<compile_context>
chip_gen: v5e
topology: v5e:2x2
jax: 0.10.0
libtpu: 0.0.40
codegen_flags: <defaults>
</compile_context>

<pallas_src>
import jax
import jax.numpy as jnp
from jax.experimental import pallas as pl
from jax.experimental.pallas import tpu as pltpu

# ---- sizes (small, consistent with the module) ---------------------------------
B = 2        # graphs in the batch
N = 16       # nodes per graph
D = 32       # GT_hidden_dim == GT_out_dim
H = 4        # n_heads
DH = D // H  # per-head dim
P = 8        # pos_enc_dim
C = 4        # n_classes
L = 3        # GT layers

BN = B * N
BNN = B * N * N
D2 = 2 * D   # fused h|p channel width
H2 = 2 * H   # fused head count

ATOM_DIMS = [119, 4, 12, 12, 10, 6, 6, 2, 2]   # OGB AtomEncoder vocab sizes
BOND_DIMS = [5, 6, 2]                           # OGB BondEncoder vocab sizes


# ---- in-kernel helpers ----------------------------------------------------------
def _layernorm(x, g, b):
    mu = jnp.mean(x, axis=-1, keepdims=True)
    var = jnp.mean((x - mu) ** 2, axis=-1, keepdims=True)
    return (x - mu) * jax.lax.rsqrt(var + 1e-5) * g + b


# ---- fused GraphiTNet forward kernel (single invocation, no grid) ----------------
def graphit_fused_kernel(h0_ref, p0_ref, e_ref, maskc_ref, hsel_ref, hexp_ref, seg_ref,
                         embp_w, Wproj_s, We_all, WO_s, WF1_s, WF2_s, vec_s, bF1_s,
                         pout_w, whp_h, whp_p, mw0, mw1, mw2, bias_ref,
                         out_ref):
    f32 = jnp.float32
    bf16 = jnp.bfloat16

    h = h0_ref[...]                       # [BN, D]   atom-embedded node features (f32)
    p0 = p0_ref[...]                      # [BN, P]   rand-walk PE (f32)
    e_b = e_ref[...]                      # [BNN, D]  bond-embedded edge features (bf16)
    mask_col = maskc_ref[...]             # [BNN, 1]  1.0 on real edges
    head_sel = hsel_ref[...]              # [2D, 2H]  0/1 per-head channel-sum selector (bf16)
    head_expand = hexp_ref[...]           # [2H, 2D]  0/1 per-head -> per-channel broadcast (bf16)
    seg = seg_ref[...]                    # [BN, BNN] 0/1 destination-node segment-sum (bf16)
    bias = bias_ref[...]                  # [8, D]    packed global biases (f32)

    inv_sqrt_dh = 1.0 / (DH ** 0.5)

    # embedding_p (rand_walk PE init)
    p = jnp.dot(p0.astype(bf16), embp_w[...], preferred_element_type=f32) + bias[0:1]

    # layer-invariant edge projections, hoisted: one matmul for all L layers -> [BNN, L*2D]
    eP_all = jnp.dot(e_b, We_all[...], preferred_element_type=f32)

    # --- GraphiT_GT_LSPE layers (static unroll over L) ---
    for l in range(L):
        # merged projection: [h|p] @ [Q|Qp|K|Kp|V|Vp]  -> [BN, 6D]
        hp = jnp.concatenate([h, p], axis=-1).astype(bf16)                 # [BN, 2D]
        proj = jnp.dot(hp, Wproj_s[l], preferred_element_type=f32)         # [BN, 6D]
        Qc = proj[:, 0:D2]                                                 # [Q_h | Q_p]
        Kc = proj[:, D2:2 * D2]                                            # [K_h | K_p]
        Vc = proj[:, 2 * D2:3 * D2]                                        # [V_h | V_p]
        E = eP_all[:, l * D2:(l + 1) * D2]                                 # [E_h | E_p]  [BNN, 2D]

        # fused GraphiT edge-modulated attention (both h- and p-attention at once):
        #   score_ij^h = exp(clamp(sum_{d in head h} K[j,d]*Q[i,d]*E[ij,d]/sqrt(dh), -5, 5))
        #   out_i^h    = (sum_j score_ij^h * V_j^h) / (sum_j score_ij^h + 1e-6)
        Qb = jnp.broadcast_to(Qc.reshape(BN, 1, D2), (BN, N, D2)).reshape(BNN, D2)       # dst i
        Kb = jnp.broadcast_to(Kc.reshape(B, 1, N, D2), (B, N, N, D2)).reshape(BNN, D2)   # src j
        Vb = jnp.broadcast_to(Vc.reshape(B, 1, N, D2), (B, N, N, D2)).reshape(BNN, D2)   # src j

        T = Qb * Kb * E                                                    # [BNN, 2D] f32
        s = jnp.dot(T.astype(bf16), head_sel,
                    preferred_element_type=f32) * inv_sqrt_dh              # [BNN, 2H]
        s = jnp.exp(jnp.clip(s, -5.0, 5.0)) * mask_col                     # real edges only
        Sf = jnp.dot(s.astype(bf16), head_expand,
                     preferred_element_type=f32)                           # [BNN, 2D]

        # segment sum over source nodes via MXU: [num | den] = seg @ [Sf*Vb | Sf]
        X = jnp.concatenate([Sf * Vb, Sf], axis=-1).astype(bf16)           # [BNN, 4D]
        Y = jnp.dot(seg, X, preferred_element_type=f32)                    # [BN, 4D]
        attn = Y[:, 0:D2] * pl.reciprocal(Y[:, D2:2 * D2] + 1e-6, approx=True)  # [BN, 2D]

        WO = WO_s[l]            # [2D, 2D] block-diag(wOh, wOp)
        vec = vec_s[l]          # [8, D]:  bOh, bOp, ln1g, ln1b, bF2, ln2g, ln2b, pad
        bF1 = bF1_s[l]          # [1, 2D]

        # O projections (fused), residual, norms, FFN (dropout == 0 by config)
        oproj = jnp.dot(attn.astype(bf16), WO, preferred_element_type=f32)   # [BN, 2D]
        h_o = h + oproj[:, 0:D] + vec[0:1]
        p = p + jnp.tanh(oproj[:, D:2 * D] + vec[1:2])
        h_o = _layernorm(h_o, vec[2:3], vec[3:4])                          # layer_norm1_h

        hf = jnp.maximum(jnp.dot(h_o.astype(bf16), WF1_s[l],
                                 preferred_element_type=f32) + bF1, 0.0)
        hf = jnp.dot(hf.astype(bf16), WF2_s[l], preferred_element_type=f32) + vec[4:5]
        h = _layernorm(h_o + hf, vec[5:6], vec[6:7])                       # layer_norm2_h

    # --- p_out, per-graph centering / L2 norm over nodes ---
    p2 = jnp.dot(p.astype(bf16), pout_w[...], preferred_element_type=f32) + bias[2:3, 0:P]  # [BN, P]
    p3 = p2.reshape(B, N, P)
    p3 = p3 - jnp.mean(p3, axis=1, keepdims=True)                          # subtract per-graph mean
    p3 = p3 * jax.lax.rsqrt(jnp.sum(p3 * p3, axis=1, keepdims=True) + 1e-6)  # per-dim L2 over nodes
    p2 = p3.reshape(BN, P)

    # --- Whp([h || p]), mean readout, MLPReadout ---
    hcat = (jnp.dot(h.astype(bf16), whp_h[...], preferred_element_type=f32)
            + jnp.dot(p2.astype(bf16), whp_p[...], preferred_element_type=f32)
            + bias[1:2])                                                   # [BN, D]
    hg = jnp.mean(hcat.reshape(B, N, D), axis=1)                           # readout 'mean' -> [B, D]
    y = jnp.maximum(jnp.dot(hg.astype(bf16), mw0[...],
                            preferred_element_type=f32) + bias[3:4, 0:D // 2], 0.0)
    y = jnp.maximum(jnp.dot(y.astype(bf16), mw1[...],
                            preferred_element_type=f32) + bias[4:5, 0:D // 4], 0.0)
    y = jnp.dot(y.astype(bf16), mw2[...], preferred_element_type=f32) + bias[5:6, 0:C]  # [B, C]
    out_ref[...] = y


# ---- parameters -----------------------------------------------------------------
def init_params(key):
    keys = iter(jax.random.split(key, 256))

    def w(shape):
        fan_in = shape[0]
        return (jax.random.normal(next(keys), shape, dtype=jnp.float32)
                / jnp.sqrt(jnp.float32(fan_in)))

    zeros = lambda s: jnp.zeros(s, jnp.float32)
    ones = lambda s: jnp.ones(s, jnp.float32)

    params = {
        "atom_tables": [w((v, D)) for v in ATOM_DIMS],      # AtomEncoder
        "bond_tables": [w((v, D)) for v in BOND_DIMS],      # BondEncoder
        "emb_p_w": w((P, D)), "emb_p_b": zeros((1, D)),     # embedding_p
        "p_out_w": w((D, P)), "p_out_b": zeros((1, P)),     # p_out
        "whp_w": w((D + P, D)), "whp_b": zeros((1, D)),     # Whp
        "mlp_w0": w((D, D // 2)), "mlp_b0": zeros((1, D // 2)),   # MLPReadout
        "mlp_w1": w((D // 2, D // 4)), "mlp_b1": zeros((1, D // 4)),
        "mlp_w2": w((D // 4, C)), "mlp_b2": zeros((1, C)),
        "layers": [],
    }
    for _ in range(L):
        params["layers"].append({
            "wQ": w((2 * D, D)), "wK": w((2 * D, D)), "wV": w((D, D)), "wE": w((D, D)),
            "wQp": w((D, D)), "wKp": w((D, D)), "wVp": w((D, D)), "wEp": w((D, D)),
            "wOh": w((D, D)), "bOh": zeros((1, D)),
            "wOp": w((D, D)), "bOp": zeros((1, D)),
            "ln1g": ones((1, D)), "ln1b": zeros((1, D)),
            "wF1": w((D, 2 * D)), "bF1": zeros((1, 2 * D)),
            "wF2": w((2 * D, D)), "bF2": zeros((1, D)),
            "ln2g": ones((1, D)), "ln2b": zeros((1, D)),
        })
    return params


def pack_params(params):
    """Merge/stack weights offline so the kernel sees lane-dense, block-structured operands:
    one [2D,6D] projection per layer, one [D,L*2D] edge projection for all layers, a
    block-diag [2D,2D] output projection, 0/1 selector/segment matrices, and one bias slab."""
    bf = lambda x: x.astype(jnp.bfloat16)
    ls = params["layers"]
    Z = jnp.zeros((D, D), jnp.float32)

    def wproj_layer(lw):
        # columns: [Q | Qp | K | Kp | V | Vp]; rows: [h channels (0:D) ; p channels (D:2D)]
        top = jnp.concatenate([lw["wQ"][:D], Z, lw["wK"][:D], Z, lw["wV"], Z], axis=1)
        bot = jnp.concatenate([lw["wQ"][D:], lw["wQp"], lw["wK"][D:], lw["wKp"], Z, lw["wVp"]], axis=1)
        return jnp.concatenate([top, bot], axis=0)                       # [2D, 6D]

    def wo_layer(lw):
        top = jnp.concatenate([lw["wOh"], Z], axis=1)
        bot = jnp.concatenate([Z, lw["wOp"]], axis=1)
        return jnp.concatenate([top, bot], axis=0)                       # [2D, 2D]

    Wproj = jnp.stack([wproj_layer(lw) for lw in ls])                    # [L, 2D, 6D]
    We_all = jnp.concatenate(
        [jnp.concatenate([lw["wE"], lw["wEp"]], axis=1) for lw in ls], axis=1)  # [D, L*2D]
    WO = jnp.stack([wo_layer(lw) for lw in ls])                          # [L, 2D, 2D]
    WF1 = jnp.stack([lw["wF1"] for lw in ls])
    WF2 = jnp.stack([lw["wF2"] for lw in ls])
    # packed per-layer vectors: rows = bOh, bOp, ln1g, ln1b, bF2, ln2g, ln2b, pad
    vec = jnp.stack([jnp.concatenate([lw["bOh"], lw["bOp"], lw["ln1g"], lw["ln1b"],
                                      lw["bF2"], lw["ln2g"], lw["ln2b"],
                                      jnp.zeros((1, D), jnp.float32)], axis=0) for lw in ls])
    bF1 = jnp.stack([lw["bF1"] for lw in ls])

    # 0/1 selector matrices (exact in bf16); 1/sqrt(dh) applied as a scalar inside the kernel
    d_idx = jnp.arange(D2)
    head_sel = ((d_idx[:, None] // DH) == jnp.arange(H2)[None, :]).astype(jnp.bfloat16)   # [2D, 2H]
    head_expand = ((jnp.arange(H2)[:, None]) == (d_idx[None, :] // DH)).astype(jnp.bfloat16)  # [2H, 2D]
    # destination-node segment-sum matrix: seg[r, c] = 1 iff edge row c has destination node r
    c_idx = jnp.arange(BNN)
    seg = ((c_idx[None, :] // N) == jnp.arange(BN)[:, None]).astype(jnp.bfloat16)         # [BN, BNN]

    def pad_row(v):
        return jnp.pad(v, ((0, 0), (0, D - v.shape[1])))
    bias_slab = jnp.concatenate([
        params["emb_p_b"], params["whp_b"], pad_row(params["p_out_b"]),
        pad_row(params["mlp_b0"]), pad_row(params["mlp_b1"]), pad_row(params["mlp_b2"]),
        jnp.zeros((2, D), jnp.float32)], axis=0)                         # [8, D]

    return dict(
        atom_tables=params["atom_tables"], bond_tables=params["bond_tables"],
        head_sel=head_sel, head_expand=head_expand, seg=seg,
        embp_w=bf(params["emb_p_w"]),
        Wproj=bf(Wproj), We_all=bf(We_all), WO=bf(WO), WF1=bf(WF1), WF2=bf(WF2),
        vec=vec, bF1=bF1,
        pout_w=bf(params["p_out_w"]),
        whp_h=bf(params["whp_w"][:D]), whp_p=bf(params["whp_w"][D:]),
        mw0=bf(params["mlp_w0"]), mw1=bf(params["mlp_w1"]), mw2=bf(params["mlp_w2"]),
        bias_slab=bias_slab,
    )


# ---- full forward ----------------------------------------------------------------
@jax.jit
def graphit_net_forward(packed, h_int, p_rw, e_int, mask):
    # AtomEncoder / BondEncoder: categorical embedding lookups (glue, stays in XLA)
    h0 = sum(packed["atom_tables"][i][h_int[..., i]] for i in range(len(ATOM_DIMS)))   # [B,N,D]
    e0 = sum(packed["bond_tables"][i][e_int[..., i]] for i in range(len(BOND_DIMS)))   # [B,N,N,D]

    h0 = h0.reshape(BN, D)
    e_bf = e0.reshape(BNN, D).astype(jnp.bfloat16)     # edge feats only feed bf16 matmuls
    p0 = p_rw.reshape(BN, P)
    mask_col = mask.reshape(BNN, 1)

    args = (h0, p0, e_bf, mask_col,
            packed["head_sel"], packed["head_expand"], packed["seg"],
            packed["embp_w"], packed["Wproj"], packed["We_all"], packed["WO"],
            packed["WF1"], packed["WF2"], packed["vec"], packed["bF1"],
            packed["pout_w"], packed["whp_h"], packed["whp_p"],
            packed["mw0"], packed["mw1"], packed["mw2"], packed["bias_slab"])

    vmem = pl.BlockSpec(memory_space=pltpu.MemorySpace.VMEM)
    logits = pl.pallas_call(
        graphit_fused_kernel,
        out_shape=jax.ShapeDtypeStruct((B, C), jnp.float32),
        in_specs=[vmem] * len(args),
        out_specs=vmem,
    )(*args)
    return logits                                                                       # [B, C]


if __name__ == "__main__":
    key = jax.random.PRNGKey(0)
    pkey, hkey, ekey, pekey = jax.random.split(key, 4)
    params = init_params(pkey)
    packed = pack_params(params)

    hk = jax.random.split(hkey, len(ATOM_DIMS))
    h_int = jnp.stack([jax.random.randint(hk[i], (B, N), 0, ATOM_DIMS[i])
                       for i in range(len(ATOM_DIMS))], axis=-1)                        # [B,N,9]
    ek = jax.random.split(ekey, len(BOND_DIMS))
    e_int = jnp.stack([jax.random.randint(ek[i], (B, N, N), 0, BOND_DIMS[i])
                       for i in range(len(BOND_DIMS))], axis=-1)                        # [B,N,N,3]
    p_rw = jax.random.normal(pekey, (B, N, P), dtype=jnp.float32)                       # rand-walk PE

    # ring adjacency per graph (every node has degree 2); mask[b,i,j] = edge j -> i
    idx = jnp.arange(N)
    ring = jnp.zeros((N, N), jnp.float32)
    ring = ring.at[idx, (idx + 1) % N].set(1.0)
    ring = ring.at[(idx + 1) % N, idx].set(1.0)
    mask = jnp.broadcast_to(ring, (B, N, N))

    logits = graphit_net_forward(packed, h_int, p_rw, e_int, mask)
    jax.block_until_ready(logits)
    assert logits.shape == (B, C)
    assert bool(jnp.all(jnp.isfinite(logits)))
    print("KERNEL_OK")
</pallas_src>

<mosaic_0001>
module attributes {stable_mosaic.version = 11 : i64} {
  func.func @graphit_fused_kernel(%arg0: memref<32x32xf32, #tpu.memory_space<vmem>>, %arg1: memref<32x8xf32, #tpu.memory_space<vmem>>, %arg2: memref<512x32xbf16, #tpu.memory_space<vmem>>, %arg3: memref<512x1xf32, #tpu.memory_space<vmem>>, %arg4: memref<64x8xbf16, #tpu.memory_space<vmem>>, %arg5: memref<8x64xbf16, #tpu.memory_space<vmem>>, %arg6: memref<32x512xbf16, #tpu.memory_space<vmem>>, %arg7: memref<8x32xbf16, #tpu.memory_space<vmem>>, %arg8: memref<3x64x192xbf16, #tpu.memory_space<vmem>>, %arg9: memref<32x192xbf16, #tpu.memory_space<vmem>>, %arg10: memref<3x64x64xbf16, #tpu.memory_space<vmem>>, %arg11: memref<3x32x64xbf16, #tpu.memory_space<vmem>>, %arg12: memref<3x64x32xbf16, #tpu.memory_space<vmem>>, %arg13: memref<3x8x32xf32, #tpu.memory_space<vmem>>, %arg14: memref<3x1x64xf32, #tpu.memory_space<vmem>>, %arg15: memref<32x8xbf16, #tpu.memory_space<vmem>>, %arg16: memref<32x32xbf16, #tpu.memory_space<vmem>>, %arg17: memref<8x32xbf16, #tpu.memory_space<vmem>>, %arg18: memref<32x16xbf16, #tpu.memory_space<vmem>>, %arg19: memref<16x8xbf16, #tpu.memory_space<vmem>>, %arg20: memref<8x4xbf16, #tpu.memory_space<vmem>>, %arg21: memref<8x32xf32, #tpu.memory_space<vmem>>, %arg22: memref<2x4xf32, #tpu.memory_space<vmem>>) attributes {dimension_semantics = [], scalar_prefetch = 0 : i64, scratch_operands = 0 : i64, tpu.core_type = #tpu.core_type<tc>} {
    %c0 = arith.constant 0 : index
    %c0_0 = arith.constant 0 : index
    %0 = vector.load %arg0[%c0, %c0_0] : memref<32x32xf32, #tpu.memory_space<vmem>>, vector<32x32xf32>
    %c0_1 = arith.constant 0 : index
    %c0_2 = arith.constant 0 : index
    %1 = vector.load %arg1[%c0_1, %c0_2] : memref<32x8xf32, #tpu.memory_space<vmem>>, vector<32x8xf32>
    %c0_3 = arith.constant 0 : index
    %c0_4 = arith.constant 0 : index
    %2 = vector.load %arg2[%c0_3, %c0_4] : memref<512x32xbf16, #tpu.memory_space<vmem>>, vector<512x32xbf16>
    %c0_5 = arith.constant 0 : index
    %c0_6 = arith.constant 0 : index
    %3 = vector.load %arg3[%c0_5, %c0_6] : memref<512x1xf32, #tpu.memory_space<vmem>>, vector<512x1xf32>
    %c0_7 = arith.constant 0 : index
    %c0_8 = arith.constant 0 : index
    %4 = vector.load %arg4[%c0_7, %c0_8] : memref<64x8xbf16, #tpu.memory_space<vmem>>, vector<64x8xbf16>
    %c0_9 = arith.constant 0 : index
    %c0_10 = arith.constant 0 : index
    %5 = vector.load %arg5[%c0_9, %c0_10] : memref<8x64xbf16, #tpu.memory_space<vmem>>, vector<8x64xbf16>
    %c0_11 = arith.constant 0 : index
    %c0_12 = arith.constant 0 : index
    %6 = vector.load %arg6[%c0_11, %c0_12] : memref<32x512xbf16, #tpu.memory_space<vmem>>, vector<32x512xbf16>
    %c0_13 = arith.constant 0 : index
    %c0_14 = arith.constant 0 : index
    %7 = vector.load %arg21[%c0_13, %c0_14] : memref<8x32xf32, #tpu.memory_space<vmem>>, vector<8x32xf32>
    %8 = arith.truncf %1 : vector<32x8xf32> to vector<32x8xbf16>
    %c0_15 = arith.constant 0 : index
    %c0_16 = arith.constant 0 : index
    %9 = vector.load %arg7[%c0_15, %c0_16] : memref<8x32xbf16, #tpu.memory_space<vmem>>, vector<8x32xbf16>
    %cst = arith.constant dense<0.000000e+00> : vector<32x32xf32>
    %10 = tpu.matmul %8, %9, %cst {dimension_numbers = #tpu.dot_dimension_numbers<[1], [0], [0], [1], [0, 0, 1, 1], [], []>} : vector<32x8xbf16>, vector<8x32xbf16>, vector<32x32xf32> -> vector<32x32xf32>
    %11 = vector.extract_strided_slice %7 {offsets = [0, 0], sizes = [1, 32], strides = [1, 1]} : vector<8x32xf32> to vector<1x32xf32>
    %12 = vector.broadcast %11 : vector<1x32xf32> to vector<32x32xf32>
    %13 = arith.addf %10, %12 : vector<32x32xf32>
    %c0_17 = arith.constant 0 : index
    %c0_18 = arith.constant 0 : index
    %14 = vector.load %arg9[%c0_17, %c0_18] : memref<32x192xbf16, #tpu.memory_space<vmem>>, vector<32x192xbf16>
    %cst_19 = arith.constant dense<0.000000e+00> : vector<512x192xf32>
    %15 = tpu.matmul %2, %14, %cst_19 {dimension_numbers = #tpu.dot_dimension_numbers<[1], [0], [0], [1], [0, 0, 1, 1], [], []>} : vector<512x32xbf16>, vector<32x192xbf16>, vector<512x192xf32> -> vector<512x192xf32>
    %16 = tpu.concatenate %0, %13 in 1 : vector<32x32xf32>, vector<32x32xf32> -> vector<32x64xf32>
    %17 = arith.truncf %16 : vector<32x64xf32> to vector<32x64xbf16>
    %c0_20 = arith.constant 0 : index
    %c0_21 = arith.constant 0 : index
    %c0_22 = arith.constant 0 : index
    %18 = vector.load %arg8[%c0_20, %c0_21, %c0_22] : memref<3x64x192xbf16, #tpu.memory_space<vmem>>, vector<1x64x192xbf16>
    %19 = vector.shape_cast %18 : vector<1x64x192xbf16> to vector<64x192xbf16>
    %cst_23 = arith.constant dense<0.000000e+00> : vector<32x192xf32>
    %20 = tpu.matmul %17, %19, %cst_23 {dimension_numbers = #tpu.dot_dimension_numbers<[1], [0], [0], [1], [0, 0, 1, 1], [], []>} : vector<32x64xbf16>, vector<64x192xbf16>, vector<32x192xf32> -> vector<32x192xf32>
    %21 = vector.extract_strided_slice %20 {offsets = [0, 0], sizes = [32, 64], strides = [1, 1]} : vector<32x192xf32> to vector<32x64xf32>
    %22 = vector.extract_strided_slice %20 {offsets = [0, 64], sizes = [32, 64], strides = [1, 1]} : vector<32x192xf32> to vector<32x64xf32>
    %23 = vector.extract_strided_slice %20 {offsets = [0, 128], sizes = [32, 64], strides = [1, 1]} : vector<32x192xf32> to vector<32x64xf32>
    %24 = vector.extract_strided_slice %15 {offsets = [0, 0], sizes = [512, 64], strides = [1, 1]} : vector<512x192xf32> to vector<512x64xf32>
    %25 = vector.shape_cast %21 : vector<32x64xf32> to vector<32x1x64xf32>
    %26 = vector.shape_cast %25 : vector<32x1x64xf32> to vector<32x1x64xf32>
    %27 = vector.broadcast %26 : vector<32x1x64xf32> to vector<32x16x64xf32>
    %28 = vector.shape_cast %27 : vector<32x16x64xf32> to vector<512x64xf32>
    %29 = vector.shape_cast %22 : vector<32x64xf32> to vector<2x1x16x64xf32>
    %30 = vector.shape_cast %29 : vector<2x1x16x64xf32> to vector<2x1x16x64xf32>
    %31 = vector.broadcast %30 : vector<2x1x16x64xf32> to vector<2x16x16x64xf32>
    %32 = vector.shape_cast %31 : vector<2x16x16x64xf32> to vector<512x64xf32>
    %33 = vector.shape_cast %23 : vector<32x64xf32> to vector<2x1x16x64xf32>
    %34 = vector.shape_cast %33 : vector<2x1x16x64xf32> to vector<2x1x16x64xf32>
    %35 = vector.broadcast %34 : vector<2x1x16x64xf32> to vector<2x16x16x64xf32>
    %36 = vector.shape_cast %35 : vector<2x16x16x64xf32> to vector<512x64xf32>
    %37 = arith.mulf %28, %32 : vector<512x64xf32>
    %38 = arith.mulf %37, %24 : vector<512x64xf32>
    %39 = arith.truncf %38 : vector<512x64xf32> to vector<512x64xbf16>
    %cst_24 = arith.constant dense<0.000000e+00> : vector<512x8xf32>
    %40 = tpu.matmul %39, %4, %cst_24 {dimension_numbers = #tpu.dot_dimension_numbers<[1], [0], [0], [1], [0, 0, 1, 1], [], []>} : vector<512x64xbf16>, vector<64x8xbf16>, vector<512x8xf32> -> vector<512x8xf32>
    %cst_25 = arith.constant 0.353553385 : f32
    %41 = vector.broadcast %cst_25 : f32 to vector<512x8xf32>
    %42 = arith.mulf %40, %41 : vector<512x8xf32>
    %cst_26 = arith.constant -5.000000e+00 : f32
    %cst_27 = arith.constant 5.000000e+00 : f32
    %43 = vector.broadcast %cst_26 : f32 to vector<512x8xf32>
    %44 = arith.maximumf %43, %42 : vector<512x8xf32>
    %45 = vector.broadcast %cst_27 : f32 to vector<512x8xf32>
    %46 = arith.minimumf %45, %44 : vector<512x8xf32>
    %47 = math.exp %46 : vector<512x8xf32>
    %48 = vector.broadcast %3 : vector<512x1xf32> to vector<512x8xf32>
    %49 = arith.mulf %47, %48 : vector<512x8xf32>
    %50 = arith.truncf %49 : vector<512x8xf32> to vector<512x8xbf16>
    %cst_28 = arith.constant dense<0.000000e+00> : vector<512x64xf32>
    %51 = tpu.matmul %50, %5, %cst_28 {dimension_numbers = #tpu.dot_dimension_numbers<[1], [0], [0], [1], [0, 0, 1, 1], [], []>} : vector<512x8xbf16>, vector<8x64xbf16>, vector<512x64xf32> -> vector<512x64xf32>
    %52 = arith.mulf %51, %36 : vector<512x64xf32>
    %53 = tpu.concatenate %52, %51 in 1 : vector<512x64xf32>, vector<512x64xf32> -> vector<512x128xf32>
    %54 = arith.truncf %53 : vector<512x128xf32> to vector<512x128xbf16>
    %cst_29 = arith.constant dense<0.000000e+00> : vector<32x128xf32>
    %55 = tpu.matmul %6, %54, %cst_29 {dimension_numbers = #tpu.dot_dimension_numbers<[1], [0], [0], [1], [0, 0, 1, 1], [], []>} : vector<32x512xbf16>, vector<512x128xbf16>, vector<32x128xf32> -> vector<32x128xf32>
    %56 = vector.extract_strided_slice %55 {offsets = [0, 0], sizes = [32, 64], strides = [1, 1]} : vector<32x128xf32> to vector<32x64xf32>
    %57 = vector.extract_strided_slice %55 {offsets = [0, 64], sizes = [32, 64], strides = [1, 1]} : vector<32x128xf32> to vector<32x64xf32>
    %cst_30 = arith.constant 9.99999997E-7 : f32
    %58 = vector.broadcast %cst_30 : f32 to vector<32x64xf32>
    %59 = arith.addf %57, %58 : vector<32x64xf32>
    %60 = tpu.reciprocal %59 {approx = true} : vector<32x64xf32> -> vector<32x64xf32>
    %61 = arith.mulf %56, %60 : vector<32x64xf32>
    %c0_31 = arith.constant 0 : index
    %c0_32 = arith.constant 0 : index
    %c0_33 = arith.constant 0 : index
    %62 = vector.load %arg10[%c0_31, %c0_32, %c0_33] : memref<3x64x64xbf16, #tpu.memory_space<vmem>>, vector<1x64x64xbf16>
    %63 = vector.shape_cast %62 : vector<1x64x64xbf16> to vector<64x64xbf16>
    %c0_34 = arith.constant 0 : index
    %c0_35 = arith.constant 0 : index
    %c0_36 = arith.constant 0 : index
    %64 = vector.load %arg13[%c0_34, %c0_35, %c0_36] : memref<3x8x32xf32, #tpu.memory_space<vmem>>, vector<1x8x32xf32>
    %65 = vector.shape_cast %64 : vector<1x8x32xf32> to vector<8x32xf32>
    %c0_37 = arith.constant 0 : index
    %c0_38 = arith.constant 0 : index
    %c0_39 = arith.constant 0 : index
    %66 = vector.load %arg14[%c0_37, %c0_38, %c0_39] : memref<3x1x64xf32, #tpu.memory_space<vmem>>, vector<1x1x64xf32>
    %67 = vector.shape_cast %66 : vector<1x1x64xf32> to vector<1x64xf32>
    %68 = arith.truncf %61 : vector<32x64xf32> to vector<32x64xbf16>
    %cst_40 = arith.constant dense<0.000000e+00> : vector<32x64xf32>
    %69 = tpu.matmul %68, %63, %cst_40 {dimension_numbers = #tpu.dot_dimension_numbers<[1], [0], [0], [1], [0, 0, 1, 1], [], []>} : vector<32x64xbf16>, vector<64x64xbf16>, vector<32x64xf32> -> vector<32x64xf32>
    %70 = vector.extract_strided_slice %69 {offsets = [0, 0], sizes = [32, 32], strides = [1, 1]} : vector<32x64xf32> to vector<32x32xf32>
    %71 = arith.addf %0, %70 : vector<32x32xf32>
    %72 = vector.extract_strided_slice %65 {offsets = [0, 0], sizes = [1, 32], strides = [1, 1]} : vector<8x32xf32> to vector<1x32xf32>
    %73 = vector.broadcast %72 : vector<1x32xf32> to vector<32x32xf32>
    %74 = arith.addf %71, %73 : vector<32x32xf32>
    %75 = vector.extract_strided_slice %69 {offsets = [0, 32], sizes = [32, 32], strides = [1, 1]} : vector<32x64xf32> to vector<32x32xf32>
    %76 = vector.extract_strided_slice %65 {offsets = [1, 0], sizes = [1, 32], strides = [1, 1]} : vector<8x32xf32> to vector<1x32xf32>
    %77 = vector.broadcast %76 : vector<1x32xf32> to vector<32x32xf32>
    %78 = arith.addf %75, %77 : vector<32x32xf32>
    %79 = math.tanh %78 : vector<32x32xf32>
    %80 = arith.addf %13, %79 : vector<32x32xf32>
    %81 = vector.extract_strided_slice %65 {offsets = [2, 0], sizes = [1, 32], strides = [1, 1]} : vector<8x32xf32> to vector<1x32xf32>
    %82 = vector.extract_strided_slice %65 {offsets = [3, 0], sizes = [1, 32], strides = [1, 1]} : vector<8x32xf32> to vector<1x32xf32>
    %cst_41 = arith.constant dense<0.000000e+00> : vector<32xf32>
    %83 = vector.multi_reduction <add>, %74, %cst_41 [1] : vector<32x32xf32> to vector<32xf32>
    %84 = vector.shape_cast %83 : vector<32xf32> to vector<32x1xf32>
    %cst_42 = arith.constant 3.200000e+01 : f32
    %85 = vector.broadcast %cst_42 : f32 to vector<32x1xf32>
    %86 = arith.divf %84, %85 : vector<32x1xf32>
    %87 = vector.broadcast %86 : vector<32x1xf32> to vector<32x32xf32>
    %88 = arith.subf %74, %87 : vector<32x32xf32>
    %89 = arith.mulf %88, %88 : vector<32x32xf32>
    %cst_43 = arith.constant dense<0.000000e+00> : vector<32xf32>
    %90 = vector.multi_reduction <add>, %89, %cst_43 [1] : vector<32x32xf32> to vector<32xf32>
    %91 = vector.shape_cast %90 : vector<32xf32> to vector<32x1xf32>
    %cst_44 = arith.constant 3.200000e+01 : f32
    %92 = vector.broadcast %cst_44 : f32 to vector<32x1xf32>
    %93 = arith.divf %91, %92 : vector<32x1xf32>
    %94 = vector.broadcast %86 : vector<32x1xf32> to vector<32x32xf32>
    %95 = arith.subf %74, %94 : vector<32x32xf32>
    %cst_45 = arith.constant 9.99999974E-6 : f32
    %96 = vector.broadcast %cst_45 : f32 to vector<32x1xf32>
    %97 = arith.addf %93, %96 : vector<32x1xf32>
    %98 = math.rsqrt %97 : vector<32x1xf32>
    %99 = vector.broadcast %98 : vector<32x1xf32> to vector<32x32xf32>
    %100 = arith.mulf %95, %99 : vector<32x32xf32>
    %101 = vector.broadcast %81 : vector<1x32xf32> to vector<32x32xf32>
    %102 = arith.mulf %100, %101 : vector<32x32xf32>
    %103 = vector.broadcast %82 : vector<1x32xf32> to vector<32x32xf32>
    %104 = arith.addf %102, %103 : vector<32x32xf32>
    %105 = arith.truncf %104 : vector<32x32xf32> to vector<32x32xbf16>
    %c0_46 = arith.constant 0 : index
    %c0_47 = arith.constant 0 : index
    %c0_48 = arith.constant 0 : index
    %106 = vector.load %arg11[%c0_46, %c0_47, %c0_48] : memref<3x32x64xbf16, #tpu.memory_space<vmem>>, vector<1x32x64xbf16>
    %107 = vector.shape_cast %106 : vector<1x32x64xbf16> to vector<32x64xbf16>
    %cst_49 = arith.constant dense<0.000000e+00> : vector<32x64xf32>
    %108 = tpu.matmul %105, %107, %cst_49 {dimension_numbers = #tpu.dot_dimension_numbers<[1], [0], [0], [1], [0, 0, 1, 1], [], []>} : vector<32x32xbf16>, vector<32x64xbf16>, vector<32x64xf32> -> vector<32x64xf32>
    %109 = vector.broadcast %67 : vector<1x64xf32> to vector<32x64xf32>
    %110 = arith.addf %108, %109 : vector<32x64xf32>
    %cst_50 = arith.constant 0.000000e+00 : f32
    %111 = vector.broadcast %cst_50 : f32 to vector<32x64xf32>
    %112 = arith.maximumf %110, %111 : vector<32x64xf32>
    %113 = arith.truncf %112 : vector<32x64xf32> to vector<32x64xbf16>
    %c0_51 = arith.constant 0 : index
    %c0_52 = arith.constant 0 : index
    %c0_53 = arith.constant 0 : index
    %114 = vector.load %arg12[%c0_51, %c0_52, %c0_53] : memref<3x64x32xbf16, #tpu.memory_space<vmem>>, vector<1x64x32xbf16>
    %115 = vector.shape_cast %114 : vector<1x64x32xbf16> to vector<64x32xbf16>
    %cst_54 = arith.constant dense<0.000000e+00> : vector<32x32xf32>
    %116 = tpu.matmul %113, %115, %cst_54 {dimension_numbers = #tpu.dot_dimension_numbers<[1], [0], [0], [1], [0, 0, 1, 1], [], []>} : vector<32x64xbf16>, vector<64x32xbf16>, vector<32x32xf32> -> vector<32x32xf32>
    %117 = vector.extract_strided_slice %65 {offsets = [4, 0], sizes = [1, 32], strides = [1, 1]} : vector<8x32xf32> to vector<1x32xf32>
    %118 = vector.broadcast %117 : vector<1x32xf32> to vector<32x32xf32>
    %119 = arith.addf %116, %118 : vector<32x32xf32>
    %120 = arith.addf %104, %119 : vector<32x32xf32>
    %121 = vector.extract_strided_slice %65 {offsets = [5, 0], sizes = [1, 32], strides = [1, 1]} : vector<8x32xf32> to vector<1x32xf32>
    %122 = vector.extract_strided_slice %65 {offsets = [6, 0], sizes = [1, 32], strides = [1, 1]} : vector<8x32xf32> to vector<1x32xf32>
    %cst_55 = arith.constant dense<0.000000e+00> : vector<32xf32>
    %123 = vector.multi_reduction <add>, %120, %cst_55 [1] : vector<32x32xf32> to vector<32xf32>
    %124 = vector.shape_cast %123 : vector<32xf32> to vector<32x1xf32>
    %cst_56 = arith.constant 3.200000e+01 : f32
    %125 = vector.broadcast %cst_56 : f32 to vector<32x1xf32>
    %126 = arith.divf %124, %125 : vector<32x1xf32>
    %127 = vector.broadcast %126 : vector<32x1xf32> to vector<32x32xf32>
    %128 = arith.subf %120, %127 : vector<32x32xf32>
    %129 = arith.mulf %128, %128 : vector<32x32xf32>
    %cst_57 = arith.constant dense<0.000000e+00> : vector<32xf32>
    %130 = vector.multi_reduction <add>, %129, %cst_57 [1] : vector<32x32xf32> to vector<32xf32>
    %131 = vector.shape_cast %130 : vector<32xf32> to vector<32x1xf32>
    %cst_58 = arith.constant 3.200000e+01 : f32
    %132 = vector.broadcast %cst_58 : f32 to vector<32x1xf32>
    %133 = arith.divf %131, %132 : vector<32x1xf32>
    %134 = vector.broadcast %126 : vector<32x1xf32> to vector<32x32xf32>
    %135 = arith.subf %120, %134 : vector<32x32xf32>
    %cst_59 = arith.constant 9.99999974E-6 : f32
    %136 = vector.broadcast %cst_59 : f32 to vector<32x1xf32>
    %137 = arith.addf %133, %136 : vector<32x1xf32>
    %138 = math.rsqrt %137 : vector<32x1xf32>
    %139 = vector.broadcast %138 : vector<32x1xf32> to vector<32x32xf32>
    %140 = arith.mulf %135, %139 : vector<32x32xf32>
    %141 = vector.broadcast %121 : vector<1x32xf32> to vector<32x32xf32>
    %142 = arith.mulf %140, %141 : vector<32x32xf32>
    %143 = vector.broadcast %122 : vector<1x32xf32> to vector<32x32xf32>
    %144 = arith.addf %142, %143 : vector<32x32xf32>
    %145 = tpu.concatenate %144, %80 in 1 : vector<32x32xf32>, vector<32x32xf32> -> vector<32x64xf32>
    %146 = arith.truncf %145 : vector<32x64xf32> to vector<32x64xbf16>
    %c1 = arith.constant 1 : index
    %c0_60 = arith.constant 0 : index
    %c0_61 = arith.constant 0 : index
    %147 = vector.load %arg8[%c1, %c0_60, %c0_61] : memref<3x64x192xbf16, #tpu.memory_space<vmem>>, vector<1x64x192xbf16>
    %148 = vector.shape_cast %147 : vector<1x64x192xbf16> to vector<64x192xbf16>
    %cst_62 = arith.constant dense<0.000000e+00> : vector<32x192xf32>
    %149 = tpu.matmul %146, %148, %cst_62 {dimension_numbers = #tpu.dot_dimension_numbers<[1], [0], [0], [1], [0, 0, 1, 1], [], []>} : vector<32x64xbf16>, vector<64x192xbf16>, vector<32x192xf32> -> vector<32x192xf32>
    %150 = vector.extract_strided_slice %149 {offsets = [0, 0], sizes = [32, 64], strides = [1, 1]} : vector<32x192xf32> to vector<32x64xf32>
    %151 = vector.extract_strided_slice %149 {offsets = [0, 64], sizes = [32, 64], strides = [1, 1]} : vector<32x192xf32> to vector<32x64xf32>
    %152 = vector.extract_strided_slice %149 {offsets = [0, 128], sizes = [32, 64], strides = [1, 1]} : vector<32x192xf32> to vector<32x64xf32>
    %153 = vector.extract_strided_slice %15 {offsets = [0, 64], sizes = [512, 64], strides = [1, 1]} : vector<512x192xf32> to vector<512x64xf32>
    %154 = vector.shape_cast %150 : vector<32x64xf32> to vector<32x1x64xf32>
    %155 = vector.shape_cast %154 : vector<32x1x64xf32> to vector<32x1x64xf32>
    %156 = vector.broadcast %155 : vector<32x1x64xf32> to vector<32x16x64xf32>
    %157 = vector.shape_cast %156 : vector<32x16x64xf32> to vector<512x64xf32>
    %158 = vector.shape_cast %151 : vector<32x64xf32> to vector<2x1x16x64xf32>
    %159 = vector.shape_cast %158 : vector<2x1x16x64xf32> to vector<2x1x16x64xf32>
    %160 = vector.broadcast %159 : vector<2x1x16x64xf32> to vector<2x16x16x64xf32>
    %161 = vector.shape_cast %160 : vector<2x16x16x64xf32> to vector<512x64xf32>
    %162 = vector.shape_cast %152 : vector<32x64xf32> to vector<2x1x16x64xf32>
    %163 = vector.shape_cast %162 : vector<2x1x16x64xf32> to vector<2x1x16x64xf32>
    %164 = vector.broadcast %163 : vector<2x1x16x64xf32> to vector<2x16x16x64xf32>
    %165 = vector.shape_cast %164 : vector<2x16x16x64xf32> to vector<512x64xf32>
    %166 = arith.mulf %157, %161 : vector<512x64xf32>
    %167 = arith.mulf %166, %153 : vector<512x64xf32>
    %168 = arith.truncf %167 : vector<512x64xf32> to vector<512x64xbf16>
    %cst_63 = arith.constant dense<0.000000e+00> : vector<512x8xf32>
    %169 = tpu.matmul %168, %4, %cst_63 {dimension_numbers = #tpu.dot_dimension_numbers<[1], [0], [0], [1], [0, 0, 1, 1], [], []>} : vector<512x64xbf16>, vector<64x8xbf16>, vector<512x8xf32> -> vector<512x8xf32>
    %cst_64 = arith.constant 0.353553385 : f32
    %170 = vector.broadcast %cst_64 : f32 to vector<512x8xf32>
    %171 = arith.mulf %169, %170 : vector<512x8xf32>
    %cst_65 = arith.constant -5.000000e+00 : f32
    %cst_66 = arith.constant 5.000000e+00 : f32
    %172 = vector.broadcast %cst_65 : f32 to vector<512x8xf32>
    %173 = arith.maximumf %172, %171 : vector<512x8xf32>
    %174 = vector.broadcast %cst_66 : f32 to vector<512x8xf32>
    %175 = arith.minimumf %174, %173 : vector<512x8xf32>
    %176 = math.exp %175 : vector<512x8xf32>
    %177 = vector.broadcast %3 : vector<512x1xf32> to vector<512x8xf32>
    %178 = arith.mulf %176, %177 : vector<512x8xf32>
    %179 = arith.truncf %178 : vector<512x8xf32> to vector<512x8xbf16>
    %cst_67 = arith.constant dense<0.000000e+00> : vector<512x64xf32>
    %180 = tpu.matmul %179, %5, %cst_67 {dimension_numbers = #tpu.dot_dimension_numbers<[1], [0], [0], [1], [0, 0, 1, 1], [], []>} : vector<512x8xbf16>, vector<8x64xbf16>, vector<512x64xf32> -> vector<512x64xf32>
    %181 = arith.mulf %180, %165 : vector<512x64xf32>
    %182 = tpu.concatenate %181, %180 in 1 : vector<512x64xf32>, vector<512x64xf32> -> vector<512x128xf32>
    %183 = arith.truncf %182 : vector<512x128xf32> to vector<512x128xbf16>
    %cst_68 = arith.constant dense<0.000000e+00> : vector<32x128xf32>
    %184 = tpu.matmul %6, %183, %cst_68 {dimension_numbers = #tpu.dot_dimension_numbers<[1], [0], [0], [1], [0, 0, 1, 1], [], []>} : vector<32x512xbf16>, vector<512x128xbf16>, vector<32x128xf32> -> vector<32x128xf32>
    %185 = vector.extract_strided_slice %184 {offsets = [0, 0], sizes = [32, 64], strides = [1, 1]} : vector<32x128xf32> to vector<32x64xf32>
    %186 = vector.extract_strided_slice %184 {offsets = [0, 64], sizes = [32, 64], strides = [1, 1]} : vector<32x128xf32> to vector<32x64xf32>
    %cst_69 = arith.constant 9.99999997E-7 : f32
    %187 = vector.broadcast %cst_69 : f32 to vector<32x64xf32>
    %188 = arith.addf %186, %187 : vector<32x64xf32>
    %189 = tpu.reciprocal %188 {approx = true} : vector<32x64xf32> -> vector<32x64xf32>
    %190 = arith.mulf %185, %189 : vector<32x64xf32>
    %c1_70 = arith.constant 1 : index
    %c0_71 = arith.constant 0 : index
    %c0_72 = arith.constant 0 : index
    %191 = vector.load %arg10[%c1_70, %c0_71, %c0_72] : memref<3x64x64xbf16, #tpu.memory_space<vmem>>, vector<1x64x64xbf16>
    %192 = vector.shape_cast %191 : vector<1x64x64xbf16> to vector<64x64xbf16>
    %c1_73 = arith.constant 1 : index
    %c0_74 = arith.constant 0 : index
    %c0_75 = arith.constant 0 : index
    %193 = vector.load %arg13[%c1_73, %c0_74, %c0_75] : memref<3x8x32xf32, #tpu.memory_space<vmem>>, vector<1x8x32xf32>
    %194 = vector.shape_cast %193 : vector<1x8x32xf32> to vector<8x32xf32>
    %c1_76 = arith.constant 1 : index
    %c0_77 = arith.constant 0 : index
    %c0_78 = arith.constant 0 : index
    %195 = vector.load %arg14[%c1_76, %c0_77, %c0_78] : memref<3x1x64xf32, #tpu.memory_space<vmem>>, vector<1x1x64xf32>
    %196 = vector.shape_cast %195 : vector<1x1x64xf32> to vector<1x64xf32>
    %197 = arith.truncf %190 : vector<32x64xf32> to vector<32x64xbf16>
    %cst_79 = arith.constant dense<0.000000e+00> : vector<32x64xf32>
    %198 = tpu.matmul %197, %192, %cst_79 {dimension_numbers = #tpu.dot_dimension_numbers<[1], [0], [0], [1], [0, 0, 1, 1], [], []>} : vector<32x64xbf16>, vector<64x64xbf16>, vector<32x64xf32> -> vector<32x64xf32>
    %199 = vector.extract_strided_slice %198 {offsets = [0, 0], sizes = [32, 32], strides = [1, 1]} : vector<32x64xf32> to vector<32x32xf32>
    %200 = arith.addf %144, %199 : vector<32x32xf32>
    %201 = vector.extract_strided_slice %194 {offsets = [0, 0], sizes = [1, 32], strides = [1, 1]} : vector<8x32xf32> to vector<1x32xf32>
    %202 = vector.broadcast %201 : vector<1x32xf32> to vector<32x32xf32>
    %203 = arith.addf %200, %202 : vector<32x32xf32>
    %204 = vector.extract_strided_slice %198 {offsets = [0, 32], sizes = [32, 32], strides = [1, 1]} : vector<32x64xf32> to vector<32x32xf32>
    %205 = vector.extract_strided_slice %194 {offsets = [1, 0], sizes = [1, 32], strides = [1, 1]} : vector<8x32xf32> to vector<1x32xf32>
    %206 = vector.broadcast %205 : vector<1x32xf32> to vector<32x32xf32>
    %207 = arith.addf %204, %206 : vector<32x32xf32>
    %208 = math.tanh %207 : vector<32x32xf32>
    %209 = arith.addf %80, %208 : vector<32x32xf32>
    %210 = vector.extract_strided_slice %194 {offsets = [2, 0], sizes = [1, 32], strides = [1, 1]} : vector<8x32xf32> to vector<1x32xf32>
    %211 = vector.extract_strided_slice %194 {offsets = [3, 0], sizes = [1, 32], strides = [1, 1]} : vector<8x32xf32> to vector<1x32xf32>
    %cst_80 = arith.constant dense<0.000000e+00> : vector<32xf32>
    %212 = vector.multi_reduction <add>, %203, %cst_80 [1] : vector<32x32xf32> to vector<32xf32>
    %213 = vector.shape_cast %212 : vector<32xf32> to vector<32x1xf32>
    %cst_81 = arith.constant 3.200000e+01 : f32
    %214 = vector.broadcast %cst_81 : f32 to vector<32x1xf32>
    %215 = arith.divf %213, %214 : vector<32x1xf32>
    %216 = vector.broadcast %215 : vector<32x1xf32> to vector<32x32xf32>
    %217 = arith.subf %203, %216 : vector<32x32xf32>
    %218 = arith.mulf %217, %217 : vector<32x32xf32>
    %cst_82 = arith.constant dense<0.000000e+00> : vector<32xf32>
    %219 = vector.multi_reduction <add>, %218, %cst_82 [1] : vector<32x32xf32> to vector<32xf32>
    %220 = vector.shape_cast %219 : vector<32xf32> to vector<32x1xf32>
    %cst_83 = arith.constant 3.200000e+01 : f32
    %221 = vector.broadcast %cst_83 : f32 to vector<32x1xf32>
    %222 = arith.divf %220, %221 : vector<32x1xf32>
    %223 = vector.broadcast %215 : vector<32x1xf32> to vector<32x32xf32>
    %224 = arith.subf %203, %223 : vector<32x32xf32>
    %cst_84 = arith.constant 9.99999974E-6 : f32
    %225 = vector.broadcast %cst_84 : f32 to vector<32x1xf32>
    %226 = arith.addf %222, %225 : vector<32x1xf32>
    %227 = math.rsqrt %226 : vector<32x1xf32>
    %228 = vector.broadcast %227 : vector<32x1xf32> to vector<32x32xf32>
    %229 = arith.mulf %224, %228 : vector<32x32xf32>
    %230 = vector.broadcast %210 : vector<1x32xf32> to vector<32x32xf32>
    %231 = arith.mulf %229, %230 : vector<32x32xf32>
    %232 = vector.broadcast %211 : vector<1x32xf32> to vector<32x32xf32>
    %233 = arith.addf %231, %232 : vector<32x32xf32>
    %234 = arith.truncf %233 : vector<32x32xf32> to vector<32x32xbf16>
    %c1_85 = arith.constant 1 : index
    %c0_86 = arith.constant 0 : index
    %c0_87 = arith.constant 0 : index
    %235 = vector.load %arg11[%c1_85, %c0_86, %c0_87] : memref<3x32x64xbf16, #tpu.memory_space<vmem>>, vector<1x32x64xbf16>
    %236 = vector.shape_cast %235 : vector<1x32x64xbf16> to vector<32x64xbf16>
    %cst_88 = arith.constant dense<0.000000e+00> : vector<32x64xf32>
    %237 = tpu.matmul %234, %236, %cst_88 {dimension_numbers = #tpu.dot_dimension_numbers<[1], [0], [0], [1], [0, 0, 1, 1], [], []>} : vector<32x32xbf16>, vector<32x64xbf16>, vector<32x64xf32> -> vector<32x64xf32>
    %238 = vector.broadcast %196 : vector<1x64xf32> to vector<32x64xf32>
    %239 = arith.addf %237, %238 : vector<32x64xf32>
    %cst_89 = arith.constant 0.000000e+00 : f32
    %240 = vector.broadcast %cst_89 : f32 to vector<32x64xf32>
    %241 = arith.maximumf %239, %240 : vector<32x64xf32>
    %242 = arith.truncf %241 : vector<32x64xf32> to vector<32x64xbf16>
    %c1_90 = arith.constant 1 : index
    %c0_91 = arith.constant 0 : index
    %c0_92 = arith.constant 0 : index
    %243 = vector.load %arg12[%c1_90, %c0_91, %c0_92] : memref<3x64x32xbf16, #tpu.memory_space<vmem>>, vector<1x64x32xbf16>
    %244 = vector.shape_cast %243 : vector<1x64x32xbf16> to vector<64x32xbf16>
    %cst_93 = arith.constant dense<0.000000e+00> : vector<32x32xf32>
    %245 = tpu.matmul %242, %244, %cst_93 {dimension_numbers = #tpu.dot_dimension_numbers<[1], [0], [0], [1], [0, 0, 1, 1], [], []>} : vector<32x64xbf16>, vector<64x32xbf16>, vector<32x32xf32> -> vector<32x32xf32>
    %246 = vector.extract_strided_slice %194 {offsets = [4, 0], sizes = [1, 32], strides = [1, 1]} : vector<8x32xf32> to vector<1x32xf32>
    %247 = vector.broadcast %246 : vector<1x32xf32> to vector<32x32xf32>
    %248 = arith.addf %245, %247 : vector<32x32xf32>
    %249 = arith.addf %233, %248 : vector<32x32xf32>
    %250 = vector.extract_strided_slice %194 {offsets = [5, 0], sizes = [1, 32], strides = [1, 1]} : vector<8x32xf32> to vector<1x32xf32>
    %251 = vector.extract_strided_slice %194 {offsets = [6, 0], sizes = [1, 32], strides = [1, 1]} : vector<8x32xf32> to vector<1x32xf32>
    %cst_94 = arith.constant dense<0.000000e+00> : vector<32xf32>
    %252 = vector.multi_reduction <add>, %249, %cst_94 [1] : vector<32x32xf32> to vector<32xf32>
    %253 = vector.shape_cast %252 : vector<32xf32> to vector<32x1xf32>
    %cst_95 = arith.constant 3.200000e+01 : f32
    %254 = vector.broadcast %cst_95 : f32 to vector<32x1xf32>
    %255 = arith.divf %253, %254 : vector<32x1xf32>
    %256 = vector.broadcast %255 : vector<32x1xf32> to vector<32x32xf32>
    %257 = arith.subf %249, %256 : vector<32x32xf32>
    %258 = arith.mulf %257, %257 : vector<32x32xf32>
    %cst_96 = arith.constant dense<0.000000e+00> : vector<32xf32>
    %259 = vector.multi_reduction <add>, %258, %cst_96 [1] : vector<32x32xf32> to vector<32xf32>
    %260 = vector.shape_cast %259 : vector<32xf32> to vector<32x1xf32>
    %cst_97 = arith.constant 3.200000e+01 : f32
    %261 = vector.broadcast %cst_97 : f32 to vector<32x1xf32>
    %262 = arith.divf %260, %261 : vector<32x1xf32>
    %263 = vector.broadcast %255 : vector<32x1xf32> to vector<32x32xf32>
    %264 = arith.subf %249, %263 : vector<32x32xf32>
    %cst_98 = arith.constant 9.99999974E-6 : f32
    %265 = vector.broadcast %cst_98 : f32 to vector<32x1xf32>
    %266 = arith.addf %262, %265 : vector<32x1xf32>
    %267 = math.rsqrt %266 : vector<32x1xf32>
    %268 = vector.broadcast %267 : vector<32x1xf32> to vector<32x32xf32>
    %269 = arith.mulf %264, %268 : vector<32x32xf32>
    %270 = vector.broadcast %250 : vector<1x32xf32> to vector<32x32xf32>
    %271 = arith.mulf %269, %270 : vector<32x32xf32>
    %272 = vector.broadcast %251 : vector<1x32xf32> to vector<32x32xf32>
    %273 = arith.addf %271, %272 : vector<32x32xf32>
    %274 = tpu.concatenate %273, %209 in 1 : vector<32x32xf32>, vector<32x32xf32> -> vector<32x64xf32>
    %275 = arith.truncf %274 : vector<32x64xf32> to vector<32x64xbf16>
    %c2 = arith.constant 2 : index
    %c0_99 = arith.constant 0 : index
    %c0_100 = arith.constant 0 : index
    %276 = vector.load %arg8[%c2, %c0_99, %c0_100] : memref<3x64x192xbf16, #tpu.memory_space<vmem>>, vector<1x64x192xbf16>
    %277 = vector.shape_cast %276 : vector<1x64x192xbf16> to vector<64x192xbf16>
    %cst_101 = arith.constant dense<0.000000e+00> : vector<32x192xf32>
    %278 = tpu.matmul %275, %277, %cst_101 {dimension_numbers = #tpu.dot_dimension_numbers<[1], [0], [0], [1], [0, 0, 1, 1], [], []>} : vector<32x64xbf16>, vector<64x192xbf16>, vector<32x192xf32> -> vector<32x192xf32>
    %279 = vector.extract_strided_slice %278 {offsets = [0, 0], sizes = [32, 64], strides = [1, 1]} : vector<32x192xf32> to vector<32x64xf32>
    %280 = vector.extract_strided_slice %278 {offsets = [0, 64], sizes = [32, 64], strides = [1, 1]} : vector<32x192xf32> to vector<32x64xf32>
    %281 = vector.extract_strided_slice %278 {offsets = [0, 128], sizes = [32, 64], strides = [1, 1]} : vector<32x192xf32> to vector<32x64xf32>
    %282 = vector.extract_strided_slice %15 {offsets = [0, 128], sizes = [512, 64], strides = [1, 1]} : vector<512x192xf32> to vector<512x64xf32>
    %283 = vector.shape_cast %279 : vector<32x64xf32> to vector<32x1x64xf32>
    %284 = vector.shape_cast %283 : vector<32x1x64xf32> to vector<32x1x64xf32>
    %285 = vector.broadcast %284 : vector<32x1x64xf32> to vector<32x16x64xf32>
    %286 = vector.shape_cast %285 : vector<32x16x64xf32> to vector<512x64xf32>
    %287 = vector.shape_cast %280 : vector<32x64xf32> to vector<2x1x16x64xf32>
    %288 = vector.shape_cast %287 : vector<2x1x16x64xf32> to vector<2x1x16x64xf32>
    %289 = vector.broadcast %288 : vector<2x1x16x64xf32> to vector<2x16x16x64xf32>
    %290 = vector.shape_cast %289 : vector<2x16x16x64xf32> to vector<512x64xf32>
    %291 = vector.shape_cast %281 : vector<32x64xf32> to vector<2x1x16x64xf32>
    %292 = vector.shape_cast %291 : vector<2x1x16x64xf32> to vector<2x1x16x64xf32>
    %293 = vector.broadcast %292 : vector<2x1x16x64xf32> to vector<2x16x16x64xf32>
    %294 = vector.shape_cast %293 : vector<2x16x16x64xf32> to vector<512x64xf32>
    %295 = arith.mulf %286, %290 : vector<512x64xf32>
    %296 = arith.mulf %295, %282 : vector<512x64xf32>
    %297 = arith.truncf %296 : vector<512x64xf32> to vector<512x64xbf16>
    %cst_102 = arith.constant dense<0.000000e+00> : vector<512x8xf32>
    %298 = tpu.matmul %297, %4, %cst_102 {dimension_numbers = #tpu.dot_dimension_numbers<[1], [0], [0], [1], [0, 0, 1, 1], [], []>} : vector<512x64xbf16>, vector<64x8xbf16>, vector<512x8xf32> -> vector<512x8xf32>
    %cst_103 = arith.constant 0.353553385 : f32
    %299 = vector.broadcast %cst_103 : f32 to vector<512x8xf32>
    %300 = arith.mulf %298, %299 : vector<512x8xf32>
    %cst_104 = arith.constant -5.000000e+00 : f32
    %cst_105 = arith.constant 5.000000e+00 : f32
    %301 = vector.broadcast %cst_104 : f32 to vector<512x8xf32>
    %302 = arith.maximumf %301, %300 : vector<512x8xf32>
    %303 = vector.broadcast %cst_105 : f32 to vector<512x8xf32>
    %304 = arith.minimumf %303, %302 : vector<512x8xf32>
    %305 = math.exp %304 : vector<512x8xf32>
    %306 = vector.broadcast %3 : vector<512x1xf32> to vector<512x8xf32>
    %307 = arith.mulf %305, %306 : vector<512x8xf32>
    %308 = arith.truncf %307 : vector<512x8xf32> to vector<512x8xbf16>
    %cst_106 = arith.constant dense<0.000000e+00> : vector<512x64xf32>
    %309 = tpu.matmul %308, %5, %cst_106 {dimension_numbers = #tpu.dot_dimension_numbers<[1], [0], [0], [1], [0, 0, 1, 1], [], []>} : vector<512x8xbf16>, vector<8x64xbf16>, vector<512x64xf32> -> vector<512x64xf32>
    %310 = arith.mulf %309, %294 : vector<512x64xf32>
    %311 = tpu.concatenate %310, %309 in 1 : vector<512x64xf32>, vector<512x64xf32> -> vector<512x128xf32>
    %312 = arith.truncf %311 : vector<512x128xf32> to vector<512x128xbf16>
    %cst_107 = arith.constant dense<0.000000e+00> : vector<32x128xf32>
    %313 = tpu.matmul %6, %312, %cst_107 {dimension_numbers = #tpu.dot_dimension_numbers<[1], [0], [0], [1], [0, 0, 1, 1], [], []>} : vector<32x512xbf16>, vector<512x128xbf16>, vector<32x128xf32> -> vector<32x128xf32>
    %314 = vector.extract_strided_slice %313 {offsets = [0, 0], sizes = [32, 64], strides = [1, 1]} : vector<32x128xf32> to vector<32x64xf32>
    %315 = vector.extract_strided_slice %313 {offsets = [0, 64], sizes = [32, 64], strides = [1, 1]} : vector<32x128xf32> to vector<32x64xf32>
    %cst_108 = arith.constant 9.99999997E-7 : f32
    %316 = vector.broadcast %cst_108 : f32 to vector<32x64xf32>
    %317 = arith.addf %315, %316 : vector<32x64xf32>
    %318 = tpu.reciprocal %317 {approx = true} : vector<32x64xf32> -> vector<32x64xf32>
    %319 = arith.mulf %314, %318 : vector<32x64xf32>
    %c2_109 = arith.constant 2 : index
    %c0_110 = arith.constant 0 : index
    %c0_111 = arith.constant 0 : index
    %320 = vector.load %arg10[%c2_109, %c0_110, %c0_111] : memref<3x64x64xbf16, #tpu.memory_space<vmem>>, vector<1x64x64xbf16>
    %321 = vector.shape_cast %320 : vector<1x64x64xbf16> to vector<64x64xbf16>
    %c2_112 = arith.constant 2 : index
    %c0_113 = arith.constant 0 : index
    %c0_114 = arith.constant 0 : index
    %322 = vector.load %arg13[%c2_112, %c0_113, %c0_114] : memref<3x8x32xf32, #tpu.memory_space<vmem>>, vector<1x8x32xf32>
    %323 = vector.shape_cast %322 : vector<1x8x32xf32> to vector<8x32xf32>
    %c2_115 = arith.constant 2 : index
    %c0_116 = arith.constant 0 : index
    %c0_117 = arith.constant 0 : index
    %324 = vector.load %arg14[%c2_115, %c0_116, %c0_117] : memref<3x1x64xf32, #tpu.memory_space<vmem>>, vector<1x1x64xf32>
    %325 = vector.shape_cast %324 : vector<1x1x64xf32> to vector<1x64xf32>
    %326 = arith.truncf %319 : vector<32x64xf32> to vector<32x64xbf16>
    %cst_118 = arith.constant dense<0.000000e+00> : vector<32x64xf32>
    %327 = tpu.matmul %326, %321, %cst_118 {dimension_numbers = #tpu.dot_dimension_numbers<[1], [0], [0], [1], [0, 0, 1, 1], [], []>} : vector<32x64xbf16>, vector<64x64xbf16>, vector<32x64xf32> -> vector<32x64xf32>
    %328 = vector.extract_strided_slice %327 {offsets = [0, 0], sizes = [32, 32], strides = [1, 1]} : vector<32x64xf32> to vector<32x32xf32>
    %329 = arith.addf %273, %328 : vector<32x32xf32>
    %330 = vector.extract_strided_slice %323 {offsets = [0, 0], sizes = [1, 32], strides = [1, 1]} : vector<8x32xf32> to vector<1x32xf32>
    %331 = vector.broadcast %330 : vector<1x32xf32> to vector<32x32xf32>
    %332 = arith.addf %329, %331 : vector<32x32xf32>
    %333 = vector.extract_strided_slice %327 {offsets = [0, 32], sizes = [32, 32], strides = [1, 1]} : vector<32x64xf32> to vector<32x32xf32>
    %334 = vector.extract_strided_slice %323 {offsets = [1, 0], sizes = [1, 32], strides = [1, 1]} : vector<8x32xf32> to vector<1x32xf32>
    %335 = vector.broadcast %334 : vector<1x32xf32> to vector<32x32xf32>
    %336 = arith.addf %333, %335 : vector<32x32xf32>
    %337 = math.tanh %336 : vector<32x32xf32>
    %338 = arith.addf %209, %337 : vector<32x32xf32>
    %339 = vector.extract_strided_slice %323 {offsets = [2, 0], sizes = [1, 32], strides = [1, 1]} : vector<8x32xf32> to vector<1x32xf32>
    %340 = vector.extract_strided_slice %323 {offsets = [3, 0], sizes = [1, 32], strides = [1, 1]} : vector<8x32xf32> to vector<1x32xf32>
    %cst_119 = arith.constant dense<0.000000e+00> : vector<32xf32>
    %341 = vector.multi_reduction <add>, %332, %cst_119 [1] : vector<32x32xf32> to vector<32xf32>
    %342 = vector.shape_cast %341 : vector<32xf32> to vector<32x1xf32>
    %cst_120 = arith.constant 3.200000e+01 : f32
    %343 = vector.broadcast %cst_120 : f32 to vector<32x1xf32>
    %344 = arith.divf %342, %343 : vector<32x1xf32>
    %345 = vector.broadcast %344 : vector<32x1xf32> to vector<32x32xf32>
    %346 = arith.subf %332, %345 : vector<32x32xf32>
    %347 = arith.mulf %346, %346 : vector<32x32xf32>
    %cst_121 = arith.constant dense<0.000000e+00> : vector<32xf32>
    %348 = vector.multi_reduction <add>, %347, %cst_121 [1] : vector<32x32xf32> to vector<32xf32>
    %349 = vector.shape_cast %348 : vector<32xf32> to vector<32x1xf32>
    %cst_122 = arith.constant 3.200000e+01 : f32
    %350 = vector.broadcast %cst_122 : f32 to vector<32x1xf32>
    %351 = arith.divf %349, %350 : vector<32x1xf32>
    %352 = vector.broadcast %344 : vector<32x1xf32> to vector<32x32xf32>
    %353 = arith.subf %332, %352 : vector<32x32xf32>
    %cst_123 = arith.constant 9.99999974E-6 : f32
    %354 = vector.broadcast %cst_123 : f32 to vector<32x1xf32>
    %355 = arith.addf %351, %354 : vector<32x1xf32>
    %356 = math.rsqrt %355 : vector<32x1xf32>
    %357 = vector.broadcast %356 : vector<32x1xf32> to vector<32x32xf32>
    %358 = arith.mulf %353, %357 : vector<32x32xf32>
    %359 = vector.broadcast %339 : vector<1x32xf32> to vector<32x32xf32>
    %360 = arith.mulf %358, %359 : vector<32x32xf32>
    %361 = vector.broadcast %340 : vector<1x32xf32> to vector<32x32xf32>
    %362 = arith.addf %360, %361 : vector<32x32xf32>
    %363 = arith.truncf %362 : vector<32x32xf32> to vector<32x32xbf16>
    %c2_124 = arith.constant 2 : index
    %c0_125 = arith.constant 0 : index
    %c0_126 = arith.constant 0 : index
    %364 = vector.load %arg11[%c2_124, %c0_125, %c0_126] : memref<3x32x64xbf16, #tpu.memory_space<vmem>>, vector<1x32x64xbf16>
    %365 = vector.shape_cast %364 : vector<1x32x64xbf16> to vector<32x64xbf16>
    %cst_127 = arith.constant dense<0.000000e+00> : vector<32x64xf32>
    %366 = tpu.matmul %363, %365, %cst_127 {dimension_numbers = #tpu.dot_dimension_numbers<[1], [0], [0], [1], [0, 0, 1, 1], [], []>} : vector<32x32xbf16>, vector<32x64xbf16>, vector<32x64xf32> -> vector<32x64xf32>
    %367 = vector.broadcast %325 : vector<1x64xf32> to vector<32x64xf32>
    %368 = arith.addf %366, %367 : vector<32x64xf32>
    %cst_128 = arith.constant 0.000000e+00 : f32
    %369 = vector.broadcast %cst_128 : f32 to vector<32x64xf32>
    %370 = arith.maximumf %368, %369 : vector<32x64xf32>
    %371 = arith.truncf %370 : vector<32x64xf32> to vector<32x64xbf16>
    %c2_129 = arith.constant 2 : index
    %c0_130 = arith.constant 0 : index
    %c0_131 = arith.constant 0 : index
    %372 = vector.load %arg12[%c2_129, %c0_130, %c0_131] : memref<3x64x32xbf16, #tpu.memory_space<vmem>>, vector<1x64x32xbf16>
    %373 = vector.shape_cast %372 : vector<1x64x32xbf16> to vector<64x32xbf16>
    %cst_132 = arith.constant dense<0.000000e+00> : vector<32x32xf32>
    %374 = tpu.matmul %371, %373, %cst_132 {dimension_numbers = #tpu.dot_dimension_numbers<[1], [0], [0], [1], [0, 0, 1, 1], [], []>} : vector<32x64xbf16>, vector<64x32xbf16>, vector<32x32xf32> -> vector<32x32xf32>
    %375 = vector.extract_strided_slice %323 {offsets = [4, 0], sizes = [1, 32], strides = [1, 1]} : vector<8x32xf32> to vector<1x32xf32>
    %376 = vector.broadcast %375 : vector<1x32xf32> to vector<32x32xf32>
    %377 = arith.addf %374, %376 : vector<32x32xf32>
    %378 = arith.addf %362, %377 : vector<32x32xf32>
    %379 = vector.extract_strided_slice %323 {offsets = [5, 0], sizes = [1, 32], strides = [1, 1]} : vector<8x32xf32> to vector<1x32xf32>
    %380 = vector.extract_strided_slice %323 {offsets = [6, 0], sizes = [1, 32], strides = [1, 1]} : vector<8x32xf32> to vector<1x32xf32>
    %cst_133 = arith.constant dense<0.000000e+00> : vector<32xf32>
    %381 = vector.multi_reduction <add>, %378, %cst_133 [1] : vector<32x32xf32> to vector<32xf32>
    %382 = vector.shape_cast %381 : vector<32xf32> to vector<32x1xf32>
    %cst_134 = arith.constant 3.200000e+01 : f32
    %383 = vector.broadcast %cst_134 : f32 to vector<32x1xf32>
    %384 = arith.divf %382, %383 : vector<32x1xf32>
    %385 = vector.broadcast %384 : vector<32x1xf32> to vector<32x32xf32>
    %386 = arith.subf %378, %385 : vector<32x32xf32>
    %387 = arith.mulf %386, %386 : vector<32x32xf32>
    %cst_135 = arith.constant dense<0.000000e+00> : vector<32xf32>
    %388 = vector.multi_reduction <add>, %387, %cst_135 [1] : vector<32x32xf32> to vector<32xf32>
    %389 = vector.shape_cast %388 : vector<32xf32> to vector<32x1xf32>
    %cst_136 = arith.constant 3.200000e+01 : f32
    %390 = vector.broadcast %cst_136 : f32 to vector<32x1xf32>
    %391 = arith.divf %389, %390 : vector<32x1xf32>
    %392 = vector.broadcast %384 : vector<32x1xf32> to vector<32x32xf32>
    %393 = arith.subf %378, %392 : vector<32x32xf32>
    %cst_137 = arith.constant 9.99999974E-6 : f32
    %394 = vector.broadcast %cst_137 : f32 to vector<32x1xf32>
    %395 = arith.addf %391, %394 : vector<32x1xf32>
    %396 = math.rsqrt %395 : vector<32x1xf32>
    %397 = vector.broadcast %396 : vector<32x1xf32> to vector<32x32xf32>
    %398 = arith.mulf %393, %397 : vector<32x32xf32>
    %399 = vector.broadcast %379 : vector<1x32xf32> to vector<32x32xf32>
    %400 = arith.mulf %398, %399 : vector<32x32xf32>
    %401 = vector.broadcast %380 : vector<1x32xf32> to vector<32x32xf32>
    %402 = arith.addf %400, %401 : vector<32x32xf32>
    %403 = arith.truncf %338 : vector<32x32xf32> to vector<32x32xbf16>
    %c0_138 = arith.constant 0 : index
    %c0_139 = arith.constant 0 : index
    %404 = vector.load %arg15[%c0_138, %c0_139] : memref<32x8xbf16, #tpu.memory_space<vmem>>, vector<32x8xbf16>
    %cst_140 = arith.constant dense<0.000000e+00> : vector<32x8xf32>
    %405 = tpu.matmul %403, %404, %cst_140 {dimension_numbers = #tpu.dot_dimension_numbers<[1], [0], [0], [1], [0, 0, 1, 1], [], []>} : vector<32x32xbf16>, vector<32x8xbf16>, vector<32x8xf32> -> vector<32x8xf32>
    %406 = vector.extract_strided_slice %7 {offsets = [2, 0], sizes = [1, 8], strides = [1, 1]} : vector<8x32xf32> to vector<1x8xf32>
    %407 = vector.broadcast %406 : vector<1x8xf32> to vector<32x8xf32>
    %408 = arith.addf %405, %407 : vector<32x8xf32>
    %409 = vector.shape_cast %408 : vector<32x8xf32> to vector<2x16x8xf32>
    %cst_141 = arith.constant dense<0.000000e+00> : vector<2x8xf32>
    %410 = vector.multi_reduction <add>, %409, %cst_141 [1] : vector<2x16x8xf32> to vector<2x8xf32>
    %411 = vector.shape_cast %410 : vector<2x8xf32> to vector<2x1x8xf32>
    %cst_142 = arith.constant 1.600000e+01 : f32
    %412 = vector.broadcast %cst_142 : f32 to vector<2x1x8xf32>
    %413 = arith.divf %411, %412 : vector<2x1x8xf32>
    %414 = vector.broadcast %413 : vector<2x1x8xf32> to vector<2x16x8xf32>
    %415 = arith.subf %409, %414 : vector<2x16x8xf32>
    %416 = arith.mulf %415, %415 : vector<2x16x8xf32>
    %cst_143 = arith.constant dense<0.000000e+00> : vector<2x8xf32>
    %417 = vector.multi_reduction <add>, %416, %cst_143 [1] : vector<2x16x8xf32> to vector<2x8xf32>
    %418 = vector.shape_cast %417 : vector<2x8xf32> to vector<2x1x8xf32>
    %cst_144 = arith.constant 9.99999997E-7 : f32
    %419 = vector.broadcast %cst_144 : f32 to vector<2x1x8xf32>
    %420 = arith.addf %418, %419 : vector<2x1x8xf32>
    %421 = math.rsqrt %420 : vector<2x1x8xf32>
    %422 = vector.broadcast %421 : vector<2x1x8xf32> to vector<2x16x8xf32>
    %423 = arith.mulf %415, %422 : vector<2x16x8xf32>
    %424 = vector.shape_cast %423 : vector<2x16x8xf32> to vector<32x8xf32>
    %425 = arith.truncf %402 : vector<32x32xf32> to vector<32x32xbf16>
    %c0_145 = arith.constant 0 : index
    %c0_146 = arith.constant 0 : index
    %426 = vector.load %arg16[%c0_145, %c0_146] : memref<32x32xbf16, #tpu.memory_space<vmem>>, vector<32x32xbf16>
    %cst_147 = arith.constant dense<0.000000e+00> : vector<32x32xf32>
    %427 = tpu.matmul %425, %426, %cst_147 {dimension_numbers = #tpu.dot_dimension_numbers<[1], [0], [0], [1], [0, 0, 1, 1], [], []>} : vector<32x32xbf16>, vector<32x32xbf16>, vector<32x32xf32> -> vector<32x32xf32>
    %428 = arith.truncf %424 : vector<32x8xf32> to vector<32x8xbf16>
    %c0_148 = arith.constant 0 : index
    %c0_149 = arith.constant 0 : index
    %429 = vector.load %arg17[%c0_148, %c0_149] : memref<8x32xbf16, #tpu.memory_space<vmem>>, vector<8x32xbf16>
    %cst_150 = arith.constant dense<0.000000e+00> : vector<32x32xf32>
    %430 = tpu.matmul %428, %429, %cst_150 {dimension_numbers = #tpu.dot_dimension_numbers<[1], [0], [0], [1], [0, 0, 1, 1], [], []>} : vector<32x8xbf16>, vector<8x32xbf16>, vector<32x32xf32> -> vector<32x32xf32>
    %431 = arith.addf %427, %430 : vector<32x32xf32>
    %432 = vector.extract_strided_slice %7 {offsets = [1, 0], sizes = [1, 32], strides = [1, 1]} : vector<8x32xf32> to vector<1x32xf32>
    %433 = vector.broadcast %432 : vector<1x32xf32> to vector<32x32xf32>
    %434 = arith.addf %431, %433 : vector<32x32xf32>
    %435 = vector.shape_cast %434 : vector<32x32xf32> to vector<2x16x32xf32>
    %cst_151 = arith.constant dense<0.000000e+00> : vector<2x32xf32>
    %436 = vector.multi_reduction <add>, %435, %cst_151 [1] : vector<2x16x32xf32> to vector<2x32xf32>
    %cst_152 = arith.constant 1.600000e+01 : f32
    %437 = vector.broadcast %cst_152 : f32 to vector<2x32xf32>
    %438 = arith.divf %436, %437 : vector<2x32xf32>
    %439 = arith.truncf %438 : vector<2x32xf32> to vector<2x32xbf16>
    %c0_153 = arith.constant 0 : index
    %c0_154 = arith.constant 0 : index
    %440 = vector.load %arg18[%c0_153, %c0_154] : memref<32x16xbf16, #tpu.memory_space<vmem>>, vector<32x16xbf16>
    %cst_155 = arith.constant dense<0.000000e+00> : vector<2x16xf32>
    %441 = tpu.matmul %439, %440, %cst_155 {dimension_numbers = #tpu.dot_dimension_numbers<[1], [0], [0], [1], [0, 0, 1, 1], [], []>} : vector<2x32xbf16>, vector<32x16xbf16>, vector<2x16xf32> -> vector<2x16xf32>
    %442 = vector.extract_strided_slice %7 {offsets = [3, 0], sizes = [1, 16], strides = [1, 1]} : vector<8x32xf32> to vector<1x16xf32>
    %443 = vector.broadcast %442 : vector<1x16xf32> to vector<2x16xf32>
    %444 = arith.addf %441, %443 : vector<2x16xf32>
    %cst_156 = arith.constant 0.000000e+00 : f32
    %445 = vector.broadcast %cst_156 : f32 to vector<2x16xf32>
    %446 = arith.maximumf %444, %445 : vector<2x16xf32>
    %447 = arith.truncf %446 : vector<2x16xf32> to vector<2x16xbf16>
    %c0_157 = arith.constant 0 : index
    %c0_158 = arith.constant 0 : index
    %448 = vector.load %arg19[%c0_157, %c0_158] : memref<16x8xbf16, #tpu.memory_space<vmem>>, vector<16x8xbf16>
    %cst_159 = arith.constant dense<0.000000e+00> : vector<2x8xf32>
    %449 = tpu.matmul %447, %448, %cst_159 {dimension_numbers = #tpu.dot_dimension_numbers<[1], [0], [0], [1], [0, 0, 1, 1], [], []>} : vector<2x16xbf16>, vector<16x8xbf16>, vector<2x8xf32> -> vector<2x8xf32>
    %450 = vector.extract_strided_slice %7 {offsets = [4, 0], sizes = [1, 8], strides = [1, 1]} : vector<8x32xf32> to vector<1x8xf32>
    %451 = vector.broadcast %450 : vector<1x8xf32> to vector<2x8xf32>
    %452 = arith.addf %449, %451 : vector<2x8xf32>
    %cst_160 = arith.constant 0.000000e+00 : f32
    %453 = vector.broadcast %cst_160 : f32 to vector<2x8xf32>
    %454 = arith.maximumf %452, %453 : vector<2x8xf32>
    %455 = arith.truncf %454 : vector<2x8xf32> to vector<2x8xbf16>
    %c0_161 = arith.constant 0 : index
    %c0_162 = arith.constant 0 : index
    %456 = vector.load %arg20[%c0_161, %c0_162] : memref<8x4xbf16, #tpu.memory_space<vmem>>, vector<8x4xbf16>
    %cst_163 = arith.constant dense<0.000000e+00> : vector<2x4xf32>
    %457 = tpu.matmul %455, %456, %cst_163 {dimension_numbers = #tpu.dot_dimension_numbers<[1], [0], [0], [1], [0, 0, 1, 1], [], []>} : vector<2x8xbf16>, vector<8x4xbf16>, vector<2x4xf32> -> vector<2x4xf32>
    %458 = vector.extract_strided_slice %7 {offsets = [5, 0], sizes = [1, 4], strides = [1, 1]} : vector<8x32xf32> to vector<1x4xf32>
    %459 = vector.broadcast %458 : vector<1x4xf32> to vector<2x4xf32>
    %460 = arith.addf %457, %459 : vector<2x4xf32>
    %c0_164 = arith.constant 0 : index
    %c0_165 = arith.constant 0 : index
    %461 = vector.load %arg22[%c0_164, %c0_165] : memref<2x4xf32, #tpu.memory_space<vmem>>, vector<2x4xf32>
    tpu.vector_store %arg22[%c0_164, %c0_165], %460 {strides = array<i32>} : memref<2x4xf32, #tpu.memory_space<vmem>>, vector<2x4xf32>,
    return
  }
}

</mosaic_0001>

<bundles_post_ra>
// kernel: graphit_net_forward.1
= control target key start
LH: loop header
LB: loop body
LE: loop exit
PB: predicated region body
PF: predicated region fallthrough
CT: control target
= control target key end

     0   :  { %s15432_s0 = inlined_call_operand.vmem [shape: f32[32,32], index: 0, kind: input, shape index: {}]   ;;  %s15433_s1 = inlined_call_operand.vmem [shape: f32[32,8], index: 1, kind: input, shape index: {}]   ;;  %s15434_s2 = inlined_call_operand.vmem [shape: bf16[512,32], index: 2, kind: input, shape index: {}]   ;;  %s15435_s3 = inlined_call_operand.vmem [shape: f32[512,1], index: 3, kind: input, shape index: {}]   ;;  %s15436_s4 = inlined_call_operand.vmem [shape: bf16[64,8], index: 4, kind: input, shape index: {}]   ;;  %s15437_s5 = inlined_call_operand.vmem [shape: bf16[8,64], index: 5, kind: input, shape index: {}]   ;;  %s15438_s6 = inlined_call_operand.vmem [shape: bf16[32,512], index: 6, kind: input, shape index: {}]   ;;  %s15439_s7 = inlined_call_operand.vmem [shape: bf16[8,32], index: 7, kind: input, shape index: {}]   ;;  %s15440_s8 = inlined_call_operand.vmem [shape: bf16[3,64,192], index: 8, kind: input, shape index: {}]   ;;  %s15441_s9 = inlined_call_operand.vmem [shape: bf16[32,192], index: 9, kind: input, shape index: {}]   ;;  %s15442_s10 = inlined_call_operand.vmem [shape: bf16[3,64,64], index: 10, kind: input, shape index: {}]   ;;  %s15443_s11 = inlined_call_operand.vmem [shape: bf16[3,32,64], index: 11, kind: input, shape index: {}]   ;;  %s15444_s12 = inlined_call_operand.vmem [shape: bf16[3,64,32], index: 12, kind: input, shape index: {}]   ;;  %s15445_s13 = inlined_call_operand.vmem [shape: f32[3,8,32], index: 13, kind: input, shape index: {}]   ;;  %s15446_s14 = inlined_call_operand.vmem [shape: f32[3,1,64], index: 14, kind: input, shape index: {}]   ;;  %s15447_s15 = inlined_call_operand.vmem [shape: bf16[32,8], index: 15, kind: input, shape index: {}]   ;;  %s15448_s16 = inlined_call_operand.vmem [shape: bf16[32,32], index: 16, kind: input, shape index: {}]   ;;  %s15449_s17 = inlined_call_operand.vmem [shape: bf16[8,32], index: 17, kind: input, shape index: {}]   ;;  %s15450_s18 = inlined_call_operand.vmem [shape: bf16[32,16], index: 18, kind: input, shape index: {}]   ;;  %s15451_s19 = inlined_call_operand.vmem [shape: bf16[16,8], index: 19, kind: input, shape index: {}]   ;;  %s15452_s20 = inlined_call_operand.vmem [shape: bf16[8,4], index: 20, kind: input, shape index: {}]   ;;  %s15453_s21 = inlined_call_operand.vmem [shape: f32[8,32], index: 21, kind: input, shape index: {}]   ;;  %s15454_s22 = inlined_call_operand.hbm [shape: f32[2,4], index: 22, kind: output, shape index: {}]  }
   0x1   :  { %15686 = sst [smem:[#allocation207_spill]] %s15432_s0 }
   0x2   :  { %15687 = sst [smem:[#allocation208_spill]] %s15433_s1 }
   0x3   :  { %15688 = sst [smem:[#allocation209_spill]] %s15434_s2 }
   0x4   :  { %15689 = sst [smem:[#allocation210_spill]] %s15435_s3 }
   0x5   :  { %15690 = sst [smem:[#allocation211_spill]] %s15436_s4 }
   0x6   :  { %15691 = sst [smem:[#allocation212_spill]] %s15437_s5 }
   0x7   :  { %15692 = sst [smem:[#allocation213_spill]] %s15438_s6 }
   0x8   :  { %v229_v0 = vld [vmem:[%s15439_s7] sm:$0xf]  ;;  %vm238_vm0 = vcmask 1043456   ;;  %v8799_v1 = vld [vmem:[%s15441_s9 + $0x10] sm:$0xf]  ;;  %s15693_s23 = sld [smem:[#allocation208_spill]] }
   0x9   :  { %v240_v3 = vsel %vm238_vm0, %v229_v0, 0  ;;  %v9691_v4 = vld [vmem:[%s15441_s9 + $0x14] sm:$0xf0]  ;;  %vm231_vm1 = vcmask 64512   ;;  %v8791_v8 = vld [vmem:[%s15441_s9] sm:$0xf] }
   0xa   :  { %249 = vmatpush.bf16.msra.mxu0 %v240_v3  ;;  %v8800_v6 = vor.u32 %v9691_v4, %v8799_v1  ;;  %v9689_v9 = vld [vmem:[%s15441_s9 + $0x4] sm:$0xf0] }
   0xb   :  { %v8792_v10 = vor.u32 %v9689_v9, %v8791_v8 }
   0xc   :  { %548 = vmatpush.bf16.msra.mxu1 %v8800_v6 }
   0xe   :  { %v77_v2 = vld [vmem:[%s15693_s23] sm:$0xff]  ;;  %v78_v5 = vld [vmem:[%s15693_s23 + $0x8] sm:$0xff] }
   0xf   :  { %v227_v7 = vpack.c.bf16 %v78_v5, %v77_v2 }
  0x10   :  { %27 = vsyncpa [#allocation3], 0  ;;  %s15694_s28 = sld [smem:[#allocation209_spill]]  ;;  %549 = vmatpush.bf16.msra.mxu1 %v8792_v10  ;;  %vm445_vm2 = vcmask 261120   ;;  %v79_v12 = vld [vmem:[%s15693_s23 + $0x10] sm:$0xff]  ;;  %v80_v13 = vld [vmem:[%s15693_s23 + $0x18] sm:$0xff] }
  0x11   :  { %8659 = vmatmul.msk.bf16.vlgmr.msra.gmra.mxu0 %vm231_vm1, %v227_v7  ;;  %v228_v14 = vpack.c.bf16 %v80_v13, %v79_v12  ;;  %v226_v23 = vld [vmem:[%s15453_s21] sm:$0xff]  ;;  %s10835_s6 = smov 32   ;;  %v8895_v49 = vld [vmem:[%s15440_s8 + $0x30] sm:$0xf]  ;;  %v9699_v50 = vld [vmem:[%s15440_s8 + $0x34] sm:$0xf0] }
  0x12   :  { %v230_v24 = vperm.slane %v226_v23, 0  ;;  %v9698_v51 = vld [vmem:[%s15440_s8 + $0x34] sm:$0xf]  ;;  %v8896_v53 = vor.u32 %v9699_v50, %v8895_v49  ;;  %v8897_v54 = vld [vmem:[%s15440_s8 + $0x38] sm:$0xf0]  ;;  %s15714_s3 = sld [smem:[#allocation207_spill]] }
  0x13   :  { %v8900_v55 = vor.u32 %v9698_v51, %v8897_v54  ;;  %v8887_v57 = vld [vmem:[%s15440_s8 + $0x20] sm:$0xf]  ;;  %v9697_v58 = vld [vmem:[%s15440_s8 + $0x24] sm:$0xf0]  ;;  %v9696_v59 = vld [vmem:[%s15440_s8 + $0x24] sm:$0xf] }
  0x14   :  { %961 = vmatpush.bf16.msra.mxu3 %v8896_v53  ;;  %v8888_v60 = vor.u32 %v9697_v58, %v8887_v57  ;;  %v8889_v61 = vld [vmem:[%s15440_s8 + $0x28] sm:$0xf0]  ;;  %v8879_v63 = vld [vmem:[%s15440_s8 + $0x10] sm:$0xf]  ;;  %v9695_v0 = vld [vmem:[%s15440_s8 + $0x14] sm:$0xf0] }
  0x15   :  { %980 = vmatpush.bf16.msrb.mxu0 %v8900_v55  ;;  %v8892_v62 = vor.u32 %v9696_v59, %v8889_v61  ;;  %v9694_v1 = vld [vmem:[%s15440_s8 + $0x14] sm:$0xf]  ;;  %v8880_v2 = vor.u32 %v9695_v0, %v8879_v63  ;;  %v8881_v3 = vld [vmem:[%s15440_s8 + $0x18] sm:$0xf0]  ;;  %v8871_v5 = vld [vmem:[%s15440_s8] sm:$0xf] }
  0x16   :  { %v9644_v11 = vld [vmem:[%s15694_s28] sm:$0xff]  ;;  %v9645_v15 = vld [vmem:[%s15694_s28 + $0x8] sm:$0xff]  ;;  %v9646_v16 = vld [vmem:[%s15694_s28 + $0x10] sm:$0xff]  ;;  %v8884_v4 = vor.u32 %v9694_v1, %v8881_v3  ;;  %vm950_vm3 = vcmask 523264   ;;  %s15726_s23 = sld [smem:[#allocation210_spill]]  ;;  %v10836_v3 = vmov 0  }
  0x17   :  { %8805 = vmatmul.msk.bf16.vlgmr.msra.gmra.mxu1 %vm445_vm2, %v9644_v11  ;;  %v9647_v17 = vld [vmem:[%s15694_s28 + $0x18] sm:$0xff]  ;;  %v9648_v18 = vld [vmem:[%s15694_s28 + $0x20] sm:$0xff]  ;;  %v9649_v19 = vld [vmem:[%s15694_s28 + $0x28] sm:$0xff]  ;;  %9770 = vset.pattern.permute.xlu2 %v10836_v3  ;;  %s10837_s27 = smov 64   ;;  %s15737_s29 = sld [smem:[#allocation211_spill]] }
  0x18   :  { %v9650_v20 = vld [vmem:[%s15694_s28 + $0x30] sm:$0xff]  ;;  %v9651_v21 = vld [vmem:[%s15694_s28 + $0x38] sm:$0xff]  ;;  %v9652_v25 = vld [vmem:[%s15694_s28 + $0x40] sm:$0xff]  ;;  %962 = vmatpush.bf16.msra.mxu3 %v8888_v60  ;;  %9772 = vset.pattern.permute.xlu1 %v10836_v3  ;;  %s15742_s1 = sld [smem:[#allocation212_spill]] }
  0x19   :  { %v9653_v33 = vld [vmem:[%s15694_s28 + $0x48] sm:$0xff]  ;;  %v9654_v40 = vld [vmem:[%s15694_s28 + $0x50] sm:$0xff]  ;;  %v9655_v43 = vld [vmem:[%s15694_s28 + $0x58] sm:$0xff]  ;;  %981 = vmatpush.bf16.msrb.mxu0 %v8892_v62  ;;  %9771 = vset.pattern.permute.xlu0 %v10836_v3  ;;  %s15901_s7 = sld [smem:[#allocation213_spill]] }
  0x1a   :  { %v9656_v46 = vld [vmem:[%s15694_s28 + $0x60] sm:$0xff]  ;;  %v9657_v52 = vld [vmem:[%s15694_s28 + $0x68] sm:$0xff]  ;;  %v9658_v12 = vld [vmem:[%s15694_s28 + $0x70] sm:$0xff] }
  0x1b   :  { %v9693_v6 = vld [vmem:[%s15440_s8 + $0x4] sm:$0xf0]  ;;  %v9692_v7 = vld [vmem:[%s15440_s8 + $0x4] sm:$0xf]  ;;  %v8873_v10 = vld [vmem:[%s15440_s8 + $0x8] sm:$0xf0] }
  0x1c   :  { %963 = vmatpush.bf16.msra.mxu3 %v8880_v2  ;;  %v8872_v9 = vor.u32 %v9693_v6, %v8871_v5  ;;  %v8876_v11 = vor.u32 %v9692_v7, %v8873_v10  ;;  %v9661_v50 = vld [vmem:[%s15694_s28 + $0x88] sm:$0xff]  ;;  %v9663_v55 = vld [vmem:[%s15694_s28 + $0x98] sm:$0xff]  ;;  %v9664_v59 = vld [vmem:[%s15694_s28 + $0xa0] sm:$0xff] }
  0x1d   :  { %982 = vmatpush.bf16.msrb.mxu0 %v8884_v4  ;;  %v9665_v61 = vld [vmem:[%s15694_s28 + $0xa8] sm:$0xff]  ;;  %v9666_v0 = vld [vmem:[%s15694_s28 + $0xb0] sm:$0xff]  ;;  %v145_v2 = vld [vmem:[%s15726_s23] sm:$0xff] }
  0x1e   :  { %1874 = vperm.xlu2 %9770, %v145_v2   ;;  %v9667_v4 = vld [vmem:[%s15694_s28 + $0xb8] sm:$0xff]  ;;  %v146_v5 = vld [vmem:[%s15726_s23 + $0x8] sm:$0xff]  ;;  %v149_v7 = vld [vmem:[%s15726_s23 + $0x20] sm:$0xff] }
  0x1f   :  { %v9671_v3 = vld [vmem:[%s15694_s28 + $0xd8] sm:$0xff] }
  0x20   :  { %964 = vmatpush.bf16.msra.mxu3 %v8872_v9  ;;  %v147_v9 = vld [vmem:[%s15726_s23 + $0x10] sm:$0xff] }
  0x21   :  { %8660 = vmatmul.msk.bf16.gmra.mxu0 %vm231_vm1, %v228_v14 }
  0x22   :  { %983 = vmatpush.bf16.msrb.mxu0 %v8876_v11  ;;  %v9668_v11 = vld [vmem:[%s15694_s28 + $0xc0] sm:$0xff] }
  0x26   :  { %1879 = vperm.xlu2 %9770, %v146_v5   ;;  %v167_v5 = vld [vmem:[%s15726_s23 + $0xb0] sm:$0xff] }
  0x27   :  { %8806 = vmatmul.msk.bf16.gmra.mxu1 %vm445_vm2, %v9645_v15  ;;  %v9659_v15 = vld [vmem:[%s15694_s28 + $0x78] sm:$0xff] }
  0x2e   :  { %1894 = vperm.xlu2 %9770, %v149_v7  }
  0x37   :  { %8807 = vmatmul.msk.bf16.gmra.mxu1 %vm445_vm2, %v9646_v16 }
  0x47   :  { %8808 = vmatmul.msk.bf16.gmra.mxu1 %vm445_vm2, %v9647_v17 }
  0x57   :  { %8809 = vmatmul.msk.bf16.gmra.mxu1 %vm445_vm2, %v9648_v18  ;;  %v73_v18 = vld [vmem:[%s15714_s3] sm:$0xff] }
  0x67   :  { %8810 = vmatmul.msk.bf16.gmra.mxu1 %vm445_vm2, %v9649_v19  ;;  %v74_v19 = vld [vmem:[%s15714_s3 + $0x8] sm:$0xff] }
  0x77   :  { %8811 = vmatmul.msk.bf16.gmra.mxu1 %vm445_vm2, %v9650_v20 }
  0x87   :  { %8812 = vmatmul.msk.bf16.gmra.mxu1 %vm445_vm2, %v9651_v21 }
  0x8e   :  { %v251_v22 = vpop.f32.mrf.mxu0 }
  0x8f   :  { %v11027_v28 = vadd.f32 %v251_v22, %v230_v24 }
  0x91   :  { %15696 = vst [vmem:[#allocation6_spill] sm:$0xff] %v11027_v28 }
  0x94   :  { %v11025_v26 = vpop.f32.mrf.mxu1 }
  0x95   :  { %15695 = vst [vmem:[#allocation5_spill] sm:$0xff] %v11025_v26 }
  0x96   :  { %v253_v27 = vpop.f32.mrf.mxu0 }
  0x97   :  { %v11029_v29 = vadd.f32 %v253_v27, %v230_v24  ;;  %8813 = vmatmul.msk.bf16.gmra.mxu1 %vm445_vm2, %v9652_v25  ;;  %v9660_v25 = vld [vmem:[%s15694_s28 + $0x80] sm:$0xff] }
  0x99   :  { %15697 = vst [vmem:[#allocation7_spill] sm:$0xff] %v11029_v29  ;;  %v9760_v30 = vpack.i.bf16 %v11029_v29, %v11027_v28 }
  0x9b   :  { %9761 = vrot.lane.b32.xlu0 %v9760_v30, %s10835_s6 }
  0x9c   :  { %v11035_v31 = vpop.f32.mrf.mxu1 }
  0x9d   :  { %15698 = vst [vmem:[#allocation8_spill] sm:$0xff] %v11035_v31 }
  0x9e   :  { %v256_v32 = vpop.f32.mrf.mxu0 }
  0x9f   :  { %v11042_v35 = vadd.f32 %v256_v32, %v230_v24  ;;  %v75_v32 = vld [vmem:[%s15714_s3 + $0x10] sm:$0xff] }
  0xa1   :  { %15700 = vst [vmem:[#allocation10_spill] sm:$0xff] %v11042_v35 }
  0xa4   :  { %v11040_v34 = vpop.f32.mrf.mxu1 }
  0xa5   :  { %15699 = vst [vmem:[#allocation9_spill] sm:$0xff] %v11040_v34 }
  0xa6   :  { %v258_v36 = vpop.f32.mrf.mxu0 }
  0xa7   :  { %8814 = vmatmul.msk.bf16.gmra.mxu1 %vm445_vm2, %v9653_v33  ;;  %v11045_v37 = vadd.f32 %v258_v36, %v230_v24  ;;  %v76_v33 = vld [vmem:[%s15714_s3 + $0x18] sm:$0xff] }
  0xa9   :  { %15701 = vst [vmem:[#allocation11_spill] sm:$0xff] %v11045_v37  ;;  %v9765_v38 = vpack.i.bf16 %v11045_v37, %v11042_v35 }
  0xab   :  { %9766 = vrot.lane.b32.xlu0 %v9765_v38, %s10835_s6 }
  0xac   :  { %v11050_v39 = vpop.f32.mrf.mxu1 }
  0xad   :  { %15702 = vst [vmem:[#allocation12_spill] sm:$0xff] %v11050_v39 }
  0xb3   :  { %1884 = vperm.xlu0 %9771, %v147_v9   ;;  %v160_v9 = vld [vmem:[%s15726_s23 + $0x78] sm:$0xff] }
  0xb4   :  { %v11055_v41 = vpop.f32.mrf.mxu1 }
  0xb5   :  { %15703 = vst [vmem:[#allocation13_spill] sm:$0xff] %v11055_v41 }
  0xb7   :  { %8815 = vmatmul.msk.bf16.gmra.mxu1 %vm445_vm2, %v9654_v40 }
  0xbc   :  { %v11058_v42 = vpop.f32.mrf.mxu1 }
  0xbd   :  { %15704 = vst [vmem:[#allocation14_spill] sm:$0xff] %v11058_v42 }
  0xc4   :  { %v11063_v44 = vpop.f32.mrf.mxu1 }
  0xc5   :  { %15705 = vst [vmem:[#allocation15_spill] sm:$0xff] %v11063_v44 }
  0xc7   :  { %8816 = vmatmul.msk.bf16.gmra.mxu1 %vm445_vm2, %v9655_v43 }
  0xcc   :  { %v11066_v45 = vpop.f32.mrf.mxu1 }
  0xcd   :  { %15706 = vst [vmem:[#allocation16_spill] sm:$0xff] %v11066_v45 }
  0xd4   :  { %v11071_v47 = vpop.f32.mrf.mxu1 }
  0xd5   :  { %15707 = vst [vmem:[#allocation17_spill] sm:$0xff] %v11071_v47 }
  0xd7   :  { %8817 = vmatmul.msk.bf16.gmra.mxu1 %vm445_vm2, %v9656_v46 }
  0xdc   :  { %v11074_v48 = vpop.f32.mrf.mxu1 }
  0xdd   :  { %15708 = vst [vmem:[#allocation18_spill] sm:$0xff] %v11074_v48 }
  0xe4   :  { %v11091_v56 = vpop.f32.mrf.mxu1 }
  0xe5   :  { %15709 = vst [vmem:[#allocation19_spill] sm:$0xff] %v11091_v56 }
  0xe7   :  { %8818 = vmatmul.msk.bf16.gmra.mxu1 %vm445_vm2, %v9657_v52  ;;  %v9662_v52 = vld [vmem:[%s15694_s28 + $0x90] sm:$0xff] }
  0xec   :  { %v11127_v8 = vpop.f32.mrf.mxu1 }
  0xed   :  { %15710 = vst [vmem:[#allocation20_spill] sm:$0xff] %v11127_v8 }
  0xf4   :  { %v11136_v13 = vpop.f32.mrf.mxu1 }
  0xf5   :  { %15711 = vst [vmem:[#allocation21_spill] sm:$0xff] %v11136_v13 }
  0xf7   :  { %8819 = vmatmul.msk.bf16.gmra.mxu1 %vm445_vm2, %v9658_v12  ;;  %v151_v12 = vld [vmem:[%s15726_s23 + $0x30] sm:$0xff] }
  0xf8   :  { %1904 = vperm.xlu2 %9770, %v151_v12   ;;  %v170_v12 = vld [vmem:[%s15726_s23 + $0xc8] sm:$0xff] }
  0xfc   :  { %v11138_v14 = vpop.f32.mrf.mxu1 }
  0xfd   :  { %15712 = vst [vmem:[#allocation22_spill] sm:$0xff] %v11138_v14 }
 0x104   :  { %v11144_v16 = vpop.f32.mrf.mxu1 }
 0x105   :  { %15713 = vst [vmem:[#allocation23_spill] sm:$0xff] %v11144_v16 }
 0x107   :  { %8820 = vmatmul.msk.bf16.gmra.mxu1 %vm445_vm2, %v9659_v15 }
 0x10c   :  { %v11159_v27 = vpop.f32.mrf.mxu1 }
 0x10d   :  { %v9762_v17 = vpop.permute.xlu0 %9761  ;;  %15715 = vst [vmem:[#allocation24_spill] sm:$0xff] %v11159_v27 }
 0x10e   :  { %v9764_v20 = vunpack.i.h.bf16 %v9762_v17  ;;  %v9763_v21 = vunpack.i.l.bf16 %v9762_v17  ;;  %v152_v17 = vld [vmem:[%s15726_s23 + $0x38] sm:$0xff] }
 0x10f   :  { %1909 = vperm.xlu0 %9771, %v152_v17   ;;  %v9672_v17 = vld [vmem:[%s15694_s28 + $0xe0] sm:$0xff] }
 0x110   :  { %v896_v22 = vsel %vm445_vm2, %v73_v18, %v9763_v21  ;;  %v897_v23 = vsel %vm445_vm2, %v74_v19, %v9764_v20  ;;  %v154_v19 = vld [vmem:[%s15726_s23 + $0x48] sm:$0xff]  ;;  %v155_v20 = vld [vmem:[%s15726_s23 + $0x50] sm:$0xff] }
 0x111   :  { %v900_v24 = vpack.c.bf16 %v897_v23, %v896_v22  ;;  %1919 = vperm.xlu2 %9770, %v154_v19   ;;  %v9669_v23 = vld [vmem:[%s15694_s28 + $0xc8] sm:$0xff]  ;;  %v163_v19 = vld [vmem:[%s15726_s23 + $0x90] sm:$0xff] }
 0x113   :  { %8901 = vmatmul.msk.bf16.vlgmr.msra.gmra.mxu3 %vm950_vm3, %v900_v24  ;;  %8903 = vmatmul.msk.bf16.vlgmr.msrb.gmra.mxu0 %vm950_vm3, %v900_v24  ;;  %v148_v24 = vld [vmem:[%s15726_s23 + $0x18] sm:$0xff] }
 0x114   :  { %v11170_v46 = vpop.f32.mrf.mxu1 }
 0x115   :  { %15716 = vst [vmem:[#allocation25_spill] sm:$0xff] %v11170_v46 }
 0x117   :  { %8821 = vmatmul.msk.bf16.gmra.mxu1 %vm445_vm2, %v9660_v25  ;;  %1924 = vperm.xlu0 %9771, %v155_v20   ;;  %v157_v25 = vld [vmem:[%s15726_s23 + $0x60] sm:$0xff] }
 0x119   :  { %1934 = vperm.xlu2 %9770, %v157_v25   ;;  %v166_v25 = vld [vmem:[%s15726_s23 + $0xa8] sm:$0xff] }
 0x11c   :  { %v11178_v51 = vpop.f32.mrf.mxu1 }
 0x11d   :  { %v9767_v30 = vpop.permute.xlu0 %9766  ;;  %15717 = vst [vmem:[#allocation26_spill] sm:$0xff] %v11178_v51 }
 0x11e   :  { %v9769_v36 = vunpack.i.h.bf16 %v9767_v30  ;;  %v9768_v38 = vunpack.i.l.bf16 %v9767_v30 }
 0x120   :  { %v898_v40 = vsel %vm445_vm2, %v75_v32, %v9768_v38  ;;  %v899_v43 = vsel %vm445_vm2, %v76_v33, %v9769_v36  ;;  %v158_v32 = vld [vmem:[%s15726_s23 + $0x68] sm:$0xff]  ;;  %v159_v38 = vld [vmem:[%s15726_s23 + $0x70] sm:$0xff] }
 0x121   :  { %v901_v49 = vpack.c.bf16 %v899_v43, %v898_v40  ;;  %1939 = vperm.xlu0 %9771, %v158_v32   ;;  %v150_v33 = vld [vmem:[%s15726_s23 + $0x28] sm:$0xff]  ;;  %v9670_v43 = vld [vmem:[%s15694_s28 + $0xd0] sm:$0xff]  ;;  %v177_v32 = vld [vmem:[%s15726_s23 + $0x100] sm:$0xff] }
 0x123   :  { %8902 = vmatmul.msk.bf16.gmra.mxu3 %vm950_vm3, %v901_v49  ;;  %8904 = vmatmul.msk.bf16.gmra.mxu0 %vm950_vm3, %v901_v49  ;;  %v153_v49 = vld [vmem:[%s15726_s23 + $0x40] sm:$0xff] }
 0x124   :  { %v11183_v53 = vpop.f32.mrf.mxu1 }
 0x125   :  { %15718 = vst [vmem:[#allocation27_spill] sm:$0xff] %v11183_v53 }
 0x127   :  { %8822 = vmatmul.msk.bf16.gmra.mxu1 %vm445_vm2, %v9661_v50  ;;  %v162_v50 = vld [vmem:[%s15726_s23 + $0x88] sm:$0xff] }
 0x129   :  { %1944 = vperm.xlu0 %9771, %v159_v38  }
 0x12c   :  { %v11186_v54 = vpop.f32.mrf.mxu1 }
 0x12d   :  { %15719 = vst [vmem:[#allocation28_spill] sm:$0xff] %v11186_v54 }
 0x131   :  { %1959 = vperm.xlu0 %9771, %v162_v50   ;;  %v180_v50 = vld [vmem:[%s15726_s23 + $0x118] sm:$0xff] }
 0x134   :  { %v11192_v57 = vpop.f32.mrf.mxu1 }
 0x135   :  { %15720 = vst [vmem:[#allocation29_spill] sm:$0xff] %v11192_v57 }
 0x137   :  { %8823 = vmatmul.msk.bf16.gmra.mxu1 %vm445_vm2, %v9662_v52  ;;  %v161_v52 = vld [vmem:[%s15726_s23 + $0x80] sm:$0xff] }
 0x13c   :  { %v11194_v58 = vpop.f32.mrf.mxu1 }
 0x13d   :  { %15721 = vst [vmem:[#allocation30_spill] sm:$0xff] %v11194_v58 }
 0x144   :  { %v11200_v60 = vpop.f32.mrf.mxu1 }
 0x145   :  { %15722 = vst [vmem:[#allocation31_spill] sm:$0xff] %v11200_v60 }
 0x147   :  { %8824 = vmatmul.msk.bf16.gmra.mxu1 %vm445_vm2, %v9663_v55 }
 0x14c   :  { %v11205_v62 = vpop.f32.mrf.mxu1 }
 0x14d   :  { %15723 = vst [vmem:[#allocation32_spill] sm:$0xff] %v11205_v62 }
 0x154   :  { %v11208_v63 = vpop.f32.mrf.mxu1 }
 0x155   :  { %15724 = vst [vmem:[#allocation33_spill] sm:$0xff] %v11208_v63 }
 0x157   :  { %8825 = vmatmul.msk.bf16.gmra.mxu1 %vm445_vm2, %v9664_v59  ;;  %v156_v59 = vld [vmem:[%s15726_s23 + $0x58] sm:$0xff] }
 0x15c   :  { %v11214_v1 = vpop.f32.mrf.mxu1 }
 0x15d   :  { %15725 = vst [vmem:[#allocation34_spill] sm:$0xff] %v11214_v1 }
 0x164   :  { %v11225_v6 = vpop.f32.mrf.mxu1 }
 0x165   :  { %15727 = vst [vmem:[#allocation35_spill] sm:$0xff] %v11225_v6 }
 0x167   :  { %8826 = vmatmul.msk.bf16.gmra.mxu1 %vm445_vm2, %v9665_v61  ;;  %v165_v61 = vld [vmem:[%s15726_s23 + $0xa0] sm:$0xff] }
 0x168   :  { %1974 = vperm.xlu0 %9771, %v165_v61  }
 0x16c   :  { %v11234_v10 = vpop.f32.mrf.mxu1 }
 0x16d   :  { %15728 = vst [vmem:[#allocation36_spill] sm:$0xff] %v11234_v10 }
 0x174   :  { %v11250_v18 = vpop.f32.mrf.mxu1 }
 0x175   :  { %15729 = vst [vmem:[#allocation37_spill] sm:$0xff] %v11250_v18 }
 0x177   :  { %8827 = vmatmul.msk.bf16.gmra.mxu1 %vm445_vm2, %v9666_v0  ;;  %v164_v0 = vld [vmem:[%s15726_s23 + $0x98] sm:$0xff] }
 0x17c   :  { %v11262_v22 = vpop.f32.mrf.mxu1 }
 0x17d   :  { %15730 = vst [vmem:[#allocation38_spill] sm:$0xff] %v11262_v22 }
 0x184   :  { %v11282_v36 = vpop.f32.mrf.mxu1 }
 0x185   :  { %15731 = vst [vmem:[#allocation39_spill] sm:$0xff] %v11282_v36 }
 0x187   :  { %8828 = vmatmul.msk.bf16.gmra.mxu1 %vm445_vm2, %v9667_v4  ;;  %v168_v4 = vld [vmem:[%s15726_s23 + $0xb8] sm:$0xff] }
 0x188   :  { %1989 = vperm.xlu0 %9771, %v168_v4   ;;  %v183_v4 = vld [vmem:[%s15726_s23 + $0x130] sm:$0xff] }
 0x18c   :  { %v11303_v55 = vpop.f32.mrf.mxu1 }
 0x18d   :  { %15732 = vst [vmem:[#allocation40_spill] sm:$0xff] %v11303_v55 }
 0x194   :  { %v11315_v2 = vpop.f32.mrf.mxu1 }
 0x195   :  { %15733 = vst [vmem:[#allocation41_spill] sm:$0xff] %v11315_v2 }
 0x196   :  { %v11242_v15 = vpop.f32.mrf.mxu3 }
 0x197   :  { %8829 = vmatmul.msk.bf16.gmra.mxu1 %vm445_vm2, %v9668_v11  ;;  %1091 = vrot.lane.b32.xlu1 %v11242_v15, %s10837_s27  ;;  %v171_v11 = vld [vmem:[%s15726_s23 + $0xd0] sm:$0xff] }
 0x198   :  { %2004 = vperm.xlu0 %9771, %v171_v11  }
 0x19c   :  { %v11329_v7 = vpop.f32.mrf.mxu1 }
 0x19d   :  { %15734 = vst [vmem:[#allocation42_spill] sm:$0xff] %v11329_v7 }
 0x19e   :  { %v11258_v21 = vpop.f32.mrf.mxu3 }
 0x19f   :  { %1093 = vrot.lane.b32.xlu1 %v11258_v21, %s10837_s27 }
 0x1a4   :  { %v11346_v20 = vpop.f32.mrf.mxu1 }
 0x1a5   :  { %15735 = vst [vmem:[#allocation43_spill] sm:$0xff] %v11346_v20 }
 0x1a6   :  { %v11273_v30 = vpop.f32.mrf.mxu3 }
 0x1a7   :  { %8830 = vmatmul.msk.bf16.gmra.mxu1 %vm445_vm2, %v9669_v23  ;;  %1889 = vperm.xlu1 %9772, %v148_v24   ;;  %v174_v23 = vld [vmem:[%s15726_s23 + $0xe8] sm:$0xff]  ;;  %v173_v24 = vld [vmem:[%s15726_s23 + $0xe0] sm:$0xff] }
 0x1a8   :  { %2019 = vperm.xlu0 %9771, %v174_v23   ;;  %v186_v23 = vld [vmem:[%s15726_s23 + $0x148] sm:$0xff] }
 0x1ac   :  { %v11364_v38 = vpop.f32.mrf.mxu1 }
 0x1ad   :  { %15736 = vst [vmem:[#allocation44_spill] sm:$0xff] %v11364_v38 }
 0x1ae   :  { %v11287_v40 = vpop.f32.mrf.mxu3 }
 0x1af   :  { %1899 = vperm.xlu1 %9772, %v150_v33   ;;  %1097 = vrot.lane.b32.xlu2 %v11287_v40, %s10837_s27  ;;  %v176_v33 = vld [vmem:[%s15726_s23 + $0xf8] sm:$0xff] }
 0x1b0   :  { %2034 = vperm.xlu0 %9771, %v177_v32  }
 0x1b4   :  { %v11382_v61 = vpop.f32.mrf.mxu1 }
 0x1b5   :  { %15738 = vst [vmem:[#allocation45_spill] sm:$0xff] %v11382_v61 }
 0x1b7   :  { %8831 = vmatmul.msk.bf16.gmra.mxu1 %vm445_vm2, %v9670_v43  ;;  %1914 = vperm.xlu1 %9772, %v153_v49   ;;  %v9673_v43 = vld [vmem:[%s15694_s28 + $0xe8] sm:$0xff]  ;;  %v169_v49 = vld [vmem:[%s15726_s23 + $0xc0] sm:$0xff] }
 0x1b8   :  { %1954 = vperm.xlu2 %9770, %v161_v52   ;;  %v179_v52 = vld [vmem:[%s15726_s23 + $0x110] sm:$0xff]  ;;  %2049 = vperm.xlu0 %9771, %v180_v50   ;;  %v181_v50 = vld [vmem:[%s15726_s23 + $0x120] sm:$0xff] }
 0x1bc   :  { %v11399_v11 = vpop.f32.mrf.mxu1 }
 0x1bd   :  { %15739 = vst [vmem:[#allocation46_spill] sm:$0xff] %v11399_v11 }
 0x1bf   :  { %1929 = vperm.xlu1 %9772, %v156_v59   ;;  %v9679_v59 = vld [vmem:[%s15737_s29 + $0x18] sm:$0xff] }
 0x1c0   :  { %1969 = vperm.xlu2 %9770, %v164_v0   ;;  %1387 = vmatpush.bf16.msrb.mxu3 %v9679_v59  ;;  %v172_v0 = vld [vmem:[%s15726_s23 + $0xd8] sm:$0xff]  ;;  %v191_v59 = vld [vmem:[%s15726_s23 + $0x170] sm:$0xff] }
 0x1c1   :  { %2064 = vperm.xlu0 %9771, %v183_v4   ;;  %v184_v4 = vld [vmem:[%s15726_s23 + $0x138] sm:$0xff] }
 0x1c4   :  { %v11420_v32 = vpop.f32.mrf.mxu1 }
 0x1c5   :  { %15740 = vst [vmem:[#allocation47_spill] sm:$0xff] %v11420_v32 }
 0x1c7   :  { %8832 = vmatmul.msk.bf16.gmra.mxu1 %vm445_vm2, %v9671_v3  ;;  %1095 = vrot.lane.b32.xlu1 %v11273_v30, %s10837_s27  ;;  %v9678_v3 = vld [vmem:[%s15737_s29 + $0x10] sm:$0xff] }
 0x1c8   :  { %1984 = vperm.xlu2 %9770, %v167_v5   ;;  %v182_v5 = vld [vmem:[%s15726_s23 + $0x128] sm:$0xff]  ;;  %1388 = vmatpush.bf16.msrb.mxu3 %v9678_v3 }
 0x1c9   :  { %2079 = vperm.xlu0 %9771, %v186_v23  }
 0x1cf   :  { %1949 = vperm.xlu1 %9772, %v160_v9   ;;  %v9677_v9 = vld [vmem:[%s15737_s29 + $0x8] sm:$0xff] }
 0x1d0   :  { %1999 = vperm.xlu2 %9770, %v170_v12   ;;  %1389 = vmatpush.bf16.msrb.mxu3 %v9677_v9  ;;  %v9674_v12 = vld [vmem:[%s15694_s28 + $0xf0] sm:$0xff]  ;;  %v194_v9 = vld [vmem:[%s15726_s23 + $0x188] sm:$0xff] }
 0x1d7   :  { %8833 = vmatmul.msk.bf16.gmra.mxu1 %vm445_vm2, %v9672_v17  ;;  %1964 = vperm.xlu1 %9772, %v163_v19   ;;  %v175_v17 = vld [vmem:[%s15726_s23 + $0xf0] sm:$0xff]  ;;  %v9676_v19 = vld [vmem:[%s15737_s29] sm:$0xff] }
 0x1d8   :  { %2014 = vperm.xlu2 %9770, %v173_v24   ;;  %v185_v24 = vld [vmem:[%s15726_s23 + $0x140] sm:$0xff]  ;;  %1390 = vmatpush.bf16.msrb.mxu3 %v9676_v19 }
 0x1df   :  { %1979 = vperm.xlu1 %9772, %v166_v25   ;;  %v178_v25 = vld [vmem:[%s15726_s23 + $0x108] sm:$0xff] }
 0x1e0   :  { %2029 = vperm.xlu2 %9770, %v176_v33   ;;  %v189_v33 = vld [vmem:[%s15726_s23 + $0x160] sm:$0xff] }
 0x1e1   :  { %2094 = vperm.xlu0 %9771, %v189_v33  }
 0x1e7   :  { %8834 = vmatmul.msk.bf16.gmra.mxu1 %vm445_vm2, %v9673_v43  ;;  %1994 = vperm.xlu1 %9772, %v169_v49   ;;  %v188_v43 = vld [vmem:[%s15726_s23 + $0x158] sm:$0xff] }
 0x1e8   :  { %2044 = vperm.xlu2 %9770, %v179_v52   ;;  %v9675_v49 = vld [vmem:[%s15694_s28 + $0xf8] sm:$0xff] }
 0x1e9   :  { %v192_v52 = vld [vmem:[%s15726_s23 + $0x178] sm:$0xff] }
 0x1ea   :  { %2109 = vperm.xlu0 %9771, %v192_v52   ;;  %v999_v52 = vrot.slane %v11242_v15, 1 }
 0x1ef   :  { %2009 = vperm.xlu1 %9772, %v172_v0   ;;  %v11440_v0 = vpop.f32.mrf.mxu1 }
 0x1f0   :  { %2059 = vperm.xlu2 %9770, %v182_v5   ;;  %15741 = vst [vmem:[#allocation48_spill] sm:$0xff] %v11440_v0  ;;  %v195_v5 = vld [vmem:[%s15726_s23 + $0x190] sm:$0xff] }
 0x1f2   :  { %2124 = vperm.xlu0 %9771, %v195_v5  }
 0x1f7   :  { %8835 = vmatmul.msk.bf16.gmra.mxu1 %vm445_vm2, %v9674_v12  ;;  %2024 = vperm.xlu1 %9772, %v175_v17   ;;  %v1027_v12 = vperm.slane %v11242_v15, 0 }
 0x1f8   :  { %2074 = vperm.xlu2 %9770, %v185_v24   ;;  %v187_v24 = vld [vmem:[%s15726_s23 + $0x150] sm:$0xff] }
 0x1ff   :  { %2039 = vperm.xlu1 %9772, %v178_v25  }
 0x200   :  { %2089 = vperm.xlu2 %9770, %v188_v43   ;;  %v198_v43 = vld [vmem:[%s15726_s23 + $0x1a8] sm:$0xff] }
 0x201   :  { %2139 = vperm.xlu0 %9771, %v198_v43  }
 0x207   :  { %8836 = vmatmul.msk.bf16.gmra.mxu1 %vm445_vm2, %v9675_v49  ;;  %2054 = vperm.xlu1 %9772, %v181_v50   ;;  %v197_v50 = vld [vmem:[%s15726_s23 + $0x1a0] sm:$0xff] }
 0x208   :  { %2104 = vperm.xlu2 %9770, %v191_v59   ;;  %v190_v59 = vld [vmem:[%s15726_s23 + $0x168] sm:$0xff] }
 0x209   :  { %v11443_v3 = vpop.permute.xlu1 %1091 }
 0x20a   :  { %v1103_v17 = vmul.f32 %v11443_v3, %v1027_v12 }
 0x20c   :  { %v1167_v25 = vmul.f32 %v1103_v17, %v11025_v26 }
 0x20f   :  { %2069 = vperm.xlu1 %9772, %v184_v4   ;;  %v1028_v4 = vperm.slane %v999_v52, 0  ;;  %v196_v52 = vld [vmem:[%s15726_s23 + $0x198] sm:$0xff] }
 0x210   :  { %2119 = vperm.xlu2 %9770, %v194_v9   ;;  %v201_v9 = vld [vmem:[%s15726_s23 + $0x1c0] sm:$0xff] }
 0x211   :  { %v11456_v19 = vpop.permute.xlu1 %1093  ;;  %v1105_v17 = vmul.f32 %v11443_v3, %v1028_v4  ;;  %2154 = vperm.xlu0 %9771, %v201_v9   ;;  %v206_v9 = vld [vmem:[%s15726_s23 + $0x1e8] sm:$0xff] }
 0x212   :  { %v1104_v23 = vmul.f32 %v11456_v19, %v1027_v12  ;;  %v1106_v5 = vmul.f32 %v11456_v19, %v1028_v4  ;;  %v200_v12 = vld [vmem:[%s15726_s23 + $0x1b8] sm:$0xff] }
 0x214   :  { %v1168_v33 = vmul.f32 %v1104_v23, %v11035_v31  ;;  %v1170_v23 = vmul.f32 %v1106_v5, %v11050_v39  ;;  %v207_v5 = vld [vmem:[%s15726_s23 + $0x1f0] sm:$0xff] }
 0x216   :  { %v1231_v49 = vpack.c.bf16 %v1168_v33, %v1167_v25  ;;  %v1169_v25 = vmul.f32 %v1105_v17, %v11040_v34  ;;  %v204_v33 = vld [vmem:[%s15726_s23 + $0x1d8] sm:$0xff] }
 0x217   :  { %2084 = vperm.xlu1 %9772, %v187_v24   ;;  %v193_v24 = vld [vmem:[%s15726_s23 + $0x180] sm:$0xff] }
 0x218   :  { %8921 = vmatmul.msk.bf16.vlgmr.msrb.gmra.mxu3 %vm950_vm3, %v1231_v49  ;;  %2134 = vperm.xlu2 %9770, %v197_v50   ;;  %v1232_v43 = vpack.c.bf16 %v1170_v23, %v1169_v25  ;;  %v203_v49 = vld [vmem:[%s15726_s23 + $0x1d0] sm:$0xff]  ;;  %v1000_v50 = vrot.slane %v11242_v15, 2 }
 0x219   :  { %2169 = vperm.xlu0 %9771, %v204_v33   ;;  %v199_v23 = vld [vmem:[%s15726_s23 + $0x1b0] sm:$0xff]  ;;  %v1001_v33 = vrot.slane %v11242_v15, 3 }
 0x21f   :  { %2099 = vperm.xlu1 %9772, %v190_v59   ;;  %v1029_v59 = vperm.slane %v1000_v50, 0 }
 0x220   :  { %2149 = vperm.xlu2 %9770, %v200_v12  }
 0x221   :  { %v1108_v4 = vmul.f32 %v11456_v19, %v1029_v59  ;;  %v1107_v12 = vmul.f32 %v11443_v3, %v1029_v59  ;;  %2184 = vperm.xlu0 %9771, %v207_v5  }
 0x223   :  { %v1172_v17 = vmul.f32 %v1108_v4, %v11058_v42  ;;  %v205_v4 = vld [vmem:[%s15726_s23 + $0x1e0] sm:$0xff] }
 0x227   :  { %2114 = vperm.xlu1 %9772, %v193_v24   ;;  %v1171_v24 = vmul.f32 %v1107_v12, %v11055_v41  ;;  %v1002_v12 = vrot.slane %v11242_v15, 4 }
 0x228   :  { %8922 = vmatmul.msk.bf16.gmra.mxu3 %vm950_vm3, %v1232_v43  ;;  %2164 = vperm.xlu2 %9770, %v203_v49   ;;  %v202_v43 = vld [vmem:[%s15726_s23 + $0x1c8] sm:$0xff]  ;;  %v1030_v49 = vperm.slane %v1001_v33, 0 }
 0x229   :  { %v1233_v25 = vpack.c.bf16 %v1172_v17, %v1171_v24  ;;  %v208_v17 = vld [vmem:[%s15726_s23 + $0x1f8] sm:$0xff] }
 0x22a   :  { %v1110_v50 = vmul.f32 %v11456_v19, %v1030_v49 }
 0x22c   :  { %v1174_v59 = vmul.f32 %v1110_v50, %v11066_v45  ;;  %v1003_v50 = vrot.slane %v11242_v15, 5 }
 0x22f   :  { %2129 = vperm.xlu1 %9772, %v196_v52   ;;  %v1109_v52 = vmul.f32 %v11443_v3, %v1030_v49 }
 0x230   :  { %2179 = vperm.xlu2 %9770, %v206_v9  }
 0x231   :  { %v1173_v5 = vmul.f32 %v1109_v52, %v11063_v44  ;;  %v1032_v52 = vperm.slane %v1003_v50, 0  ;;  %v1005_v50 = vrot.slane %v11242_v15, 7 }
 0x233   :  { %v1234_v9 = vpack.c.bf16 %v1174_v59, %v1173_v5  ;;  %v1114_v59 = vmul.f32 %v11456_v19, %v1032_v52 }
 0x235   :  { %v1178_v5 = vmul.f32 %v1114_v59, %v11127_v8 }
 0x237   :  { %2144 = vperm.xlu1 %9772, %v199_v23   ;;  %v1031_v23 = vperm.slane %v1002_v12, 0 }
 0x238   :  { %8923 = vmatmul.msk.bf16.gmra.mxu3 %vm950_vm3, %v1233_v25 }
 0x239   :  { %v1112_v24 = vmul.f32 %v11456_v19, %v1031_v23  ;;  %v1111_v25 = vmul.f32 %v11443_v3, %v1031_v23 }
 0x23b   :  { %v1176_v33 = vmul.f32 %v1112_v24, %v11074_v48 }
 0x23f   :  { %2159 = vperm.xlu1 %9772, %v202_v43   ;;  %v1175_v43 = vmul.f32 %v1111_v25, %v11071_v47 }
 0x241   :  { %v1235_v49 = vpack.c.bf16 %v1176_v33, %v1175_v43 }
 0x247   :  { %2174 = vperm.xlu1 %9772, %v205_v4   ;;  %v1113_v4 = vmul.f32 %v11443_v3, %v1032_v52  ;;  %v1034_v52 = vperm.slane %v1005_v50, 0  ;;  %v1006_v50 = vrot.slane %v11258_v21, 1 }
 0x248   :  { %8924 = vmatmul.msk.bf16.gmra.mxu3 %vm950_vm3, %v1234_v9 }
 0x249   :  { %v1177_v9 = vmul.f32 %v1113_v4, %v11091_v56  ;;  %v1118_v59 = vmul.f32 %v11456_v19, %v1034_v52  ;;  %v1117_v4 = vmul.f32 %v11443_v3, %v1034_v52 }
 0x24b   :  { %v1236_v12 = vpack.c.bf16 %v1178_v5, %v1177_v9  ;;  %v1182_v5 = vmul.f32 %v1118_v59, %v11159_v27  ;;  %v1181_v9 = vmul.f32 %v1117_v4, %v11144_v16  ;;  %v1036_v4 = vperm.slane %v1006_v50, 0 }
 0x24c   :  { %v1007_v50 = vrot.slane %v11258_v21, 2 }
 0x24f   :  { %2189 = vperm.xlu1 %9772, %v208_v17   ;;  %v1004_v17 = vrot.slane %v11242_v15, 6 }
 0x251   :  { %v1033_v23 = vperm.slane %v1004_v17, 0  ;;  %v1035_v17 = vperm.slane %v11258_v21, 0 }
 0x253   :  { %v1116_v24 = vmul.f32 %v11456_v19, %v1033_v23  ;;  %v1115_v25 = vmul.f32 %v11443_v3, %v1033_v23  ;;  %v1120_v23 = vmul.f32 %v11456_v19, %v1035_v17 }
 0x255   :  { %v1180_v33 = vmul.f32 %v1116_v24, %v11138_v14  ;;  %v1179_v43 = vmul.f32 %v1115_v25, %v11136_v13  ;;  %v1119_v24 = vmul.f32 %v11443_v3, %v1035_v17  ;;  %v1184_v15 = vmul.f32 %v1120_v23, %v11178_v51  ;;  %v217_v25 = vld [vmem:[%s15742_s1] sm:$0xf] }
 0x258   :  { %8925 = vmatmul.msk.bf16.gmra.mxu3 %vm950_vm3, %v1235_v49  ;;  %v1237_v49 = vpack.c.bf16 %v1180_v33, %v1179_v43  ;;  %v11560_v33 = vsel %vm238_vm0, %v217_v25, 0  ;;  %v1183_v43 = vmul.f32 %v1119_v24, %v11170_v46 }
 0x259   :  { %15743 = vst [vmem:[#allocation49_spill] sm:$0xff] %v11560_v33  ;;  %2394 = vmatpush.bf16.msra.mxu0 %v11560_v33 }
 0x268   :  { %8926 = vmatmul.msk.bf16.gmra.mxu3 %vm950_vm3, %v1236_v12  ;;  %v1238_v12 = vpack.c.bf16 %v1182_v5, %v1181_v9  ;;  %v1122_v5 = vmul.f32 %v11456_v19, %v1036_v4 }
 0x26a   :  { %v1186_v17 = vmul.f32 %v1122_v5, %v11186_v54 }
 0x278   :  { %8927 = vmatmul.msk.bf16.gmra.mxu3 %vm950_vm3, %v1237_v49  ;;  %v1239_v49 = vpack.c.bf16 %v1184_v15, %v1183_v43  ;;  %v11570_v15 = vpop.permute.xlu2 %1874 }
 0x279   :  { %15744 = vst [vmem:[#allocation50_spill] sm:$0xff] %v11570_v15 }
 0x280   :  { %v11575_v14 = vpop.permute.xlu2 %1879 }
 0x281   :  { %15745 = vst [vmem:[#allocation51_spill] sm:$0xff] %v11575_v14 }
 0x288   :  { %8928 = vmatmul.msk.bf16.gmra.mxu3 %vm950_vm3, %v1238_v12  ;;  %v1121_v12 = vmul.f32 %v11443_v3, %v1036_v4  ;;  %v1037_v4 = vperm.slane %v1007_v50, 0 }
 0x28a   :  { %v1185_v51 = vmul.f32 %v1121_v12, %v11183_v53 }
 0x298   :  { %8929 = vmatmul.msk.bf16.gmra.mxu3 %vm950_vm3, %v1239_v49  ;;  %v1240_v49 = vpack.c.bf16 %v1186_v17, %v1185_v51 }
 0x29b   :  { %v1392_v52 = vpop.f32.mrf.mxu3 }
 0x29c   :  { %v1552_v59 = vmul.f32 0.35355338, %v1392_v52 }
 0x29e   :  { %v8953_v9 = vclamps-f32 %v1552_v59, 5.0 }
 0x2a0   :  { %v1744_v25 = vmul.f32 1.442695, %v8953_v9  ;;  %v1124_v9 = vmul.f32 %v11456_v19, %v1037_v4 }
 0x2a2   :  { %10276 = vpow2.f32 %v1744_v25  ;;  %v1188_v25 = vmul.f32 %v1124_v9, %v11194_v58 }
 0x2a3   :  { %v1394_v23 = vpop.f32.mrf.mxu3 }
 0x2a4   :  { %v1553_v24 = vmul.f32 0.35355338, %v1394_v23 }
 0x2a6   :  { %v8954_v43 = vclamps-f32 %v1553_v24, 5.0  ;;  %v1123_v24 = vmul.f32 %v11443_v3, %v1037_v4  ;;  %v1008_v4 = vrot.slane %v11258_v21, 3 }
 0x2a8   :  { %v1746_v16 = vmul.f32 1.442695, %v8954_v43  ;;  %8930 = vmatmul.msk.bf16.gmra.mxu3 %vm950_vm3, %v1240_v49  ;;  %v10277_v5 = vpop.eup %10276  ;;  %v1187_v50 = vmul.f32 %v1123_v24, %v11192_v57  ;;  %v1038_v9 = vperm.slane %v1008_v4, 0  ;;  %v11588_v24 = vpop.permute.xlu0 %1884 }
 0x2a9   :  { %v2192_v51 = vmul.f32 %v10277_v5, %v11570_v15  ;;  %15747 = vst [vmem:[#allocation53_spill] sm:$0xff] %v11588_v24 }
 0x2aa   :  { %10278 = vpow2.f32 %v1746_v16  ;;  %v1241_v35 = vpack.c.bf16 %v1188_v25, %v1187_v50  ;;  %v1125_v25 = vmul.f32 %v11443_v3, %v1038_v9 }
 0x2ab   :  { %v1397_v52 = vpop.f32.mrf.mxu3 }
 0x2ac   :  { %v1554_v59 = vmul.f32 0.35355338, %v1397_v52  ;;  %v1189_v4 = vmul.f32 %v1125_v25, %v11200_v60 }
 0x2ae   :  { %v8955_v12 = vclamps-f32 %v1554_v59, 5.0 }
 0x2b0   :  { %v10279_v23 = vpop.eup %10278  ;;  %v1748_v49 = vmul.f32 1.442695, %v8955_v12  ;;  %v1126_v12 = vmul.f32 %v11456_v19, %v1038_v9 }
 0x2b1   :  { %v2193_v17 = vmul.f32 %v10279_v23, %v11575_v14 }
 0x2b2   :  { %10280 = vpow2.f32 %v1748_v49 }
 0x2b3   :  { %v1399_v43 = vpop.f32.mrf.mxu3  ;;  %v2256_v16 = vpack.c.bf16 %v2193_v17, %v2192_v51  ;;  %v11586_v17 = vpop.permute.xlu1 %1889 }
 0x2b4   :  { %v1555_v52 = vmul.f32 0.35355338, %v1399_v43  ;;  %15746 = vst [vmem:[#allocation52_spill] sm:$0xff] %v11586_v17 }
 0x2b5   :  { %9017 = vmatmul.msk.bf16.vlgmr.msra.gmra.mxu0 %vm231_vm1, %v2256_v16  ;;  %v1190_v16 = vmul.f32 %v1126_v12, %v11205_v62 }
 0x2b6   :  { %v8956_v8 = vclamps-f32 %v1555_v52, 5.0 }
 0x2b7   :  { %v1242_v15 = vpack.c.bf16 %v1190_v16, %v1189_v4 }
 0x2b8   :  { %v1750_v59 = vmul.f32 1.442695, %v8956_v8  ;;  %8931 = vmatmul.msk.bf16.gmra.mxu3 %vm950_vm3, %v1241_v35  ;;  %v10281_v14 = vpop.eup %10280 }
 0x2b9   :  { %v2194_v8 = vmul.f32 %v10281_v14, %v11588_v24  ;;  %v1009_v14 = vrot.slane %v11258_v21, 4 }
 0x2ba   :  { %10282 = vpow2.f32 %v1750_v59 }
 0x2bb   :  { %v1402_v5 = vpop.f32.mrf.mxu3  ;;  %v1039_v12 = vperm.slane %v1009_v14, 0  ;;  %v11601_v25 = vpop.permute.xlu1 %1899 }
 0x2bc   :  { %v1556_v23 = vmul.f32 0.35355338, %v1402_v5  ;;  %15749 = vst [vmem:[#allocation55_spill] sm:$0xff] %v11601_v25 }
 0x2bd   :  { %v1127_v16 = vmul.f32 %v11443_v3, %v1039_v12 }
 0x2be   :  { %v8957_v43 = vclamps-f32 %v1556_v23, 5.0 }
 0x2bf   :  { %v1191_v14 = vmul.f32 %v1127_v16, %v11208_v63  ;;  %v11614_v16 = vpop.permute.xlu0 %1909 }
 0x2c0   :  { %v10283_v51 = vpop.eup %10282  ;;  %v1752_v50 = vmul.f32 1.442695, %v8957_v43  ;;  %v1128_v43 = vmul.f32 %v11456_v19, %v1039_v12  ;;  %15751 = vst [vmem:[#allocation57_spill] sm:$0xff] %v11614_v16 }
 0x2c1   :  { %v2195_v35 = vmul.f32 %v10283_v51, %v11586_v17 }
 0x2c2   :  { %10284 = vpow2.f32 %v1752_v50  ;;  %v1192_v50 = vmul.f32 %v1128_v43, %v11214_v1 }
 0x2c3   :  { %v1404_v49 = vpop.f32.mrf.mxu3  ;;  %v2257_v52 = vpack.c.bf16 %v2195_v35, %v2194_v8  ;;  %v11599_v35 = vpop.permute.xlu2 %1894 }
 0x2c4   :  { %v1557_v59 = vmul.f32 0.35355338, %v1404_v49  ;;  %15748 = vst [vmem:[#allocation54_spill] sm:$0xff] %v11599_v35  ;;  %v1243_v24 = vpack.c.bf16 %v1192_v50, %v1191_v14 }
 0x2c5   :  { %9018 = vmatmul.msk.bf16.gmra.mxu0 %vm231_vm1, %v2257_v52 }
 0x2c6   :  { %v8958_v5 = vclamps-f32 %v1557_v59, 5.0 }
 0x2c8   :  { %v1754_v23 = vmul.f32 1.442695, %v8958_v5  ;;  %8932 = vmatmul.msk.bf16.gmra.mxu3 %vm950_vm3, %v1242_v15  ;;  %v10285_v17 = vpop.eup %10284 }
 0x2c9   :  { %v2196_v52 = vmul.f32 %v10285_v17, %v11599_v35  ;;  %v1010_v17 = vrot.slane %v11258_v21, 5 }
 0x2ca   :  { %10286 = vpow2.f32 %v1754_v23 }
 0x2cb   :  { %v1407_v9 = vpop.f32.mrf.mxu3  ;;  %v1040_v43 = vperm.slane %v1010_v17, 0 }
 0x2cc   :  { %v1558_v51 = vmul.f32 0.35355338, %v1407_v9 }
 0x2cd   :  { %v1129_v50 = vmul.f32 %v11443_v3, %v1040_v43 }
 0x2ce   :  { %v8959_v49 = vclamps-f32 %v1558_v51, 5.0 }
 0x2cf   :  { %v1193_v17 = vmul.f32 %v1129_v50, %v11225_v6  ;;  %v11627_v50 = vpop.permute.xlu1 %1914 }
 0x2d0   :  { %v10287_v8 = vpop.eup %10286  ;;  %v1756_v5 = vmul.f32 1.442695, %v8959_v49  ;;  %v1130_v49 = vmul.f32 %v11456_v19, %v1040_v43  ;;  %15753 = vst [vmem:[#allocation59_spill] sm:$0xff] %v11627_v50 }
 0x2d1   :  { %v2197_v15 = vmul.f32 %v10287_v8, %v11601_v25 }
 0x2d2   :  { %10288 = vpow2.f32 %v1756_v5  ;;  %v1194_v5 = vmul.f32 %v1130_v49, %v11234_v10 }
 0x2d3   :  { %v1409_v59 = vpop.f32.mrf.mxu3  ;;  %v2258_v4 = vpack.c.bf16 %v2197_v15, %v2196_v52  ;;  %v11612_v15 = vpop.permute.xlu2 %1904 }
 0x2d4   :  { %v1559_v23 = vmul.f32 0.35355338, %v1409_v59  ;;  %15750 = vst [vmem:[#allocation56_spill] sm:$0xff] %v11612_v15  ;;  %v1244_v35 = vpack.c.bf16 %v1194_v5, %v1193_v17 }
 0x2d5   :  { %9019 = vmatmul.msk.bf16.gmra.mxu0 %vm231_vm1, %v2258_v4 }
 0x2d6   :  { %v8960_v9 = vclamps-f32 %v1559_v23, 5.0 }
 0x2d8   :  { %v1758_v51 = vmul.f32 1.442695, %v8960_v9  ;;  %8933 = vmatmul.msk.bf16.gmra.mxu3 %vm950_vm3, %v1243_v24  ;;  %v10289_v25 = vpop.eup %10288 }
 0x2d9   :  { %v2198_v4 = vmul.f32 %v10289_v25, %v11612_v15  ;;  %v1011_v25 = vrot.slane %v11258_v21, 6 }
 0x2da   :  { %10290 = vpow2.f32 %v1758_v51 }
 0x2db   :  { %v1412_v12 = vpop.f32.mrf.mxu3  ;;  %v1041_v49 = vperm.slane %v1011_v25, 0 }
 0x2dc   :  { %v1560_v8 = vmul.f32 0.35355338, %v1412_v12 }
 0x2dd   :  { %v1131_v5 = vmul.f32 %v11443_v3, %v1041_v49 }
 0x2de   :  { %v8961_v59 = vclamps-f32 %v1560_v8, 5.0 }
 0x2df   :  { %v1195_v25 = vmul.f32 %v1131_v5, %v11250_v18  ;;  %v11640_v5 = vpop.permute.xlu1 %1929 }
 0x2e0   :  { %v10291_v52 = vpop.eup %10290  ;;  %v1760_v9 = vmul.f32 1.442695, %v8961_v59  ;;  %v1132_v59 = vmul.f32 %v11456_v19, %v1041_v49  ;;  %15755 = vst [vmem:[#allocation61_spill] sm:$0xff] %v11640_v5 }
 0x2e1   :  { %v2199_v24 = vmul.f32 %v10291_v52, %v11614_v16 }
 0x2e2   :  { %10292 = vpow2.f32 %v1760_v9  ;;  %v1196_v9 = vmul.f32 %v1132_v59, %v11262_v22 }
 0x2e3   :  { %v1414_v23 = vpop.f32.mrf.mxu3  ;;  %v2259_v14 = vpack.c.bf16 %v2199_v24, %v2198_v4  ;;  %v11625_v24 = vpop.permute.xlu2 %1919 }
 0x2e4   :  { %v1561_v51 = vmul.f32 0.35355338, %v1414_v23  ;;  %15752 = vst [vmem:[#allocation58_spill] sm:$0xff] %v11625_v24  ;;  %v1245_v15 = vpack.c.bf16 %v1196_v9, %v1195_v25 }
 0x2e5   :  { %9020 = vmatmul.msk.bf16.gmra.mxu0 %vm231_vm1, %v2259_v14 }
 0x2e6   :  { %v8962_v12 = vclamps-f32 %v1561_v51, 5.0 }
 0x2e8   :  { %v1762_v8 = vmul.f32 1.442695, %v8962_v12  ;;  %8934 = vmatmul.msk.bf16.gmra.mxu3 %vm950_vm3, %v1244_v35  ;;  %v10293_v16 = vpop.eup %10292 }
 0x2e9   :  { %v2200_v14 = vmul.f32 %v10293_v16, %v11627_v50  ;;  %v1012_v16 = vrot.slane %v11258_v21, 7  ;;  %v1013_v50 = vrot.slane %v11273_v30, 1 }
 0x2ea   :  { %10294 = vpow2.f32 %v1762_v8 }
 0x2eb   :  { %v1417_v43 = vpop.f32.mrf.mxu3  ;;  %v1042_v59 = vperm.slane %v1012_v16, 0 }
 0x2ec   :  { %v1562_v52 = vmul.f32 0.35355338, %v1417_v43 }
 0x2ed   :  { %v1133_v9 = vmul.f32 %v11443_v3, %v1042_v59 }
 0x2ee   :  { %v8963_v23 = vclamps-f32 %v1562_v52, 5.0 }
 0x2f0   :  { %v10295_v4 = vpop.eup %10294  ;;  %v1764_v12 = vmul.f32 1.442695, %v8963_v23  ;;  %v1134_v23 = vmul.f32 %v11456_v19, %v1042_v59 }
 0x2f1   :  { %v2201_v35 = vmul.f32 %v10295_v4, %v11625_v24 }
 0x2f2   :  { %10296 = vpow2.f32 %v1764_v12  ;;  %v1198_v21 = vmul.f32 %v1134_v23, %v11303_v55  ;;  %v11646_v12 = vpop.permute.xlu2 %1934 }
 0x2f3   :  { %v1419_v51 = vpop.f32.mrf.mxu3  ;;  %v2260_v17 = vpack.c.bf16 %v2201_v35, %v2200_v14  ;;  %v11638_v35 = vpop.permute.xlu0 %1924  ;;  %15756 = vst [vmem:[#allocation62_spill] sm:$0xff] %v11646_v12 }
 0x2f4   :  { %v1563_v8 = vmul.f32 0.35355338, %v1419_v51  ;;  %15754 = vst [vmem:[#allocation60_spill] sm:$0xff] %v11638_v35 }
 0x2f5   :  { %9021 = vmatmul.msk.bf16.gmra.mxu0 %vm231_vm1, %v2260_v17 }
 0x2f6   :  { %v8964_v43 = vclamps-f32 %v1563_v8, 5.0 }
 0x2f8   :  { %v1766_v52 = vmul.f32 1.442695, %v8964_v43  ;;  %8935 = vmatmul.msk.bf16.gmra.mxu3 %vm950_vm3, %v1245_v15  ;;  %v10297_v24 = vpop.eup %10296 }
 0x2f9   :  { %v2202_v17 = vmul.f32 %v10297_v24, %v11638_v35  ;;  %v1043_v24 = vperm.slane %v11273_v30, 0 }
 0x2fa   :  { %10298 = vpow2.f32 %v1766_v52  ;;  %v1197_v52 = vmul.f32 %v1133_v9, %v11282_v36  ;;  %v11652_v23 = vpop.permute.xlu2 %1097 }
 0x2fb   :  { %v1422_v49 = vpop.f32.mrf.mxu3 }
 0x2fc   :  { %v1564_v4 = vmul.f32 0.35355338, %v1422_v49  ;;  %v1246_v49 = vpack.c.bf16 %v1198_v21, %v1197_v52 }
 0x2fe   :  { %v8965_v51 = vclamps-f32 %v1564_v4, 5.0 }
 0x300   :  { %v10299_v14 = vpop.eup %10298  ;;  %v1768_v43 = vmul.f32 1.442695, %v8965_v51 }
 0x301   :  { %v2203_v15 = vmul.f32 %v10299_v14, %v11640_v5  ;;  %v11654_v14 = vpop.permute.xlu1 %1095 }
 0x302   :  { %10300 = vpow2.f32 %v1768_v43  ;;  %v1135_v9 = vmul.f32 %v11654_v14, %v1043_v24 }
 0x303   :  { %v1424_v8 = vpop.f32.mrf.mxu3  ;;  %v2261_v25 = vpack.c.bf16 %v2203_v15, %v2202_v17  ;;  %v11656_v17 = vpop.f32.mrf.mxu0  ;;  %v1136_v15 = vmul.f32 %v11652_v23, %v1043_v24 }
 0x304   :  { %v1565_v19 = vmul.f32 0.35355338, %v1424_v8  ;;  %v11660_v8 = vpop.permute.xlu0 %1939  ;;  %v1199_v52 = vmul.f32 %v1135_v9, %v11315_v2  ;;  %v1044_v9 = vperm.slane %v1013_v50, 0  ;;  %v1016_v2 = vrot.slane %v11273_v30, 4 }
 0x305   :  { %9022 = vmatmul.msk.bf16.gmra.mxu0 %vm231_vm1, %v2261_v25  ;;  %15757 = vst [vmem:[#allocation63_spill] sm:$0xff] %v11660_v8 }
 0x306   :  { %v8966_v16 = vclamps-f32 %v1565_v19, 5.0 }
 0x308   :  { %v1770_v3 = vmul.f32 1.442695, %v8966_v16  ;;  %8936 = vmatmul.msk.bf16.gmra.mxu3 %vm950_vm3, %v1246_v49  ;;  %v10301_v51 = vpop.eup %10300  ;;  %v1200_v16 = vmul.f32 %v1136_v15, %v11329_v7 }
 0x309   :  { %v2204_v43 = vmul.f32 %v10301_v51, %v11646_v12  ;;  %v11671_v51 = vpop.f32.mrf.mxu1 }
 0x30a   :  { %10302 = vpow2.f32 %v1770_v3  ;;  %v1247_v24 = vpack.c.bf16 %v1200_v16, %v1199_v52  ;;  %15758 = vst [vmem:[#allocation64_spill] sm:$0xff] %v11671_v51  ;;  %v11677_v16 = vpop.permute.xlu1 %1949 }
 0x30b   :  { %v1427_v4 = vpop.f32.mrf.mxu3  ;;  %v11668_v22 = vpop.f32.mrf.mxu0  ;;  %15760 = vst [vmem:[#allocation66_spill] sm:$0xff] %v11677_v16 }
 0x30c   :  { %v1566_v59 = vmul.f32 0.35355338, %v1427_v4 }
 0x30e   :  { %v8967_v25 = vclamps-f32 %v1566_v59, 5.0 }
 0x310   :  { %v10303_v21 = vpop.eup %10302  ;;  %v1772_v4 = vmul.f32 1.442695, %v8967_v25 }
 0x311   :  { %v2205_v19 = vmul.f32 %v10303_v21, %v11660_v8 }
 0x312   :  { %10304 = vpow2.f32 %v1772_v4 }
 0x313   :  { %v1429_v49 = vpop.f32.mrf.mxu3  ;;  %v2262_v3 = vpack.c.bf16 %v2205_v19, %v2204_v43  ;;  %v1137_v43 = vmul.f32 %v11654_v14, %v1044_v9  ;;  %v11675_v19 = vpop.permute.xlu0 %1944 }
 0x314   :  { %v1567_v5 = vmul.f32 0.35355338, %v1429_v49  ;;  %15759 = vst [vmem:[#allocation65_spill] sm:$0xff] %v11675_v19  ;;  %v11679_v49 = vpop.f32.mrf.mxu0 }
 0x315   :  { %9023 = vmatmul.msk.bf16.gmra.mxu0 %vm231_vm1, %v2262_v3  ;;  %15761 = vst [vmem:[#allocation67_spill] sm:$0xff] %v11679_v49  ;;  %v1201_v50 = vmul.f32 %v1137_v43, %v11346_v20 }
 0x316   :  { %v8968_v35 = vclamps-f32 %v1567_v5, 5.0  ;;  %v1138_v5 = vmul.f32 %v11652_v23, %v1044_v9 }
 0x318   :  { %v1774_v59 = vmul.f32 1.442695, %v8968_v35  ;;  %8937 = vmatmul.msk.bf16.gmra.mxu3 %vm950_vm3, %v1247_v24  ;;  %v10305_v25 = vpop.eup %10304  ;;  %v1202_v24 = vmul.f32 %v1138_v5, %v11364_v38 }
 0x319   :  { %v2206_v3 = vmul.f32 %v10305_v25, %v11675_v19 }
 0x31a   :  { %10306 = vpow2.f32 %v1774_v59  ;;  %v11685_v59 = vpop.f32.mrf.mxu1  ;;  %v1248_v6 = vpack.c.bf16 %v1202_v24, %v1201_v50  ;;  %v11696_v50 = vpop.permute.xlu2 %1954 }
 0x31b   :  { %v1432_v15 = vpop.f32.mrf.mxu3  ;;  %15762 = vst [vmem:[#allocation68_spill] sm:$0xff] %v11685_v59 }
 0x31c   :  { %v1568_v21 = vmul.f32 0.35355338, %v1432_v15  ;;  %15765 = vst [vmem:[#allocation71_spill] sm:$0xff] %v11696_v50 }
 0x31e   :  { %v8969_v35 = vclamps-f32 %v1568_v21, 5.0  ;;  %v1014_v21 = vrot.slane %v11273_v30, 2 }
 0x320   :  { %v10307_v52 = vpop.eup %10306  ;;  %v1776_v8 = vmul.f32 1.442695, %v8969_v35  ;;  %v1045_v43 = vperm.slane %v1014_v21, 0 }
 0x321   :  { %v2207_v4 = vmul.f32 %v10307_v52, %v11677_v16  ;;  %v11690_v52 = vpop.f32.mrf.mxu0 }
 0x322   :  { %10308 = vpow2.f32 %v1776_v8  ;;  %15763 = vst [vmem:[#allocation69_spill] sm:$0xff] %v11690_v52  ;;  %v11692_v19 = vpop.f32.mrf.mxu1  ;;  %v11698_v8 = vpop.permute.xlu0 %1959 }
 0x323   :  { %v1434_v15 = vpop.f32.mrf.mxu3  ;;  %v2263_v9 = vpack.c.bf16 %v2207_v4, %v2206_v3  ;;  %15764 = vst [vmem:[#allocation70_spill] sm:$0xff] %v11692_v19  ;;  %v1139_v3 = vmul.f32 %v11654_v14, %v1045_v43 }
 0x324   :  { %v1569_v12 = vmul.f32 0.35355338, %v1434_v15  ;;  %15766 = vst [vmem:[#allocation72_spill] sm:$0xff] %v11698_v8 }
 0x325   :  { %9024 = vmatmul.msk.bf16.gmra.mxu0 %vm231_vm1, %v2263_v9  ;;  %v1203_v9 = vmul.f32 %v1139_v3, %v11382_v61 }
 0x326   :  { %v8970_v7 = vclamps-f32 %v1569_v12, 5.0  ;;  %v1140_v12 = vmul.f32 %v11652_v23, %v1045_v43 }
 0x328   :  { %v1778_v25 = vmul.f32 1.442695, %v8970_v7  ;;  %8938 = vmatmul.msk.bf16.gmra.mxu3 %vm950_vm3, %v1248_v6  ;;  %v10309_v35 = vpop.eup %10308  ;;  %v1204_v21 = vmul.f32 %v1140_v12, %v11399_v11 }
 0x329   :  { %v2208_v6 = vmul.f32 %v10309_v35, %v11696_v50 }
 0x32a   :  { %10310 = vpow2.f32 %v1778_v25  ;;  %v1249_v57 = vpack.c.bf16 %v1204_v21, %v1203_v9  ;;  %v11708_v38 = vpop.f32.mrf.mxu1 }
 0x32b   :  { %v1437_v5 = vpop.f32.mrf.mxu3  ;;  %15767 = vst [vmem:[#allocation73_spill] sm:$0xff] %v11708_v38 }
 0x32c   :  { %v1570_v16 = vmul.f32 0.35355338, %v1437_v5 }
 0x32e   :  { %v8971_v7 = vclamps-f32 %v1570_v16, 5.0  ;;  %v1015_v16 = vrot.slane %v11273_v30, 3 }
 0x330   :  { %v10311_v4 = vpop.eup %10310  ;;  %v1780_v20 = vmul.f32 1.442695, %v8971_v7  ;;  %v1046_v12 = vperm.slane %v1015_v16, 0 }
 0x331   :  { %v2209_v24 = vmul.f32 %v10311_v4, %v11698_v8 }
 0x332   :  { %v11702_v15 = vpop.f32.mrf.mxu0  ;;  %10312 = vpow2.f32 %v1780_v20  ;;  %v1141_v9 = vmul.f32 %v11654_v14, %v1046_v12  ;;  %v1142_v21 = vmul.f32 %v11652_v23, %v1046_v12  ;;  %v11721_v20 = vpop.f32.mrf.mxu1 }
 0x333   :  { %v1439_v25 = vpop.f32.mrf.mxu3  ;;  %v2264_v5 = vpack.c.bf16 %v2209_v24, %v2208_v6  ;;  %15770 = vst [vmem:[#allocation76_spill] sm:$0xff] %v11721_v20 }
 0x334   :  { %v1571_v43 = vmul.f32 0.35355338, %v1439_v25  ;;  %v1206_v4 = vmul.f32 %v1142_v21, %v11440_v0 }
 0x335   :  { %9025 = vmatmul.msk.bf16.gmra.mxu0 %vm231_vm1, %v2264_v5  ;;  %v11717_v5 = vpop.permute.xlu2 %1969 }
 0x336   :  { %v8972_v62 = vclamps-f32 %v1571_v43, 5.0  ;;  %15768 = vst [vmem:[#allocation74_spill] sm:$0xff] %v11717_v5 }
 0x338   :  { %v1782_v35 = vmul.f32 1.442695, %v8972_v62  ;;  %8939 = vmatmul.msk.bf16.gmra.mxu3 %vm950_vm3, %v1249_v57  ;;  %v10313_v24 = vpop.eup %10312  ;;  %v11719_v62 = vpop.permute.xlu1 %1964 }
 0x339   :  { %15769 = vst [vmem:[#allocation75_spill] sm:$0xff] %v11719_v62  ;;  %v2210_v43 = vmul.f32 %v10313_v24, %v11719_v62 }
 0x33a   :  { %10314 = vpow2.f32 %v1782_v35  ;;  %v11711_v3 = vpop.f32.mrf.mxu0 }
 0x33b   :  { %v1442_v7 = vpop.f32.mrf.mxu3 }
 0x33c   :  { %v1572_v6 = vmul.f32 0.35355338, %v1442_v7  ;;  %v1205_v7 = vmul.f32 %v1141_v9, %v11420_v32  ;;  %v1047_v9 = vperm.slane %v1016_v2, 0 }
 0x33e   :  { %v8973_v57 = vclamps-f32 %v1572_v6, 5.0  ;;  %v1250_v6 = vpack.c.bf16 %v1206_v4, %v1205_v7  ;;  %v1144_v4 = vmul.f32 %v11652_v23, %v1047_v9 }
 0x340   :  { %v10315_v25 = vpop.eup %10314  ;;  %v1784_v50 = vmul.f32 1.442695, %v8973_v57 }
 0x341   :  { %v2211_v16 = vmul.f32 %v10315_v25, %v11717_v5  ;;  %v11734_v5 = vpop.f32.mrf.mxu1 }
 0x342   :  { %v11725_v35 = vpop.f32.mrf.mxu0  ;;  %10316 = vpow2.f32 %v1784_v50  ;;  %15771 = vst [vmem:[#allocation77_spill] sm:$0xff] %v11734_v5 }
 0x343   :  { %v1444_v8 = vpop.f32.mrf.mxu3  ;;  %v2265_v12 = vpack.c.bf16 %v2211_v16, %v2210_v43  ;;  %v11742_v16 = vpop.permute.xlu1 %1979 }
 0x344   :  { %v1573_v11 = vmul.f32 0.35355338, %v1444_v8  ;;  %15773 = vst [vmem:[#allocation79_spill] sm:$0xff] %v11742_v16 }
 0x345   :  { %9026 = vmatmul.msk.bf16.gmra.mxu0 %vm231_vm1, %v2265_v12 }
 0x346   :  { %v8974_v61 = vclamps-f32 %v1573_v11, 5.0  ;;  %v1143_v11 = vmul.f32 %v11654_v14, %v1047_v9 }
 0x348   :  { %v1786_v24 = vmul.f32 1.442695, %v8974_v61  ;;  %8940 = vmatmul.msk.bf16.gmra.mxu3 %vm950_vm3, %v1250_v6  ;;  %v10317_v43 = vpop.eup %10316  ;;  %v11740_v61 = vpop.permute.xlu0 %1974 }
 0x349   :  { %15772 = vst [vmem:[#allocation78_spill] sm:$0xff] %v11740_v61  ;;  %v2212_v2 = vmul.f32 %v10317_v43, %v11740_v61  ;;  %v11750_v32 = vpop.f32.mrf.mxu1  ;;  %v1017_v43 = vrot.slane %v11273_v30, 5 }
 0x34a   :  { %10318 = vpow2.f32 %v1786_v24  ;;  %v11732_v25 = vpop.f32.mrf.mxu0  ;;  %v1207_v24 = vmul.f32 %v1143_v11, %v11671_v51  ;;  %15774 = vst [vmem:[#allocation80_spill] sm:$0xff] %v11750_v32 }
 0x34b   :  { %v1447_v8 = vpop.f32.mrf.mxu3 }
 0x34c   :  { %v1574_v57 = vmul.f32 0.35355338, %v1447_v8  ;;  %v1208_v8 = vmul.f32 %v1144_v4, %v11685_v59  ;;  %v1048_v4 = vperm.slane %v1017_v43, 0 }
 0x34e   :  { %v8975_v7 = vclamps-f32 %v1574_v57, 5.0  ;;  %v1251_v57 = vpack.c.bf16 %v1208_v8, %v1207_v24  ;;  %v1146_v24 = vmul.f32 %v11652_v23, %v1048_v4 }
 0x350   :  { %v10319_v50 = vpop.eup %10318  ;;  %v1788_v0 = vmul.f32 1.442695, %v8975_v7 }
 0x351   :  { %v2213_v12 = vmul.f32 %v10319_v50, %v11742_v16  ;;  %v11761_v8 = vpop.f32.mrf.mxu1  ;;  %v1210_v16 = vmul.f32 %v1146_v24, %v11708_v38 }
 0x352   :  { %v11746_v6 = vpop.f32.mrf.mxu0  ;;  %10320 = vpow2.f32 %v1788_v0  ;;  %15775 = vst [vmem:[#allocation81_spill] sm:$0xff] %v11761_v8 }
 0x353   :  { %v1449_v21 = vpop.f32.mrf.mxu3  ;;  %v2266_v62 = vpack.c.bf16 %v2213_v12, %v2212_v2 }
 0x354   :  { %v1575_v9 = vmul.f32 0.35355338, %v1449_v21 }
 0x355   :  { %9027 = vmatmul.msk.bf16.gmra.mxu0 %vm231_vm1, %v2266_v62  ;;  %v1145_v62 = vmul.f32 %v11654_v14, %v1048_v4 }
 0x356   :  { %v8976_v55 = vclamps-f32 %v1575_v9, 5.0  ;;  %v11765_v9 = vpop.permute.xlu0 %1989 }
 0x357   :  { %15777 = vst [vmem:[#allocation83_spill] sm:$0xff] %v11765_v9 }
 0x358   :  { %v1790_v50 = vmul.f32 1.442695, %v8976_v55  ;;  %8941 = vmatmul.msk.bf16.gmra.mxu3 %vm950_vm3, %v1251_v57  ;;  %v10321_v12 = vpop.eup %10320  ;;  %v11763_v55 = vpop.permute.xlu2 %1984 }
 0x359   :  { %15776 = vst [vmem:[#allocation82_spill] sm:$0xff] %v11763_v55  ;;  %v2214_v43 = vmul.f32 %v10321_v12, %v11763_v55 }
 0x35a   :  { %10322 = vpow2.f32 %v1790_v50  ;;  %v11755_v11 = vpop.f32.mrf.mxu0 }
 0x35b   :  { %v1452_v21 = vpop.f32.mrf.mxu3 }
 0x35c   :  { %v1576_v2 = vmul.f32 0.35355338, %v1452_v21  ;;  %v1209_v21 = vmul.f32 %v1145_v62, %v11692_v19 }
 0x35e   :  { %v8977_v57 = vclamps-f32 %v1576_v2, 5.0  ;;  %v1252_v37 = vpack.c.bf16 %v1210_v16, %v1209_v21  ;;  %v1018_v2 = vrot.slane %v11273_v30, 6  ;;  %v11788_v21 = vpop.permute.xlu1 %1994 }
 0x35f   :  { %15781 = vst [vmem:[#allocation87_spill] sm:$0xff] %v11788_v21 }
 0x360   :  { %v10323_v0 = vpop.eup %10322  ;;  %v1792_v51 = vmul.f32 1.442695, %v8977_v57  ;;  %v1049_v24 = vperm.slane %v1018_v2, 0 }
 0x361   :  { %v2215_v50 = vmul.f32 %v10323_v0, %v11765_v9  ;;  %v11776_v0 = vpop.f32.mrf.mxu1 }
 0x362   :  { %v11769_v7 = vpop.f32.mrf.mxu0  ;;  %10324 = vpow2.f32 %v1792_v51  ;;  %15778 = vst [vmem:[#allocation84_spill] sm:$0xff] %v11776_v0  ;;  %v1148_v16 = vmul.f32 %v11652_v23, %v1049_v24  ;;  %v11784_v51 = vpop.permute.xlu0 %2004 }
 0x363   :  { %v1454_v61 = vpop.f32.mrf.mxu3  ;;  %v2267_v4 = vpack.c.bf16 %v2215_v50, %v2214_v43  ;;  %15779 = vst [vmem:[#allocation85_spill] sm:$0xff] %v11784_v51 }
 0x364   :  { %v1577_v59 = vmul.f32 0.35355338, %v1454_v61  ;;  %v1212_v9 = vmul.f32 %v1148_v16, %v11734_v5  ;;  %v8801_v16 = vld [vmem:[%s15441_s9 + $0x18] sm:$0xf0] }
 0x365   :  { %9028 = vmatmul.msk.bf16.gmra.mxu0 %vm231_vm1, %v2267_v4 }
 0x366   :  { %v8978_v18 = vclamps-f32 %v1577_v59, 5.0  ;;  %v1147_v59 = vmul.f32 %v11654_v14, %v1049_v24 }
 0x368   :  { %v1794_v12 = vmul.f32 1.442695, %v8978_v18  ;;  %8942 = vmatmul.msk.bf16.gmra.mxu3 %vm950_vm3, %v1252_v37  ;;  %v10325_v50 = vpop.eup %10324  ;;  %v11786_v37 = vpop.permute.xlu2 %1999 }
 0x369   :  { %15780 = vst [vmem:[#allocation86_spill] sm:$0xff] %v11786_v37  ;;  %v2216_v2 = vmul.f32 %v10325_v50, %v11788_v21  ;;  %v11796_v55 = vpop.f32.mrf.mxu1  ;;  %v1019_v50 = vrot.slane %v11273_v30, 7  ;;  %v8793_v30 = vld [vmem:[%s15441_s9 + $0x8] sm:$0xf0] }
 0x36a   :  { %10326 = vpow2.f32 %v1794_v12  ;;  %v11778_v62 = vpop.f32.mrf.mxu0  ;;  %15782 = vst [vmem:[#allocation88_spill] sm:$0xff] %v11796_v55 }
 0x36b   :  { %v1457_v61 = vpop.f32.mrf.mxu3 }
 0x36c   :  { %v1578_v43 = vmul.f32 0.35355338, %v1457_v61  ;;  %v1211_v61 = vmul.f32 %v1147_v59, %v11721_v20  ;;  %v9690_v59 = vld [vmem:[%s15441_s9 + $0x14] sm:$0xf] }
 0x36e   :  { %v8979_v4 = vclamps-f32 %v1578_v43, 5.0  ;;  %v1253_v43 = vpack.c.bf16 %v1212_v9, %v1211_v61  ;;  %v8804_v9 = vor.u32 %v9690_v59, %v8801_v16 }
 0x370   :  { %v10327_v18 = vpop.eup %10326  ;;  %v1796_v19 = vmul.f32 1.442695, %v8979_v4  ;;  %717 = vmatpush.bf16.msra.mxu2 %v8804_v9  ;;  %v11826_v21 = vpop.permute.xlu2 %2014 }
 0x371   :  { %v2217_v12 = vmul.f32 %v10327_v18, %v11786_v37  ;;  %v11801_v37 = vpop.permute.xlu0 %2019  ;;  %v11819_v61 = vpop.f32.mrf.mxu1  ;;  %15786 = vst [vmem:[#allocation92_spill] sm:$0xff] %v11826_v21 }
 0x372   :  { %v11792_v57 = vpop.f32.mrf.mxu0  ;;  %10328 = vpow2.f32 %v1796_v19  ;;  %15783 = vst [vmem:[#allocation89_spill] sm:$0xff] %v11801_v37 }
 0x373   :  { %v1459_v24 = vpop.f32.mrf.mxu3  ;;  %v2268_v38 = vpack.c.bf16 %v2217_v12, %v2216_v2  ;;  %15784 = vst [vmem:[#allocation90_spill] sm:$0xff] %v11819_v61 }
 0x374   :  { %v1579_v1 = vmul.f32 0.35355338, %v1459_v24 }
 0x375   :  { %9029 = vmatmul.msk.bf16.gmra.mxu0 %vm231_vm1, %v2268_v38 }
 0x376   :  { %v8980_v60 = vclamps-f32 %v1579_v1, 5.0  ;;  %v1050_v1 = vperm.slane %v1019_v50, 0 }
 0x378   :  { %v1798_v18 = vmul.f32 1.442695, %v8980_v60  ;;  %8943 = vmatmul.msk.bf16.gmra.mxu3 %vm950_vm3, %v1253_v43  ;;  %v9688_v60 = vld [vmem:[%s15441_s9 + $0x4] sm:$0xf]  ;;  %v10329_v24 = vpop.eup %10328  ;;  %v1149_v43 = vmul.f32 %v11654_v14, %v1050_v1  ;;  %v1150_v50 = vmul.f32 %v11652_v23, %v1050_v1  ;;  %s10839_s9 = smov 96  }
 0x379   :  { %v8796_v12 = vor.u32 %v9688_v60, %v8793_v30  ;;  %v11834_v5 = vpop.permute.xlu0 %2034 }
 0x37a   :  { %10330 = vpow2.f32 %v1798_v18  ;;  %v11809_v38 = vpop.f32.mrf.mxu0  ;;  %v11824_v18 = vpop.permute.xlu1 %2009  ;;  %v1213_v30 = vmul.f32 %v1149_v43, %v11750_v32  ;;  %15787 = vst [vmem:[#allocation93_spill] sm:$0xff] %v11834_v5 }
 0x37b   :  { %v9773_v19 = vpack.i.bf16 %v11809_v38, %v11792_v57  ;;  %v1462_v4 = vpop.f32.mrf.mxu3  ;;  %15785 = vst [vmem:[#allocation91_spill] sm:$0xff] %v11824_v18  ;;  %718 = vmatpush.bf16.msra.mxu2 %v8796_v12 }
 0x37c   :  { %v1580_v2 = vmul.f32 0.35355338, %v1462_v4  ;;  %v2218_v4 = vmul.f32 %v10329_v24, %v11784_v51  ;;  %v11841_v51 = vpop.f32.mrf.mxu1 }
 0x37d   :  { %9774 = vrot.lane.b32.xlu0 %v9773_v19, %s10837_s27  ;;  %v1214_v19 = vmul.f32 %v1150_v50, %v11761_v8  ;;  %15788 = vst [vmem:[#allocation94_spill] sm:$0xff] %v11841_v51 }
 0x37e   :  { %v8981_v16 = vclamps-f32 %v1580_v2, 5.0  ;;  %v10764_v2 = vld [vmem:[%s15694_s28] sm:$0xff] }
 0x37f   :  { %8837 = vmatmul.msk.bf16.vlgmr.msra.gmra.mxu2 %vm445_vm2, %v10764_v2  ;;  %v11849_v2 = vpop.permute.xlu2 %2029 }
 0x380   :  { %v10331_v59 = vpop.eup %10330  ;;  %v1800_v12 = vmul.f32 1.442695, %v8981_v16  ;;  %15790 = vst [vmem:[#allocation96_spill] sm:$0xff] %v11849_v2 }
 0x381   :  { %v2219_v9 = vmul.f32 %v10331_v59, %v11824_v18  ;;  %v1254_v18 = vpack.c.bf16 %v1214_v19, %v1213_v30  ;;  %v11853_v19 = vpop.permute.xlu0 %2049 }
 0x382   :  { %v11830_v60 = vpop.f32.mrf.mxu0  ;;  %10332 = vpow2.f32 %v1800_v12  ;;  %v11844_v50 = vpop.permute.xlu1 %2024  ;;  %15791 = vst [vmem:[#allocation97_spill] sm:$0xff] %v11853_v19 }
 0x383   :  { %v1464_v1 = vpop.f32.mrf.mxu3  ;;  %v2269_v20 = vpack.c.bf16 %v2219_v9, %v2218_v4  ;;  %15789 = vst [vmem:[#allocation95_spill] sm:$0xff] %v11844_v50  ;;  %v1051_v9 = vperm.slane %v11287_v40, 0 }
 0x384   :  { %v1581_v24 = vmul.f32 0.35355338, %v1464_v1 }
 0x385   :  { %9030 = vmatmul.msk.bf16.gmra.mxu0 %vm231_vm1, %v2269_v20  ;;  %v1152_v12 = vmul.f32 %v11652_v23, %v1051_v9 }
 0x386   :  { %v8982_v59 = vclamps-f32 %v1581_v24, 5.0 }
 0x387   :  { %v1216_v46 = vmul.f32 %v1152_v12, %v11796_v55 }
 0x388   :  { %v1802_v43 = vmul.f32 1.442695, %v8982_v59  ;;  %8944 = vmatmul.msk.bf16.gmra.mxu3 %vm950_vm3, %v1254_v18  ;;  %v10333_v1 = vpop.eup %10332  ;;  %v1151_v18 = vmul.f32 %v11654_v14, %v1051_v9  ;;  %v10765_v9 = vld [vmem:[%s15694_s28 + $0x8] sm:$0xff] }
 0x389   :  { %v2220_v32 = vmul.f32 %v10333_v1, %v11826_v21  ;;  %v11872_v21 = vpop.permute.xlu2 %2044 }
 0x38a   :  { %10334 = vpow2.f32 %v1802_v43  ;;  %v11846_v4 = vpop.f32.mrf.mxu0  ;;  %v11858_v43 = vpop.f32.mrf.mxu1  ;;  %15794 = vst [vmem:[#allocation100_spill] sm:$0xff] %v11872_v21 }
 0x38b   :  { %v9778_v20 = vpack.i.bf16 %v11846_v4, %v11830_v60  ;;  %v1467_v16 = vpop.f32.mrf.mxu3  ;;  %15792 = vst [vmem:[#allocation98_spill] sm:$0xff] %v11858_v43 }
 0x38c   :  { %v1582_v30 = vmul.f32 0.35355338, %v1467_v16  ;;  %v1215_v16 = vmul.f32 %v1151_v18, %v11776_v0  ;;  %v1020_v18 = vrot.slane %v11287_v40, 1 }
 0x38d   :  { %9779 = vrot.lane.b32.xlu1 %v9778_v20, %s10837_s27  ;;  %v11866_v20 = vpop.permute.xlu1 %2039 }
 0x38e   :  { %v8983_v59 = vclamps-f32 %v1582_v30, 5.0  ;;  %15793 = vst [vmem:[#allocation99_spill] sm:$0xff] %v11866_v20  ;;  %v1255_v12 = vpack.c.bf16 %v1216_v46, %v1215_v16 }
 0x38f   :  { %8838 = vmatmul.msk.bf16.gmra.mxu2 %vm445_vm2, %v10765_v9 }
 0x390   :  { %v10335_v24 = vpop.eup %10334  ;;  %v1804_v30 = vmul.f32 1.442695, %v8983_v59 }
 0x391   :  { %v2221_v8 = vmul.f32 %v10335_v24, %v11801_v37  ;;  %v11876_v37 = vpop.permute.xlu0 %2064 }
 0x392   :  { %v11862_v54 = vpop.f32.mrf.mxu0  ;;  %15795 = vst [vmem:[#allocation101_spill] sm:$0xff] %v11876_v37  ;;  %10336 = vpow2.f32 %v1804_v30  ;;  %v11881_v59 = vpop.f32.mrf.mxu1 }
 0x393   :  { %v1469_v56 = vpop.f32.mrf.mxu3  ;;  %v2270_v36 = vpack.c.bf16 %v2221_v8, %v2220_v32  ;;  %v1052_v8 = vperm.slane %v1020_v18, 0  ;;  %15796 = vst [vmem:[#allocation102_spill] sm:$0xff] %v11881_v59 }
 0x394   :  { %v1583_v1 = vmul.f32 0.35355338, %v1469_v56 }
 0x395   :  { %9031 = vmatmul.msk.bf16.gmra.mxu0 %vm231_vm1, %v2270_v36  ;;  %v11885_v0 = vpop.permute.xlu1 %2054  ;;  %v1154_v16 = vmul.f32 %v11652_v23, %v1052_v8  ;;  %v1153_v30 = vmul.f32 %v11654_v14, %v1052_v8  ;;  %v10766_v8 = vld [vmem:[%s15694_s28 + $0x10] sm:$0xff] }
 0x396   :  { %v8984_v24 = vclamps-f32 %v1583_v1, 5.0  ;;  %15797 = vst [vmem:[#allocation103_spill] sm:$0xff] %v11885_v0  ;;  %v11890_v1 = vpop.permute.xlu2 %2059 }
 0x397   :  { %15798 = vst [vmem:[#allocation104_spill] sm:$0xff] %v11890_v1 }
 0x398   :  { %v1806_v32 = vmul.f32 1.442695, %v8984_v24  ;;  %8945 = vmatmul.msk.bf16.gmra.mxu3 %vm950_vm3, %v1255_v12  ;;  %v10337_v46 = vpop.eup %10336 }
 0x399   :  { %v11892_v12 = vpop.permute.xlu0 %2079 }
 0x39a   :  { %10338 = vpow2.f32 %v1806_v32  ;;  %v11879_v55 = vpop.f32.mrf.mxu0  ;;  %15799 = vst [vmem:[#allocation105_spill] sm:$0xff] %v11892_v12  ;;  %v2222_v32 = vmul.f32 %v10337_v46, %v11844_v50  ;;  %v11904_v45 = vpop.f32.mrf.mxu1  ;;  %v1021_v46 = vrot.slane %v11287_v40, 2 }
 0x39b   :  { %v9783_v56 = vpack.i.bf16 %v11879_v55, %v11862_v54  ;;  %v1472_v36 = vpop.f32.mrf.mxu3  ;;  %15800 = vst [vmem:[#allocation106_spill] sm:$0xff] %v11904_v45 }
 0x39c   :  { %v1584_v9 = vmul.f32 0.35355338, %v1472_v36  ;;  %v1218_v36 = vmul.f32 %v1154_v16, %v11841_v51 }
 0x39d   :  { %9784 = vrot.lane.b32.xlu2 %v9783_v56, %s10837_s27  ;;  %v1217_v56 = vmul.f32 %v1153_v30, %v11819_v61 }
 0x39e   :  { %v8985_v24 = vclamps-f32 %v1584_v9, 5.0  ;;  %v11911_v30 = vpop.permute.xlu2 %2074 }
 0x39f   :  { %8839 = vmatmul.msk.bf16.gmra.mxu2 %vm445_vm2, %v10766_v8  ;;  %15802 = vst [vmem:[#allocation108_spill] sm:$0xff] %v11911_v30 }
 0x3a0   :  { %v10339_v18 = vpop.eup %10338  ;;  %v1808_v9 = vmul.f32 1.442695, %v8985_v24 }
 0x3a1   :  { %v2223_v10 = vmul.f32 %v10339_v18, %v11849_v2  ;;  %v1256_v18 = vpack.c.bf16 %v1218_v36, %v1217_v56  ;;  %v11908_v2 = vpop.permute.xlu1 %2069 }
 0x3a2   :  { %v11897_v48 = vpop.f32.mrf.mxu0  ;;  %15801 = vst [vmem:[#allocation107_spill] sm:$0xff] %v11908_v2  ;;  %10340 = vpow2.f32 %v1808_v9 }
 0x3a3   :  { %v1474_v63 = vpop.f32.mrf.mxu3  ;;  %v2271_v47 = vpack.c.bf16 %v2223_v10, %v2222_v32  ;;  %v1053_v32 = vperm.slane %v1021_v46, 0 }
 0x3a4   :  { %v1585_v58 = vmul.f32 0.35355338, %v1474_v63  ;;  %v11915_v63 = vpop.permute.xlu0 %2094 }
 0x3a5   :  { %9032 = vmatmul.msk.bf16.gmra.mxu0 %vm231_vm1, %v2271_v47  ;;  %15803 = vst [vmem:[#allocation109_spill] sm:$0xff] %v11915_v63  ;;  %v1155_v56 = vmul.f32 %v11654_v14, %v1053_v32  ;;  %v1156_v9 = vmul.f32 %v11652_v23, %v1053_v32 }
 0x3a6   :  { %v8986_v16 = vclamps-f32 %v1585_v58, 5.0  ;;  %v11932_v53 = vpop.permute.xlu2 %2089 }
 0x3a7   :  { %v1219_v61 = vmul.f32 %v1155_v56, %v11858_v43  ;;  %15805 = vst [vmem:[#allocation111_spill] sm:$0xff] %v11932_v53 }
 0x3a8   :  { %v1810_v10 = vmul.f32 1.442695, %v8986_v16  ;;  %8946 = vmatmul.msk.bf16.gmra.mxu3 %vm950_vm3, %v1256_v18  ;;  %v10341_v36 = vpop.eup %10340  ;;  %v11922_v16 = vpop.f32.mrf.mxu1 }
 0x3a9   :  { %15804 = vst [vmem:[#allocation110_spill] sm:$0xff] %v11922_v16  ;;  %v2224_v50 = vmul.f32 %v10341_v36, %v11834_v5 }
 0x3aa   :  { %10342 = vpow2.f32 %v1810_v10  ;;  %v11913_v24 = vpop.f32.mrf.mxu0  ;;  %v11924_v10 = vpop.permute.xlu1 %2084 }
 0x3ab   :  { %v9788_v47 = vpack.i.bf16 %v11913_v24, %v11897_v48  ;;  %v1477_v8 = vpop.f32.mrf.mxu3 }
 0x3ac   :  { %v1586_v58 = vmul.f32 0.35355338, %v1477_v8  ;;  %v1220_v8 = vmul.f32 %v1156_v9, %v11881_v59  ;;  %v11938_v5 = vpop.permute.xlu0 %2109  ;;  %v1022_v9 = vrot.slane %v11287_v40, 3 }
 0x3ad   :  { %9789 = vrot.lane.b32.xlu0 %v9788_v47, %s10837_s27 }
 0x3ae   :  { %v8987_v18 = vclamps-f32 %v1586_v58, 5.0  ;;  %v10767_v58 = vld [vmem:[%s15694_s28 + $0x18] sm:$0xff]  ;;  %v1257_v56 = vpack.c.bf16 %v1220_v8, %v1219_v61  ;;  %v11951_v8 = vpop.permute.xlu2 %2104 }
 0x3af   :  { %8840 = vmatmul.msk.bf16.gmra.mxu2 %vm445_vm2, %v10767_v58 }
 0x3b0   :  { %v10343_v46 = vpop.eup %10342  ;;  %v1812_v27 = vmul.f32 1.442695, %v8987_v18 }
 0x3b1   :  { %v2225_v51 = vmul.f32 %v10343_v46, %v11866_v20 }
 0x3b2   :  { %v11930_v47 = vpop.f32.mrf.mxu0  ;;  %10344 = vpow2.f32 %v1812_v27  ;;  %v11947_v18 = vpop.permute.xlu1 %2099 }
 0x3b3   :  { %v1479_v44 = vpop.f32.mrf.mxu3  ;;  %v2272_v32 = vpack.c.bf16 %v2225_v51, %v2224_v50  ;;  %v11943_v51 = vpop.f32.mrf.mxu1  ;;  %v1054_v50 = vperm.slane %v1022_v9, 0  ;;  %15807 = vst [vmem:[#allocation113_spill] sm:$0xff] %v11947_v18 }
 0x3b4   :  { %v1587_v36 = vmul.f32 0.35355338, %v1479_v44  ;;  %15806 = vst [vmem:[#allocation112_spill] sm:$0xff] %v11943_v51 }
 0x3b5   :  { %9033 = vmatmul.msk.bf16.gmra.mxu0 %vm231_vm1, %v2272_v32  ;;  %v1157_v27 = vmul.f32 %v11654_v14, %v1054_v50 }
 0x3b6   :  { %v8988_v46 = vclamps-f32 %v1587_v36, 5.0  ;;  %v1158_v36 = vmul.f32 %v11652_v23, %v1054_v50  ;;  %v10768_v50 = vld [vmem:[%s15694_s28 + $0x20] sm:$0xff] }
 0x3b7   :  { %v1221_v42 = vmul.f32 %v1157_v27, %v11904_v45 }
 0x3b8   :  { %v1814_v20 = vmul.f32 1.442695, %v8988_v46  ;;  %8947 = vmatmul.msk.bf16.gmra.mxu3 %vm950_vm3, %v1257_v56  ;;  %v10345_v58 = vpop.eup %10344  ;;  %v11955_v56 = vpop.permute.xlu0 %2124  ;;  %v1222_v44 = vmul.f32 %v1158_v36, %v11922_v16  ;;  %v1023_v36 = vrot.slane %v11287_v40, 4 }
 0x3b9   :  { %15808 = vst [vmem:[#allocation114_spill] sm:$0xff] %v11955_v56  ;;  %v2226_v46 = vmul.f32 %v10345_v58, %v11872_v21 }
 0x3ba   :  { %10346 = vpow2.f32 %v1814_v20  ;;  %v11945_v43 = vpop.f32.mrf.mxu0  ;;  %v11969_v21 = vpop.permute.xlu1 %2114  ;;  %v1258_v27 = vpack.c.bf16 %v1222_v44, %v1221_v42  ;;  %v1055_v16 = vperm.slane %v1023_v36, 0 }
 0x3bb   :  { %v1482_v32 = vpop.f32.mrf.mxu3  ;;  %v11963_v41 = vpop.f32.mrf.mxu1  ;;  %15810 = vst [vmem:[#allocation116_spill] sm:$0xff] %v11969_v21 }
 0x3bc   :  { %v1588_v61 = vmul.f32 0.35355338, %v1482_v32  ;;  %15809 = vst [vmem:[#allocation115_spill] sm:$0xff] %v11963_v41 }
 0x3be   :  { %v8989_v20 = vclamps-f32 %v1588_v61, 5.0 }
 0x3bf   :  { %8841 = vmatmul.msk.bf16.gmra.mxu2 %vm445_vm2, %v10768_v50 }
 0x3c0   :  { %v10347_v9 = vpop.eup %10346  ;;  %v1816_v61 = vmul.f32 1.442695, %v8989_v20 }
 0x3c1   :  { %v2227_v59 = vmul.f32 %v10347_v9, %v11853_v19  ;;  %v11973_v19 = vpop.permute.xlu2 %2119 }
 0x3c2   :  { %v11961_v32 = vpop.f32.mrf.mxu0  ;;  %15811 = vst [vmem:[#allocation117_spill] sm:$0xff] %v11973_v19  ;;  %10348 = vpow2.f32 %v1816_v61  ;;  %v1160_v61 = vmul.f32 %v11652_v23, %v1055_v16 }
 0x3c3   :  { %v1484_v13 = vpop.f32.mrf.mxu3  ;;  %v2273_v34 = vpack.c.bf16 %v2227_v59, %v2226_v46  ;;  %v11976_v46 = vpop.permute.xlu0 %2139 }
 0x3c4   :  { %v1589_v58 = vmul.f32 0.35355338, %v1484_v13  ;;  %15812 = vst [vmem:[#allocation118_spill] sm:$0xff] %v11976_v46  ;;  %v11982_v44 = vpop.f32.mrf.mxu1 }
 0x3c5   :  { %9034 = vmatmul.msk.bf16.gmra.mxu0 %vm231_vm1, %v2273_v34  ;;  %15813 = vst [vmem:[#allocation119_spill] sm:$0xff] %v11982_v44 }
 0x3c6   :  { %v8990_v9 = vclamps-f32 %v1589_v58, 5.0  ;;  %v1159_v58 = vmul.f32 %v11654_v14, %v1055_v16 }
 0x3c8   :  { %v1818_v59 = vmul.f32 1.442695, %v8990_v9  ;;  %8948 = vmatmul.msk.bf16.gmra.mxu3 %vm950_vm3, %v1258_v27  ;;  %v10349_v50 = vpop.eup %10348  ;;  %v11986_v9 = vpop.permute.xlu1 %2129  ;;  %v1223_v13 = vmul.f32 %v1159_v58, %v11943_v51  ;;  %v1024_v58 = vrot.slane %v11287_v40, 5 }
 0x3c9   :  { %15814 = vst [vmem:[#allocation120_spill] sm:$0xff] %v11986_v9  ;;  %v11988_v36 = vpop.permute.xlu2 %2134 }
 0x3ca   :  { %10350 = vpow2.f32 %v1818_v59  ;;  %v11978_v20 = vpop.f32.mrf.mxu0  ;;  %15815 = vst [vmem:[#allocation121_spill] sm:$0xff] %v11988_v36  ;;  %v2228_v59 = vmul.f32 %v10349_v50, %v11885_v0 }
 0x3cb   :  { %v1487_v34 = vpop.f32.mrf.mxu3  ;;  %v11996_v39 = vpop.permute.xlu0 %2154 }
 0x3cc   :  { %v1590_v42 = vmul.f32 0.35355338, %v1487_v34  ;;  %v1224_v34 = vmul.f32 %v1160_v61, %v11963_v41  ;;  %15816 = vst [vmem:[#allocation122_spill] sm:$0xff] %v11996_v39 }
 0x3ce   :  { %v8991_v45 = vclamps-f32 %v1590_v42, 5.0  ;;  %v10769_v42 = vld [vmem:[%s15694_s28 + $0x28] sm:$0xff] }
 0x3cf   :  { %8842 = vmatmul.msk.bf16.gmra.mxu2 %vm445_vm2, %v10769_v42 }
 0x3d0   :  { %v10351_v27 = vpop.eup %10350  ;;  %v1820_v29 = vmul.f32 1.442695, %v8991_v45 }
 0x3d1   :  { %v2229_v31 = vmul.f32 %v10351_v27, %v11890_v1  ;;  %v1259_v27 = vpack.c.bf16 %v1224_v34, %v1223_v13  ;;  %v12004_v1 = vpop.f32.mrf.mxu1  ;;  %v12011_v45 = vpop.permute.xlu2 %2149 }
 0x3d2   :  { %v11994_v26 = vpop.f32.mrf.mxu0  ;;  %15817 = vst [vmem:[#allocation123_spill] sm:$0xff] %v12004_v1  ;;  %10352 = vpow2.f32 %v1820_v29 }
 0x3d3   :  { %v1489_v28 = vpop.f32.mrf.mxu3  ;;  %v2274_v16 = vpack.c.bf16 %v2229_v31, %v2228_v59  ;;  %v12007_v31 = vpop.permute.xlu1 %2144  ;;  %v1056_v59 = vperm.slane %v1024_v58, 0  ;;  %15819 = vst [vmem:[#allocation125_spill] sm:$0xff] %v12011_v45 }
 0x3d4   :  { %v1591_v50 = vmul.f32 0.35355338, %v1489_v28  ;;  %15818 = vst [vmem:[#allocation124_spill] sm:$0xff] %v12007_v31  ;;  %v12013_v13 = vpop.permute.xlu0 %2169 }
 0x3d5   :  { %9035 = vmatmul.msk.bf16.gmra.mxu0 %vm231_vm1, %v2274_v16  ;;  %15820 = vst [vmem:[#allocation126_spill] sm:$0xff] %v12013_v13  ;;  %v1161_v42 = vmul.f32 %v11654_v14, %v1056_v59  ;;  %v1162_v29 = vmul.f32 %v11652_v23, %v1056_v59  ;;  %v10770_v59 = vld [vmem:[%s15694_s28 + $0x30] sm:$0xff] }
 0x3d6   :  { %v8992_v61 = vclamps-f32 %v1591_v50, 5.0 }
 0x3d7   :  { %v1225_v51 = vmul.f32 %v1161_v42, %v11982_v44  ;;  %v1226_v33 = vmul.f32 %v1162_v29, %v12004_v1  ;;  %v1025_v29 = vrot.slane %v11287_v40, 6  ;;  %v2565_v1 = vmul.f32 %v11809_v38, %v11668_v22 }
 0x3d8   :  { %v1822_v0 = vmul.f32 1.442695, %v8992_v61  ;;  %8949 = vmatmul.msk.bf16.gmra.mxu3 %vm950_vm3, %v1259_v27  ;;  %v10353_v34 = vpop.eup %10352 }
 0x3d9   :  { %v12017_v27 = vpop.f32.mrf.mxu1  ;;  %v2230_v58 = vmul.f32 %v10353_v34, %v11876_v37  ;;  %v12031_v37 = vpop.permute.xlu2 %2164  ;;  %v1260_v42 = vpack.c.bf16 %v1226_v33, %v1225_v51 }
 0x3da   :  { %10354 = vpow2.f32 %v1822_v0  ;;  %v12009_v41 = vpop.f32.mrf.mxu0  ;;  %15822 = vst [vmem:[#allocation128_spill] sm:$0xff] %v12031_v37 }
 0x3db   :  { %v1492_v28 = vpop.f32.mrf.mxu3  ;;  %v12025_v52 = vpop.permute.xlu1 %2159 }
 0x3dc   :  { %v1592_v16 = vmul.f32 0.35355338, %v1492_v28  ;;  %15821 = vst [vmem:[#allocation127_spill] sm:$0xff] %v12025_v52 }
 0x3de   :  { %v8993_v61 = vclamps-f32 %v1592_v16, 5.0 }
 0x3df   :  { %8843 = vmatmul.msk.bf16.gmra.mxu2 %vm445_vm2, %v10770_v59 }
 0x3e0   :  { %v10355_v50 = vpop.eup %10354  ;;  %v1824_v16 = vmul.f32 1.442695, %v8993_v61 }
 0x3e1   :  { %v2231_v0 = vmul.f32 %v10355_v50, %v11908_v2  ;;  %v12035_v2 = vpop.permute.xlu0 %2184  ;;  %v12040_v61 = vpop.f32.mrf.mxu1 }
 0x3e2   :  { %v12023_v28 = vpop.f32.mrf.mxu0  ;;  %15823 = vst [vmem:[#allocation129_spill] sm:$0xff] %v12035_v2  ;;  %10356 = vpow2.f32 %v1824_v16 }
 0x3e3   :  { %v1494_v49 = vpop.f32.mrf.mxu3  ;;  %v2275_v13 = vpack.c.bf16 %v2231_v0, %v2230_v58  ;;  %v1057_v0 = vperm.slane %v1025_v29, 0  ;;  %15824 = vst [vmem:[#allocation130_spill] sm:$0xff] %v12040_v61  ;;  %v12044_v51 = vpop.permute.xlu1 %2174  ;;  %v2564_v29 = vmul.f32 %v11792_v57, %v11656_v17 }
 0x3e4   :  { %v1593_v34 = vmul.f32 0.35355338, %v1494_v49  ;;  %15825 = vst [vmem:[#allocation131_spill] sm:$0xff] %v12044_v51 }
 0x3e5   :  { %9036 = vmatmul.msk.bf16.gmra.mxu0 %vm231_vm1, %v2275_v13  ;;  %v1163_v16 = vmul.f32 %v11654_v14, %v1057_v0 }
 0x3e6   :  { %v8994_v50 = vclamps-f32 %v1593_v34, 5.0  ;;  %v1164_v34 = vmul.f32 %v11652_v23, %v1057_v0 }
 0x3e7   :  { %v1227_v52 = vmul.f32 %v1163_v16, %v12017_v27 }
 0x3e8   :  { %v1826_v58 = vmul.f32 1.442695, %v8994_v50  ;;  %8950 = vmatmul.msk.bf16.gmra.mxu3 %vm950_vm3, %v1260_v42  ;;  %v10357_v59 = vpop.eup %10356  ;;  %v12049_v42 = vpop.permute.xlu2 %2179  ;;  %v1228_v0 = vmul.f32 %v1164_v34, %v12040_v61 }
 0x3e9   :  { %15826 = vst [vmem:[#allocation132_spill] sm:$0xff] %v12049_v42 }
 0x3ea   :  { %10358 = vpow2.f32 %v1826_v58  ;;  %v12038_v44 = vpop.f32.mrf.mxu0 }
 0x3eb   :  { %v9793_v49 = vpack.i.bf16 %v12038_v44, %v12023_v28  ;;  %v1497_v13 = vpop.f32.mrf.mxu3 }
 0x3ec   :  { %v1594_v33 = vmul.f32 0.35355338, %v1497_v13 }
 0x3ed   :  { %9794 = vrot.lane.b32.xlu1 %v9793_v49, %s10837_s27  ;;  %v2232_v49 = vmul.f32 %v10357_v59, %v11911_v30  ;;  %v10771_v59 = vld [vmem:[%s15694_s28 + $0x38] sm:$0xff] }
 0x3ee   :  { %v8995_v13 = vclamps-f32 %v1594_v33, 5.0 }
 0x3ef   :  { %v9775_v50 = vpop.permute.xlu0 %9774  ;;  %8844 = vmatmul.msk.bf16.gmra.mxu2 %vm445_vm2, %v10771_v59 }
 0x3f0   :  { %v10359_v58 = vpop.eup %10358  ;;  %v9777_v2 = vunpack.i.h.bf16 %v9775_v50  ;;  %v9776_v51 = vunpack.i.l.bf16 %v9775_v50  ;;  %v1828_v34 = vmul.f32 1.442695, %v8995_v13 }
 0x3f1   :  { %v2233_v37 = vmul.f32 %v10359_v58, %v11892_v12  ;;  %v12073_v58 = vpop.f32.mrf.mxu1 }
 0x3f2   :  { %v12059_v42 = vpop.f32.mrf.mxu0  ;;  %v12062_v57 = vsel %vm950_vm3, %v2564_v29, %v9776_v51  ;;  %v12065_v39 = vsel %vm950_vm3, %v2565_v1, %v9777_v2  ;;  %v1261_v51 = vpack.c.bf16 %v1228_v0, %v1227_v52  ;;  %v1026_v1 = vrot.slane %v11287_v40, 7 }
 0x3f3   :  { %v1499_v38 = vpop.f32.mrf.mxu3  ;;  %v2276_v33 = vpack.c.bf16 %v2233_v37, %v2232_v49  ;;  %v12077_v37 = vpop.permute.xlu1 %2189  ;;  %v2568_v29 = vmul.f32 %v11862_v54, %v11656_v17  ;;  %v2569_v49 = vmul.f32 %v11879_v55, %v11668_v22  ;;  %10360 = vpow2.f32 %v1828_v34 }
 0x3f4   :  { %v1595_v50 = vmul.f32 0.35355338, %v1499_v38  ;;  %15827 = vst [vmem:[#allocation133_spill] sm:$0xff] %v12077_v37  ;;  %v1058_v54 = vperm.slane %v1026_v1, 0  ;;  %v2566_v1 = vmul.f32 %v11830_v60, %v11656_v17 }
 0x3f5   :  { %9037 = vmatmul.msk.bf16.gmra.mxu0 %vm231_vm1, %v2276_v33 }
 0x3f6   :  { %v8996_v2 = vclamps-f32 %v1595_v50, 5.0 }
 0x3f7   :  { %v9785_v59 = vpop.permute.xlu2 %9784 }
 0x3f8   :  { %v1830_v13 = vmul.f32 1.442695, %v8996_v2  ;;  %v9787_v38 = vunpack.i.h.bf16 %v9785_v59  ;;  %v9786_v16 = vunpack.i.l.bf16 %v9785_v59  ;;  %8951 = vmatmul.msk.bf16.gmra.mxu3 %vm950_vm3, %v1261_v51  ;;  %v1165_v2 = vmul.f32 %v11654_v14, %v1058_v54 }
 0x3f9   :  { %v10361_v51 = vpop.eup %10360  ;;  %v12098_v59 = vpop.f32.mrf.mxu1 }
 0x3fa   :  { %10362 = vpow2.f32 %v1830_v13  ;;  %v12084_v52 = vpop.f32.mrf.mxu0  ;;  %v12087_v40 = vsel %vm950_vm3, %v2568_v29, %v9786_v16  ;;  %v12090_v0 = vsel %vm950_vm3, %v2569_v49, %v9787_v38  ;;  %v1166_v16 = vmul.f32 %v11652_v23, %v1058_v54 }
 0x3fb   :  { %v9798_v55 = vpack.i.bf16 %v12084_v52, %v12059_v42  ;;  %v1502_v33 = vpop.f32.mrf.mxu3  ;;  %v2567_v13 = vmul.f32 %v11846_v4, %v11668_v22  ;;  %v10772_v4 = vld [vmem:[%s15694_s28 + $0x40] sm:$0xff] }
 0x3fc   :  { %v1596_v50 = vmul.f32 0.35355338, %v1502_v33  ;;  %v1230_v14 = vmul.f32 %v1166_v16, %v12098_v59 }
 0x3fd   :  { %9799 = vrot.lane.b32.xlu2 %v9798_v55, %s10837_s27  ;;  %v2234_v55 = vmul.f32 %v10361_v51, %v11924_v10  ;;  %v1229_v51 = vmul.f32 %v1165_v2, %v12073_v58 }
 0x3fe   :  { %v8997_v38 = vclamps-f32 %v1596_v50, 5.0 }
 0x3ff   :  { %v9780_v29 = vpop.permute.xlu1 %9779  ;;  %8845 = vmatmul.msk.bf16.gmra.mxu2 %vm445_vm2, %v10772_v4 }
 0x400   :  { %v10363_v49 = vpop.eup %10362  ;;  %v9782_v34 = vunpack.i.h.bf16 %v9780_v29  ;;  %v9781_v33 = vunpack.i.l.bf16 %v9780_v29  ;;  %v1832_v16 = vmul.f32 1.442695, %v8997_v38 }
 0x401   :  { %v2235_v12 = vmul.f32 %v10363_v49, %v11932_v53 }
 0x402   :  { %v12108_v30 = vpop.f32.mrf.mxu0  ;;  %v12111_v23 = vsel %vm950_vm3, %v2566_v1, %v9781_v33  ;;  %v12114_v60 = vsel %vm950_vm3, %v2567_v13, %v9782_v34  ;;  %v1262_v1 = vpack.c.bf16 %v1230_v14, %v1229_v51  ;;  %10364 = vpow2.f32 %v1832_v16 }
 0x403   :  { %v1504_v54 = vpop.f32.mrf.mxu3  ;;  %v2277_v61 = vpack.c.bf16 %v2235_v12, %v2234_v55  ;;  %v12125_v12 = vpop.f32.mrf.mxu2 }
 0x404   :  { %v1597_v29 = vmul.f32 0.35355338, %v1504_v54  ;;  %15828 = vst [vmem:[#allocation134_spill] sm:$0xff] %v12125_v12 }
 0x405   :  { %9038 = vmatmul.msk.bf16.gmra.mxu0 %vm231_vm1, %v2277_v61 }
 0x406   :  { %v8998_v34 = vclamps-f32 %v1597_v29, 5.0  ;;  %v9823_v29 = vpack.i.bf16 %v12009_v41, %v11994_v26 }
 0x408   :  { %v1834_v49 = vmul.f32 1.442695, %v8998_v34  ;;  %8952 = vmatmul.msk.bf16.gmra.mxu3 %vm950_vm3, %v1262_v1  ;;  %v10365_v38 = vpop.eup %10364 }
 0x409   :  { %v2236_v54 = vmul.f32 %v10365_v38, %v11915_v63 }
 0x40a   :  { %10366 = vpow2.f32 %v1834_v49  ;;  %v12127_v13 = vpop.f32.mrf.mxu0  ;;  %v10773_v49 = vld [vmem:[%s15694_s28 + $0x48] sm:$0xff] }
 0x40b   :  { %v9803_v33 = vpack.i.bf16 %v12127_v13, %v12108_v30  ;;  %v1507_v55 = vpop.f32.mrf.mxu3  ;;  %v12134_v51 = vpop.f32.mrf.mxu2 }
 0x40c   :  { %v1598_v2 = vmul.f32 0.35355338, %v1507_v55  ;;  %15829 = vst [vmem:[#allocation135_spill] sm:$0xff] %v12134_v51 }
 0x40d   :  { %9804 = vrot.lane.b32.xlu0 %v9803_v33, %s10837_s27 }
 0x40e   :  { %v8999_v14 = vclamps-f32 %v1598_v2, 5.0 }
 0x40f   :  { %8846 = vmatmul.msk.bf16.gmra.mxu2 %vm445_vm2, %v10773_v49 }
 0x410   :  { %v10367_v61 = vpop.eup %10366  ;;  %v1836_v33 = vmul.f32 1.442695, %v8999_v14  ;;  %v15831_v14 = vpack.i.bf16 %v11732_v25, %v11725_v35 }
 0x411   :  { %v2237_v4 = vmul.f32 %v10367_v61, %v11947_v18 }
 0x412   :  { %v12136_v16 = vpop.f32.mrf.mxu0  ;;  %10368 = vpow2.f32 %v1836_v33  ;;  %v2571_v33 = vmul.f32 %v11913_v24, %v11668_v22  ;;  %v10774_v24 = vld [vmem:[%s15694_s28 + $0x50] sm:$0xff] }
 0x413   :  { %v1509_v1 = vpop.f32.mrf.mxu3  ;;  %v2278_v34 = vpack.c.bf16 %v2237_v4, %v2236_v54  ;;  %v12146_v61 = vpop.f32.mrf.mxu2 }
 0x414   :  { %v1599_v55 = vmul.f32 0.35355338, %v1509_v1  ;;  %15830 = vst [vmem:[#allocation136_spill] sm:$0xff] %v12146_v61  ;;  %v2570_v1 = vmul.f32 %v11897_v48, %v11656_v17 }
 0x415   :  { %9824 = vrot.lane.b32.xlu0 %v9823_v29, %s10837_s27  ;;  %9039 = vmatmul.msk.bf16.gmra.mxu0 %vm231_vm1, %v2278_v34 }
 0x416   :  { %v9000_v2 = vclamps-f32 %v1599_v55, 5.0 }
 0x418   :  { %v1838_v38 = vmul.f32 1.442695, %v9000_v2  ;;  %v10369_v29 = vpop.eup %10368 }
 0x41a   :  { %10370 = vpow2.f32 %v1838_v38  ;;  %v12148_v50 = vpop.f32.mrf.mxu0 }
 0x41b   :  { %v9808_v54 = vpack.i.bf16 %v12148_v50, %v12136_v16  ;;  %v1512_v4 = vpop.f32.mrf.mxu3  ;;  %v12163_v12 = vpop.f32.mrf.mxu2 }
 0x41c   :  { %v1600_v51 = vmul.f32 0.35355338, %v1512_v4  ;;  %v2238_v4 = vmul.f32 %v10369_v29, %v11951_v8  ;;  %15832 = vst [vmem:[#allocation137_spill] sm:$0xff] %v12163_v12 }
 0x41d   :  { %9839 = vrot.lane.b32.xlu0 %v15831_v14, %s10837_s27  ;;  %9809 = vrot.lane.b32.xlu1 %v9808_v54, %s10837_s27 }
 0x41e   :  { %v9001_v55 = vclamps-f32 %v1600_v51, 5.0 }
 0x41f   :  { %v9790_v34 = vpop.permute.xlu0 %9789  ;;  %8847 = vmatmul.msk.bf16.gmra.mxu2 %vm445_vm2, %v10774_v24 }
 0x420   :  { %v10371_v49 = vpop.eup %10370  ;;  %v9792_v2 = vunpack.i.h.bf16 %v9790_v34  ;;  %v9791_v38 = vunpack.i.l.bf16 %v9790_v34  ;;  %v1840_v51 = vmul.f32 1.442695, %v9001_v55  ;;  %v15833_v34 = vpack.i.bf16 %v11755_v11, %v11746_v6 }
 0x421   :  { %v2239_v61 = vmul.f32 %v10371_v49, %v11938_v5 }
 0x422   :  { %v12165_v14 = vpop.f32.mrf.mxu0  ;;  %v2890_v54 = vsel %vm950_vm3, %v2570_v1, %v9791_v38  ;;  %v2891_v48 = vsel %vm950_vm3, %v2571_v33, %v9792_v2  ;;  %10372 = vpow2.f32 %v1840_v51  ;;  %v15836_v38 = vpack.c.bf16 %v12114_v60, %v12111_v23 }
 0x423   :  { %v1514_v18 = vpop.f32.mrf.mxu3  ;;  %v2947_v63 = vpack.c.bf16 %v2891_v48, %v2890_v54  ;;  %v2279_v53 = vpack.c.bf16 %v2239_v61, %v2238_v4  ;;  %v15834_v61 = vpack.c.bf16 %v12090_v0, %v12087_v40  ;;  %v12181_v33 = vpop.f32.mrf.mxu2  ;;  %v15838_v48 = vpack.c.bf16 %v12065_v39, %v12062_v57 }
 0x424   :  { %v1601_v29 = vmul.f32 0.35355338, %v1514_v18  ;;  %15835 = vst [vmem:[#allocation138_spill] sm:$0xff] %v12181_v33  ;;  %v15840_v39 = vpack.i.bf16 %v11778_v62, %v11769_v7 }
 0x425   :  { %3012 = vmatpush.bf16.msrb.mxu1 %v2947_v63  ;;  %9829 = vrot.lane.b32.xlu1 %v15833_v34, %s10837_s27  ;;  %v10775_v34 = vld [vmem:[%s15694_s28 + $0x58] sm:$0xff] }
 0x426   :  { %v9002_v1 = vclamps-f32 %v1601_v29, 5.0  ;;  %9040 = vmatmul.msk.bf16.gmra.mxu0 %vm231_vm1, %v2279_v53  ;;  %v15837_v53 = vpack.i.bf16 %v11945_v43, %v11930_v47 }
 0x428   :  { %v1842_v49 = vmul.f32 1.442695, %v9002_v1  ;;  %v10373_v40 = vpop.eup %10372 }
 0x429   :  { %3013 = vmatpush.bf16.msrb.mxu1 %v15834_v61  ;;  %v2240_v54 = vmul.f32 %v10373_v40, %v11969_v21 }
 0x42a   :  { %10374 = vpow2.f32 %v1842_v49  ;;  %v12183_v55 = vpop.f32.mrf.mxu0 }
 0x42b   :  { %v9813_v63 = vpack.i.bf16 %v12183_v55, %v12165_v14  ;;  %v1517_v18 = vpop.f32.mrf.mxu3  ;;  %v12200_v23 = vpop.f32.mrf.mxu2 }
 0x42c   :  { %v1602_v2 = vmul.f32 0.35355338, %v1517_v18  ;;  %15839 = vst [vmem:[#allocation139_spill] sm:$0xff] %v12200_v23 }
 0x42d   :  { %3014 = vmatpush.bf16.msrb.mxu1 %v15836_v38  ;;  %9844 = vrot.lane.b32.xlu1 %v15837_v53, %s10837_s27 }
 0x42e   :  { %9814 = vrot.lane.b32.xlu2 %v9813_v63, %s10837_s27  ;;  %v9003_v4 = vclamps-f32 %v1602_v2, 5.0  ;;  %v10777_v2 = vld [vmem:[%s15694_s28 + $0x68] sm:$0xff] }
 0x42f   :  { %8848 = vmatmul.msk.bf16.gmra.mxu2 %vm445_vm2, %v10775_v34 }
 0x430   :  { %v10375_v0 = vpop.eup %10374  ;;  %v1844_v1 = vmul.f32 1.442695, %v9003_v4 }
 0x431   :  { %3015 = vmatpush.bf16.msrb.mxu1 %v15838_v48  ;;  %v2241_v24 = vmul.f32 %v10375_v0, %v11973_v19  ;;  %v15842_v0 = vpack.i.bf16 %v11978_v20, %v11961_v32 }
 0x432   :  { %v12202_v60 = vpop.f32.mrf.mxu0  ;;  %10376 = vpow2.f32 %v1844_v1 }
 0x433   :  { %v1519_v51 = vpop.f32.mrf.mxu3  ;;  %v2280_v29 = vpack.c.bf16 %v2241_v24, %v2240_v54  ;;  %v12213_v63 = vpop.f32.mrf.mxu2 }
 0x434   :  { %v1603_v49 = vmul.f32 0.35355338, %v1519_v51  ;;  %15841 = vst [vmem:[#allocation140_spill] sm:$0xff] %v12213_v63 }
 0x436   :  { %v9004_v61 = vclamps-f32 %v1603_v49, 5.0  ;;  %9819 = vrot.lane.b32.xlu2 %v15840_v39, %s10837_s27  ;;  %9041 = vmatmul.msk.bf16.gmra.mxu0 %vm231_vm1, %v2280_v29  ;;  %v10776_v49 = vld [vmem:[%s15694_s28 + $0x60] sm:$0xff] }
 0x438   :  { %v1846_v57 = vmul.f32 1.442695, %v9004_v61  ;;  %v10377_v40 = vpop.eup %10376 }
 0x439   :  { %v2242_v48 = vmul.f32 %v10377_v40, %v11955_v56 }
 0x43a   :  { %10378 = vpow2.f32 %v1846_v57  ;;  %v12215_v18 = vpop.f32.mrf.mxu0 }
 0x43b   :  { %v1522_v38 = vpop.f32.mrf.mxu3  ;;  %v12225_v51 = vpop.f32.mrf.mxu2 }
 0x43c   :  { %v1604_v53 = vmul.f32 0.35355338, %v1522_v38  ;;  %15843 = vst [vmem:[#allocation141_spill] sm:$0xff] %v12225_v51  ;;  %v15844_v38 = vpack.i.bf16 %v11711_v3, %v11702_v15 }
 0x43e   :  { %9834 = vrot.lane.b32.xlu2 %v15842_v0, %s10837_s27  ;;  %v9005_v54 = vclamps-f32 %v1604_v53, 5.0 }
 0x43f   :  { %8849 = vmatmul.msk.bf16.gmra.mxu2 %vm445_vm2, %v10776_v49 }
 0x440   :  { %v10379_v4 = vpop.eup %10378  ;;  %v1848_v61 = vmul.f32 1.442695, %v9005_v54 }
 0x441   :  { %v2243_v24 = vmul.f32 %v10379_v4, %v11986_v9 }
 0x442   :  { %v12227_v29 = vpop.f32.mrf.mxu0  ;;  %10380 = vpow2.f32 %v1848_v61 }
 0x443   :  { %v1524_v34 = vpop.f32.mrf.mxu3  ;;  %v2281_v1 = vpack.c.bf16 %v2243_v24, %v2242_v48  ;;  %v12238_v40 = vpop.f32.mrf.mxu2 }
 0x444   :  { %v1605_v39 = vmul.f32 0.35355338, %v1524_v34  ;;  %15845 = vst [vmem:[#allocation142_spill] sm:$0xff] %v12238_v40 }
 0x446   :  { %v9006_v57 = vclamps-f32 %v1605_v39, 5.0  ;;  %9849 = vrot.lane.b32.xlu2 %v15844_v38, %s10837_s27  ;;  %9042 = vmatmul.msk.bf16.gmra.mxu0 %vm231_vm1, %v2281_v1 }
 0x448   :  { %v1850_v53 = vmul.f32 1.442695, %v9006_v57  ;;  %v10381_v24 = vpop.eup %10380 }
 0x449   :  { %v2244_v39 = vmul.f32 %v10381_v24, %v11988_v36  ;;  %v2581_v24 = vmul.f32 %v12084_v52, %v11668_v22 }
 0x44a   :  { %10382 = vpow2.f32 %v1850_v53  ;;  %v12240_v0 = vpop.f32.mrf.mxu0 }
 0x44b   :  { %v1527_v54 = vpop.f32.mrf.mxu3  ;;  %v12246_v1 = vpop.f32.mrf.mxu2 }
 0x44c   :  { %v1606_v48 = vmul.f32 0.35355338, %v1527_v54  ;;  %15846 = vst [vmem:[#allocation143_spill] sm:$0xff] %v12246_v1 }
 0x44e   :  { %v9007_v49 = vclamps-f32 %v1606_v48, 5.0  ;;  %v2580_v48 = vmul.f32 %v12059_v42, %v11656_v17 }
 0x44f   :  { %8850 = vmatmul.msk.bf16.gmra.mxu2 %vm445_vm2, %v10777_v2 }
 0x450   :  { %v10383_v34 = vpop.eup %10382  ;;  %v1852_v54 = vmul.f32 1.442695, %v9007_v49 }
 0x451   :  { %v2245_v38 = vmul.f32 %v10383_v34, %v11976_v46 }
 0x452   :  { %v12248_v61 = vpop.f32.mrf.mxu0  ;;  %10384 = vpow2.f32 %v1852_v54  ;;  %v2578_v54 = vmul.f32 %v12023_v28, %v11656_v17 }
 0x453   :  { %v1529_v57 = vpop.f32.mrf.mxu3  ;;  %v2282_v53 = vpack.c.bf16 %v2245_v38, %v2244_v39  ;;  %v12259_v51 = vpop.f32.mrf.mxu2 }
 0x454   :  { %v1607_v4 = vmul.f32 0.35355338, %v1529_v57  ;;  %15847 = vst [vmem:[#allocation144_spill] sm:$0xff] %v12259_v51 }
 0x456   :  { %v9008_v40 = vclamps-f32 %v1607_v4, 5.0  ;;  %9043 = vmatmul.msk.bf16.gmra.mxu0 %vm231_vm1, %v2282_v53 }
 0x457   :  { %v9800_v34 = vpop.permute.xlu2 %9799 }
 0x458   :  { %v1854_v39 = vmul.f32 1.442695, %v9008_v40  ;;  %v9802_v38 = vunpack.i.h.bf16 %v9800_v34  ;;  %v9801_v1 = vunpack.i.l.bf16 %v9800_v34  ;;  %v10385_v53 = vpop.eup %10384 }
 0x459   :  { %v2246_v51 = vmul.f32 %v10385_v53, %v12007_v31 }
 0x45a   :  { %10386 = vpow2.f32 %v1854_v39  ;;  %v12261_v2 = vpop.f32.mrf.mxu0  ;;  %v12264_v4 = vsel %vm950_vm3, %v2580_v48, %v9801_v1  ;;  %v12267_v49 = vsel %vm950_vm3, %v2581_v24, %v9802_v38  ;;  %v2579_v1 = vmul.f32 %v12038_v44, %v11668_v22  ;;  %v10778_v44 = vld [vmem:[%s15694_s28 + $0x70] sm:$0xff] }
 0x45b   :  { %v1532_v52 = vpop.f32.mrf.mxu3  ;;  %v12279_v63 = vpop.f32.mrf.mxu2 }
 0x45c   :  { %v1608_v57 = vmul.f32 0.35355338, %v1532_v52  ;;  %15848 = vst [vmem:[#allocation145_spill] sm:$0xff] %v12279_v63 }
 0x45e   :  { %v9009_v48 = vclamps-f32 %v1608_v57, 5.0 }
 0x45f   :  { %v9795_v34 = vpop.permute.xlu1 %9794  ;;  %8851 = vmatmul.msk.bf16.gmra.mxu2 %vm445_vm2, %v10778_v44 }
 0x460   :  { %v10387_v39 = vpop.eup %10386  ;;  %v9797_v24 = vunpack.i.h.bf16 %v9795_v34  ;;  %v9796_v38 = vunpack.i.l.bf16 %v9795_v34  ;;  %v1856_v53 = vmul.f32 1.442695, %v9009_v48  ;;  %v15850_v48 = vld [vmem:[#allocation122_spill] sm:$0xff] }
 0x461   :  { %v2247_v42 = vmul.f32 %v10387_v39, %v12011_v45 }
 0x462   :  { %v12281_v40 = vpop.f32.mrf.mxu0  ;;  %v12284_v52 = vsel %vm950_vm3, %v2578_v54, %v9796_v38  ;;  %v12287_v28 = vsel %vm950_vm3, %v2579_v1, %v9797_v24  ;;  %10388 = vpow2.f32 %v1856_v53 }
 0x463   :  { %v1534_v23 = vpop.f32.mrf.mxu3  ;;  %v2283_v33 = vpack.c.bf16 %v2247_v42, %v2246_v51  ;;  %v12296_v1 = vpop.f32.mrf.mxu2 }
 0x464   :  { %v1609_v34 = vmul.f32 0.35355338, %v1534_v23  ;;  %15849 = vst [vmem:[#allocation146_spill] sm:$0xff] %v12296_v1  ;;  %v10779_v1 = vld [vmem:[%s15694_s28 + $0x78] sm:$0xff] }
 0x466   :  { %v9010_v39 = vclamps-f32 %v1609_v34, 5.0  ;;  %9044 = vmatmul.msk.bf16.gmra.mxu0 %vm231_vm1, %v2283_v33  ;;  %v15851_v34 = vld [vmem:[#allocation127_spill] sm:$0xff] }
 0x468   :  { %v1858_v54 = vmul.f32 1.442695, %v9010_v39  ;;  %v10389_v44 = vpop.eup %10388 }
 0x469   :  { %v2248_v23 = vmul.f32 %v10389_v44, %v15850_v48 }
 0x46a   :  { %10390 = vpow2.f32 %v1858_v54  ;;  %v12298_v51 = vpop.f32.mrf.mxu0 }
 0x46b   :  { %v1537_v24 = vpop.f32.mrf.mxu3  ;;  %v12304_v33 = vpop.f32.mrf.mxu2 }
 0x46c   :  { %v1610_v38 = vmul.f32 0.35355338, %v1537_v24  ;;  %15852 = vst [vmem:[#allocation147_spill] sm:$0xff] %v12304_v33 }
 0x46e   :  { %v9011_v57 = vclamps-f32 %v1610_v38, 5.0 }
 0x46f   :  { %8852 = vmatmul.msk.bf16.gmra.mxu2 %vm445_vm2, %v10779_v1  ;;  %v2583_v1 = vmul.f32 %v12127_v13, %v11668_v22  ;;  %v2586_v13 = vmul.f32 %v12165_v14, %v11656_v17 }
 0x470   :  { %v10391_v63 = vpop.eup %10390  ;;  %v1860_v24 = vmul.f32 1.442695, %v9011_v57  ;;  %v2582_v57 = vmul.f32 %v12108_v30, %v11656_v17 }
 0x471   :  { %v2249_v12 = vmul.f32 %v10391_v63, %v15851_v34 }
 0x472   :  { %v12306_v53 = vpop.f32.mrf.mxu0  ;;  %10392 = vpow2.f32 %v1860_v24  ;;  %v15855_v24 = vld [vmem:[#allocation126_spill] sm:$0xff] }
 0x473   :  { %v1539_v39 = vpop.f32.mrf.mxu3  ;;  %v2284_v54 = vpack.c.bf16 %v2249_v12, %v2248_v23  ;;  %v12313_v63 = vpop.f32.mrf.mxu2 }
 0x474   :  { %v1611_v42 = vmul.f32 0.35355338, %v1539_v39  ;;  %15853 = vst [vmem:[#allocation148_spill] sm:$0xff] %v12313_v63 }
 0x476   :  { %v9012_v45 = vclamps-f32 %v1611_v42, 5.0  ;;  %9045 = vmatmul.msk.bf16.gmra.mxu0 %vm231_vm1, %v2284_v54 }
 0x478   :  { %v1862_v38 = vmul.f32 1.442695, %v9012_v45  ;;  %v10393_v23 = vpop.eup %10392  ;;  %v15854_v45 = vld [vmem:[#allocation128_spill] sm:$0xff] }
 0x479   :  { %v2250_v54 = vmul.f32 %v10393_v23, %v15854_v45 }
 0x47a   :  { %10394 = vpow2.f32 %v1862_v38  ;;  %v12315_v44 = vpop.f32.mrf.mxu0 }
 0x47b   :  { %v1542_v33 = vpop.f32.mrf.mxu3  ;;  %v12323_v63 = vpop.f32.mrf.mxu2 }
 0x47c   :  { %v1612_v12 = vmul.f32 0.35355338, %v1542_v33  ;;  %15856 = vst [vmem:[#allocation149_spill] sm:$0xff] %v12323_v63 }
 0x47e   :  { %v9013_v34 = vclamps-f32 %v1612_v12, 5.0 }
 0x47f   :  { %v9805_v48 = vpop.permute.xlu0 %9804 }
 0x480   :  { %v10395_v31 = vpop.eup %10394  ;;  %v9807_v42 = vunpack.i.h.bf16 %v9805_v48  ;;  %v9806_v39 = vunpack.i.l.bf16 %v9805_v48  ;;  %v1864_v30 = vmul.f32 1.442695, %v9013_v34 }
 0x481   :  { %v2251_v38 = vmul.f32 %v10395_v31, %v15855_v24  ;;  %v10780_v31 = vld [vmem:[%s15694_s28 + $0x80] sm:$0xff] }
 0x482   :  { %v12325_v46 = vpop.f32.mrf.mxu0  ;;  %v12328_v33 = vsel %vm950_vm3, %v2582_v57, %v9806_v39  ;;  %v12331_v12 = vsel %vm950_vm3, %v2583_v1, %v9807_v42  ;;  %8853 = vmatmul.msk.bf16.gmra.mxu2 %vm445_vm2, %v10780_v31  ;;  %v2576_v57 = vmul.f32 %v11994_v26, %v11656_v17  ;;  %10396 = vpow2.f32 %v1864_v30 }
 0x483   :  { %v1544_v36 = vpop.f32.mrf.mxu3  ;;  %v2285_v9 = vpack.c.bf16 %v2251_v38, %v2250_v54  ;;  %v2577_v1 = vmul.f32 %v12009_v41, %v11668_v22 }
 0x484   :  { %v1613_v48 = vmul.f32 0.35355338, %v1544_v36  ;;  %v2587_v36 = vmul.f32 %v12183_v55, %v11668_v22 }
 0x486   :  { %v9014_v23 = vclamps-f32 %v1613_v48, 5.0  ;;  %9046 = vmatmul.msk.bf16.gmra.mxu0 %vm231_vm1, %v2285_v9  ;;  %v12348_v48 = vpop.f32.mrf.mxu2 }
 0x487   :  { %v9825_v34 = vpop.permute.xlu0 %9824  ;;  %15857 = vst [vmem:[#allocation150_spill] sm:$0xff] %v12348_v48 }
 0x488   :  { %v1866_v42 = vmul.f32 1.442695, %v9014_v23  ;;  %v9827_v39 = vunpack.i.h.bf16 %v9825_v34  ;;  %v9826_v54 = vunpack.i.l.bf16 %v9825_v34  ;;  %v9815_v38 = vpop.permute.xlu2 %9814  ;;  %v10397_v48 = vpop.eup %10396 }
 0x489   :  { %v9817_v31 = vunpack.i.h.bf16 %v9815_v38  ;;  %v9816_v9 = vunpack.i.l.bf16 %v9815_v38 }
 0x48a   :  { %10398 = vpow2.f32 %v1866_v42  ;;  %v12350_v26 = vpop.f32.mrf.mxu0  ;;  %v12353_v30 = vsel %vm950_vm3, %v2576_v57, %v9826_v54  ;;  %v12356_v41 = vsel %vm950_vm3, %v2577_v1, %v9827_v39  ;;  %v2558_v57 = vmul.f32 %v11725_v35, %v11656_v17 }
 0x48b   :  { %v9853_v23 = vpack.i.bf16 %v12350_v26, %v12325_v46  ;;  %v1547_v14 = vpop.f32.mrf.mxu3  ;;  %v2906_v34 = vsel %vm950_vm3, %v2586_v13, %v9816_v9  ;;  %v2907_v55 = vsel %vm950_vm3, %v2587_v36, %v9817_v31  ;;  %v2559_v1 = vmul.f32 %v11732_v25, %v11668_v22 }
 0x48c   :  { %v1614_v38 = vmul.f32 0.35355338, %v1547_v14  ;;  %v2955_v63 = vpack.c.bf16 %v2907_v55, %v2906_v34  ;;  %v2562_v13 = vmul.f32 %v11769_v7, %v11656_v17  ;;  %v2563_v39 = vmul.f32 %v11778_v62, %v11668_v22  ;;  %v15858_v14 = vld [vmem:[#allocation131_spill] sm:$0xff]  ;;  %v15859_v7 = vld [vmem:[#allocation132_spill] sm:$0xff] }
 0x48d   :  { %9854 = vrot.lane.b32.xlu2 %v9853_v23, %s10837_s27  ;;  %v2585_v54 = vmul.f32 %v12148_v50, %v11668_v22  ;;  %v2252_v34 = vmul.f32 %v10397_v48, %v15858_v14  ;;  %v2584_v62 = vmul.f32 %v12136_v16, %v11656_v17 }
 0x48e   :  { %3031 = vmatpush.bf16.msrb.mxu2 %v2955_v63  ;;  %v9015_v36 = vclamps-f32 %v1614_v38, 5.0  ;;  %v12377_v19 = vpop.f32.mrf.mxu2 }
 0x48f   :  { %v9840_v31 = vpop.permute.xlu0 %9839  ;;  %v9810_v9 = vpop.permute.xlu1 %9809  ;;  %15860 = vst [vmem:[#allocation151_spill] sm:$0xff] %v12377_v19  ;;  %v10781_v19 = vld [vmem:[%s15694_s28 + $0x88] sm:$0xff] }
 0x490   :  { %v10399_v23 = vpop.eup %10398  ;;  %v9842_v35 = vunpack.i.h.bf16 %v9840_v31  ;;  %v9841_v55 = vunpack.i.l.bf16 %v9840_v31  ;;  %v9812_v42 = vunpack.i.h.bf16 %v9810_v9  ;;  %v9820_v25 = vpop.permute.xlu2 %9819  ;;  %v9811_v63 = vunpack.i.l.bf16 %v9810_v9 }
 0x491   :  { %v9822_v24 = vunpack.i.h.bf16 %v9820_v25  ;;  %v9821_v45 = vunpack.i.l.bf16 %v9820_v25  ;;  %v2253_v56 = vmul.f32 %v10399_v23, %v15859_v7  ;;  %v1868_v14 = vmul.f32 1.442695, %v9015_v36 }
 0x492   :  { %v12381_v50 = vpop.f32.mrf.mxu0  ;;  %v2905_v38 = vsel %vm950_vm3, %v2585_v54, %v9812_v42  ;;  %v2878_v48 = vsel %vm950_vm3, %v2558_v57, %v9841_v55  ;;  %v2879_v31 = vsel %vm950_vm3, %v2559_v1, %v9842_v35  ;;  %8854 = vmatmul.msk.bf16.gmra.mxu2 %vm445_vm2, %v10781_v19  ;;  %v2904_v42 = vsel %vm950_vm3, %v2584_v62, %v9811_v63 }
 0x493   :  { %v1549_v21 = vpop.f32.mrf.mxu3  ;;  %v2286_v9 = vpack.c.bf16 %v2253_v56, %v2252_v34  ;;  %v2882_v25 = vsel %vm950_vm3, %v2562_v13, %v9821_v45  ;;  %v2883_v23 = vsel %vm950_vm3, %v2563_v39, %v9822_v24  ;;  %v2941_v57 = vpack.c.bf16 %v2879_v31, %v2878_v48 }
 0x494   :  { %v1615_v16 = vmul.f32 0.35355338, %v1549_v21  ;;  %v2943_v7 = vpack.c.bf16 %v2883_v23, %v2882_v25  ;;  %v2954_v54 = vpack.c.bf16 %v2905_v38, %v2904_v42  ;;  %v2560_v56 = vmul.f32 %v11746_v6, %v11656_v17 }
 0x495   :  { %v2561_v45 = vmul.f32 %v11755_v11, %v11668_v22  ;;  %10400 = vpow2.f32 %v1868_v14  ;;  %v2574_v36 = vmul.f32 %v11961_v32, %v11656_v17  ;;  %v2575_v6 = vmul.f32 %v11978_v20, %v11668_v22 }
 0x496   :  { %v9016_v1 = vclamps-f32 %v1615_v16, 5.0  ;;  %9047 = vmatmul.msk.bf16.gmra.mxu0 %vm231_vm1, %v2286_v9  ;;  %3016 = vmatpush.bf16.msrb.mxu1 %v2943_v7  ;;  %v12400_v55 = vpop.f32.mrf.mxu2  ;;  %v15862_v7 = vpack.c.bf16 %v12331_v12, %v12328_v33  ;;  %v2556_v9 = vmul.f32 %v11702_v15, %v11656_v17  ;;  %v2557_v33 = vmul.f32 %v11711_v3, %v11668_v22 }
 0x497   :  { %3032 = vmatpush.bf16.msrb.mxu2 %v2954_v54  ;;  %v9830_v24 = vpop.permute.xlu1 %9829  ;;  %15861 = vst [vmem:[#allocation152_spill] sm:$0xff] %v12400_v55  ;;  %v15863_v12 = vpack.c.bf16 %v12267_v49, %v12264_v4  ;;  %v2572_v16 = vmul.f32 %v11930_v47, %v11656_v17  ;;  %v2573_v42 = vmul.f32 %v11945_v43, %v11668_v22 }
 0x498   :  { %v1870_v19 = vmul.f32 1.442695, %v9016_v1  ;;  %v9832_v21 = vunpack.i.h.bf16 %v9830_v24  ;;  %v9831_v13 = vunpack.i.l.bf16 %v9830_v24  ;;  %v9835_v39 = vpop.permute.xlu2 %9834  ;;  %v15866_v17 = vpack.c.bf16 %v12287_v28, %v12284_v52 }
 0x499   :  { %v9837_v34 = vunpack.i.h.bf16 %v9835_v39  ;;  %v9836_v35 = vunpack.i.l.bf16 %v9835_v39  ;;  %v15867_v52 = vpack.c.bf16 %v12356_v41, %v12353_v30 }
 0x49a   :  { %10402 = vpow2.f32 %v1870_v19  ;;  %v12404_v63 = vpop.f32.mrf.mxu0  ;;  %v2880_v11 = vsel %vm950_vm3, %v2560_v56, %v9831_v13  ;;  %v2881_v14 = vsel %vm950_vm3, %v2561_v45, %v9832_v21  ;;  %v15864_v45 = vld [vmem:[#allocation129_spill] sm:$0xff] }
 0x49b   :  { %3033 = vmatpush.bf16.msrb.mxu2 %v15862_v7  ;;  %v9858_v32 = vpack.i.bf16 %v12404_v63, %v12381_v50  ;;  %v2942_v62 = vpack.c.bf16 %v2881_v14, %v2880_v11  ;;  %v2894_v38 = vsel %vm950_vm3, %v2574_v36, %v9836_v35  ;;  %v2895_v48 = vsel %vm950_vm3, %v2575_v6, %v9837_v34  ;;  %v10401_v31 = vpop.eup %10400  ;;  %v10782_v36 = vld [vmem:[%s15694_s28 + $0x90] sm:$0xff]  ;;  %v10783_v14 = vld [vmem:[%s15694_s28 + $0x98] sm:$0xff] }
 0x49c   :  { %v2949_v20 = vpack.c.bf16 %v2895_v48, %v2894_v38  ;;  %v2254_v15 = vmul.f32 %v10401_v31, %v15864_v45 }
 0x49d   :  { %3017 = vmatpush.bf16.msrb.mxu1 %v2942_v62  ;;  %9859 = vrot.lane.b32.xlu0 %v9858_v32, %s10837_s27  ;;  %v10784_v62 = vld [vmem:[%s15694_s28 + $0xa0] sm:$0xff] }
 0x49e   :  { %v12429_v4 = vpop.f32.mrf.mxu2 }
 0x49f   :  { %3034 = vmatpush.bf16.msrb.mxu2 %v15863_v12  ;;  %v9845_v25 = vpop.permute.xlu1 %9844  ;;  %15865 = vst [vmem:[#allocation153_spill] sm:$0xff] %v12429_v4 }
 0x4a0   :  { %v10403_v23 = vpop.eup %10402  ;;  %v9847_v54 = vunpack.i.h.bf16 %v9845_v25  ;;  %v9846_v1 = vunpack.i.l.bf16 %v9845_v25  ;;  %v9850_v56 = vpop.permute.xlu2 %9849 }
 0x4a1   :  { %v9852_v24 = vunpack.i.h.bf16 %v9850_v56  ;;  %v9851_v19 = vunpack.i.l.bf16 %v9850_v56  ;;  %3018 = vmatpush.bf16.msrb.mxu1 %v2941_v57  ;;  %v2255_v3 = vmul.f32 %v10403_v23, %v12077_v37 }
 0x4a2   :  { %v2892_v49 = vsel %vm950_vm3, %v2572_v16, %v9846_v1  ;;  %v2893_v21 = vsel %vm950_vm3, %v2573_v42, %v9847_v54  ;;  %8855 = vmatmul.msk.bf16.gmra.mxu2 %vm445_vm2, %v10782_v36  ;;  %v10786_v16 = vld [vmem:[%s15694_s28 + $0xb0] sm:$0xff]  ;;  %v10789_v36 = vld [vmem:[%s15694_s28 + $0xc8] sm:$0xff] }
 0x4a3   :  { %3035 = vmatpush.bf16.msrb.mxu2 %v15866_v17  ;;  %v12436_v22 = vpop.f32.mrf.mxu0  ;;  %v2287_v43 = vpack.c.bf16 %v2255_v3, %v2254_v15  ;;  %v2876_v47 = vsel %vm950_vm3, %v2556_v9, %v9851_v19  ;;  %v2877_v13 = vsel %vm950_vm3, %v2557_v33, %v9852_v24  ;;  %v2948_v57 = vpack.c.bf16 %v2893_v21, %v2892_v49  ;;  %v10785_v9 = vld [vmem:[%s15694_s28 + $0xa8] sm:$0xff]  ;;  %v10787_v15 = vld [vmem:[%s15694_s28 + $0xb8] sm:$0xff]  ;;  %v10788_v21 = vld [vmem:[%s15694_s28 + $0xc0] sm:$0xff] }
 0x4a4   :  { %v2940_v39 = vpack.c.bf16 %v2877_v13, %v2876_v47 }
 0x4a6   :  { %9048 = vmatmul.msk.bf16.gmra.mxu0 %vm231_vm1, %v2287_v43  ;;  %3019 = vmatpush.bf16.msrb.mxu1 %v2940_v39  ;;  %v12448_v28 = vpop.f32.mrf.mxu2  ;;  %v9888_v39 = vpack.i.bf16 %v12315_v44, %v12306_v53 }
 0x4a7   :  { %3036 = vmatpush.bf16.msrb.mxu2 %v15867_v52  ;;  %15868 = vst [vmem:[#allocation154_spill] sm:$0xff] %v12448_v28 }
 0x4ab   :  { %3037 = vmatpush.bf16.msrb.mxu2 %v2949_v20  ;;  %v2513_v34 = vpop.f32.mrf.mxu0 }
 0x4ac   :  { %v9863_v35 = vpack.i.bf16 %v2513_v34, %v12436_v22 }
 0x4ae   :  { %9864 = vrot.lane.b32.xlu1 %v9863_v35, %s10837_s27  ;;  %v12452_v6 = vpop.f32.mrf.mxu2 }
 0x4af   :  { %3038 = vmatpush.bf16.msrb.mxu2 %v2948_v57  ;;  %15869 = vst [vmem:[#allocation155_spill] sm:$0xff] %v12452_v6 }
 0x4b2   :  { %8856 = vmatmul.msk.bf16.gmra.mxu2 %vm445_vm2, %v10783_v14 }
 0x4b3   :  { %v12454_v11 = vpop.f32.mrf.mxu0 }
 0x4b6   :  { %v12460_v30 = vpop.f32.mrf.mxu2 }
 0x4b7   :  { %15870 = vst [vmem:[#allocation156_spill] sm:$0xff] %v12460_v30 }
 0x4bb   :  { %v12462_v41 = vpop.f32.mrf.mxu0 }
 0x4be   :  { %v12464_v7 = vpop.f32.mrf.mxu2 }
 0x4bf   :  { %15871 = vst [vmem:[#allocation157_spill] sm:$0xff] %v12464_v7 }
 0x4c2   :  { %8857 = vmatmul.msk.bf16.gmra.mxu2 %vm445_vm2, %v10784_v62 }
 0x4c3   :  { %v12466_v32 = vpop.f32.mrf.mxu0 }
 0x4c6   :  { %v12472_v38 = vpop.f32.mrf.mxu2 }
 0x4c7   :  { %15872 = vst [vmem:[#allocation158_spill] sm:$0xff] %v12472_v38 }
 0x4cb   :  { %v12474_v48 = vpop.f32.mrf.mxu0 }
 0x4ce   :  { %v12476_v20 = vpop.f32.mrf.mxu2 }
 0x4cf   :  { %15873 = vst [vmem:[#allocation159_spill] sm:$0xff] %v12476_v20 }
 0x4d2   :  { %8858 = vmatmul.msk.bf16.gmra.mxu2 %vm445_vm2, %v10785_v9 }
 0x4d3   :  { %v12478_v31 = vpop.f32.mrf.mxu0 }
 0x4d6   :  { %v12484_v33 = vpop.f32.mrf.mxu2 }
 0x4d7   :  { %15874 = vst [vmem:[#allocation160_spill] sm:$0xff] %v12484_v33 }
 0x4db   :  { %v12486_v12 = vpop.f32.mrf.mxu0 }
 0x4dc   :  { %v9903_v14 = vpack.i.bf16 %v12486_v12, %v12478_v31 }
 0x4de   :  { %v12488_v25 = vpop.f32.mrf.mxu2 }
 0x4df   :  { %15875 = vst [vmem:[#allocation161_spill] sm:$0xff] %v12488_v25 }
 0x4e2   :  { %8859 = vmatmul.msk.bf16.gmra.mxu2 %vm445_vm2, %v10786_v16  ;;  %v15883_v16 = vld [vmem:[#allocation67_spill] sm:$0xff] }
 0x4e3   :  { %v12490_v23 = vpop.f32.mrf.mxu0 }
 0x4e6   :  { %v12496_v42 = vpop.f32.mrf.mxu2 }
 0x4e7   :  { %15876 = vst [vmem:[#allocation162_spill] sm:$0xff] %v12496_v42 }
 0x4eb   :  { %v12498_v54 = vpop.f32.mrf.mxu0 }
 0x4ee   :  { %v12500_v1 = vpop.f32.mrf.mxu2 }
 0x4ef   :  { %15877 = vst [vmem:[#allocation163_spill] sm:$0xff] %v12500_v1  ;;  %v2600_v1 = vmul.f32 %v12381_v50, %v15883_v16  ;;  %v9893_v50 = vpack.i.bf16 %v12498_v54, %v12490_v23 }
 0x4f2   :  { %8860 = vmatmul.msk.bf16.gmra.mxu2 %vm445_vm2, %v10787_v15  ;;  %v2602_v15 = vmul.f32 %v12436_v22, %v15883_v16 }
 0x4f3   :  { %v12502_v56 = vpop.f32.mrf.mxu0 }
 0x4f6   :  { %v12508_v24 = vpop.f32.mrf.mxu2 }
 0x4f7   :  { %15878 = vst [vmem:[#allocation164_spill] sm:$0xff] %v12508_v24 }
 0x4fb   :  { %v12510_v19 = vpop.f32.mrf.mxu0 }
 0x4fe   :  { %v12512_v3 = vpop.f32.mrf.mxu2 }
 0x4ff   :  { %15879 = vst [vmem:[#allocation165_spill] sm:$0xff] %v12512_v3 }
 0x502   :  { %8861 = vmatmul.msk.bf16.gmra.mxu2 %vm445_vm2, %v10788_v21  ;;  %v15884_v21 = vld [vmem:[#allocation69_spill] sm:$0xff] }
 0x503   :  { %v12514_v49 = vpop.f32.mrf.mxu0 }
 0x506   :  { %v12520_v17 = vpop.f32.mrf.mxu2 }
 0x507   :  { %15880 = vst [vmem:[#allocation166_spill] sm:$0xff] %v12520_v17 }
 0x50b   :  { %v12522_v43 = vpop.f32.mrf.mxu0 }
 0x50c   :  { %v9868_v47 = vpack.i.bf16 %v12522_v43, %v12514_v49 }
 0x50e   :  { %9869 = vrot.lane.b32.xlu1 %v9868_v47, %s10837_s27  ;;  %v12527_v13 = vpop.f32.mrf.mxu2  ;;  %v2603_v47 = vmul.f32 %v2513_v34, %v15884_v21 }
 0x50f   :  { %15881 = vst [vmem:[#allocation167_spill] sm:$0xff] %v12527_v13  ;;  %v9860_v9 = vpop.permute.xlu0 %9859 }
 0x510   :  { %v9861_v17 = vunpack.i.l.bf16 %v9860_v9 }
 0x512   :  { %8862 = vmatmul.msk.bf16.gmra.mxu2 %vm445_vm2, %v10789_v36  ;;  %v9855_v36 = vpop.permute.xlu2 %9854 }
 0x513   :  { %v12529_v57 = vpop.f32.mrf.mxu0  ;;  %v9857_v34 = vunpack.i.h.bf16 %v9855_v36 }
 0x516   :  { %9889 = vrot.lane.b32.xlu1 %v9888_v39, %s10837_s27  ;;  %v12538_v52 = vpop.f32.mrf.mxu2 }
 0x517   :  { %15882 = vst [vmem:[#allocation168_spill] sm:$0xff] %v12538_v52  ;;  %v9862_v52 = vunpack.i.h.bf16 %v9860_v9  ;;  %v10790_v9 = vld [vmem:[%s15694_s28 + $0xd0] sm:$0xff] }
 0x51b   :  { %v12540_v35 = vpop.f32.mrf.mxu0 }
 0x51c   :  { %v9873_v62 = vpack.i.bf16 %v12540_v35, %v12529_v57 }
 0x51e   :  { %9904 = vrot.lane.b32.xlu1 %v9903_v14, %s10837_s27  ;;  %9874 = vrot.lane.b32.xlu2 %v9873_v62, %s10837_s27  ;;  %v12551_v24 = vpop.f32.mrf.mxu2  ;;  %v2601_v14 = vmul.f32 %v12404_v63, %v15884_v21  ;;  %v2920_v63 = vsel %vm950_vm3, %v2600_v1, %v9861_v17 }
 0x51f   :  { %15885 = vst [vmem:[#allocation67_spill] sm:$0xff] %v12551_v24 }
 0x520   :  { %v9865_v39 = vpop.permute.xlu1 %9864 }
 0x521   :  { %v9867_v13 = vunpack.i.h.bf16 %v9865_v39  ;;  %v9866_v3 = vunpack.i.l.bf16 %v9865_v39  ;;  %v9856_v39 = vunpack.i.l.bf16 %v9855_v36 }
 0x522   :  { %8863 = vmatmul.msk.bf16.gmra.mxu2 %vm445_vm2, %v10790_v9  ;;  %v9923_v9 = vpack.i.bf16 %v12462_v41, %v12454_v11 }
 0x523   :  { %v2922_v62 = vsel %vm950_vm3, %v2602_v15, %v9866_v3  ;;  %v2923_v22 = vsel %vm950_vm3, %v2603_v47, %v9867_v13  ;;  %v12559_v42 = vpop.f32.mrf.mxu0  ;;  %v2921_v3 = vsel %vm950_vm3, %v2601_v14, %v9862_v52  ;;  %v15886_v13 = vpack.i.bf16 %v12240_v0, %v12227_v29 }
 0x524   :  { %v2963_v25 = vpack.c.bf16 %v2923_v22, %v2922_v62  ;;  %v2598_v15 = vmul.f32 %v12325_v46, %v15883_v16  ;;  %v2599_v47 = vmul.f32 %v12350_v26, %v15884_v21  ;;  %v2962_v36 = vpack.c.bf16 %v2921_v3, %v2920_v63 }
 0x525   :  { %v15888_v46 = vpack.i.bf16 %v12261_v2, %v12248_v61  ;;  %v9883_v22 = vpack.i.bf16 %v12510_v19, %v12502_v56  ;;  %v9913_v3 = vpack.i.bf16 %v12474_v48, %v12466_v32 }
 0x526   :  { %3050 = vmatpush.bf16.msra.mxu1 %v2963_v25  ;;  %9919 = vrot.lane.b32.xlu1 %v15886_v13, %s10837_s27  ;;  %v2918_v62 = vsel %vm950_vm3, %v2598_v15, %v9856_v39  ;;  %v2919_v1 = vsel %vm950_vm3, %v2599_v47, %v9857_v34  ;;  %v12580_v17 = vpop.f32.mrf.mxu2  ;;  %v10791_v34 = vld [vmem:[%s15694_s28 + $0xd8] sm:$0xff]  ;;  %v10792_v13 = vld [vmem:[%s15694_s28 + $0xe0] sm:$0xff]  ;;  %v15894_v47 = vpack.i.bf16 %v12215_v18, %v12202_v60 }
 0x527   :  { %9894 = vrot.lane.b32.xlu2 %v9893_v50, %s10837_s27  ;;  %15887 = vst [vmem:[#allocation69_spill] sm:$0xff] %v12580_v17  ;;  %v2961_v14 = vpack.c.bf16 %v2919_v1, %v2918_v62  ;;  %v15891_v50 = vpack.i.bf16 %v12298_v51, %v12281_v40  ;;  %v10793_v62 = vld [vmem:[%s15694_s28 + $0xe8] sm:$0xff] }
 0x52a   :  { %3051 = vmatpush.bf16.msra.mxu1 %v2962_v36 }
 0x52b   :  { %v12582_v25 = vpop.f32.mrf.mxu0 }
 0x52c   :  { %v9878_v52 = vpack.i.bf16 %v12582_v25, %v12559_v42 }
 0x52e   :  { %3052 = vmatpush.bf16.msra.mxu1 %v2961_v14  ;;  %9879 = vrot.lane.b32.xlu0 %v9878_v52, %s10837_s27  ;;  %v12591_v26 = vpop.f32.mrf.mxu2  ;;  %v10794_v14 = vld [vmem:[%s15694_s28 + $0xf0] sm:$0xff] }
 0x52f   :  { %9909 = vrot.lane.b32.xlu2 %v15888_v46, %s10837_s27  ;;  %15889 = vst [vmem:[#allocation169_spill] sm:$0xff] %v12591_v26  ;;  %v2597_v26 = vmul.f32 %v12315_v44, %v15884_v21 }
 0x532   :  { %8864 = vmatmul.msk.bf16.gmra.mxu2 %vm445_vm2, %v10791_v34  ;;  %v10795_v34 = vld [vmem:[%s15694_s28 + $0xf8] sm:$0xff] }
 0x536   :  { %9884 = vrot.lane.b32.xlu0 %v9883_v22, %s10837_s27  ;;  %v12603_v39 = vpop.f32.mrf.mxu2 }
 0x537   :  { %9924 = vrot.lane.b32.xlu2 %v9923_v9, %s10837_s27  ;;  %15890 = vst [vmem:[#allocation170_spill] sm:$0xff] %v12603_v39 }
 0x53e   :  { %9899 = vrot.lane.b32.xlu0 %v15891_v50, %s10837_s27  ;;  %v12609_v63 = vpop.f32.mrf.mxu2 }
 0x53f   :  { %15892 = vst [vmem:[#allocation171_spill] sm:$0xff] %v12609_v63  ;;  %v9682_v63 = vld [vmem:[%s15901_s7 + $0xc] sm:$0xf0] }
 0x542   :  { %8865 = vmatmul.msk.bf16.gmra.mxu2 %vm445_vm2, %v10792_v13  ;;  %v9053_v13 = vld [vmem:[%s15901_s7 + $0x10] sm:$0xf0] }
 0x546   :  { %9914 = vrot.lane.b32.xlu0 %v9913_v3, %s10837_s27  ;;  %v12618_v15 = vpop.f32.mrf.mxu2  ;;  %v9680_v3 = vld [vmem:[%s15901_s7 + $0x4] sm:$0xf] }
 0x547   :  { %15893 = vst [vmem:[#allocation172_spill] sm:$0xff] %v12618_v15 }
 0x54e   :  { %9929 = vrot.lane.b32.xlu0 %v15894_v47, %s10837_s27  ;;  %v12624_v36 = vpop.f32.mrf.mxu2 }
 0x54f   :  { %15895 = vst [vmem:[#allocation173_spill] sm:$0xff] %v12624_v36 }
 0x552   :  { %8866 = vmatmul.msk.bf16.gmra.mxu2 %vm445_vm2, %v10793_v62  ;;  %v12658_v62 = vor.u32 %v9680_v3, %v9053_v13  ;;  %v2596_v13 = vmul.f32 %v12306_v53, %v15883_v16 }
 0x554   :  { %15902 = vst [vmem:[#allocation179_spill] sm:$0xff] %v12658_v62 }
 0x556   :  { %v12630_v1 = vpop.f32.mrf.mxu2 }
 0x557   :  { %15896 = vst [vmem:[#allocation174_spill] sm:$0xff] %v12630_v1 }
 0x55e   :  { %v12632_v52 = vpop.f32.mrf.mxu2 }
 0x55f   :  { %15897 = vst [vmem:[#allocation175_spill] sm:$0xff] %v12632_v52 }
 0x562   :  { %8867 = vmatmul.msk.bf16.gmra.mxu2 %vm445_vm2, %v10794_v14 }
 0x566   :  { %v12638_v46 = vpop.f32.mrf.mxu2 }
 0x567   :  { %15898 = vst [vmem:[#allocation176_spill] sm:$0xff] %v12638_v46 }
 0x56e   :  { %v12640_v22 = vpop.f32.mrf.mxu2 }
 0x56f   :  { %15899 = vst [vmem:[#allocation177_spill] sm:$0xff] %v12640_v22 }
 0x572   :  { %8868 = vmatmul.msk.bf16.gmra.mxu2 %vm445_vm2, %v10795_v34  ;;  %v9051_v34 = vld [vmem:[%s15901_s7] sm:$0xf] }
 0x573   :  { %v12671_v17 = vor.u32 %v9682_v63, %v9051_v34  ;;  %v2593_v63 = vmul.f32 %v12261_v2, %v15884_v21  ;;  %v9069_v2 = vld [vmem:[%s15901_s7 + $0x30] sm:$0xf0] }
 0x575   :  { %15904 = vst [vmem:[#allocation181_spill] sm:$0xff] %v12671_v17  ;;  %3020 = vmatmul.bf16.vlgmr.msrb.gmra.mxu1 %v12671_v17 }
 0x576   :  { %v12648_v50 = vpop.f32.mrf.mxu2 }
 0x577   :  { %15900 = vst [vmem:[#allocation178_spill] sm:$0xff] %v12648_v50 }
 0x578   :  { %v12646_v9 = vpop.permute.xlu2 %9874 }
 0x57e   :  { %v12662_v39 = vpop.f32.mrf.mxu2 }
 0x57f   :  { %15903 = vst [vmem:[#allocation180_spill] sm:$0xff] %v12662_v39  ;;  %v2592_v39 = vmul.f32 %v12248_v61, %v15883_v16  ;;  %v9684_v61 = vld [vmem:[%s15901_s7 + $0x24] sm:$0xf] }
 0x580   :  { %v12656_v47 = vpop.permute.xlu1 %9869 }
 0x581   :  { %v12660_v14 = vpop.permute.xlu2 %9894  ;;  %v9871_v46 = vunpack.i.l.bf16 %v12656_v47 }
 0x582   :  { %3039 = vmatmul.bf16.vlgmr.msrb.gmra.mxu2 %v12658_v62  ;;  %v16049_v62 = vld [vmem:[#allocation104_spill] sm:$0xff] }
 0x586   :  { %v12678_v38 = vpop.f32.mrf.mxu2 }
 0x587   :  { %15905 = vst [vmem:[#allocation182_spill] sm:$0xff] %v12678_v38 }
 0x588   :  { %v9890_v3 = vpop.permute.xlu1 %9889 }
 0x589   :  { %v9892_v24 = vunpack.i.h.bf16 %v9890_v3  ;;  %v9891_v33 = vunpack.i.l.bf16 %v9890_v3  ;;  %v9910_v20 = vpop.permute.xlu2 %9909 }
 0x58a   :  { %v9912_v34 = vunpack.i.h.bf16 %v9910_v20  ;;  %v9911_v50 = vunpack.i.l.bf16 %v9910_v20  ;;  %v2618_v20 = vmul.f32 %v12559_v42, %v15883_v16 }
 0x58b   :  { %v2916_v7 = vsel %vm950_vm3, %v2596_v13, %v9891_v33  ;;  %v2917_v53 = vsel %vm950_vm3, %v2597_v26, %v9892_v24  ;;  %v9067_v26 = vld [vmem:[%s15901_s7 + $0x20] sm:$0xf]  ;;  %v2590_v13 = vmul.f32 %v12227_v29, %v15883_v16  ;;  %v2619_v29 = vmul.f32 %v12582_v25, %v15884_v21 }
 0x58c   :  { %v2960_v30 = vpack.c.bf16 %v2917_v53, %v2916_v7  ;;  %v12687_v44 = vsel %vm950_vm3, %v2592_v39, %v9911_v50  ;;  %v12690_v3 = vsel %vm950_vm3, %v2593_v63, %v9912_v34  ;;  %v12702_v7 = vor.u32 %v9684_v61, %v9069_v2  ;;  %v9686_v39 = vld [vmem:[%s15901_s7 + $0x2c] sm:$0xf0] }
 0x58d   :  { %v12712_v50 = vor.u32 %v9686_v39, %v9067_v26  ;;  %v2591_v63 = vmul.f32 %v12240_v0, %v15884_v21 }
 0x58e   :  { %3053 = vmatpush.bf16.msra.mxu1 %v2960_v30  ;;  %15906 = vst [vmem:[#allocation183_spill] sm:$0xff] %v12702_v7  ;;  %v12704_v24 = vpop.f32.mrf.mxu2 }
 0x58f   :  { %15907 = vst [vmem:[#allocation184_spill] sm:$0xff] %v12704_v24  ;;  %3025 = vmatmul.bf16.gmra.mxu1 %v12712_v50  ;;  %v9872_v24 = vunpack.i.h.bf16 %v12656_v47 }
 0x590   :  { %v12700_v33 = vpop.permute.xlu1 %9904  ;;  %15908 = vst [vmem:[#allocation185_spill] sm:$0xff] %v12712_v50 }
 0x592   :  { %3044 = vmatmul.bf16.gmra.mxu2 %v12702_v7 }
 0x596   :  { %v12720_v61 = vpop.f32.mrf.mxu2 }
 0x597   :  { %15909 = vst [vmem:[#allocation186_spill] sm:$0xff] %v12720_v61  ;;  %v9876_v61 = vunpack.i.l.bf16 %v12646_v9 }
 0x598   :  { %v9920_v30 = vpop.permute.xlu1 %9919 }
 0x599   :  { %v9922_v34 = vunpack.i.h.bf16 %v9920_v30  ;;  %v9921_v53 = vunpack.i.l.bf16 %v9920_v30  ;;  %v9877_v30 = vunpack.i.h.bf16 %v12646_v9 }
 0x59b   :  { %v12723_v2 = vsel %vm950_vm3, %v2590_v13, %v9921_v53  ;;  %v12726_v26 = vsel %vm950_vm3, %v2591_v63, %v9922_v34  ;;  %v2616_v63 = vmul.f32 %v12529_v57, %v15883_v16  ;;  %v2617_v34 = vmul.f32 %v12540_v35, %v15884_v21  ;;  %v9703_v57 = vld [vmem:[%s15442_s10 + $0x18] sm:$0xff] }
 0x59c   :  { %v2614_v35 = vmul.f32 %v12514_v49, %v15883_v16  ;;  %3162 = vmatpush.bf16.msra.mxu3 %v9703_v57  ;;  %v2613_v49 = vmul.f32 %v12510_v19, %v15884_v21  ;;  %v2595_v19 = vmul.f32 %v12298_v51, %v15884_v21  ;;  %v2609_v51 = vmul.f32 %v12486_v12, %v15884_v21 }
 0x59d   :  { %v2936_v9 = vsel %vm950_vm3, %v2616_v63, %v9876_v61  ;;  %v2612_v63 = vmul.f32 %v12502_v56, %v15883_v16  ;;  %v2594_v56 = vmul.f32 %v12281_v40, %v15883_v16  ;;  %v2608_v40 = vmul.f32 %v12478_v31, %v15883_v16 }
 0x59e   :  { %v12736_v53 = vpop.f32.mrf.mxu2  ;;  %v2934_v61 = vsel %vm950_vm3, %v2614_v35, %v9871_v46  ;;  %v2607_v31 = vmul.f32 %v12474_v48, %v15884_v21 }
 0x59f   :  { %15910 = vst [vmem:[#allocation187_spill] sm:$0xff] %v12736_v53 }
 0x5a0   :  { %v9880_v0 = vpop.permute.xlu0 %9879 }
 0x5a1   :  { %v9882_v38 = vunpack.i.h.bf16 %v9880_v0  ;;  %v9881_v13 = vunpack.i.l.bf16 %v9880_v0  ;;  %v2937_v0 = vsel %vm950_vm3, %v2617_v34, %v9877_v30  ;;  %v9896_v34 = vunpack.i.l.bf16 %v12660_v14 }
 0x5a3   :  { %v2938_v42 = vsel %vm950_vm3, %v2618_v20, %v9881_v13  ;;  %v2939_v39 = vsel %vm950_vm3, %v2619_v29, %v9882_v38  ;;  %v2615_v38 = vmul.f32 %v12522_v43, %v15884_v21  ;;  %v9897_v43 = vunpack.i.h.bf16 %v12660_v14 }
 0x5a4   :  { %v2971_v25 = vpack.c.bf16 %v2939_v39, %v2938_v42  ;;  %v2970_v39 = vpack.c.bf16 %v2937_v0, %v2936_v9  ;;  %v2611_v9 = vmul.f32 %v12498_v54, %v15884_v21 }
 0x5a5   :  { %v2935_v30 = vsel %vm950_vm3, %v2615_v38, %v9872_v24  ;;  %v2610_v24 = vmul.f32 %v12490_v23, %v15883_v16  ;;  %v9907_v38 = vunpack.i.h.bf16 %v12700_v33  ;;  %v9906_v23 = vunpack.i.l.bf16 %v12700_v33 }
 0x5a6   :  { %3069 = vmatpush.bf16.msra.mxu2 %v2971_v25  ;;  %v12757_v13 = vpop.f32.mrf.mxu2  ;;  %v2969_v42 = vpack.c.bf16 %v2935_v30, %v2934_v61  ;;  %v2931_v35 = vsel %vm950_vm3, %v2611_v9, %v9897_v43  ;;  %v2606_v43 = vmul.f32 %v12466_v32, %v15883_v16  ;;  %v2605_v32 = vmul.f32 %v12462_v41, %v15884_v21  ;;  %v9061_v41 = vld [vmem:[%s15901_s7 + $0x18] sm:$0xf0] }
 0x5a7   :  { %15911 = vst [vmem:[#allocation188_spill] sm:$0xff] %v12757_v13  ;;  %v2930_v57 = vsel %vm950_vm3, %v2610_v24, %v9896_v34  ;;  %v2929_v33 = vsel %vm950_vm3, %v2609_v51, %v9907_v38  ;;  %v9059_v51 = vld [vmem:[%s15901_s7 + $0x8] sm:$0xf] }
 0x5a8   :  { %v9885_v20 = vpop.permute.xlu0 %9884  ;;  %v2967_v30 = vpack.c.bf16 %v2931_v35, %v2930_v57 }
 0x5a9   :  { %v9887_v29 = vunpack.i.h.bf16 %v9885_v20  ;;  %v9886_v47 = vunpack.i.l.bf16 %v9885_v20 }
 0x5aa   :  { %3070 = vmatpush.bf16.msra.mxu2 %v2970_v39 }
 0x5ab   :  { %v2932_v25 = vsel %vm950_vm3, %v2612_v63, %v9886_v47  ;;  %v2933_v46 = vsel %vm950_vm3, %v2613_v49, %v9887_v29  ;;  %v2928_v63 = vsel %vm950_vm3, %v2608_v40, %v9906_v23  ;;  %v9925_v49 = vpop.permute.xlu2 %9924 }
 0x5ac   :  { %v2968_v14 = vpack.c.bf16 %v2933_v46, %v2932_v25  ;;  %v2966_v34 = vpack.c.bf16 %v2929_v33, %v2928_v63  ;;  %v9926_v25 = vunpack.i.l.bf16 %v9925_v49 }
 0x5ae   :  { %3071 = vmatpush.bf16.msra.mxu2 %v2969_v42  ;;  %v12779_v54 = vpop.f32.mrf.mxu2  ;;  %v9927_v42 = vunpack.i.h.bf16 %v9925_v49  ;;  %v9075_v49 = vld [vmem:[%s15901_s7 + $0x28] sm:$0xf] }
 0x5af   :  { %15912 = vst [vmem:[#allocation189_spill] sm:$0xff] %v12779_v54 }
 0x5b0   :  { %v9900_v0 = vpop.permute.xlu0 %9899  ;;  %v2925_v35 = vsel %vm950_vm3, %v2605_v32, %v9927_v42 }
 0x5b1   :  { %v9902_v20 = vunpack.i.h.bf16 %v9900_v0  ;;  %v9901_v39 = vunpack.i.l.bf16 %v9900_v0 }
 0x5b2   :  { %3072 = vmatpush.bf16.msra.mxu2 %v2968_v14 }
 0x5b3   :  { %v2914_v29 = vsel %vm950_vm3, %v2594_v56, %v9901_v39  ;;  %v2915_v47 = vsel %vm950_vm3, %v2595_v19, %v9902_v20  ;;  %v15914_v56 = vpack.c.bf16 %v12690_v3, %v12687_v44  ;;  %v2604_v19 = vmul.f32 %v12454_v11, %v15883_v16  ;;  %v9681_v11 = vld [vmem:[%s15901_s7 + $0xc] sm:$0xf] }
 0x5b4   :  { %v2959_v61 = vpack.c.bf16 %v2915_v47, %v2914_v29  ;;  %v15915_v44 = vpack.c.bf16 %v12726_v26, %v12723_v2  ;;  %v2588_v3 = vmul.f32 %v12202_v60, %v15883_v16  ;;  %v2589_v20 = vmul.f32 %v12215_v18, %v15884_v21  ;;  %v9683_v60 = vld [vmem:[%s15901_s7 + $0x14] sm:$0xf0] }
 0x5b5   :  { %v2924_v57 = vsel %vm950_vm3, %v2604_v19, %v9926_v25  ;;  %v12819_v26 = vor.u32 %v9681_v11, %v9061_v41  ;;  %v12832_v21 = vor.u32 %v9683_v60, %v9059_v51 }
 0x5b6   :  { %3054 = vmatpush.bf16.msra.mxu1 %v2959_v61  ;;  %3073 = vmatpush.bf16.msra.mxu2 %v2967_v30  ;;  %v12793_v9 = vpop.f32.mrf.mxu2  ;;  %v2964_v23 = vpack.c.bf16 %v2925_v35, %v2924_v57  ;;  %v9685_v61 = vld [vmem:[%s15901_s7 + $0x2c] sm:$0xf]  ;;  %v9077_v30 = vld [vmem:[%s15901_s7 + $0x38] sm:$0xf0]  ;;  %v9702_v35 = vld [vmem:[%s15442_s10 + $0x10] sm:$0xff] }
 0x5b7   :  { %15913 = vst [vmem:[#allocation190_spill] sm:$0xff] %v12793_v9  ;;  %v12843_v63 = vor.u32 %v9685_v61, %v9077_v30  ;;  %3163 = vmatpush.bf16.msra.mxu3 %v9702_v35  ;;  %v12887_v35 = vld [vmem:[%s15445_s13] sm:$0xff] }
 0x5b8   :  { %v9915_v12 = vpop.permute.xlu0 %9914  ;;  %15916 = vst [vmem:[#allocation191_spill] sm:$0xff] %v12819_v26  ;;  %v13099_v9 = vperm.slane %v12887_v35, 5 }
 0x5b9   :  { %v9917_v46 = vunpack.i.h.bf16 %v9915_v12  ;;  %v9916_v24 = vunpack.i.l.bf16 %v9915_v12  ;;  %15918 = vst [vmem:[#allocation193_spill] sm:$0xff] %v12832_v21 }
 0x5ba   :  { %3055 = vmatpush.bf16.msra.mxu1 %v15914_v56  ;;  %3074 = vmatpush.bf16.msra.mxu2 %v2966_v34  ;;  %15920 = vst [vmem:[#allocation195_spill] sm:$0xff] %v12843_v63 }
 0x5bb   :  { %v2926_v48 = vsel %vm950_vm3, %v2606_v43, %v9916_v24  ;;  %v2927_v0 = vsel %vm950_vm3, %v2607_v31, %v9917_v46  ;;  %v9687_v43 = vld [vmem:[%s15901_s7 + $0x34] sm:$0xf0] }
 0x5bc   :  { %v2965_v14 = vpack.c.bf16 %v2927_v0, %v2926_v48  ;;  %v12854_v31 = vor.u32 %v9687_v43, %v9075_v49  ;;  %v9701_v49 = vld [vmem:[%s15442_s10 + $0x8] sm:$0xff]  ;;  %v9700_v43 = vld [vmem:[%s15442_s10] sm:$0xff] }
 0x5bd   :  { %3164 = vmatpush.bf16.msra.mxu3 %v9701_v49 }
 0x5be   :  { %3056 = vmatpush.bf16.msra.mxu1 %v15915_v44  ;;  %3075 = vmatpush.bf16.msra.mxu2 %v2965_v14  ;;  %v12821_v40 = vpop.f32.mrf.mxu2  ;;  %15922 = vst [vmem:[#allocation197_spill] sm:$0xff] %v12854_v31 }
 0x5bf   :  { %15917 = vst [vmem:[#allocation192_spill] sm:$0xff] %v12821_v40 }
 0x5c0   :  { %v9930_v38 = vpop.permute.xlu0 %9929 }
 0x5c1   :  { %v9932_v39 = vunpack.i.h.bf16 %v9930_v38  ;;  %v9931_v2 = vunpack.i.l.bf16 %v9930_v38  ;;  %3165 = vmatpush.bf16.msra.mxu3 %v9700_v43 }
 0x5c2   :  { %3076 = vmatpush.bf16.msra.mxu2 %v2964_v23 }
 0x5c3   :  { %v2908_v16 = vsel %vm950_vm3, %v2588_v3, %v9931_v2  ;;  %v2909_v29 = vsel %vm950_vm3, %v2589_v20, %v9932_v39 }
 0x5c4   :  { %v2956_v18 = vpack.c.bf16 %v2909_v29, %v2908_v16 }
 0x5c5   :  { %3077 = vmatmul.bf16.vlgmr.msra.gmra.mxu2 %v12819_v26 }
 0x5c6   :  { %3057 = vmatpush.bf16.msra.mxu1 %v2956_v18  ;;  %v12835_v47 = vpop.f32.mrf.mxu2 }
 0x5c7   :  { %15919 = vst [vmem:[#allocation194_spill] sm:$0xff] %v12835_v47 }
 0x5c9   :  { %3058 = vmatmul.bf16.vlgmr.msra.gmra.mxu1 %v12832_v21 }
 0x5ce   :  { %v12845_v33 = vpop.f32.mrf.mxu2 }
 0x5cf   :  { %15921 = vst [vmem:[#allocation196_spill] sm:$0xff] %v12845_v33 }
 0x5d5   :  { %3082 = vmatmul.bf16.gmra.mxu2 %v12843_v63 }
 0x5d6   :  { %v12857_v12 = vpop.f32.mrf.mxu2 }
 0x5d7   :  { %15923 = vst [vmem:[#allocation198_spill] sm:$0xff] %v12857_v12 }
 0x5d9   :  { %3063 = vmatmul.bf16.gmra.mxu1 %v12854_v31 }
 0x5de   :  { %v12859_v34 = vpop.f32.mrf.mxu2 }
 0x5df   :  { %15924 = vst [vmem:[#allocation199_spill] sm:$0xff] %v12859_v34 }
 0x5e6   :  { %v12861_v42 = vpop.f32.mrf.mxu2 }
 0x5e7   :  { %15925 = vst [vmem:[#allocation200_spill] sm:$0xff] %v12861_v42 }
 0x5ee   :  { %v12863_v25 = vpop.f32.mrf.mxu2 }
 0x5ef   :  { %15926 = vst [vmem:[#allocation201_spill] sm:$0xff] %v12863_v25 }
 0x5f2   :  { %v3021_v56 = vpop.f32.mrf.mxu1 }
 0x5f6   :  { %v12865_v46 = vpop.f32.mrf.mxu2 }
 0x5f7   :  { %15927 = vst [vmem:[#allocation202_spill] sm:$0xff] %v12865_v46 }
 0x5fa   :  { %v3023_v32 = vpop.f32.mrf.mxu1 }
 0x5fe   :  { %v12867_v24 = vpop.f32.mrf.mxu2 }
 0x5ff   :  { %15928 = vst [vmem:[#allocation203_spill] sm:$0xff] %v12867_v24 }
 0x606   :  { %v3040_v19 = vpop.f32.mrf.mxu2 }
 0x607   :  { %v3041_v41 = vadd.f32 %v3040_v19, %v3021_v56 }
 0x60c   :  { %v3026_v0 = vpop.f32.mrf.mxu1 }
 0x60e   :  { %v3042_v48 = vpop.f32.mrf.mxu2 }
 0x60f   :  { %v3043_v2 = vadd.f32 %v3042_v48, %v3023_v32 }
 0x614   :  { %v3028_v44 = vpop.f32.mrf.mxu1 }
 0x616   :  { %v3045_v14 = vpop.f32.mrf.mxu2 }
 0x617   :  { %v3046_v57 = vadd.f32 %v3045_v14, %v3026_v0  ;;  %v9705_v14 = vld [vmem:[%s15443_s11 + $0x8] sm:$0xff] }
 0x618   :  { %3357 = vmatpush.bf16.msrb.mxu0 %v9705_v14 }
 0x61e   :  { %v3047_v11 = vpop.f32.mrf.mxu2 }
 0x646   :  { %v3059_v3 = vpop.f32.mrf.mxu1 }
 0x647   :  { %v3060_v38 = vadd.f32 %v3059_v3, %v3041_v41  ;;  %v12890_v41 = vperm.slane %v12887_v35, 0 }
 0x648   :  { %v3078_v23 = vpop.f32.mrf.mxu2 }
 0x649   :  { %v3079_v20 = vadd.f32 %v3078_v23, %v3060_v38  ;;  %v10796_v38 = vld [vmem:[%s15714_s3] sm:$0xff] }
 0x64b   :  { %v3088_v39 = vadd.f32 1e-06, %v3079_v20 }
 0x64d   :  { %10404 = vrcp.f32 %v3088_v39 }
 0x64e   :  { %v3061_v51 = vpop.f32.mrf.mxu1 }
 0x64f   :  { %v3062_v60 = vadd.f32 %v3061_v51, %v3043_v2 }
 0x650   :  { %v3080_v16 = vpop.f32.mrf.mxu2 }
 0x651   :  { %v3081_v29 = vadd.f32 %v3080_v16, %v3062_v60 }
 0x653   :  { %v10405_v18 = vpop.eup %10404  ;;  %v3089_v61 = vadd.f32 1e-06, %v3081_v29 }
 0x654   :  { %3100 = vrot.lane.b32.xlu1 %v10405_v18, %s10837_s27 }
 0x655   :  { %10406 = vrcp.f32 %v3089_v61 }
 0x656   :  { %v3064_v39 = vpop.f32.mrf.mxu1 }
 0x657   :  { %v3065_v51 = vadd.f32 %v3064_v39, %v3046_v57  ;;  %v10838_v39 = vmov 32.0  }
 0x658   :  { %v3083_v60 = vpop.f32.mrf.mxu2 }
 0x659   :  { %v3084_v61 = vadd.f32 %v3083_v60, %v3065_v51 }
 0x65b   :  { %v10407_v30 = vpop.eup %10406  ;;  %v3090_v43 = vadd.f32 1e-06, %v3084_v61 }
 0x65c   :  { %3102 = vrot.lane.b32.xlu2 %v10407_v30, %s10837_s27 }
 0x65d   :  { %10408 = vrcp.f32 %v3090_v43 }
 0x6b6   :  { %v3103_v56 = vpop.permute.xlu2 %3102 }
 0x6b7   :  { %v3113_v32 = vmul.f32 %v3103_v56, %v3081_v29  ;;  %v10797_v29 = vld [vmem:[%s15714_s3 + $0x8] sm:$0xff]  ;;  %v3066_v56 = vpop.f32.mrf.mxu1 }
 0x6c6   :  { %v3101_v19 = vpop.permute.xlu1 %3100 }
 0x6c7   :  { %v3112_v48 = vmul.f32 %v3101_v19, %v3079_v20  ;;  %v3048_v19 = vadd.f32 %v3047_v11, %v3028_v44 }
 0x6c9   :  { %v3126_v0 = vpack.c.bf16 %v3113_v32, %v3112_v48  ;;  %v3067_v57 = vadd.f32 %v3066_v56, %v3048_v19  ;;  %v3085_v32 = vpop.f32.mrf.mxu2 }
 0x6cb   :  { %9097 = vmatmul.msk.bf16.vlgmr.msra.gmra.mxu3 %vm950_vm3, %v3126_v0  ;;  %v3086_v48 = vadd.f32 %v3085_v32, %v3067_v57  ;;  %v10409_v0 = vpop.eup %10408 }
 0x6cd   :  { %v3091_v14 = vadd.f32 1e-06, %v3086_v48 }
 0x6cf   :  { %10410 = vrcp.f32 %v3091_v14 }
 0x6d0   :  { %10412 = vrcp.f32 %v10838_v39 }
 0x74e   :  { %v12892_v3 = vpop.f32.mrf.mxu3 }
 0x74f   :  { %v3177_v23 = vadd.f32 %v10796_v38, %v12892_v3  ;;  %v10411_v38 = vpop.eup %10410 }
 0x751   :  { %v3182_v20 = vadd.f32 %v12890_v41, %v3177_v23  ;;  %v3186_v23 = vperm.slane %v12887_v35, 1 }
 0x753   :  { %v3219_v2 = vsel %vm445_vm2, %v3182_v20, 0.0 }
 0x754   :  { %3220 = vadd.xlane.f32.xlu0 %v3219_v2  ;;  %v10413_v2 = vpop.eup %10412 }
 0x755   :  { %v3232_v44 = vmul.f32 32.0, %v10413_v2  ;;  %vm3236_vm4 = vweird.f32 %v10413_v2 }
 0x756   :  { %v12900_v16 = vpop.f32.mrf.mxu3 }
 0x757   :  { %v3178_v18 = vadd.f32 %v10797_v29, %v12900_v16  ;;  %v3233_v11 = vsub.f32 1.0, %v3232_v44 }
 0x759   :  { %v3183_v30 = vadd.f32 %v12890_v41, %v3178_v18  ;;  %v3234_v51 = vmul.f32 %v10413_v2, %v3233_v11 }
 0x75b   :  { %v3222_v49 = vsel %vm445_vm2, %v3183_v30, 0.0  ;;  %v3235_v60 = vadd.f32 %v10413_v2, %v3234_v51 }
 0x75c   :  { %3223 = vadd.xlane.f32.xlu1 %v3222_v49 }
 0x75d   :  { %v12912_v29 = vsel %vm3236_vm4, %v10413_v2, %v3235_v60 }
 0x75e   :  { %15929 = vst [vmem:[#allocation204_spill] sm:$0xff] %v12912_v29 }
 0x768   :  { %3104 = vrot.lane.b32.xlu0 %v10409_v0, %s10837_s27 }
 0x775   :  { %3106 = vrot.lane.b32.xlu1 %v10411_v38, %s10837_s27 }
 0x77d   :  { %3188 = vrot.lane.b32.xlu1 %v3186_v23, %s10835_s6 }
 0x7c7   :  { %v3221_v18 = vpop.xlane.xlu0 %3220 }
 0x7c8   :  { %v3238_v49 = vmul.f32 %v12912_v29, %v3221_v18 }
 0x7ca   :  { %v3242_v43 = vsub.f32 %v3182_v20, %v3238_v49  ;;  %v10798_v49 = vld [vmem:[%s15737_s29 + $0x18] sm:$0xff] }
 0x7cc   :  { %v3246_v56 = vmul.f32 %v3242_v43, %v3242_v43 }
 0x7ce   :  { %v3250_v19 = vsel %vm445_vm2, %v3246_v56, 0.0 }
 0x7cf   :  { %3251 = vadd.xlane.f32.xlu2 %v3250_v19  ;;  %v3224_v57 = vpop.xlane.xlu1 %3223 }
 0x7d0   :  { %v3239_v32 = vmul.f32 %v12912_v29, %v3224_v57  ;;  %v10799_v57 = vld [vmem:[%s15737_s29 + $0x10] sm:$0xff] }
 0x7d2   :  { %v3243_v0 = vsub.f32 %v3183_v30, %v3239_v32  ;;  %v9704_v30 = vld [vmem:[%s15443_s11] sm:$0xff] }
 0x7d3   :  { %3358 = vmatpush.bf16.msrb.mxu0 %v9704_v30 }
 0x7d4   :  { %v3247_v14 = vmul.f32 %v3243_v0, %v3243_v0 }
 0x7d6   :  { %v3253_v38 = vsel %vm445_vm2, %v3247_v14, 0.0 }
 0x7d7   :  { %3254 = vadd.xlane.f32.xlu2 %v3253_v38  ;;  %4275 = vmatpush.bf16.msra.mxu0 %v10798_v49  ;;  %v10800_v38 = vld [vmem:[%s15737_s29 + $0x8] sm:$0xff]  ;;  %v12937_v49 = vperm.slane %v12887_v35, 2 }
 0x7da   :  { %v3105_v23 = vpop.permute.xlu0 %3104 }
 0x7db   :  { %v3114_v2 = vmul.f32 %v3105_v23, %v3084_v61  ;;  %4276 = vmatpush.bf16.msra.mxu0 %v10799_v57 }
 0x7df   :  { %4277 = vmatpush.bf16.msra.mxu0 %v10800_v38 }
 0x7e7   :  { %v3107_v39 = vpop.permute.xlu1 %3106 }
 0x7e8   :  { %v3115_v44 = vmul.f32 %v3107_v39, %v3086_v48 }
 0x7ea   :  { %v3127_v11 = vpack.c.bf16 %v3115_v44, %v3114_v2 }
 0x7ec   :  { %9098 = vmatmul.msk.bf16.gmra.mxu3 %vm950_vm3, %v3127_v11  ;;  %v10801_v11 = vld [vmem:[%s15737_s29] sm:$0xff] }
 0x7ed   :  { %4278 = vmatpush.bf16.msra.mxu0 %v10801_v11 }
 0x842   :  { %v3252_v20 = vpop.xlane.xlu2 %3251 }
 0x843   :  { %v3262_v51 = vmul.f32 %v3252_v20, %v12912_v29 }
 0x845   :  { %v3266_v60 = vadd.f32 1e-05, %v3262_v51 }
 0x847   :  { %10414 = vrsqrt.f32 %v3266_v60  ;;  %vm3276_vm6 = vweird.f32 %v3266_v60 }
 0x84a   :  { %v3255_v18 = vpop.xlane.xlu2 %3254 }
 0x84b   :  { %v3263_v61 = vmul.f32 %v3255_v18, %v12912_v29 }
 0x84d   :  { %v10415_v48 = vpop.eup %10414  ;;  %v3267_v56 = vadd.f32 1e-05, %v3263_v61 }
 0x84e   :  { %v3271_v19 = vmul.f32 %v10415_v48, %v3266_v60  ;;  %vm3277_vm5 = vweird.f32 %v10415_v48 }
 0x84f   :  { %10416 = vrsqrt.f32 %v3267_v56  ;;  %vm3278_vm7 = vmor %vm3276_vm6, %vm3277_vm5  ;;  %vm3286_vm9 = vweird.f32 %v3267_v56 }
 0x850   :  { %v3272_v32 = vmul.f32 %v10415_v48, %v3271_v19 }
 0x852   :  { %v3273_v14 = vmul.f32 0.5, %v3272_v32  ;;  %v12940_v32 = vperm.slane %v12887_v35, 3 }
 0x854   :  { %v3274_v23 = vsub.f32 1.5, %v3273_v14 }
 0x855   :  { %v10417_v39 = vpop.eup %10416 }
 0x856   :  { %v3275_v2 = vmul.f32 %v10415_v48, %v3274_v23  ;;  %v3281_v44 = vmul.f32 %v10417_v39, %v3267_v56  ;;  %vm3287_vm8 = vweird.f32 %v10417_v39 }
 0x857   :  { %vm3288_vm10 = vmor %vm3286_vm9, %vm3287_vm8 }
 0x858   :  { %v3282_v20 = vmul.f32 %v10417_v39, %v3281_v44  ;;  %v3279_v51 = vsel %vm3278_vm7, %v10415_v48, %v3275_v2 }
 0x859   :  { %v3310_v61 = vmul.f32 %v3279_v51, %v3242_v43 }
 0x85a   :  { %v3283_v30 = vmul.f32 0.5, %v3282_v20  ;;  %v10803_v20 = vld [vmem:[%s15714_s3 + $0x18] sm:$0xff] }
 0x85b   :  { %v3315_v14 = vmul.f32 %v12937_v49, %v3310_v61  ;;  %v9709_v61 = vld [vmem:[%s15444_s12 + $0x18] sm:$0xff] }
 0x85c   :  { %v3284_v18 = vsub.f32 1.5, %v3283_v30  ;;  %3419 = vmatpush.bf16.msrb.mxu1 %v9709_v61 }
 0x85d   :  { %v12945_v48 = vadd.f32 %v12940_v32, %v3315_v14  ;;  %v15930_v14 = vld [vmem:[#allocation49_spill] sm:$0xff] }
 0x85e   :  { %v3285_v19 = vmul.f32 %v10417_v39, %v3284_v18 }
 0x860   :  { %v3289_v57 = vsel %vm3288_vm10, %v10417_v39, %v3285_v19  ;;  %v10802_v39 = vld [vmem:[%s15714_s3 + $0x10] sm:$0xff] }
 0x861   :  { %v3311_v60 = vmul.f32 %v3289_v57, %v3243_v0  ;;  %v9708_v19 = vld [vmem:[%s15444_s12 + $0x10] sm:$0xff]  ;;  %v9707_v57 = vld [vmem:[%s15444_s12 + $0x8] sm:$0xff] }
 0x862   :  { %3420 = vmatpush.bf16.msrb.mxu1 %v9708_v19 }
 0x863   :  { %v3316_v38 = vmul.f32 %v12937_v49, %v3311_v60 }
 0x865   :  { %v12948_v23 = vadd.f32 %v12940_v32, %v3316_v38 }
 0x866   :  { %3421 = vmatpush.bf16.msrb.mxu1 %v9707_v57 }
 0x867   :  { %v3324_v43 = vpack.c.bf16 %v12948_v23, %v12945_v48 }
 0x869   :  { %9107 = vmatmul.msk.bf16.vlgmr.msrb.gmra.mxu0 %vm445_vm2, %v3324_v43  ;;  %v12985_v43 = vld [vmem:[%s15446_s14] ss:$0 sm:$0xff] }
 0x86f   :  { %v12953_v56 = vpop.f32.mrf.mxu3 }
 0x870   :  { %v3179_v0 = vadd.f32 %v10802_v39, %v12953_v56 }
 0x872   :  { %v3184_v2 = vadd.f32 %v12890_v41, %v3179_v0 }
 0x874   :  { %v3225_v44 = vsel %vm445_vm2, %v3184_v2, 0.0 }
 0x875   :  { %3226 = vadd.xlane.f32.xlu2 %v3225_v44 }
 0x877   :  { %v12961_v11 = vpop.f32.mrf.mxu3 }
 0x878   :  { %v3180_v51 = vadd.f32 %v10803_v20, %v12961_v11 }
 0x87a   :  { %v3185_v30 = vadd.f32 %v12890_v41, %v3180_v51  ;;  %v9706_v41 = vld [vmem:[%s15444_s12] sm:$0xff] }
 0x87b   :  { %3422 = vmatpush.bf16.msrb.mxu1 %v9706_v41 }
 0x87c   :  { %v3228_v18 = vsel %vm445_vm2, %v3185_v30, 0.0 }
 0x87d   :  { %3229 = vadd.xlane.f32.xlu2 %v3228_v18 }
 0x87f   :  { %4959 = vmatpush.bf16.msra.mxu1 %v15930_v14 }
 0x8e6   :  { %v3360_v60 = vpop.f32.mrf.mxu0 }
 0x8e7   :  { %v3361_v44 = vadd.f32 %v12985_v43, %v3360_v60 }
 0x8e8   :  { %v3227_v38 = vpop.xlane.xlu2 %3226 }
 0x8e9   :  { %v3240_v39 = vmul.f32 %v12912_v29, %v3227_v38  ;;  %v3370_v57 = vmax.f32 %v3361_v44, 0.0 }
 0x8eb   :  { %v3244_v0 = vsub.f32 %v3184_v2, %v3240_v39  ;;  %v12993_v2 = vpop.permute.xlu1 %3188 }
 0x8ec   :  { %v3192_v39 = vadd.f32 %v12993_v2, %v12900_v16 }
 0x8ed   :  { %v3248_v20 = vmul.f32 %v3244_v0, %v3244_v0 }
 0x8ee   :  { %v3362_v51 = vpop.f32.mrf.mxu0  ;;  %10418 = vtanh.f32 %v3192_v39 }
 0x8ef   :  { %v3363_v18 = vadd.f32 %v12985_v43, %v3362_v51  ;;  %v3256_v61 = vsel %vm445_vm2, %v3248_v20, 0.0 }
 0x8f0   :  { %3257 = vadd.xlane.f32.xlu0 %v3256_v61  ;;  %v3230_v19 = vpop.xlane.xlu2 %3229 }
 0x8f1   :  { %v3371_v41 = vmax.f32 %v3363_v18, 0.0  ;;  %v3241_v46 = vmul.f32 %v12912_v29, %v3230_v19 }
 0x8f3   :  { %v3374_v24 = vpack.c.bf16 %v3371_v41, %v3370_v57  ;;  %v3245_v42 = vsub.f32 %v3185_v30, %v3241_v46  ;;  %v13002_v57 = vperm.slane %v12887_v35, 4 }
 0x8f4   :  { %v10419_v20 = vpop.eup %10418 }
 0x8f5   :  { %9125 = vmatmul.msk.bf16.vlgmr.msrb.gmra.mxu1 %vm950_vm3, %v3374_v24  ;;  %v3249_v38 = vmul.f32 %v3245_v42, %v3245_v42 }
 0x8f7   :  { %v3259_v60 = vsel %vm445_vm2, %v3249_v38, 0.0 }
 0x8f8   :  { %3260 = vadd.xlane.f32.xlu2 %v3259_v60 }
 0x904   :  { %3205 = vrot.lane.b32.xlu0 %v10419_v20, %s10839_s9 }
 0x963   :  { %v3258_v44 = vpop.xlane.xlu0 %3257 }
 0x964   :  { %v3264_v51 = vmul.f32 %v3258_v44, %v12912_v29 }
 0x966   :  { %v3268_v46 = vadd.f32 1e-05, %v3264_v51 }
 0x968   :  { %10420 = vrsqrt.f32 %v3268_v46  ;;  %vm3296_vm12 = vweird.f32 %v3268_v46 }
 0x96b   :  { %v3261_v24 = vpop.xlane.xlu2 %3260 }
 0x96c   :  { %v3265_v30 = vmul.f32 %v3261_v24, %v12912_v29 }
 0x96e   :  { %v10421_v18 = vpop.eup %10420  ;;  %v3269_v61 = vadd.f32 1e-05, %v3265_v30 }
 0x96f   :  { %v3291_v19 = vmul.f32 %v10421_v18, %v3268_v46  ;;  %vm3297_vm11 = vweird.f32 %v10421_v18 }
 0x970   :  { %10422 = vrsqrt.f32 %v3269_v61  ;;  %vm3298_vm13 = vmor %vm3296_vm12, %vm3297_vm11  ;;  %vm3306_vm15 = vweird.f32 %v3269_v61 }
 0x971   :  { %v3292_v16 = vmul.f32 %v10421_v18, %v3291_v19 }
 0x972   :  { %v3424_v41 = vpop.f32.mrf.mxu1 }
 0x973   :  { %v3293_v38 = vmul.f32 0.5, %v3292_v16  ;;  %v3425_v60 = vadd.f32 %v3424_v41, %v13002_v57 }
 0x975   :  { %v3294_v39 = vsub.f32 1.5, %v3293_v38  ;;  %v3434_v20 = vadd.f32 %v3425_v60, %v12945_v48 }
 0x976   :  { %v10423_v44 = vpop.eup %10422 }
 0x977   :  { %v3295_v51 = vmul.f32 %v10421_v18, %v3294_v39  ;;  %v3301_v25 = vmul.f32 %v10423_v44, %v3269_v61  ;;  %v3438_v24 = vsel %vm445_vm2, %v3434_v20, 0.0  ;;  %vm3307_vm14 = vweird.f32 %v10423_v44  ;;  %v3206_v61 = vpop.permute.xlu0 %3205 }
 0x978   :  { %3439 = vadd.xlane.f32.xlu2 %v3438_v24  ;;  %vm3308_vm4 = vmor %vm3306_vm15, %vm3307_vm14 }
 0x979   :  { %v3302_v30 = vmul.f32 %v10423_v44, %v3301_v25  ;;  %v3299_v34 = vsel %vm3298_vm13, %v10421_v18, %v3295_v51 }
 0x97a   :  { %v3426_v12 = vpop.f32.mrf.mxu1  ;;  %v3312_v48 = vmul.f32 %v3299_v34, %v3244_v0 }
 0x97b   :  { %v3303_v19 = vmul.f32 0.5, %v3302_v30  ;;  %v3427_v16 = vadd.f32 %v3426_v12, %v13002_v57  ;;  %v3191_v12 = vadd.f32 %v12993_v2, %v12892_v3 }
 0x97c   :  { %v3317_v39 = vmul.f32 %v12937_v49, %v3312_v48  ;;  %v15933_v48 = vld [vmem:[#allocation6_spill] sm:$0xff] }
 0x97d   :  { %v3304_v47 = vsub.f32 1.5, %v3303_v19  ;;  %v3435_v41 = vadd.f32 %v3427_v16, %v12948_v23  ;;  %10424 = vtanh.f32 %v3191_v12  ;;  %v15931_v19 = vld [vmem:[#allocation7_spill] sm:$0xff] }
 0x97e   :  { %v13015_v51 = vadd.f32 %v12940_v32, %v3317_v39  ;;  %v13032_v16 = vadd.f32 %v3206_v61, %v15931_v19  ;;  %v9161_v61 = vld [vmem:[%s15440_s8 + $0x70] sm:$0xf]  ;;  %v9153_v19 = vld [vmem:[%s15440_s8 + $0x60] sm:$0xf] }
 0x97f   :  { %v3305_v38 = vmul.f32 %v10423_v44, %v3304_v47  ;;  %v3441_v60 = vsel %vm445_vm2, %v3435_v41, 0.0 }
 0x980   :  { %3442 = vadd.xlane.f32.xlu1 %v3441_v60  ;;  %15932 = vst [vmem:[#allocation7_spill] sm:$0xff] %v13032_v16 }
 0x981   :  { %v3309_v46 = vsel %vm3308_vm4, %v10423_v44, %v3305_v38 }
 0x982   :  { %v3313_v25 = vmul.f32 %v3309_v46, %v3245_v42 }
 0x983   :  { %v10425_v42 = vpop.eup %10424 }
 0x984   :  { %v3318_v18 = vmul.f32 %v12937_v49, %v3313_v25 }
 0x986   :  { %v13018_v34 = vadd.f32 %v12940_v32, %v3318_v18 }
 0x988   :  { %v3325_v47 = vpack.c.bf16 %v13018_v34, %v13015_v51 }
 0x98a   :  { %9108 = vmatmul.msk.bf16.gmra.mxu0 %vm445_vm2, %v3325_v47 }
 0x990   :  { %3203 = vrot.lane.b32.xlu2 %v10425_v42, %s10839_s9 }
 0x9eb   :  { %v3440_v23 = vpop.xlane.xlu2 %3439 }
 0x9ec   :  { %v3450_v49 = vmul.f32 %v3440_v23, %v12912_v29 }
 0x9ee   :  { %v13025_v0 = vsub.f32 %v3434_v20, %v3450_v49 }
 0x9f0   :  { %v3458_v3 = vmul.f32 %v13025_v0, %v13025_v0 }
 0x9f2   :  { %v3462_v32 = vsel %vm445_vm2, %v3458_v3, 0.0 }
 0x9f3   :  { %v3443_v44 = vpop.xlane.xlu1 %3442  ;;  %3463 = vadd.xlane.f32.xlu2 %v3462_v32  ;;  %v3204_v24 = vpop.permute.xlu2 %3203  ;;  %v9717_v32 = vld [vmem:[%s15440_s8 + $0x74] sm:$0xf0] }
 0x9f4   :  { %v3451_v30 = vmul.f32 %v3443_v44, %v12912_v29  ;;  %v13035_v38 = vadd.f32 %v3204_v24, %v15933_v48  ;;  %v9162_v24 = vor.u32 %v9717_v32, %v9161_v61 }
 0x9f6   :  { %15934 = vst [vmem:[#allocation6_spill] sm:$0xff] %v13035_v38  ;;  %v13037_v60 = vsub.f32 %v3435_v41, %v3451_v30  ;;  %v9933_v20 = vpack.i.bf16 %v13032_v16, %v13035_v38  ;;  %v9163_v30 = vld [vmem:[%s15440_s8 + $0x78] sm:$0xf0]  ;;  %3617 = vmatpush.bf16.msrb.mxu2 %v9162_v24  ;;  %v9711_v24 = vld [vmem:[%s15440_s8 + $0x44] sm:$0xf0] }
 0x9f8   :  { %v3459_v46 = vmul.f32 %v13037_v60, %v13037_v60  ;;  %9934 = vrot.lane.b32.xlu0 %v9933_v20, %s10835_s6  ;;  %v9715_v20 = vld [vmem:[%s15440_s8 + $0x64] sm:$0xf0] }
 0x9fa   :  { %v3465_v25 = vsel %vm445_vm2, %v3459_v46, 0.0  ;;  %v9714_v46 = vld [vmem:[%s15440_s8 + $0x64] sm:$0xf] }
 0x9fb   :  { %3466 = vadd.xlane.f32.xlu1 %v3465_v25  ;;  %v9155_v25 = vld [vmem:[%s15440_s8 + $0x68] sm:$0xf0] }
 0xa07   :  { %v3365_v39 = vpop.f32.mrf.mxu0 }
 0xa08   :  { %v3366_v18 = vadd.f32 %v12985_v43, %v3365_v39  ;;  %v9154_v39 = vor.u32 %v9715_v20, %v9153_v19  ;;  %v9710_v19 = vld [vmem:[%s15440_s8 + $0x44] sm:$0xf] }
 0xa0a   :  { %v3372_v42 = vmax.f32 %v3366_v18, 0.0  ;;  %v9158_v18 = vor.u32 %v9714_v46, %v9155_v25  ;;  %3618 = vmatpush.bf16.msrb.mxu2 %v9154_v39 }
 0xa0f   :  { %v3367_v12 = vpop.f32.mrf.mxu0 }
 0xa10   :  { %v3368_v47 = vadd.f32 %v12985_v43, %v3367_v12  ;;  %v9716_v43 = vld [vmem:[%s15440_s8 + $0x74] sm:$0xf]  ;;  %v9145_v12 = vld [vmem:[%s15440_s8 + $0x50] sm:$0xf] }
 0xa11   :  { %v9166_v48 = vor.u32 %v9716_v43, %v9163_v30  ;;  %v9137_v43 = vld [vmem:[%s15440_s8 + $0x40] sm:$0xf] }
 0xa12   :  { %v3373_v41 = vmax.f32 %v3368_v47, 0.0  ;;  %v9713_v47 = vld [vmem:[%s15440_s8 + $0x54] sm:$0xf0]  ;;  %v9138_v46 = vor.u32 %v9711_v24, %v9137_v43 }
 0xa13   :  { %3636 = vmatpush.bf16.msrb.mxu3 %v9166_v48  ;;  %v9139_v48 = vld [vmem:[%s15440_s8 + $0x48] sm:$0xf0] }
 0xa14   :  { %v3375_v23 = vpack.c.bf16 %v3373_v41, %v3372_v42  ;;  %v9712_v41 = vld [vmem:[%s15440_s8 + $0x54] sm:$0xf]  ;;  %v9142_v39 = vor.u32 %v9710_v19, %v9139_v48  ;;  %v13104_v19 = vperm.slane %v12887_v35, 6 }
 0xa16   :  { %9126 = vmatmul.msk.bf16.gmra.mxu1 %vm950_vm3, %v3375_v23  ;;  %v9147_v23 = vld [vmem:[%s15440_s8 + $0x58] sm:$0xf0] }
 0xa17   :  { %3637 = vmatpush.bf16.msrb.mxu3 %v9158_v18  ;;  %v9150_v32 = vor.u32 %v9712_v41, %v9147_v23 }
 0xa1b   :  { %3638 = vmatpush.bf16.msrb.mxu3 %v9150_v32 }
 0xa1f   :  { %3639 = vmatpush.bf16.msrb.mxu3 %v9142_v39 }
 0xa66   :  { %v3464_v49 = vpop.xlane.xlu2 %3463 }
 0xa67   :  { %v3474_v3 = vmul.f32 %v3464_v49, %v12912_v29 }
 0xa69   :  { %v3478_v44 = vadd.f32 1e-05, %v3474_v3  ;;  %v9146_v3 = vor.u32 %v9713_v47, %v9145_v12 }
 0xa6b   :  { %10426 = vrsqrt.f32 %v3478_v44  ;;  %3619 = vmatpush.bf16.msrb.mxu2 %v9146_v3  ;;  %vm3488_vm6 = vweird.f32 %v3478_v44 }
 0xa6e   :  { %v3467_v42 = vpop.xlane.xlu1 %3466 }
 0xa6f   :  { %v3475_v49 = vmul.f32 %v3467_v42, %v12912_v29  ;;  %3620 = vmatpush.bf16.msrb.mxu2 %v9138_v46 }
 0xa71   :  { %v3479_v61 = vadd.f32 1e-05, %v3475_v49  ;;  %v10427_v30 = vpop.eup %10426 }
 0xa72   :  { %v3483_v20 = vmul.f32 %v10427_v30, %v3478_v44  ;;  %vm3489_vm5 = vweird.f32 %v10427_v30 }
 0xa73   :  { %10428 = vrsqrt.f32 %v3479_v61  ;;  %vm3490_vm7 = vmor %vm3488_vm6, %vm3489_vm5  ;;  %vm3498_vm9 = vweird.f32 %v3479_v61 }
 0xa74   :  { %v3484_v25 = vmul.f32 %v10427_v30, %v3483_v20 }
 0xa76   :  { %v3485_v18 = vmul.f32 0.5, %v3484_v25 }
 0xa78   :  { %v3486_v47 = vsub.f32 1.5, %v3485_v18 }
 0xa79   :  { %v10429_v12 = vpop.eup %10428 }
 0xa7a   :  { %v3493_v42 = vmul.f32 %v10429_v12, %v3479_v61  ;;  %v3487_v41 = vmul.f32 %v10427_v30, %v3486_v47  ;;  %vm3499_vm8 = vweird.f32 %v10429_v12 }
 0xa7b   :  { %vm3500_vm10 = vmor %vm3498_vm9, %vm3499_vm8 }
 0xa7c   :  { %v3494_v23 = vmul.f32 %v10429_v12, %v3493_v42  ;;  %v3491_v49 = vsel %vm3490_vm7, %v10427_v30, %v3487_v41  ;;  %v9935_v30 = vpop.permute.xlu0 %9934 }
 0xa7d   :  { %v3522_v3 = vmul.f32 %v3491_v49, %v13025_v0  ;;  %v9937_v0 = vunpack.i.h.bf16 %v9935_v30 }
 0xa7e   :  { %v3495_v33 = vmul.f32 0.5, %v3494_v23 }
 0xa7f   :  { %v3527_v24 = vmul.f32 %v13099_v9, %v3522_v3  ;;  %v15937_v3 = vld [vmem:[#allocation12_spill] sm:$0xff] }
 0xa80   :  { %v3496_v32 = vsub.f32 1.5, %v3495_v33  ;;  %v9936_v33 = vunpack.i.l.bf16 %v9935_v30  ;;  %v3193_v30 = vadd.f32 %v12993_v2, %v12953_v56  ;;  %v15942_v56 = vld [vmem:[#allocation13_spill] sm:$0xff] }
 0xa81   :  { %v13108_v20 = vadd.f32 %v13104_v19, %v3527_v24 }
 0xa82   :  { %v3497_v43 = vmul.f32 %v10429_v12, %v3496_v32  ;;  %10430 = vtanh.f32 %v3193_v30  ;;  %v15953_v30 = vld [vmem:[#allocation39_spill] sm:$0xff] }
 0xa83   :  { %15935 = vst [vmem:[#allocation205_spill] sm:$0xff] %v13108_v20  ;;  %v3552_v61 = vsel %vm445_vm2, %v13108_v20, %v9936_v33  ;;  %v15940_v33 = vld [vmem:[#allocation9_spill] sm:$0xff] }
 0xa84   :  { %v3501_v44 = vsel %vm3500_vm10, %v10429_v12, %v3497_v43 }
 0xa85   :  { %v3523_v48 = vmul.f32 %v3501_v44, %v13037_v60 }
 0xa87   :  { %v3528_v46 = vmul.f32 %v13099_v9, %v3523_v48 }
 0xa89   :  { %v13112_v25 = vadd.f32 %v13104_v19, %v3528_v46  ;;  %v3194_v46 = vadd.f32 %v12993_v2, %v12961_v11  ;;  %v15943_v11 = vld [vmem:[#allocation14_spill] sm:$0xff]  ;;  %v15944_v2 = vld [vmem:[#allocation24_spill] sm:$0xff] }
 0xa8b   :  { %15936 = vst [vmem:[#allocation206_spill] sm:$0xff] %v13112_v25  ;;  %v3553_v35 = vsel %vm445_vm2, %v13112_v25, %v9937_v0  ;;  %v15939_v0 = vld [vmem:[#allocation8_spill] sm:$0xff]  ;;  %10432 = vtanh.f32 %v3194_v46  ;;  %v15954_v46 = vld [vmem:[#allocation19_spill] sm:$0xff] }
 0xa8c   :  { %v3556_v39 = vpack.c.bf16 %v3553_v35, %v3552_v61  ;;  %v10431_v61 = vpop.eup %10430 }
 0xa8e   :  { %9167 = vmatmul.msk.bf16.vlgmr.msrb.gmra.mxu2 %vm950_vm3, %v3556_v39  ;;  %9169 = vmatmul.msk.bf16.vlgmr.msrb.gmra.mxu3 %vm950_vm3, %v3556_v39  ;;  %v15941_v39 = vld [vmem:[#allocation21_spill] sm:$0xff] }
 0xa91   :  { %v10433_v35 = vpop.eup %10432 }
 0xa93   :  { %v3429_v60 = vpop.f32.mrf.mxu1 }
 0xa94   :  { %v3430_v18 = vadd.f32 %v3429_v60, %v13002_v57  ;;  %v15945_v60 = vld [vmem:[#allocation15_spill] sm:$0xff] }
 0xa96   :  { %v3436_v12 = vadd.f32 %v3430_v18, %v13015_v51  ;;  %v15946_v18 = vld [vmem:[#allocation27_spill] sm:$0xff] }
 0xa98   :  { %v3444_v47 = vsel %vm445_vm2, %v3436_v12, 0.0 }
 0xa99   :  { %3445 = vadd.xlane.f32.xlu1 %v3444_v47  ;;  %v15947_v47 = vld [vmem:[#allocation16_spill] sm:$0xff] }
 0xa9b   :  { %v3431_v42 = vpop.f32.mrf.mxu1 }
 0xa9c   :  { %v3432_v41 = vadd.f32 %v3431_v42, %v13002_v57  ;;  %v15948_v42 = vld [vmem:[#allocation30_spill] sm:$0xff] }
 0xa9e   :  { %v3437_v23 = vadd.f32 %v3432_v41, %v13018_v34  ;;  %v15938_v34 = vld [vmem:[#allocation5_spill] sm:$0xff] }
 0xa9f   :  { %v15949_v41 = vld [vmem:[#allocation17_spill] sm:$0xff] }
 0xaa0   :  { %v3447_v49 = vsel %vm445_vm2, %v3437_v23, 0.0 }
 0xaa1   :  { %3448 = vadd.xlane.f32.xlu0 %v3447_v49 }
 0xab5   :  { %3893 = vrot.lane.b32.xlu0 %v15937_v3, %s10837_s27  ;;  %v15950_v3 = vld [vmem:[#allocation33_spill] sm:$0xff] }
 0xb11   :  { %v13128_v32 = vpop.f32.mrf.mxu2 }
 0xb12   :  { %3747 = vrot.lane.b32.xlu1 %v13128_v32, %s10837_s27 }
 0xb14   :  { %v3449_v51 = vpop.xlane.xlu0 %3448 }
 0xb15   :  { %v3453_v43 = vmul.f32 %v3449_v51, %v12912_v29  ;;  %v15951_v51 = vld [vmem:[#allocation18_spill] sm:$0xff] }
 0xb17   :  { %v13133_v24 = vsub.f32 %v3437_v23, %v3453_v43  ;;  %v3446_v23 = vpop.xlane.xlu1 %3445 }
 0xb18   :  { %v3452_v49 = vmul.f32 %v3446_v23, %v12912_v29 }
 0xb19   :  { %v13135_v44 = vpop.f32.mrf.mxu2  ;;  %v3461_v57 = vmul.f32 %v13133_v24, %v13133_v24 }
 0xb1a   :  { %3887 = vrot.lane.b32.xlu1 %v15938_v34, %s10837_s27  ;;  %3749 = vrot.lane.b32.xlu2 %v13135_v44, %s10837_s27  ;;  %v13177_v43 = vsub.f32 %v3436_v12, %v3452_v49  ;;  %v15952_v34 = vld [vmem:[#allocation36_spill] sm:$0xff]  ;;  %v3655_v49 = vrot.slane %v13128_v32, 1 }
 0xb1b   :  { %v3471_v48 = vsel %vm445_vm2, %v3461_v57, 0.0 }
 0xb1c   :  { %3472 = vadd.xlane.f32.xlu0 %v3471_v48  ;;  %v3460_v57 = vmul.f32 %v13177_v43, %v13177_v43 }
 0xb1e   :  { %v3468_v48 = vsel %vm445_vm2, %v3460_v57, 0.0  ;;  %v15959_v57 = vld [vmem:[#allocation11_spill] sm:$0xff] }
 0xb22   :  { %3889 = vrot.lane.b32.xlu1 %v15939_v0, %s10837_s27  ;;  %3891 = vrot.lane.b32.xlu2 %v15940_v33, %s10837_s27  ;;  %v15955_v0 = vld [vmem:[#allocation25_spill] sm:$0xff]  ;;  %v15956_v33 = vld [vmem:[#allocation28_spill] sm:$0xff] }
 0xb2a   :  { %3207 = vrot.lane.b32.xlu1 %v10431_v61, %s10839_s9  ;;  %3209 = vrot.lane.b32.xlu2 %v10433_v35, %s10839_s9 }
 0xb30   :  { %3911 = vrot.lane.b32.xlu0 %v15941_v39, %s10837_s27  ;;  %v15957_v39 = vld [vmem:[#allocation31_spill] sm:$0xff] }
 0xb32   :  { %3895 = vrot.lane.b32.xlu1 %v15942_v56, %s10837_s27  ;;  %3897 = vrot.lane.b32.xlu2 %v15943_v11, %s10837_s27  ;;  %v3683_v11 = vperm.slane %v13128_v32, 0 }
 0xb38   :  { %3917 = vrot.lane.b32.xlu0 %v15944_v2, %s10837_s27 }
 0xb3a   :  { %3899 = vrot.lane.b32.xlu2 %v15945_v60, %s10837_s27 }
 0xb40   :  { %3923 = vrot.lane.b32.xlu0 %v15946_v18, %s10837_s27 }
 0xb42   :  { %3901 = vrot.lane.b32.xlu2 %v15947_v47, %s10837_s27 }
 0xb48   :  { %3929 = vrot.lane.b32.xlu0 %v15948_v42, %s10837_s27 }
 0xb4a   :  { %3903 = vrot.lane.b32.xlu2 %v15949_v41, %s10837_s27  ;;  %v15958_v41 = vld [vmem:[#allocation34_spill] sm:$0xff] }
 0xb50   :  { %3935 = vrot.lane.b32.xlu0 %v15950_v3, %s10837_s27 }
 0xb52   :  { %3905 = vrot.lane.b32.xlu2 %v15951_v51, %s10837_s27 }
 0xb58   :  { %3941 = vrot.lane.b32.xlu0 %v15952_v34, %s10837_s27 }
 0xb5c   :  { %3469 = vadd.xlane.f32.xlu1 %v3468_v48  ;;  %v15961_v48 = vld [vmem:[#allocation10_spill] sm:$0xff] }
 0xb60   :  { %3947 = vrot.lane.b32.xlu0 %v15953_v30, %s10837_s27 }
 0xb74   :  { %v13194_v61 = vpop.permute.xlu2 %3749 }
 0xb75   :  { %3907 = vrot.lane.b32.xlu1 %v15954_v46, %s10837_s27  ;;  %v3760_v60 = vmul.f32 %v13194_v61, %v3683_v11  ;;  %v15963_v46 = vld [vmem:[#allocation37_spill] sm:$0xff] }
 0xb7c   :  { %v3892_v56 = vpop.permute.xlu2 %3891 }
 0xb7d   :  { %3919 = vrot.lane.b32.xlu1 %v15955_v0, %s10837_s27  ;;  %v3684_v0 = vperm.slane %v3655_v49, 0  ;;  %v15966_v49 = vld [vmem:[#allocation41_spill] sm:$0xff] }
 0xb84   :  { %v13190_v12 = vpop.permute.xlu1 %3747  ;;  %v3210_v3 = vpop.permute.xlu2 %3209 }
 0xb85   :  { %3925 = vrot.lane.b32.xlu1 %v15956_v33, %s10837_s27  ;;  %v3759_v2 = vmul.f32 %v13190_v12, %v3683_v11  ;;  %v13206_v34 = vadd.f32 %v3210_v3, %v15959_v57  ;;  %v15967_v57 = vld [vmem:[#allocation22_spill] sm:$0xff] }
 0xb87   :  { %15960 = vst [vmem:[#allocation12_spill] sm:$0xff] %v13206_v34 }
 0xb8c   :  { %v3888_v35 = vpop.permute.xlu1 %3887 }
 0xb8d   :  { %3931 = vrot.lane.b32.xlu1 %v15957_v39, %s10837_s27  ;;  %v4079_v47 = vmul.f32 %v3888_v35, %v3759_v2  ;;  %v3761_v35 = vmul.f32 %v13190_v12, %v3684_v0  ;;  %v3762_v39 = vmul.f32 %v13194_v61, %v3684_v0  ;;  %v3894_v2 = vpop.permute.xlu0 %3893 }
 0xb8f   :  { %v4081_v11 = vmul.f32 %v3892_v56, %v3761_v35  ;;  %v15968_v35 = vld [vmem:[#allocation44_spill] sm:$0xff] }
 0xb94   :  { %v3890_v18 = vpop.permute.xlu1 %3889 }
 0xb95   :  { %v4080_v42 = vmul.f32 %v3890_v18, %v3760_v60  ;;  %3937 = vrot.lane.b32.xlu1 %v15958_v41, %s10837_s27  ;;  %v15964_v60 = vld [vmem:[#allocation40_spill] sm:$0xff]  ;;  %v4082_v18 = vmul.f32 %v3894_v2, %v3762_v39  ;;  %v3657_v2 = vrot.slane %v13128_v32, 3 }
 0xb96   :  { %v15965_v41 = vld [vmem:[#allocation20_spill] sm:$0xff] }
 0xb97   :  { %v4143_v23 = vpack.c.bf16 %v4080_v42, %v4079_v47  ;;  %v4144_v47 = vpack.c.bf16 %v4082_v18, %v4081_v11  ;;  %v3898_v42 = vpop.permute.xlu2 %3897  ;;  %v15969_v11 = vld [vmem:[#allocation23_spill] sm:$0xff] }
 0xb98   :  { %v15970_v18 = vld [vmem:[#allocation47_spill] sm:$0xff] }
 0xb99   :  { %9171 = vmatmul.msk.bf16.vlgmr.msra.gmra.mxu0 %vm950_vm3, %v4143_v23  ;;  %v3656_v23 = vrot.slane %v13128_v32, 2 }
 0xb9b   :  { %v3685_v3 = vperm.slane %v3656_v23, 0 }
 0xb9c   :  { %v3208_v51 = vpop.permute.xlu1 %3207 }
 0xb9d   :  { %v13209_v30 = vadd.f32 %v3208_v51, %v15961_v48  ;;  %3943 = vrot.lane.b32.xlu1 %v15963_v46, %s10837_s27  ;;  %v3763_v56 = vmul.f32 %v13190_v12, %v3685_v3  ;;  %v3764_v46 = vmul.f32 %v13194_v61, %v3685_v3 }
 0xb9f   :  { %15962 = vst [vmem:[#allocation5_spill] sm:$0xff] %v13209_v30  ;;  %v9938_v33 = vpack.i.bf16 %v13206_v34, %v13209_v30  ;;  %v3900_v48 = vpop.permute.xlu2 %3899 }
 0xba1   :  { %9939 = vrot.lane.b32.xlu2 %v9938_v33, %s10835_s6  ;;  %v4084_v33 = vmul.f32 %v3898_v42, %v3764_v46  ;;  %v15971_v42 = vld [vmem:[#allocation26_spill] sm:$0xff]  ;;  %v3473_v46 = vpop.xlane.xlu0 %3472 }
 0xba4   :  { %v3896_v51 = vpop.permute.xlu1 %3895 }
 0xba5   :  { %3949 = vrot.lane.b32.xlu1 %v15964_v60, %s10837_s27  ;;  %v4083_v0 = vmul.f32 %v3896_v51, %v3763_v56  ;;  %v15972_v51 = vld [vmem:[#allocation68_spill] sm:$0xff] }
 0xba7   :  { %v4145_v39 = vpack.c.bf16 %v4084_v33, %v4083_v0  ;;  %v3902_v60 = vpop.permute.xlu2 %3901  ;;  %v15973_v0 = vld [vmem:[#allocation29_spill] sm:$0xff]  ;;  %v3477_v33 = vmul.f32 %v3473_v46, %v12912_v29 }
 0xba9   :  { %9172 = vmatmul.msk.bf16.gmra.mxu0 %vm950_vm3, %v4144_v47  ;;  %3909 = vrot.lane.b32.xlu2 %v15965_v41, %s10837_s27  ;;  %v3686_v47 = vperm.slane %v3657_v2, 0 }
 0xbab   :  { %v3766_v41 = vmul.f32 %v13194_v61, %v3686_v47  ;;  %v3765_v23 = vmul.f32 %v13190_v12, %v3686_v47 }
 0xbad   :  { %3951 = vrot.lane.b32.xlu1 %v15966_v49, %s10837_s27  ;;  %v4086_v49 = vmul.f32 %v3902_v60, %v3766_v41  ;;  %v4085_v3 = vmul.f32 %v3900_v48, %v3765_v23  ;;  %v15975_v41 = vld [vmem:[#allocation32_spill] sm:$0xff] }
 0xbaf   :  { %v3904_v56 = vpop.permute.xlu2 %3903 }
 0xbb1   :  { %3913 = vrot.lane.b32.xlu2 %v15967_v57, %s10837_s27  ;;  %v4146_v57 = vpack.c.bf16 %v4086_v49, %v4085_v3 }
 0xbb5   :  { %3957 = vrot.lane.b32.xlu1 %v15968_v35, %s10837_s27  ;;  %v3658_v35 = vrot.slane %v13128_v32, 4 }
 0xbb7   :  { %v3687_v48 = vperm.slane %v3658_v35, 0  ;;  %v3906_v60 = vpop.permute.xlu2 %3905 }
 0xbb9   :  { %3915 = vrot.lane.b32.xlu2 %v15969_v11, %s10837_s27  ;;  %9173 = vmatmul.msk.bf16.gmra.mxu0 %vm950_vm3, %v4145_v39  ;;  %v15974_v39 = vld [vmem:[#allocation76_spill] sm:$0xff]  ;;  %v3481_v11 = vadd.f32 1e-05, %v3477_v33  ;;  %v3768_v47 = vmul.f32 %v13194_v61, %v3687_v48  ;;  %v3767_v23 = vmul.f32 %v13190_v12, %v3687_v48 }
 0xbbb   :  { %10434 = vrsqrt.f32 %v3481_v11  ;;  %v4088_v49 = vmul.f32 %v3906_v60, %v3768_v47  ;;  %v4087_v3 = vmul.f32 %v3904_v56, %v3767_v23  ;;  %v15979_v56 = vld [vmem:[#allocation38_spill] sm:$0xff]  ;;  %vm3518_vm13 = vweird.f32 %v3481_v11 }
 0xbbd   :  { %3963 = vrot.lane.b32.xlu1 %v15970_v18, %s10837_s27 }
 0xbc1   :  { %3921 = vrot.lane.b32.xlu2 %v15971_v42, %s10837_s27  ;;  %v10435_v46 = vpop.eup %10434 }
 0xbc2   :  { %v3513_v35 = vmul.f32 %v10435_v46, %v3481_v11  ;;  %vm3519_vm11 = vweird.f32 %v10435_v46 }
 0xbc3   :  { %vm3520_vm14 = vmor %vm3518_vm13, %vm3519_vm11 }
 0xbc4   :  { %v3514_v48 = vmul.f32 %v10435_v46, %v3513_v35 }
 0xbc5   :  { %3969 = vrot.lane.b32.xlu1 %v15972_v51, %s10837_s27  ;;  %v15976_v51 = vld [vmem:[#allocation81_spill] sm:$0xff] }
 0xbc9   :  { %3927 = vrot.lane.b32.xlu2 %v15973_v0, %s10837_s27  ;;  %9174 = vmatmul.msk.bf16.gmra.mxu0 %vm950_vm3, %v4146_v57  ;;  %v4147_v57 = vpack.c.bf16 %v4088_v49, %v4087_v3  ;;  %v15977_v0 = vld [vmem:[#allocation35_spill] sm:$0xff] }
 0xbcd   :  { %3975 = vrot.lane.b32.xlu1 %v15974_v39, %s10837_s27 }
 0xbcf   :  { %v3470_v2 = vpop.xlane.xlu1 %3469 }
 0xbd0   :  { %v3476_v18 = vmul.f32 %v3470_v2, %v12912_v29  ;;  %v15978_v2 = vld [vmem:[#allocation90_spill] sm:$0xff] }
 0xbd1   :  { %3933 = vrot.lane.b32.xlu2 %v15975_v41, %s10837_s27  ;;  %v15980_v41 = vld [vmem:[#allocation102_spill] sm:$0xff] }
 0xbd2   :  { %v3480_v42 = vadd.f32 1e-05, %v3476_v18  ;;  %v3515_v18 = vmul.f32 0.5, %v3514_v48  ;;  %v15982_v48 = vld [vmem:[#allocation123_spill] sm:$0xff] }
 0xbd4   :  { %10436 = vrsqrt.f32 %v3480_v42  ;;  %v3516_v23 = vsub.f32 1.5, %v3515_v18  ;;  %vm3508_vm15 = vweird.f32 %v3480_v42  ;;  %v3659_v18 = vrot.slane %v13128_v32, 5 }
 0xbd5   :  { %3981 = vrot.lane.b32.xlu1 %v15976_v51, %s10837_s27 }
 0xbd6   :  { %v3517_v3 = vmul.f32 %v10435_v46, %v3516_v23 }
 0xbd9   :  { %3939 = vrot.lane.b32.xlu2 %v15977_v0, %s10837_s27  ;;  %9175 = vmatmul.msk.bf16.gmra.mxu0 %vm950_vm3, %v4147_v57  ;;  %v15981_v57 = vld [vmem:[#allocation112_spill] sm:$0xff]  ;;  %v3521_v0 = vsel %vm3520_vm14, %v10435_v46, %v3517_v3 }
 0xbda   :  { %v10437_v33 = vpop.eup %10436 }
 0xbdb   :  { %v3503_v39 = vmul.f32 %v10437_v33, %v3480_v42  ;;  %vm3509_vm12 = vweird.f32 %v10437_v33 }
 0xbdc   :  { %vm3510_vm4 = vmor %vm3508_vm15, %vm3509_vm12 }
 0xbdd   :  { %3987 = vrot.lane.b32.xlu1 %v15978_v2, %s10837_s27  ;;  %v3504_v60 = vmul.f32 %v10437_v33, %v3503_v39  ;;  %v3525_v39 = vmul.f32 %v3521_v0, %v13133_v24  ;;  %v3660_v0 = vrot.slane %v13128_v32, 6 }
 0xbdf   :  { %v3505_v47 = vmul.f32 0.5, %v3504_v60  ;;  %v3530_v60 = vmul.f32 %v13099_v9, %v3525_v39 }
 0xbe1   :  { %3945 = vrot.lane.b32.xlu2 %v15979_v56, %s10837_s27  ;;  %v3506_v49 = vsub.f32 1.5, %v3505_v47  ;;  %v13277_v11 = vadd.f32 %v13104_v19, %v3530_v60 }
 0xbe3   :  { %v3507_v51 = vmul.f32 %v10437_v33, %v3506_v49  ;;  %15983 = vst [vmem:[#allocation8_spill] sm:$0xff] %v13277_v11 }
 0xbe5   :  { %3993 = vrot.lane.b32.xlu1 %v15980_v41, %s10837_s27  ;;  %v3511_v35 = vsel %vm3510_vm4, %v10437_v33, %v3507_v51  ;;  %v3688_v41 = vperm.slane %v3659_v18, 0 }
 0xbe6   :  { %v3524_v2 = vmul.f32 %v3511_v35, %v13177_v43  ;;  %v3689_v35 = vperm.slane %v3660_v0, 0 }
 0xbe7   :  { %v3908_v23 = vpop.permute.xlu1 %3907  ;;  %v3769_v49 = vmul.f32 %v13190_v12, %v3688_v41 }
 0xbe8   :  { %v3529_v56 = vmul.f32 %v13099_v9, %v3524_v2  ;;  %v3772_v2 = vmul.f32 %v13194_v61, %v3689_v35  ;;  %v3771_v60 = vmul.f32 %v13190_v12, %v3689_v35 }
 0xbe9   :  { %v4089_v51 = vmul.f32 %v3908_v23, %v3769_v49 }
 0xbea   :  { %v13280_v33 = vadd.f32 %v13104_v19, %v3529_v56  ;;  %v3770_v19 = vmul.f32 %v13194_v61, %v3688_v41 }
 0xbec   :  { %15984 = vst [vmem:[#allocation9_spill] sm:$0xff] %v13280_v33 }
 0xbed   :  { %3999 = vrot.lane.b32.xlu1 %v15981_v57, %s10837_s27 }
 0xbf5   :  { %4005 = vrot.lane.b32.xlu1 %v15982_v48, %s10837_s27  ;;  %v3912_v48 = vpop.permute.xlu0 %3911 }
 0xbf6   :  { %v4091_v18 = vmul.f32 %v3912_v48, %v3771_v60 }
 0xbfb   :  { %v9940_v47 = vpop.permute.xlu2 %9939 }
 0xbfc   :  { %v9942_v42 = vunpack.i.h.bf16 %v9940_v47  ;;  %v9941_v46 = vunpack.i.l.bf16 %v9940_v47 }
 0xbfd   :  { %4011 = vrot.lane.b32.xlu1 %v12073_v58, %s10837_s27 }
 0xbfe   :  { %v3555_v24 = vsel %vm445_vm2, %v13277_v11, %v9942_v42  ;;  %v3554_v9 = vsel %vm445_vm2, %v13280_v33, %v9941_v46 }
 0xbff   :  { %v3557_v43 = vpack.c.bf16 %v3555_v24, %v3554_v9  ;;  %v3661_v24 = vrot.slane %v13128_v32, 7 }
 0xc01   :  { %9168 = vmatmul.msk.bf16.gmra.mxu2 %vm950_vm3, %v3557_v43  ;;  %9170 = vmatmul.msk.bf16.gmra.mxu3 %vm950_vm3, %v3557_v43  ;;  %v3690_v43 = vperm.slane %v3661_v24, 0 }
 0xc03   :  { %v3910_v3 = vpop.permute.xlu2 %3909 }
 0xc04   :  { %v4090_v58 = vmul.f32 %v3910_v3, %v3770_v19  ;;  %v3773_v3 = vmul.f32 %v13190_v12, %v3690_v43 }
 0xc06   :  { %v4148_v57 = vpack.c.bf16 %v4090_v58, %v4089_v51  ;;  %v3918_v51 = vpop.permute.xlu0 %3917 }
 0xc08   :  { %9176 = vmatmul.msk.bf16.gmra.mxu0 %vm950_vm3, %v4148_v57  ;;  %v3774_v57 = vmul.f32 %v13194_v61, %v3690_v43 }
 0xc0b   :  { %v3914_v39 = vpop.permute.xlu2 %3913 }
 0xc0c   :  { %v4092_v56 = vmul.f32 %v3914_v39, %v3772_v2  ;;  %v4094_v39 = vmul.f32 %v3918_v51, %v3774_v57  ;;  %v3920_v51 = vpop.permute.xlu1 %3919 }
 0xc0e   :  { %v4149_v47 = vpack.c.bf16 %v4092_v56, %v4091_v18 }
 0xc13   :  { %v3916_v23 = vpop.permute.xlu2 %3915 }
 0xc14   :  { %v4093_v0 = vmul.f32 %v3916_v23, %v3773_v3 }
 0xc16   :  { %v4280_v42 = vpop.f32.mrf.mxu0  ;;  %v4150_v2 = vpack.c.bf16 %v4094_v39, %v4093_v0 }
 0xc17   :  { %v4440_v46 = vmul.f32 0.35355338, %v4280_v42 }
 0xc18   :  { %9177 = vmatmul.msk.bf16.gmra.mxu0 %vm950_vm3, %v4149_v47  ;;  %v15985_v47 = vld [vmem:[#allocation50_spill] sm:$0xff] }
 0xc19   :  { %v9203_v9 = vclamps-f32 %v4440_v46, 5.0  ;;  %v15986_v46 = vld [vmem:[#allocation51_spill] sm:$0xff] }
 0xc1b   :  { %v4632_v49 = vmul.f32 1.442695, %v9203_v9  ;;  %v3691_v9 = vperm.slane %v13135_v44, 0  ;;  %v3922_v23 = vpop.permute.xlu2 %3921 }
 0xc1d   :  { %10438 = vpow2.f32 %v4632_v49  ;;  %v3776_v3 = vmul.f32 %v13194_v61, %v3691_v9  ;;  %v3775_v57 = vmul.f32 %v13190_v12, %v3691_v9 }
 0xc1e   :  { %v4282_v41 = vpop.f32.mrf.mxu0 }
 0xc1f   :  { %v4441_v19 = vmul.f32 0.35355338, %v4282_v41  ;;  %v4096_v0 = vmul.f32 %v3922_v23, %v3776_v3  ;;  %v4095_v39 = vmul.f32 %v3920_v51, %v3775_v57  ;;  %v3926_v3 = vpop.permute.xlu1 %3925 }
 0xc21   :  { %v9204_v58 = vclamps-f32 %v4441_v19, 5.0 }
 0xc23   :  { %v4634_v35 = vmul.f32 1.442695, %v9204_v58  ;;  %v10439_v60 = vpop.eup %10438 }
 0xc24   :  { %v4760_v42 = vmul.f32 %v10439_v60, %v15985_v47 }
 0xc25   :  { %10440 = vpow2.f32 %v4634_v35 }
 0xc26   :  { %v4285_v48 = vpop.f32.mrf.mxu0 }
 0xc27   :  { %v4442_v32 = vmul.f32 0.35355338, %v4285_v48 }
 0xc28   :  { %9178 = vmatmul.msk.bf16.gmra.mxu0 %vm950_vm3, %v4150_v2  ;;  %v4151_v2 = vpack.c.bf16 %v4096_v0, %v4095_v39  ;;  %v3924_v0 = vpop.permute.xlu0 %3923 }
 0xc29   :  { %v9205_v18 = vclamps-f32 %v4442_v32, 5.0 }
 0xc2b   :  { %v10441_v56 = vpop.eup %10440  ;;  %v4636_v49 = vmul.f32 1.442695, %v9205_v18 }
 0xc2c   :  { %v4761_v24 = vmul.f32 %v10441_v56, %v15986_v46  ;;  %v3662_v56 = vrot.slane %v13135_v44, 1 }
 0xc2d   :  { %10442 = vpow2.f32 %v4636_v49 }
 0xc2e   :  { %v4824_v43 = vpack.c.bf16 %v4761_v24, %v4760_v42  ;;  %v4287_v41 = vpop.f32.mrf.mxu0  ;;  %v15987_v24 = vld [vmem:[#allocation53_spill] sm:$0xff]  ;;  %v3692_v9 = vperm.slane %v3662_v56, 0 }
 0xc2f   :  { %v4443_v19 = vmul.f32 0.35355338, %v4287_v41  ;;  %v15988_v41 = vld [vmem:[#allocation52_spill] sm:$0xff] }
 0xc30   :  { %9267 = vmatmul.msk.bf16.vlgmr.msra.gmra.mxu1 %vm231_vm1, %v4824_v43  ;;  %v3778_v57 = vmul.f32 %v13194_v61, %v3692_v9  ;;  %v3777_v39 = vmul.f32 %v13190_v12, %v3692_v9 }
 0xc31   :  { %v9206_v58 = vclamps-f32 %v4443_v19, 5.0 }
 0xc33   :  { %v4638_v35 = vmul.f32 1.442695, %v9206_v58  ;;  %v10443_v60 = vpop.eup %10442 }
 0xc34   :  { %v4762_v43 = vmul.f32 %v10443_v60, %v15987_v24 }
 0xc35   :  { %10444 = vpow2.f32 %v4638_v35 }
 0xc36   :  { %v4290_v48 = vpop.f32.mrf.mxu0 }
 0xc37   :  { %v4444_v32 = vmul.f32 0.35355338, %v4290_v48 }
 0xc38   :  { %9179 = vmatmul.msk.bf16.gmra.mxu0 %vm950_vm3, %v4151_v2  ;;  %v4098_v2 = vmul.f32 %v3926_v3, %v3778_v57  ;;  %v3928_v57 = vpop.permute.xlu2 %3927 }
 0xc39   :  { %v9207_v42 = vclamps-f32 %v4444_v32, 5.0  ;;  %v4097_v32 = vmul.f32 %v3924_v0, %v3777_v39 }
 0xc3b   :  { %v10445_v18 = vpop.eup %10444  ;;  %v4640_v51 = vmul.f32 1.442695, %v9207_v42  ;;  %v4152_v60 = vpack.c.bf16 %v4098_v2, %v4097_v32  ;;  %v3930_v2 = vpop.permute.xlu0 %3929 }
 0xc3c   :  { %v4763_v19 = vmul.f32 %v10445_v18, %v15988_v41 }
 0xc3d   :  { %10446 = vpow2.f32 %v4640_v51 }
 0xc3e   :  { %v4292_v23 = vpop.f32.mrf.mxu0  ;;  %v4825_v49 = vpack.c.bf16 %v4763_v19, %v4762_v43  ;;  %v3663_v43 = vrot.slane %v13135_v44, 2 }
 0xc3f   :  { %v4445_v58 = vmul.f32 0.35355338, %v4292_v23 }
 0xc40   :  { %9268 = vmatmul.msk.bf16.gmra.mxu1 %vm231_vm1, %v4825_v49  ;;  %v15989_v49 = vld [vmem:[#allocation54_spill] sm:$0xff]  ;;  %v3693_v9 = vperm.slane %v3663_v43, 0 }
 0xc41   :  { %v9208_v35 = vclamps-f32 %v4445_v58, 5.0  ;;  %v15990_v58 = vld [vmem:[#allocation55_spill] sm:$0xff] }
 0xc42   :  { %v3779_v39 = vmul.f32 %v13190_v12, %v3693_v9  ;;  %v3780_v32 = vmul.f32 %v13194_v61, %v3693_v9 }
 0xc43   :  { %v4642_v48 = vmul.f32 1.442695, %v9208_v35  ;;  %v10447_v42 = vpop.eup %10446 }
 0xc44   :  { %v4764_v40 = vmul.f32 %v10447_v42, %v15989_v49 }
 0xc45   :  { %10448 = vpow2.f32 %v4642_v48 }
 0xc46   :  { %v4295_v56 = vpop.f32.mrf.mxu0 }
 0xc47   :  { %v4446_v18 = vmul.f32 0.35355338, %v4295_v56 }
 0xc48   :  { %9180 = vmatmul.msk.bf16.gmra.mxu0 %vm950_vm3, %v4152_v60  ;;  %v4099_v60 = vmul.f32 %v3928_v57, %v3779_v39  ;;  %v3934_v39 = vpop.permute.xlu2 %3933 }
 0xc49   :  { %v9209_v23 = vclamps-f32 %v4446_v18, 5.0  ;;  %v4100_v18 = vmul.f32 %v3930_v2, %v3780_v32 }
 0xc4b   :  { %v10449_v19 = vpop.eup %10448  ;;  %v4644_v0 = vmul.f32 1.442695, %v9209_v23  ;;  %v4153_v42 = vpack.c.bf16 %v4100_v18, %v4099_v60  ;;  %v3932_v60 = vpop.permute.xlu1 %3931 }
 0xc4c   :  { %v4765_v13 = vmul.f32 %v10449_v19, %v15990_v58 }
 0xc4d   :  { %10450 = vpow2.f32 %v4644_v0 }
 0xc4e   :  { %v4297_v3 = vpop.f32.mrf.mxu0  ;;  %v4826_v51 = vpack.c.bf16 %v4765_v13, %v4764_v40  ;;  %v3664_v40 = vrot.slane %v13135_v44, 3 }
 0xc4f   :  { %v4447_v35 = vmul.f32 0.35355338, %v4297_v3 }
 0xc50   :  { %9269 = vmatmul.msk.bf16.gmra.mxu1 %vm231_vm1, %v4826_v51  ;;  %v15991_v51 = vld [vmem:[#allocation56_spill] sm:$0xff]  ;;  %v3694_v9 = vperm.slane %v3664_v40, 0 }
 0xc51   :  { %v9210_v48 = vclamps-f32 %v4447_v35, 5.0  ;;  %v15992_v35 = vld [vmem:[#allocation57_spill] sm:$0xff] }
 0xc52   :  { %v3782_v32 = vmul.f32 %v13194_v61, %v3694_v9  ;;  %v3781_v18 = vmul.f32 %v13190_v12, %v3694_v9 }
 0xc53   :  { %v4646_v56 = vmul.f32 1.442695, %v9210_v48  ;;  %v10451_v13 = vpop.eup %10450 }
 0xc54   :  { %v4766_v54 = vmul.f32 %v10451_v13, %v15991_v51  ;;  %v3938_v51 = vpop.permute.xlu1 %3937 }
 0xc55   :  { %10452 = vpow2.f32 %v4646_v56 }
 0xc56   :  { %v4300_v43 = vpop.f32.mrf.mxu0 }
 0xc57   :  { %v4448_v19 = vmul.f32 0.35355338, %v4300_v43 }
 0xc58   :  { %9181 = vmatmul.msk.bf16.gmra.mxu0 %vm950_vm3, %v4153_v42  ;;  %v4102_v42 = vmul.f32 %v3934_v39, %v3782_v32  ;;  %v3936_v39 = vpop.permute.xlu0 %3935 }
 0xc59   :  { %v9211_v3 = vclamps-f32 %v4448_v19, 5.0  ;;  %v4101_v19 = vmul.f32 %v3932_v60, %v3781_v18  ;;  %v3666_v18 = vrot.slane %v13135_v44, 5 }
 0xc5b   :  { %v10453_v23 = vpop.eup %10452  ;;  %v4648_v2 = vmul.f32 1.442695, %v9211_v3  ;;  %v4154_v13 = vpack.c.bf16 %v4102_v42, %v4101_v19  ;;  %v3696_v42 = vperm.slane %v3666_v18, 0 }
 0xc5c   :  { %v4767_v53 = vmul.f32 %v10453_v23, %v15992_v35  ;;  %v15993_v23 = vld [vmem:[#allocation59_spill] sm:$0xff] }
 0xc5d   :  { %10454 = vpow2.f32 %v4648_v2  ;;  %v3785_v19 = vmul.f32 %v13190_v12, %v3696_v42 }
 0xc5e   :  { %v4302_v57 = vpop.f32.mrf.mxu0  ;;  %v4827_v0 = vpack.c.bf16 %v4767_v53, %v4766_v54  ;;  %v3665_v54 = vrot.slane %v13135_v44, 4 }
 0xc5f   :  { %v4449_v48 = vmul.f32 0.35355338, %v4302_v57  ;;  %v15994_v57 = vld [vmem:[#allocation58_spill] sm:$0xff] }
 0xc60   :  { %9270 = vmatmul.msk.bf16.gmra.mxu1 %vm231_vm1, %v4827_v0  ;;  %v3695_v35 = vperm.slane %v3665_v54, 0 }
 0xc61   :  { %v9212_v56 = vclamps-f32 %v4449_v48, 5.0 }
 0xc62   :  { %v3784_v9 = vmul.f32 %v13194_v61, %v3695_v35  ;;  %v3783_v2 = vmul.f32 %v13190_v12, %v3695_v35 }
 0xc63   :  { %v4650_v43 = vmul.f32 1.442695, %v9212_v56  ;;  %v10455_v53 = vpop.eup %10454 }
 0xc64   :  { %v4768_v3 = vmul.f32 %v10455_v53, %v15993_v23  ;;  %v4104_v32 = vmul.f32 %v3938_v51, %v3784_v9  ;;  %v4103_v60 = vmul.f32 %v3936_v39, %v3783_v2  ;;  %v3786_v53 = vmul.f32 %v13194_v61, %v3696_v42  ;;  %v15995_v2 = vld [vmem:[#allocation42_spill] sm:$0xff] }
 0xc65   :  { %10456 = vpow2.f32 %v4650_v43  ;;  %v3940_v43 = vpop.permute.xlu2 %3939 }
 0xc66   :  { %v4155_v56 = vpack.c.bf16 %v4104_v32, %v4103_v60  ;;  %v4105_v54 = vmul.f32 %v3940_v43, %v3785_v19 }
 0xc68   :  { %9182 = vmatmul.msk.bf16.gmra.mxu0 %vm950_vm3, %v4154_v13  ;;  %v3942_v13 = vpop.permute.xlu0 %3941 }
 0xc6b   :  { %v10457_v40 = vpop.eup %10456 }
 0xc6c   :  { %v4769_v0 = vmul.f32 %v10457_v40, %v15994_v57  ;;  %v4106_v40 = vmul.f32 %v3942_v13, %v3786_v53  ;;  %v3944_v13 = vpop.permute.xlu1 %3943 }
 0xc6d   :  { %v3946_v42 = vpop.permute.xlu2 %3945 }
 0xc6e   :  { %v4828_v48 = vpack.c.bf16 %v4769_v0, %v4768_v3  ;;  %v4156_v35 = vpack.c.bf16 %v4106_v40, %v4105_v54 }
 0xc70   :  { %9271 = vmatmul.msk.bf16.gmra.mxu1 %vm231_vm1, %v4828_v48  ;;  %v3667_v48 = vrot.slane %v13135_v44, 6 }
 0xc72   :  { %v3697_v60 = vperm.slane %v3667_v48, 0 }
 0xc74   :  { %v3788_v43 = vmul.f32 %v13194_v61, %v3697_v60  ;;  %v3787_v53 = vmul.f32 %v13190_v12, %v3697_v60  ;;  %v3668_v60 = vrot.slane %v13135_v44, 7 }
 0xc76   :  { %v4108_v54 = vmul.f32 %v3946_v42, %v3788_v43 }
 0xc78   :  { %9183 = vmatmul.msk.bf16.gmra.mxu0 %vm950_vm3, %v4155_v56 }
 0xc84   :  { %v13339_v3 = vpop.f32.mrf.mxu2 }
 0xc85   :  { %3751 = vrot.lane.b32.xlu2 %v13339_v3, %s10837_s27  ;;  %v4305_v51 = vpop.f32.mrf.mxu0  ;;  %v3673_v1 = vrot.slane %v13339_v3, 5  ;;  %v3669_v34 = vrot.slane %v13339_v3, 1 }
 0xc86   :  { %v4450_v0 = vmul.f32 0.35355338, %v4305_v51  ;;  %v4107_v51 = vmul.f32 %v3944_v13, %v3787_v53  ;;  %v16000_v53 = vld [vmem:[#allocation48_spill] sm:$0xff] }
 0xc87   :  { %v13469_v47 = vperm.slane %v3673_v1, 0  ;;  %v3700_v16 = vperm.slane %v3669_v34, 0 }
 0xc88   :  { %9184 = vmatmul.msk.bf16.gmra.mxu0 %vm950_vm3, %v4156_v35  ;;  %v9213_v9 = vclamps-f32 %v4450_v0, 5.0  ;;  %v15996_v35 = vld [vmem:[#allocation45_spill] sm:$0xff]  ;;  %v15997_v0 = vld [vmem:[#allocation43_spill] sm:$0xff] }
 0xc8a   :  { %v4652_v56 = vmul.f32 1.442695, %v9213_v9  ;;  %v4157_v9 = vpack.c.bf16 %v4108_v54, %v4107_v51  ;;  %v3698_v51 = vperm.slane %v3668_v60, 0  ;;  %v16003_v60 = vld [vmem:[#allocation64_spill] sm:$0xff] }
 0xc8c   :  { %v13345_v39 = vpop.f32.mrf.mxu2  ;;  %10458 = vpow2.f32 %v4652_v56  ;;  %v15998_v56 = vld [vmem:[#allocation60_spill] sm:$0xff]  ;;  %v3790_v44 = vmul.f32 %v13194_v61, %v3698_v51 }
 0xc8d   :  { %3953 = vrot.lane.b32.xlu2 %v15995_v2, %s10837_s27  ;;  %3753 = vrot.lane.b32.xlu0 %v13345_v39, %s10837_s27  ;;  %v4307_v32 = vpop.f32.mrf.mxu0 }
 0xc8e   :  { %v4451_v18 = vmul.f32 0.35355338, %v4307_v32 }
 0xc90   :  { %v9214_v19 = vclamps-f32 %v4451_v18, 5.0 }
 0xc92   :  { %v4654_v40 = vmul.f32 1.442695, %v9214_v19  ;;  %v10459_v32 = vpop.eup %10458  ;;  %v15999_v19 = vld [vmem:[#allocation61_spill] sm:$0xff] }
 0xc93   :  { %v4770_v43 = vmul.f32 %v10459_v32, %v15998_v56  ;;  %v3948_v32 = vpop.permute.xlu0 %3947 }
 0xc94   :  { %10460 = vpow2.f32 %v4654_v40  ;;  %v16001_v40 = vld [vmem:[#allocation46_spill] sm:$0xff] }
 0xc95   :  { %3959 = vrot.lane.b32.xlu2 %v15996_v35, %s10837_s27  ;;  %3955 = vrot.lane.b32.xlu0 %v15997_v0, %s10837_s27  ;;  %v4310_v48 = vpop.f32.mrf.mxu0 }
 0xc96   :  { %v4452_v2 = vmul.f32 0.35355338, %v4310_v48 }
 0xc98   :  { %9185 = vmatmul.msk.bf16.gmra.mxu0 %vm950_vm3, %v4157_v9  ;;  %v9215_v42 = vclamps-f32 %v4452_v2, 5.0  ;;  %v3950_v9 = vpop.permute.xlu1 %3949 }
 0xc9a   :  { %v10461_v18 = vpop.eup %10460  ;;  %v4656_v0 = vmul.f32 1.442695, %v9215_v42 }
 0xc9b   :  { %v4771_v13 = vmul.f32 %v10461_v18, %v15999_v19  ;;  %v3789_v18 = vmul.f32 %v13190_v12, %v3698_v51  ;;  %v4110_v19 = vmul.f32 %v3950_v9, %v3790_v44  ;;  %v16004_v12 = vld [vmem:[#allocation62_spill] sm:$0xff]  ;;  %v16007_v44 = vld [vmem:[#allocation77_spill] sm:$0xff] }
 0xc9c   :  { %10462 = vpow2.f32 %v4656_v0  ;;  %v16005_v0 = vld [vmem:[#allocation63_spill] sm:$0xff] }
 0xc9d   :  { %3965 = vrot.lane.b32.xlu2 %v16000_v53, %s10837_s27  ;;  %3961 = vrot.lane.b32.xlu0 %v16001_v40, %s10837_s27  ;;  %v4312_v35 = vpop.f32.mrf.mxu0  ;;  %v4829_v54 = vpack.c.bf16 %v4771_v13, %v4770_v43  ;;  %v4109_v56 = vmul.f32 %v3948_v32, %v3789_v18  ;;  %v16002_v40 = vld [vmem:[#allocation70_spill] sm:$0xff] }
 0xc9e   :  { %v4453_v48 = vmul.f32 0.35355338, %v4312_v35 }
 0xc9f   :  { %9272 = vmatmul.msk.bf16.gmra.mxu1 %vm231_vm1, %v4829_v54  ;;  %v4158_v43 = vpack.c.bf16 %v4110_v19, %v4109_v56 }
 0xca0   :  { %v9216_v2 = vclamps-f32 %v4453_v48, 5.0 }
 0xca2   :  { %v4658_v53 = vmul.f32 1.442695, %v9216_v2  ;;  %v10463_v35 = vpop.eup %10462  ;;  %v16008_v2 = vld [vmem:[#allocation73_spill] sm:$0xff] }
 0xca3   :  { %v4772_v51 = vmul.f32 %v10463_v35, %v16004_v12 }
 0xca4   :  { %10464 = vpow2.f32 %v4658_v53 }
 0xca5   :  { %3971 = vrot.lane.b32.xlu2 %v16002_v40, %s10837_s27  ;;  %3967 = vrot.lane.b32.xlu0 %v16003_v60, %s10837_s27  ;;  %v4315_v42 = vpop.f32.mrf.mxu0 }
 0xca6   :  { %v4454_v13 = vmul.f32 0.35355338, %v4315_v42  ;;  %v16010_v42 = vld [vmem:[#allocation84_spill] sm:$0xff] }
 0xca8   :  { %9186 = vmatmul.msk.bf16.gmra.mxu0 %vm950_vm3, %v4158_v43  ;;  %v9217_v54 = vclamps-f32 %v4454_v13, 5.0  ;;  %v16011_v43 = vld [vmem:[#allocation80_spill] sm:$0xff] }
 0xcaa   :  { %v10465_v61 = vpop.eup %10464  ;;  %v4660_v19 = vmul.f32 1.442695, %v9217_v54 }
 0xcab   :  { %v4773_v48 = vmul.f32 %v10465_v61, %v16005_v0 }
 0xcac   :  { %10466 = vpow2.f32 %v4660_v19  ;;  %v16014_v19 = vld [vmem:[#allocation94_spill] sm:$0xff] }
 0xcad   :  { %v13375_v9 = vpop.f32.mrf.mxu1  ;;  %3977 = vrot.lane.b32.xlu2 %v16007_v44, %s10837_s27  ;;  %3973 = vrot.lane.b32.xlu0 %v16008_v2, %s10837_s27  ;;  %v4317_v32 = vpop.f32.mrf.mxu0  ;;  %v4830_v56 = vpack.c.bf16 %v4773_v48, %v4772_v51  ;;  %v16012_v48 = vld [vmem:[#allocation65_spill] sm:$0xff]  ;;  %v16013_v2 = vld [vmem:[#allocation66_spill] sm:$0xff] }
 0xcae   :  { %16006 = vst [vmem:[#allocation21_spill] sm:$0xff] %v13375_v9  ;;  %v4455_v18 = vmul.f32 0.35355338, %v4317_v32 }
 0xcaf   :  { %9273 = vmatmul.msk.bf16.gmra.mxu1 %vm231_vm1, %v4830_v56 }
 0xcb0   :  { %v9218_v53 = vclamps-f32 %v4455_v18, 5.0  ;;  %v16015_v18 = vld [vmem:[#allocation88_spill] sm:$0xff] }
 0xcb2   :  { %v4662_v40 = vmul.f32 1.442695, %v9218_v53  ;;  %v10467_v61 = vpop.eup %10466 }
 0xcb3   :  { %v4774_v44 = vmul.f32 %v10467_v61, %v16012_v48 }
 0xcb4   :  { %10468 = vpow2.f32 %v4662_v40 }
 0xcb5   :  { %v13382_v60 = vpop.f32.mrf.mxu1  ;;  %3983 = vrot.lane.b32.xlu2 %v16010_v42, %s10837_s27  ;;  %3979 = vrot.lane.b32.xlu0 %v16011_v43, %s10837_s27  ;;  %v4320_v13 = vpop.f32.mrf.mxu0 }
 0xcb6   :  { %16009 = vst [vmem:[#allocation13_spill] sm:$0xff] %v13382_v60  ;;  %v4456_v35 = vmul.f32 0.35355338, %v4320_v13 }
 0xcb8   :  { %v9219_v54 = vclamps-f32 %v4456_v35, 5.0 }
 0xcba   :  { %v10469_v51 = vpop.eup %10468  ;;  %v4664_v42 = vmul.f32 1.442695, %v9219_v54 }
 0xcbb   :  { %v4775_v32 = vmul.f32 %v10469_v51, %v16013_v2  ;;  %v16016_v51 = vld [vmem:[#allocation106_spill] sm:$0xff] }
 0xcbc   :  { %10470 = vpow2.f32 %v4664_v42 }
 0xcbd   :  { %v13390_v56 = vpop.f32.mrf.mxu1  ;;  %3989 = vrot.lane.b32.xlu2 %v16014_v19, %s10837_s27  ;;  %3985 = vrot.lane.b32.xlu0 %v16015_v18, %s10837_s27  ;;  %v4322_v53 = vpop.f32.mrf.mxu0  ;;  %v4831_v40 = vpack.c.bf16 %v4775_v32, %v4774_v44  ;;  %v16017_v19 = vld [vmem:[#allocation98_spill] sm:$0xff]  ;;  %v16018_v32 = vld [vmem:[#allocation71_spill] sm:$0xff] }
 0xcbe   :  { %v4457_v43 = vmul.f32 0.35355338, %v4322_v53 }
 0xcbf   :  { %9274 = vmatmul.msk.bf16.gmra.mxu1 %vm231_vm1, %v4831_v40  ;;  %v16019_v40 = vld [vmem:[#allocation72_spill] sm:$0xff] }
 0xcc0   :  { %v9220_v13 = vclamps-f32 %v4457_v43, 5.0 }
 0xcc2   :  { %v4666_v35 = vmul.f32 1.442695, %v9220_v13  ;;  %v10471_v48 = vpop.eup %10470  ;;  %v16020_v13 = vld [vmem:[#allocation115_spill] sm:$0xff] }
 0xcc3   :  { %v4776_v53 = vmul.f32 %v10471_v48, %v16018_v32 }
 0xcc4   :  { %10472 = vpow2.f32 %v4666_v35  ;;  %v16021_v35 = vld [vmem:[#allocation110_spill] sm:$0xff] }
 0xcc5   :  { %v13397_v61 = vpop.f32.mrf.mxu1  ;;  %3995 = vrot.lane.b32.xlu2 %v16016_v51, %s10837_s27  ;;  %3991 = vrot.lane.b32.xlu0 %v16017_v19, %s10837_s27  ;;  %v4325_v2 = vpop.f32.mrf.mxu0 }
 0xcc6   :  { %v4458_v18 = vmul.f32 0.35355338, %v4325_v2 }
 0xcc8   :  { %v9221_v54 = vclamps-f32 %v4458_v18, 5.0 }
 0xcca   :  { %v10473_v44 = vpop.eup %10472  ;;  %v4668_v19 = vmul.f32 1.442695, %v9221_v54 }
 0xccb   :  { %v4777_v43 = vmul.f32 %v10473_v44, %v16019_v40  ;;  %v16022_v44 = vld [vmem:[#allocation119_spill] sm:$0xff] }
 0xccc   :  { %10474 = vpow2.f32 %v4668_v19 }
 0xccd   :  { %v13405_v42 = vpop.f32.mrf.mxu1  ;;  %4001 = vrot.lane.b32.xlu2 %v16020_v13, %s10837_s27  ;;  %3997 = vrot.lane.b32.xlu0 %v16021_v35, %s10837_s27  ;;  %v4327_v51 = vpop.f32.mrf.mxu0  ;;  %v4832_v0 = vpack.c.bf16 %v4777_v43, %v4776_v53  ;;  %v16023_v43 = vld [vmem:[#allocation75_spill] sm:$0xff] }
 0xcce   :  { %v4459_v12 = vmul.f32 0.35355338, %v4327_v51 }
 0xccf   :  { %9275 = vmatmul.msk.bf16.gmra.mxu1 %vm231_vm1, %v4832_v0  ;;  %v16024_v0 = vld [vmem:[#allocation74_spill] sm:$0xff] }
 0xcd0   :  { %v9222_v2 = vclamps-f32 %v4459_v12, 5.0 }
 0xcd2   :  { %v4670_v18 = vmul.f32 1.442695, %v9222_v2  ;;  %v10475_v40 = vpop.eup %10474  ;;  %v16025_v2 = vld [vmem:[#allocation130_spill] sm:$0xff] }
 0xcd3   :  { %v4778_v51 = vmul.f32 %v10475_v40, %v16023_v43 }
 0xcd4   :  { %10476 = vpow2.f32 %v4670_v18 }
 0xcd5   :  { %v13412_v48 = vpop.f32.mrf.mxu1  ;;  %4007 = vrot.lane.b32.xlu2 %v12017_v27, %s10837_s27  ;;  %4003 = vrot.lane.b32.xlu0 %v16022_v44, %s10837_s27  ;;  %v4330_v13 = vpop.f32.mrf.mxu0 }
 0xcd6   :  { %v4460_v35 = vmul.f32 0.35355338, %v4330_v13  ;;  %v13426_v44 = vpop.permute.xlu1 %3951 }
 0xcd8   :  { %v9223_v54 = vclamps-f32 %v4460_v35, 5.0 }
 0xcda   :  { %v10477_v53 = vpop.eup %10476  ;;  %v4672_v13 = vmul.f32 1.442695, %v9223_v54 }
 0xcdb   :  { %v4779_v12 = vmul.f32 %v10477_v53, %v16024_v0 }
 0xcdc   :  { %10478 = vpow2.f32 %v4672_v13  ;;  %v16027_v13 = vld [vmem:[#allocation79_spill] sm:$0xff] }
 0xcdd   :  { %v13420_v19 = vpop.f32.mrf.mxu1  ;;  %4013 = vrot.lane.b32.xlu2 %v12098_v59, %s10837_s27  ;;  %4009 = vrot.lane.b32.xlu0 %v16025_v2, %s10837_s27  ;;  %v4332_v27 = vpop.f32.mrf.mxu0  ;;  %v4833_v18 = vpack.c.bf16 %v4779_v12, %v4778_v51 }
 0xcde   :  { %v4461_v32 = vmul.f32 0.35355338, %v4332_v27  ;;  %v13435_v43 = vpop.permute.xlu1 %3957 }
 0xcdf   :  { %v13428_v57 = vpop.permute.xlu2 %3751  ;;  %9276 = vmatmul.msk.bf16.gmra.mxu1 %vm231_vm1, %v4833_v18  ;;  %v16026_v18 = vld [vmem:[#allocation78_spill] sm:$0xff] }
 0xce0   :  { %v9224_v40 = vclamps-f32 %v4461_v32, 5.0 }
 0xce2   :  { %v4674_v35 = vmul.f32 1.442695, %v9224_v40  ;;  %v10479_v12 = vpop.eup %10478 }
 0xce3   :  { %v4780_v32 = vmul.f32 %v10479_v12, %v16026_v18  ;;  %v3699_v18 = vperm.slane %v13339_v3, 0 }
 0xce4   :  { %10480 = vpow2.f32 %v4674_v35 }
 0xce5   :  { %v4335_v53 = vpop.f32.mrf.mxu0  ;;  %v13431_v0 = vpop.f32.mrf.mxu1 }
 0xce6   :  { %v4462_v59 = vmul.f32 0.35355338, %v4335_v53  ;;  %v9943_v2 = vpack.i.bf16 %v13431_v0, %v13420_v19  ;;  %v13445_v22 = vpop.permute.xlu1 %3963 }
 0xce7   :  { %v3954_v51 = vpop.permute.xlu2 %3953 }
 0xce8   :  { %9944 = vrot.lane.b32.xlu2 %v9943_v2, %s10837_s27  ;;  %v9225_v27 = vclamps-f32 %v4462_v59, 5.0 }
 0xcea   :  { %v10481_v54 = vpop.eup %10480  ;;  %v4676_v53 = vmul.f32 1.442695, %v9225_v27 }
 0xceb   :  { %v4781_v40 = vmul.f32 %v10481_v54, %v16027_v13 }
 0xcec   :  { %10482 = vpow2.f32 %v4676_v53 }
 0xced   :  { %v4337_v35 = vpop.f32.mrf.mxu0  ;;  %v13440_v23 = vpop.f32.mrf.mxu1  ;;  %v4834_v58 = vpack.c.bf16 %v4781_v40, %v4780_v32 }
 0xcee   :  { %v4463_v49 = vmul.f32 0.35355338, %v4337_v35  ;;  %v16028_v35 = vld [vmem:[#allocation82_spill] sm:$0xff]  ;;  %v13459_v52 = vpop.permute.xlu1 %3969 }
 0xcef   :  { %v13442_v41 = vpop.permute.xlu2 %3959  ;;  %9277 = vmatmul.msk.bf16.gmra.mxu1 %vm231_vm1, %v4834_v58 }
 0xcf0   :  { %v9226_v24 = vclamps-f32 %v4463_v49, 5.0  ;;  %v3674_v49 = vrot.slane %v13339_v3, 6 }
 0xcf2   :  { %v4678_v2 = vmul.f32 1.442695, %v9226_v24  ;;  %v10483_v27 = vpop.eup %10482  ;;  %v16029_v24 = vld [vmem:[#allocation83_spill] sm:$0xff]  ;;  %v3705_v46 = vperm.slane %v3674_v49, 0 }
 0xcf3   :  { %v4782_v53 = vmul.f32 %v10483_v27, %v16028_v35 }
 0xcf4   :  { %10484 = vpow2.f32 %v4678_v2 }
 0xcf5   :  { %v4340_v59 = vpop.f32.mrf.mxu0  ;;  %v13447_v12 = vpop.f32.mrf.mxu1 }
 0xcf6   :  { %v4464_v54 = vmul.f32 0.35355338, %v4340_v59  ;;  %v9948_v13 = vpack.i.bf16 %v13447_v12, %v13440_v23  ;;  %v3672_v59 = vrot.slane %v13339_v3, 4 }
 0xcf7   :  { %v13451_v32 = vpop.permute.xlu2 %3965 }
 0xcf8   :  { %9949 = vrot.lane.b32.xlu0 %v9948_v13, %s10837_s27  ;;  %v9227_v58 = vclamps-f32 %v4464_v54, 5.0  ;;  %v3791_v13 = vmul.f32 %v13428_v57, %v3699_v18  ;;  %v3675_v54 = vrot.slane %v13339_v3, 7 }
 0xcfa   :  { %v10485_v40 = vpop.eup %10484  ;;  %v4680_v6 = vmul.f32 1.442695, %v9227_v58 }
 0xcfb   :  { %v4783_v2 = vmul.f32 %v10485_v40, %v16029_v24  ;;  %v3703_v24 = vperm.slane %v3672_v59, 0  ;;  %v3976_v59 = vpop.permute.xlu1 %3975 }
 0xcfc   :  { %10486 = vpow2.f32 %v4680_v6 }
 0xcfd   :  { %v4342_v36 = vpop.f32.mrf.mxu0  ;;  %v4835_v15 = vpack.c.bf16 %v4783_v2, %v4782_v53  ;;  %v4111_v2 = vmul.f32 %v13426_v44, %v3791_v13 }
 0xcfe   :  { %v4465_v28 = vmul.f32 0.35355338, %v4342_v36  ;;  %v13475_v36 = vperm.slane %v3675_v54, 0 }
 0xcff   :  { %v13464_v27 = vpop.permute.xlu2 %3971  ;;  %v13466_v40 = vpop.permute.xlu0 %3753  ;;  %9278 = vmatmul.msk.bf16.gmra.mxu1 %vm231_vm1, %v4835_v15 }
 0xd00   :  { %v9228_v35 = vclamps-f32 %v4465_v28, 5.0  ;;  %v3792_v4 = vmul.f32 %v13466_v40, %v3699_v18  ;;  %v3804_v53 = vmul.f32 %v13466_v40, %v3705_v46  ;;  %v3800_v58 = vmul.f32 %v13466_v40, %v3703_v24 }
 0xd01   :  { %v13479_v15 = vmul.f32 %v13466_v40, %v13469_v47  ;;  %v13483_v28 = vmul.f32 %v13466_v40, %v13475_v36  ;;  %v3803_v18 = vmul.f32 %v13428_v57, %v3705_v46  ;;  %v16030_v46 = vld [vmem:[#allocation87_spill] sm:$0xff] }
 0xd02   :  { %v4682_v49 = vmul.f32 1.442695, %v9228_v35  ;;  %v4112_v55 = vmul.f32 %v3954_v51, %v3792_v4  ;;  %v10487_v4 = vpop.eup %10486 }
 0xd03   :  { %v13487_v51 = vmul.f32 %v3976_v59, %v3803_v18  ;;  %v3793_v18 = vmul.f32 %v13428_v57, %v3700_v16 }
 0xd04   :  { %10488 = vpow2.f32 %v4682_v49  ;;  %v4159_v1 = vpack.c.bf16 %v4112_v55, %v4111_v2  ;;  %v4784_v2 = vmul.f32 %v10487_v4, %v16030_v46  ;;  %v16031_v49 = vld [vmem:[#allocation86_spill] sm:$0xff] }
 0xd05   :  { %v4345_v44 = vpop.f32.mrf.mxu0 }
 0xd06   :  { %v4466_v13 = vmul.f32 0.35355338, %v4345_v44  ;;  %9187 = vmatmul.msk.bf16.gmra.mxu0 %vm950_vm3, %v4159_v1 }
 0xd07   :  { %v3978_v6 = vpop.permute.xlu2 %3977  ;;  %v3956_v35 = vpop.permute.xlu0 %3955 }
 0xd08   :  { %v13489_v54 = vmul.f32 %v3978_v6, %v3804_v53  ;;  %v9229_v14 = vclamps-f32 %v4466_v13, 5.0  ;;  %v3794_v53 = vmul.f32 %v13466_v40, %v3700_v16  ;;  %v4113_v13 = vmul.f32 %v3956_v35, %v3793_v18 }
 0xd09   :  { %v3799_v16 = vmul.f32 %v13428_v57, %v3703_v24 }
 0xd0a   :  { %v10489_v30 = vpop.eup %10488  ;;  %v4684_v11 = vmul.f32 1.442695, %v9229_v14  ;;  %v4114_v4 = vmul.f32 %v13435_v43, %v3794_v53  ;;  %v16032_v53 = vld [vmem:[#allocation85_spill] sm:$0xff] }
 0xd0b   :  { %v4785_v44 = vmul.f32 %v10489_v30, %v16031_v49 }
 0xd0c   :  { %10490 = vpow2.f32 %v4684_v11  ;;  %v4160_v34 = vpack.c.bf16 %v4114_v4, %v4113_v13  ;;  %v13510_v11 = vmul.f32 %v13459_v52, %v3800_v58  ;;  %v16033_v13 = vld [vmem:[#allocation91_spill] sm:$0xff] }
 0xd0d   :  { %v4347_v1 = vpop.f32.mrf.mxu0  ;;  %v4836_v38 = vpack.c.bf16 %v4785_v44, %v4784_v2 }
 0xd0e   :  { %v4467_v59 = vmul.f32 0.35355338, %v4347_v1 }
 0xd0f   :  { %v13498_v6 = vpop.permute.xlu2 %3983  ;;  %v3962_v29 = vpop.permute.xlu0 %3961  ;;  %9279 = vmatmul.msk.bf16.gmra.mxu1 %vm231_vm1, %v4836_v38  ;;  %v3670_v38 = vrot.slane %v13339_v3, 2 }
 0xd10   :  { %v9230_v55 = vclamps-f32 %v4467_v59, 5.0 }
 0xd11   :  { %v3701_v4 = vperm.slane %v3670_v38, 0 }
 0xd12   :  { %v4686_v30 = vmul.f32 1.442695, %v9230_v55  ;;  %v10491_v49 = vpop.eup %10490 }
 0xd13   :  { %v4786_v59 = vmul.f32 %v10491_v49, %v16032_v53  ;;  %v3796_v52 = vmul.f32 %v13466_v40, %v3701_v4 }
 0xd14   :  { %10492 = vpow2.f32 %v4686_v30 }
 0xd15   :  { %v4350_v2 = vpop.f32.mrf.mxu0  ;;  %v4116_v38 = vmul.f32 %v3962_v29, %v3796_v52  ;;  %v3982_v29 = vpop.permute.xlu1 %3981 }
 0xd16   :  { %v4468_v14 = vmul.f32 0.35355338, %v4350_v2  ;;  %9188 = vmatmul.msk.bf16.gmra.mxu0 %vm950_vm3, %v4160_v34 }
 0xd17   :  { %v13504_v44 = vpop.permute.xlu2 %3989  ;;  %v3968_v1 = vpop.permute.xlu0 %3967 }
 0xd18   :  { %v13507_v35 = vmul.f32 %v3968_v1, %v3799_v16  ;;  %v9231_v55 = vclamps-f32 %v4468_v14, 5.0  ;;  %v3801_v16 = vmul.f32 %v13428_v57, %v13469_v47  ;;  %v3795_v14 = vmul.f32 %v13428_v57, %v3701_v4 }
 0xd1a   :  { %v10493_v43 = vpop.eup %10492  ;;  %v4688_v58 = vmul.f32 1.442695, %v9231_v55  ;;  %v13526_v49 = vmul.f32 %v13464_v27, %v3801_v16  ;;  %v4115_v47 = vmul.f32 %v13442_v41, %v3795_v14  ;;  %v3805_v41 = vmul.f32 %v13428_v57, %v13475_v36 }
 0xd1b   :  { %v4787_v24 = vmul.f32 %v10493_v43, %v16033_v13  ;;  %v4126_v14 = vmul.f32 %v3982_v29, %v13483_v28 }
 0xd1c   :  { %v13516_v30 = vpop.f32.mrf.mxu1  ;;  %10494 = vpow2.f32 %v4688_v58  ;;  %v4161_v4 = vpack.c.bf16 %v4116_v38, %v4115_v47  ;;  %v16034_v47 = vld [vmem:[#allocation92_spill] sm:$0xff] }
 0xd1d   :  { %v4352_v34 = vpop.f32.mrf.mxu0  ;;  %v4837_v2 = vpack.c.bf16 %v4787_v24, %v4786_v59 }
 0xd1e   :  { %v4469_v1 = vmul.f32 0.35355338, %v4352_v34 }
 0xd1f   :  { %v13522_v46 = vpop.permute.xlu2 %3995  ;;  %v3974_v18 = vpop.permute.xlu0 %3973  ;;  %9280 = vmatmul.msk.bf16.gmra.mxu1 %vm231_vm1, %v4837_v2 }
 0xd20   :  { %v9232_v43 = vclamps-f32 %v4469_v1, 5.0  ;;  %v13529_v59 = vmul.f32 %v3974_v18, %v13479_v15  ;;  %v3671_v15 = vrot.slane %v13339_v3, 3 }
 0xd22   :  { %v4690_v55 = vmul.f32 1.442695, %v9232_v43  ;;  %v4164_v24 = vpack.c.bf16 %v13529_v59, %v13526_v49  ;;  %v10495_v58 = vpop.eup %10494  ;;  %v3702_v59 = vperm.slane %v3671_v15, 0 }
 0xd24   :  { %10496 = vpow2.f32 %v4690_v55  ;;  %v13534_v34 = vpop.f32.mrf.mxu1  ;;  %v4788_v55 = vmul.f32 %v10495_v58, %v16034_v47  ;;  %v3798_v3 = vmul.f32 %v13466_v40, %v3702_v59 }
 0xd25   :  { %v9953_v27 = vpack.i.bf16 %v13534_v34, %v13516_v30  ;;  %v4355_v2 = vpop.f32.mrf.mxu0 }
 0xd26   :  { %v4470_v16 = vmul.f32 0.35355338, %v4355_v2  ;;  %9189 = vmatmul.msk.bf16.gmra.mxu0 %vm950_vm3, %v4161_v4  ;;  %v16035_v4 = vld [vmem:[#allocation89_spill] sm:$0xff]  ;;  %v4118_v29 = vmul.f32 %v13451_v32, %v3798_v3 }
 0xd27   :  { %v13542_v18 = vpop.permute.xlu2 %4001  ;;  %v3980_v52 = vpop.permute.xlu0 %3979  ;;  %9954 = vrot.lane.b32.xlu1 %v9953_v27, %s10837_s27 }
 0xd28   :  { %v4125_v1 = vmul.f32 %v3980_v52, %v3805_v41  ;;  %v9233_v38 = vclamps-f32 %v4470_v16, 5.0  ;;  %v3797_v41 = vmul.f32 %v13428_v57, %v3702_v59  ;;  %v3682_v16 = vrot.slane %v13345_v39, 7  ;;  %v16036_v59 = vld [vmem:[#allocation95_spill] sm:$0xff] }
 0xd2a   :  { %v10497_v49 = vpop.eup %10496  ;;  %v4166_v43 = vpack.c.bf16 %v4126_v14, %v4125_v1  ;;  %v4692_v33 = vmul.f32 1.442695, %v9233_v38  ;;  %v4117_v58 = vmul.f32 %v13445_v22, %v3797_v41 }
 0xd2b   :  { %v4789_v2 = vmul.f32 %v10497_v49, %v16035_v4 }
 0xd2c   :  { %v13548_v36 = vpop.f32.mrf.mxu1  ;;  %10498 = vpow2.f32 %v4692_v33  ;;  %v4162_v14 = vpack.c.bf16 %v4118_v29, %v4117_v58 }
 0xd2d   :  { %v4357_v13 = vpop.f32.mrf.mxu0  ;;  %v4838_v53 = vpack.c.bf16 %v4789_v2, %v4788_v55  ;;  %v16037_v2 = vld [vmem:[#allocation96_spill] sm:$0xff] }
 0xd2e   :  { %v4471_v27 = vmul.f32 0.35355338, %v4357_v13  ;;  %v13560_v13 = vperm.slane %v3682_v16, 0  ;;  %v16038_v16 = vpack.c.bf16 %v13510_v11, %v13507_v35 }
 0xd2f   :  { %v13552_v52 = vpop.permute.xlu2 %4007  ;;  %9281 = vmatmul.msk.bf16.gmra.mxu1 %vm231_vm1, %v4838_v53 }
 0xd30   :  { %v9234_v28 = vclamps-f32 %v4471_v27, 5.0  ;;  %v3822_v32 = vmul.f32 %v13466_v40, %v13560_v13 }
 0xd32   :  { %v4694_v15 = vmul.f32 1.442695, %v9234_v28  ;;  %v10499_v33 = vpop.eup %10498 }
 0xd33   :  { %v4790_v55 = vmul.f32 %v10499_v33, %v16036_v59 }
 0xd34   :  { %10500 = vpow2.f32 %v4694_v15  ;;  %v13558_v1 = vpop.f32.mrf.mxu1 }
 0xd35   :  { %v9958_v49 = vpack.i.bf16 %v13558_v1, %v13548_v36 }
 0xd36   :  { %9190 = vmatmul.msk.bf16.gmra.mxu0 %vm950_vm3, %v4162_v14 }
 0xd37   :  { %v4014_v53 = vpop.permute.xlu2 %4013  ;;  %9959 = vrot.lane.b32.xlu2 %v9958_v49, %s10837_s27 }
 0xd38   :  { %v13568_v38 = vmul.f32 %v4014_v53, %v3822_v32  ;;  %v16039_v32 = vpack.c.bf16 %v13489_v54, %v13487_v51  ;;  %v3707_v53 = vperm.slane %v13345_v39, 0 }
 0xd3a   :  { %v10501_v22 = vpop.eup %10500 }
 0xd3b   :  { %v4791_v3 = vmul.f32 %v10501_v22, %v16037_v2  ;;  %v3808_v22 = vmul.f32 %v13466_v40, %v3707_v53 }
 0xd3c   :  { %v13572_v27 = vpop.f32.mrf.mxu1 }
 0xd3d   :  { %v4839_v41 = vpack.c.bf16 %v4791_v3, %v4790_v55  ;;  %v3807_v55 = vmul.f32 %v13428_v57, %v3707_v53 }
 0xd3f   :  { %9282 = vmatmul.msk.bf16.gmra.mxu1 %vm231_vm1, %v4839_v41  ;;  %v4127_v51 = vmul.f32 %v13498_v6, %v3807_v55 }
 0xd44   :  { %v13575_v28 = vpop.f32.mrf.mxu1 }
 0xd45   :  { %v9963_v29 = vpack.i.bf16 %v13575_v28, %v13572_v27 }
 0xd46   :  { %9191 = vmatmul.msk.bf16.gmra.mxu0 %vm950_vm3, %v16038_v16 }
 0xd47   :  { %9964 = vrot.lane.b32.xlu0 %v9963_v29, %s10837_s27 }
 0xd4c   :  { %v13584_v15 = vpop.f32.mrf.mxu1 }
 0xd54   :  { %v13586_v58 = vpop.f32.mrf.mxu1 }
 0xd56   :  { %9192 = vmatmul.msk.bf16.gmra.mxu0 %vm950_vm3, %v4164_v24  ;;  %v3986_v24 = vpop.permute.xlu0 %3985 }
 0xd57   :  { %v4128_v3 = vmul.f32 %v3986_v24, %v3808_v22  ;;  %v3988_v24 = vpop.permute.xlu1 %3987 }
 0xd59   :  { %v4167_v41 = vpack.c.bf16 %v4128_v3, %v4127_v51 }
 0xd5c   :  { %v13589_v14 = vpop.f32.mrf.mxu1 }
 0xd5e   :  { %v3992_v59 = vpop.permute.xlu0 %3991 }
 0xd5f   :  { %v3994_v31 = vpop.permute.xlu1 %3993 }
 0xd64   :  { %v13591_v49 = vpop.f32.mrf.mxu1 }
 0xd66   :  { %9193 = vmatmul.msk.bf16.gmra.mxu0 %vm950_vm3, %v16039_v32  ;;  %v3676_v32 = vrot.slane %v13345_v39, 1 }
 0xd68   :  { %v3708_v22 = vperm.slane %v3676_v32, 0 }
 0xd6a   :  { %v3809_v51 = vmul.f32 %v13428_v57, %v3708_v22 }
 0xd6c   :  { %v13597_v35 = vpop.f32.mrf.mxu1  ;;  %v4129_v47 = vmul.f32 %v3988_v24, %v3809_v51 }
 0xd6d   :  { %16040 = vst [vmem:[#allocation14_spill] sm:$0xff] %v13597_v35 }
 0xd74   :  { %v13599_v11 = vpop.f32.mrf.mxu1 }
 0xd75   :  { %16041 = vst [vmem:[#allocation24_spill] sm:$0xff] %v13599_v11 }
 0xd76   :  { %9194 = vmatmul.msk.bf16.gmra.mxu0 %vm950_vm3, %v4166_v43 }
 0xd7c   :  { %v13603_v33 = vpop.f32.mrf.mxu1 }
 0xd7d   :  { %16042 = vst [vmem:[#allocation15_spill] sm:$0xff] %v13603_v33 }
 0xd83   :  { %v4360_v54 = vpop.f32.mrf.mxu0 }
 0xd84   :  { %v4472_v29 = vmul.f32 0.35355338, %v4360_v54  ;;  %v13608_v16 = vpop.f32.mrf.mxu1  ;;  %v3810_v54 = vmul.f32 %v13466_v40, %v3708_v22  ;;  %v16044_v22 = vld [vmem:[#allocation93_spill] sm:$0xff] }
 0xd85   :  { %16043 = vst [vmem:[#allocation27_spill] sm:$0xff] %v13608_v16  ;;  %v9968_v43 = vpack.i.bf16 %v13608_v16, %v13603_v33 }
 0xd86   :  { %9195 = vmatmul.msk.bf16.gmra.mxu0 %vm950_vm3, %v4167_v41  ;;  %v9235_v2 = vclamps-f32 %v4472_v29, 5.0  ;;  %v4130_v41 = vmul.f32 %v13504_v44, %v3810_v54 }
 0xd87   :  { %9969 = vrot.lane.b32.xlu0 %v9968_v43, %s10837_s27 }
 0xd88   :  { %v4696_v6 = vmul.f32 1.442695, %v9235_v2  ;;  %v4168_v25 = vpack.c.bf16 %v4130_v41, %v4129_v47  ;;  %v3998_v2 = vpop.permute.xlu0 %3997  ;;  %v16045_v47 = vld [vmem:[#allocation99_spill] sm:$0xff] }
 0xd8a   :  { %10502 = vpow2.f32 %v4696_v6 }
 0xd8b   :  { %v4362_v53 = vpop.f32.mrf.mxu0 }
 0xd8c   :  { %v4473_v55 = vmul.f32 0.35355338, %v4362_v53  ;;  %v13615_v3 = vpop.f32.mrf.mxu1 }
 0xd8e   :  { %v9236_v4 = vclamps-f32 %v4473_v55, 5.0 }
 0xd90   :  { %v4698_v43 = vmul.f32 1.442695, %v9236_v4  ;;  %v10503_v53 = vpop.eup %10502  ;;  %v3677_v4 = vrot.slane %v13345_v39, 2  ;;  %v13634_v37 = vpop.permute.xlu0 %4003 }
 0xd91   :  { %v4792_v6 = vmul.f32 %v10503_v53, %v16044_v22 }
 0xd92   :  { %10504 = vpow2.f32 %v4698_v43  ;;  %v3709_v41 = vperm.slane %v3677_v4, 0 }
 0xd93   :  { %v4365_v29 = vpop.f32.mrf.mxu0 }
 0xd94   :  { %v4474_v20 = vmul.f32 0.35355338, %v4365_v29  ;;  %v13620_v63 = vpop.f32.mrf.mxu1 }
 0xd95   :  { %v9973_v32 = vpack.i.bf16 %v13620_v63, %v13615_v3 }
 0xd96   :  { %9196 = vmatmul.msk.bf16.gmra.mxu0 %vm950_vm3, %v4168_v25  ;;  %v9237_v24 = vclamps-f32 %v4474_v20, 5.0  ;;  %v3811_v25 = vmul.f32 %v13428_v57, %v3709_v41  ;;  %v13636_v20 = vpop.permute.xlu1 %3999 }
 0xd97   :  { %9974 = vrot.lane.b32.xlu1 %v9973_v32, %s10837_s27  ;;  %v3812_v32 = vmul.f32 %v13466_v40, %v3709_v41 }
 0xd98   :  { %v10505_v44 = vpop.eup %10504  ;;  %v4700_v43 = vmul.f32 1.442695, %v9237_v24  ;;  %v4131_v53 = vmul.f32 %v3992_v59, %v3811_v25  ;;  %v3678_v59 = vrot.slane %v13345_v39, 3  ;;  %v16047_v25 = vld [vmem:[#allocation97_spill] sm:$0xff] }
 0xd99   :  { %v4793_v55 = vmul.f32 %v10505_v44, %v16045_v47 }
 0xd9a   :  { %10506 = vpow2.f32 %v4700_v43 }
 0xd9b   :  { %v4367_v51 = vpop.f32.mrf.mxu0  ;;  %v4840_v54 = vpack.c.bf16 %v4793_v55, %v4792_v6  ;;  %v4132_v6 = vmul.f32 %v3994_v31, %v3812_v32  ;;  %v16046_v31 = vld [vmem:[#allocation100_spill] sm:$0xff] }
 0xd9c   :  { %v4475_v29 = vmul.f32 0.35355338, %v4367_v51  ;;  %v13629_v26 = vpop.f32.mrf.mxu1 }
 0xd9d   :  { %9283 = vmatmul.msk.bf16.gmra.mxu1 %vm231_vm1, %v4840_v54  ;;  %v4169_v24 = vpack.c.bf16 %v4132_v6, %v4131_v53 }
 0xd9e   :  { %v9238_v21 = vclamps-f32 %v4475_v29, 5.0  ;;  %v13649_v53 = vpop.permute.xlu1 %4005 }
 0xda0   :  { %v4702_v44 = vmul.f32 1.442695, %v9238_v21  ;;  %v10507_v47 = vpop.eup %10506  ;;  %v13645_v21 = vpop.permute.xlu0 %4009 }
 0xda1   :  { %v4794_v29 = vmul.f32 %v10507_v47, %v16046_v31 }
 0xda2   :  { %10508 = vpow2.f32 %v4702_v44 }
 0xda3   :  { %v4370_v4 = vpop.f32.mrf.mxu0 }
 0xda4   :  { %v4476_v55 = vmul.f32 0.35355338, %v4370_v4  ;;  %v13638_v51 = vpop.f32.mrf.mxu1  ;;  %v3710_v4 = vperm.slane %v3678_v59, 0 }
 0xda5   :  { %v9978_v54 = vpack.i.bf16 %v13638_v51, %v13629_v26 }
 0xda6   :  { %9197 = vmatmul.msk.bf16.gmra.mxu0 %vm950_vm3, %v4169_v24  ;;  %v9239_v43 = vclamps-f32 %v4476_v55, 5.0  ;;  %v13656_v55 = vpop.f32.mrf.mxu3  ;;  %v3814_v47 = vmul.f32 %v13466_v40, %v3710_v4  ;;  %v3813_v59 = vmul.f32 %v13428_v57, %v3710_v4 }
 0xda7   :  { %9979 = vrot.lane.b32.xlu2 %v9978_v54, %s10837_s27  ;;  %v9998_v54 = vpack.i.bf16 %v13599_v11, %v13597_v35  ;;  %v5133_v33 = vmul.f32 %v13548_v36, %v13656_v55 }
 0xda8   :  { %v10509_v41 = vpop.eup %10508  ;;  %v4704_v22 = vmul.f32 1.442695, %v9239_v43  ;;  %v4134_v43 = vmul.f32 %v3998_v2, %v3814_v47 }
 0xda9   :  { %v4795_v32 = vmul.f32 %v10509_v41, %v16047_v25  ;;  %v13659_v41 = vpop.permute.xlu2 %9944  ;;  %v13666_v25 = vpop.permute.xlu1 %4011 }
 0xdaa   :  { %10510 = vpow2.f32 %v4704_v22 }
 0xdab   :  { %v4372_v44 = vpop.f32.mrf.mxu0  ;;  %v4841_v6 = vpack.c.bf16 %v4795_v32, %v4794_v29  ;;  %v13663_v32 = vpop.permute.xlu0 %9949 }
 0xdac   :  { %v4477_v45 = vmul.f32 0.35355338, %v4372_v44  ;;  %v13651_v24 = vpop.f32.mrf.mxu1  ;;  %v4133_v44 = vmul.f32 %v13522_v46, %v3813_v59 }
 0xdad   :  { %9284 = vmatmul.msk.bf16.gmra.mxu1 %vm231_vm1, %v4841_v6 }
 0xdae   :  { %v9240_v31 = vclamps-f32 %v4477_v45, 5.0  ;;  %v4170_v7 = vpack.c.bf16 %v4134_v43, %v4133_v44  ;;  %v13678_v47 = vpop.f32.mrf.mxu3  ;;  %v5135_v43 = vmul.f32 %v13572_v27, %v13656_v55  ;;  %v16048_v44 = vld [vmem:[#allocation103_spill] sm:$0xff] }
 0xdaf   :  { %9999 = vrot.lane.b32.xlu2 %v9998_v54, %s10837_s27  ;;  %v10013_v54 = vpack.i.bf16 %v13382_v60, %v13375_v9 }
 0xdb0   :  { %v4706_v29 = vmul.f32 1.442695, %v9240_v31  ;;  %v10511_v22 = vpop.eup %10510  ;;  %v3679_v31 = vrot.slane %v13345_v39, 4 }
 0xdb1   :  { %v9960_v46 = vpop.permute.xlu2 %9959  ;;  %v9955_v9 = vpop.permute.xlu1 %9954 }
 0xdb2   :  { %10512 = vpow2.f32 %v4706_v29  ;;  %v5136_v29 = vmul.f32 %v13575_v28, %v13678_v47  ;;  %v9962_v11 = vunpack.i.h.bf16 %v9960_v46  ;;  %v9961_v35 = vunpack.i.l.bf16 %v9960_v46 }
 0xdb3   :  { %v4375_v6 = vpop.f32.mrf.mxu0 }
 0xdb4   :  { %v4478_v50 = vmul.f32 0.35355338, %v4375_v6  ;;  %v13668_v45 = vpop.f32.mrf.mxu1  ;;  %v4796_v6 = vmul.f32 %v10511_v22, %v16048_v44 }
 0xdb5   :  { %v9983_v2 = vpack.i.bf16 %v13668_v45, %v13651_v24 }
 0xdb6   :  { %9198 = vmatmul.msk.bf16.gmra.mxu0 %vm950_vm3, %v4170_v7  ;;  %v9241_v59 = vclamps-f32 %v4478_v50, 5.0  ;;  %v5134_v50 = vmul.f32 %v13558_v1, %v13678_v47 }
 0xdb7   :  { %10014 = vrot.lane.b32.xlu2 %v10013_v54, %s10837_s27  ;;  %9984 = vrot.lane.b32.xlu0 %v9983_v2, %s10837_s27  ;;  %v3711_v2 = vperm.slane %v3679_v31, 0  ;;  %v10003_v31 = vpack.i.bf16 %v13397_v61, %v13390_v56 }
 0xdb8   :  { %v10513_v4 = vpop.eup %10512  ;;  %v4708_v28 = vmul.f32 1.442695, %v9241_v59  ;;  %v5453_v59 = vsel %vm950_vm3, %v5133_v33, %v9961_v35 }
 0xdb9   :  { %v9965_v7 = vpop.permute.xlu0 %9964  ;;  %v4797_v17 = vmul.f32 %v10513_v4, %v16049_v62  ;;  %v3815_v46 = vmul.f32 %v13428_v57, %v3711_v2  ;;  %v3816_v1 = vmul.f32 %v13466_v40, %v3711_v2 }
 0xdba   :  { %v9967_v54 = vunpack.i.h.bf16 %v9965_v7  ;;  %v9966_v16 = vunpack.i.l.bf16 %v9965_v7  ;;  %10514 = vpow2.f32 %v4708_v28  ;;  %v10018_v28 = vpack.i.bf16 %v13586_v58, %v13584_v15 }
 0xdbb   :  { %v4377_v27 = vpop.f32.mrf.mxu0  ;;  %v4842_v60 = vpack.c.bf16 %v4797_v17, %v4796_v6  ;;  %v4136_v6 = vmul.f32 %v13542_v18, %v3816_v1  ;;  %v4135_v35 = vmul.f32 %v13636_v20, %v3815_v46  ;;  %v5130_v20 = vmul.f32 %v13447_v12, %v13678_v47 }
 0xdbc   :  { %v5455_v22 = vsel %vm950_vm3, %v5135_v43, %v9966_v16  ;;  %v5456_v44 = vsel %vm950_vm3, %v5136_v29, %v9967_v54  ;;  %v4479_v4 = vmul.f32 0.35355338, %v4377_v27  ;;  %v13692_v62 = vpop.f32.mrf.mxu1  ;;  %v5454_v16 = vsel %vm950_vm3, %v5134_v50, %v9962_v11 }
 0xdbd   :  { %v5512_v36 = vpack.c.bf16 %v5456_v44, %v5455_v22  ;;  %9285 = vmatmul.msk.bf16.gmra.mxu1 %vm231_vm1, %v4842_v60  ;;  %v9957_v43 = vunpack.i.h.bf16 %v9955_v9  ;;  %v9956_v29 = vunpack.i.l.bf16 %v9955_v9  ;;  %v5131_v44 = vmul.f32 %v13516_v30, %v13656_v55 }
 0xdbe   :  { %v9242_v17 = vclamps-f32 %v4479_v4, 5.0  ;;  %v5132_v60 = vmul.f32 %v13534_v34, %v13678_v47  ;;  %v5511_v54 = vpack.c.bf16 %v5454_v16, %v5453_v59  ;;  %v9952_v11 = vunpack.i.h.bf16 %v13663_v32 }
 0xdbf   :  { %5537 = vmatpush.bf16.msra.mxu2 %v5512_v36  ;;  %10004 = vrot.lane.b32.xlu0 %v10003_v31, %s10837_s27  ;;  %v9951_v9 = vunpack.i.l.bf16 %v13663_v32  ;;  %v5451_v18 = vsel %vm950_vm3, %v5131_v44, %v9956_v29  ;;  %v4171_v50 = vpack.c.bf16 %v4136_v6, %v4135_v35  ;;  %v5129_v34 = vmul.f32 %v13440_v23, %v13656_v55  ;;  %v16051_v29 = vld [vmem:[#allocation107_spill] sm:$0xff] }
 0xdc0   :  { %v4710_v7 = vmul.f32 1.442695, %v9242_v17  ;;  %v5452_v2 = vsel %vm950_vm3, %v5132_v60, %v9957_v43  ;;  %v10515_v22 = vpop.eup %10514  ;;  %v9947_v31 = vunpack.i.h.bf16 %v13659_v41  ;;  %v9946_v46 = vunpack.i.l.bf16 %v13659_v41  ;;  %v16050_v41 = vld [vmem:[#allocation101_spill] sm:$0xff] }
 0xdc1   :  { %v5510_v4 = vpack.c.bf16 %v5452_v2, %v5451_v18  ;;  %v5449_v23 = vsel %vm950_vm3, %v5129_v34, %v9951_v9  ;;  %v5450_v12 = vsel %vm950_vm3, %v5130_v20, %v9952_v11  ;;  %v3680_v1 = vrot.slane %v13345_v39, 5 }
 0xdc2   :  { %10516 = vpow2.f32 %v4710_v7  ;;  %v5127_v59 = vmul.f32 %v13420_v19, %v13656_v55  ;;  %v5128_v16 = vmul.f32 %v13431_v0, %v13678_v47  ;;  %v4798_v43 = vmul.f32 %v10515_v22, %v16050_v41 }
 0xdc3   :  { %v4380_v33 = vpop.f32.mrf.mxu0  ;;  %5538 = vmatpush.bf16.msra.mxu2 %v5511_v54  ;;  %v5509_v7 = vpack.c.bf16 %v5450_v12, %v5449_v23  ;;  %v3712_v11 = vperm.slane %v3680_v1, 0  ;;  %v9993_v19 = vpack.i.bf16 %v13412_v48, %v13405_v42  ;;  %v16052_v12 = vld [vmem:[#allocation108_spill] sm:$0xff]  ;;  %v16053_v1 = vld [vmem:[#allocation105_spill] sm:$0xff] }
 0xdc4   :  { %v4480_v27 = vmul.f32 0.35355338, %v4380_v33  ;;  %v13712_v30 = vpop.f32.mrf.mxu1  ;;  %v5447_v54 = vsel %vm950_vm3, %v5127_v59, %v9946_v46  ;;  %v5448_v35 = vsel %vm950_vm3, %v5128_v16, %v9947_v31 }
 0xdc5   :  { %v9988_v32 = vpack.i.bf16 %v13712_v30, %v13692_v62  ;;  %v3817_v0 = vmul.f32 %v13428_v57, %v3712_v11  ;;  %v3818_v18 = vmul.f32 %v13466_v40, %v3712_v11 }
 0xdc6   :  { %9199 = vmatmul.msk.bf16.gmra.mxu0 %vm950_vm3, %v4171_v50  ;;  %v9243_v17 = vclamps-f32 %v4480_v27, 5.0  ;;  %v5508_v50 = vpack.c.bf16 %v5448_v35, %v5447_v54 }
 0xdc7   :  { %10019 = vrot.lane.b32.xlu0 %v10018_v28, %s10837_s27  ;;  %9989 = vrot.lane.b32.xlu1 %v9988_v32, %s10837_s27  ;;  %v4137_v27 = vmul.f32 %v13634_v37, %v3817_v0  ;;  %v4138_v20 = vmul.f32 %v13649_v53, %v3818_v18  ;;  %v3681_v37 = vrot.slane %v13345_v39, 6 }
 0xdc8   :  { %v10517_v36 = vpop.eup %10516  ;;  %5539 = vmatpush.bf16.msra.mxu2 %v5510_v4  ;;  %v4712_v9 = vmul.f32 1.442695, %v9243_v17  ;;  %v10008_v4 = vpack.i.bf16 %v13591_v49, %v13589_v14 }
 0xdc9   :  { %v4799_v6 = vmul.f32 %v10517_v36, %v16051_v29  ;;  %v4172_v32 = vpack.c.bf16 %v4138_v20, %v4137_v27  ;;  %v3713_v16 = vperm.slane %v3681_v37, 0 }
 0xdca   :  { %10518 = vpow2.f32 %v4712_v9 }
 0xdcb   :  { %v4382_v44 = vpop.f32.mrf.mxu0  ;;  %v4843_v60 = vpack.c.bf16 %v4799_v6, %v4798_v43 }
 0xdcc   :  { %v4481_v33 = vmul.f32 0.35355338, %v4382_v44  ;;  %5540 = vmatpush.bf16.msra.mxu2 %v5509_v7  ;;  %v3820_v7 = vmul.f32 %v13466_v40, %v3713_v16 }
 0xdcd   :  { %9286 = vmatmul.msk.bf16.gmra.mxu1 %vm231_vm1, %v4843_v60  ;;  %v3819_v60 = vmul.f32 %v13428_v57, %v3713_v16 }
 0xdce   :  { %v9244_v2 = vclamps-f32 %v4481_v33, 5.0  ;;  %v4140_v54 = vmul.f32 %v13645_v21, %v3820_v7 }
 0xdcf   :  { %9994 = vrot.lane.b32.xlu1 %v9993_v19, %s10837_s27  ;;  %v4139_v35 = vmul.f32 %v13552_v52, %v3819_v60  ;;  %v3821_v52 = vmul.f32 %v13428_v57, %v13560_v13 }
 0xdd0   :  { %v4714_v34 = vmul.f32 1.442695, %v9244_v2  ;;  %5541 = vmatpush.bf16.msra.mxu2 %v5508_v50  ;;  %v10519_v31 = vpop.eup %10518  ;;  %v16054_v2 = vld [vmem:[#allocation111_spill] sm:$0xff] }
 0xdd1   :  { %v4800_v36 = vmul.f32 %v10519_v31, %v16052_v12  ;;  %v4173_v9 = vpack.c.bf16 %v4140_v54, %v4139_v35 }
 0xdd2   :  { %10520 = vpow2.f32 %v4714_v34 }
 0xdd3   :  { %v4385_v28 = vpop.f32.mrf.mxu0 }
 0xdd4   :  { %v4482_v22 = vmul.f32 0.35355338, %v4385_v28 }
 0xdd6   :  { %9200 = vmatmul.msk.bf16.gmra.mxu0 %vm950_vm3, %v4172_v32  ;;  %v9245_v23 = vclamps-f32 %v4482_v22, 5.0  ;;  %v4141_v22 = vmul.f32 %v13666_v25, %v3821_v52  ;;  %v16057_v52 = vld [vmem:[#allocation116_spill] sm:$0xff] }
 0xdd7   :  { %10009 = vrot.lane.b32.xlu1 %v10008_v4, %s10837_s27 }
 0xdd8   :  { %v10521_v46 = vpop.eup %10520  ;;  %v4716_v43 = vmul.f32 1.442695, %v9245_v23  ;;  %v4174_v31 = vpack.c.bf16 %v13568_v38, %v4141_v22 }
 0xdd9   :  { %v4801_v53 = vmul.f32 %v10521_v46, %v16053_v1 }
 0xdda   :  { %10522 = vpow2.f32 %v4716_v43 }
 0xddb   :  { %v4387_v17 = vpop.f32.mrf.mxu0  ;;  %v4844_v59 = vpack.c.bf16 %v4801_v53, %v4800_v36  ;;  %v16055_v53 = vld [vmem:[#allocation109_spill] sm:$0xff] }
 0xddc   :  { %v4483_v6 = vmul.f32 0.35355338, %v4387_v17 }
 0xddd   :  { %9287 = vmatmul.msk.bf16.gmra.mxu1 %vm231_vm1, %v4844_v59  ;;  %v16056_v59 = vld [vmem:[#allocation113_spill] sm:$0xff] }
 0xdde   :  { %v9246_v44 = vclamps-f32 %v4483_v6, 5.0 }
 0xde0   :  { %v4718_v39 = vmul.f32 1.442695, %v9246_v44  ;;  %v10523_v19 = vpop.eup %10522 }
 0xde1   :  { %v4802_v40 = vmul.f32 %v10523_v19, %v11924_v10 }
 0xde2   :  { %10524 = vpow2.f32 %v4718_v39 }
 0xde3   :  { %v4390_v11 = vpop.f32.mrf.mxu0 }
 0xde4   :  { %v4484_v33 = vmul.f32 0.35355338, %v4390_v11 }
 0xde6   :  { %9201 = vmatmul.msk.bf16.gmra.mxu0 %vm950_vm3, %v4173_v9  ;;  %v9247_v18 = vclamps-f32 %v4484_v33, 5.0 }
 0xde8   :  { %v10525_v0 = vpop.eup %10524  ;;  %v4720_v21 = vmul.f32 1.442695, %v9247_v18 }
 0xde9   :  { %v4803_v50 = vmul.f32 %v10525_v0, %v16054_v2 }
 0xdea   :  { %10526 = vpow2.f32 %v4720_v21 }
 0xdeb   :  { %v4392_v27 = vpop.f32.mrf.mxu0  ;;  %v4845_v34 = vpack.c.bf16 %v4803_v50, %v4802_v40 }
 0xdec   :  { %v4485_v20 = vmul.f32 0.35355338, %v4392_v27 }
 0xded   :  { %9288 = vmatmul.msk.bf16.gmra.mxu1 %vm231_vm1, %v4845_v34 }
 0xdee   :  { %v9248_v28 = vclamps-f32 %v4485_v20, 5.0 }
 0xdf0   :  { %v4722_v32 = vmul.f32 1.442695, %v9248_v28  ;;  %v10527_v37 = vpop.eup %10526 }
 0xdf1   :  { %v4804_v17 = vmul.f32 %v10527_v37, %v16055_v53 }
 0xdf2   :  { %10528 = vpow2.f32 %v4722_v32  ;;  %v16058_v32 = vld [vmem:[#allocation117_spill] sm:$0xff] }
 0xdf3   :  { %v4395_v4 = vpop.f32.mrf.mxu0 }
 0xdf4   :  { %v4486_v46 = vmul.f32 0.35355338, %v4395_v4 }
 0xdf6   :  { %9202 = vmatmul.msk.bf16.gmra.mxu0 %vm950_vm3, %v4174_v31  ;;  %v9249_v36 = vclamps-f32 %v4486_v46, 5.0 }
 0xdf8   :  { %v10529_v23 = vpop.eup %10528  ;;  %v4724_v43 = vmul.f32 1.442695, %v9249_v36 }
 0xdf9   :  { %v4805_v16 = vmul.f32 %v10529_v23, %v16056_v59 }
 0xdfa   :  { %10530 = vpow2.f32 %v4724_v43 }
 0xdfb   :  { %v4397_v57 = vpop.f32.mrf.mxu0  ;;  %v4846_v13 = vpack.c.bf16 %v4805_v16, %v4804_v17 }
 0xdfc   :  { %v4487_v6 = vmul.f32 0.35355338, %v4397_v57 }
 0xdfd   :  { %9289 = vmatmul.msk.bf16.gmra.mxu1 %vm231_vm1, %v4846_v13 }
 0xdfe   :  { %v9250_v25 = vclamps-f32 %v4487_v6, 5.0 }
 0xe00   :  { %v4726_v7 = vmul.f32 1.442695, %v9250_v25  ;;  %v10531_v60 = vpop.eup %10530 }
 0xe01   :  { %v4806_v35 = vmul.f32 %v10531_v60, %v11951_v8  ;;  %v16060_v60 = vld [vmem:[#allocation120_spill] sm:$0xff] }
 0xe02   :  { %10532 = vpow2.f32 %v4726_v7 }
 0xe03   :  { %v4400_v38 = vpop.f32.mrf.mxu0 }
 0xe04   :  { %v4488_v44 = vmul.f32 0.35355338, %v4400_v38  ;;  %v16059_v38 = vld [vmem:[#allocation114_spill] sm:$0xff] }
 0xe06   :  { %v9251_v39 = vclamps-f32 %v4488_v44, 5.0 }
 0xe08   :  { %v10533_v54 = vpop.eup %10532  ;;  %v4728_v19 = vmul.f32 1.442695, %v9251_v39 }
 0xe09   :  { %v4807_v11 = vmul.f32 %v10533_v54, %v11938_v5 }
 0xe0a   :  { %10534 = vpow2.f32 %v4728_v19 }
 0xe0b   :  { %v4402_v9 = vpop.f32.mrf.mxu0  ;;  %v4847_v33 = vpack.c.bf16 %v4807_v11, %v4806_v35 }
 0xe0c   :  { %v4489_v0 = vmul.f32 0.35355338, %v4402_v9  ;;  %v13786_v9 = vpop.permute.xlu0 %9969 }
 0xe0d   :  { %9290 = vmatmul.msk.bf16.gmra.mxu1 %vm231_vm1, %v4847_v33 }
 0xe0e   :  { %v9252_v18 = vclamps-f32 %v4489_v0, 5.0 }
 0xe10   :  { %v4730_v40 = vmul.f32 1.442695, %v9252_v18  ;;  %v10535_v34 = vpop.eup %10534  ;;  %v9980_v18 = vpop.permute.xlu2 %9979 }
 0xe11   :  { %v4808_v28 = vmul.f32 %v10535_v34, %v16057_v52 }
 0xe12   :  { %10536 = vpow2.f32 %v4730_v40 }
 0xe13   :  { %v4405_v50 = vpop.f32.mrf.mxu0 }
 0xe14   :  { %v4490_v27 = vmul.f32 0.35355338, %v4405_v50  ;;  %v13789_v50 = vpop.permute.xlu1 %9974 }
 0xe16   :  { %v9253_v20 = vclamps-f32 %v4490_v27, 5.0 }
 0xe18   :  { %v10537_v21 = vpop.eup %10536  ;;  %v4732_v37 = vmul.f32 1.442695, %v9253_v20 }
 0xe19   :  { %v4809_v22 = vmul.f32 %v10537_v21, %v16058_v32 }
 0xe1a   :  { %v13775_v4 = vpop.f32.mrf.mxu1  ;;  %10538 = vpow2.f32 %v4732_v37  ;;  %v13795_v37 = vpop.permute.xlu2 %9999 }
 0xe1b   :  { %v4407_v31 = vpop.f32.mrf.mxu0  ;;  %v4848_v46 = vpack.c.bf16 %v4809_v22, %v4808_v28 }
 0xe1c   :  { %v4491_v23 = vmul.f32 0.35355338, %v4407_v31 }
 0xe1d   :  { %9291 = vmatmul.msk.bf16.gmra.mxu1 %vm231_vm1, %v4848_v46 }
 0xe1e   :  { %v9254_v36 = vclamps-f32 %v4491_v23, 5.0  ;;  %v16061_v23 = vld [vmem:[#allocation121_spill] sm:$0xff] }
 0xe20   :  { %v4734_v17 = vmul.f32 1.442695, %v9254_v36  ;;  %v10539_v6 = vpop.eup %10538 }
 0xe21   :  { %v4810_v44 = vmul.f32 %v10539_v6, %v16059_v38  ;;  %v5152_v6 = vmul.f32 %v13712_v30, %v13678_v47 }
 0xe22   :  { %10540 = vpow2.f32 %v4734_v17  ;;  %v13778_v16 = vpop.f32.mrf.mxu1 }
 0xe23   :  { %v4410_v13 = vpop.f32.mrf.mxu0 }
 0xe24   :  { %v4492_v43 = vmul.f32 0.35355338, %v4410_v13  ;;  %v16062_v13 = vld [vmem:[#allocation118_spill] sm:$0xff] }
 0xe26   :  { %v9255_v7 = vclamps-f32 %v4492_v43, 5.0 }
 0xe28   :  { %v10541_v25 = vpop.eup %10540  ;;  %v4736_v33 = vmul.f32 1.442695, %v9255_v7 }
 0xe29   :  { %v4811_v54 = vmul.f32 %v10541_v25, %v16060_v60  ;;  %v9985_v20 = vpop.permute.xlu0 %9984 }
 0xe2a   :  { %v13784_v39 = vpop.f32.mrf.mxu1  ;;  %10542 = vpow2.f32 %v4736_v33  ;;  %v9987_v25 = vunpack.i.h.bf16 %v9985_v20  ;;  %v9986_v7 = vunpack.i.l.bf16 %v9985_v20  ;;  %v9982_v20 = vunpack.i.h.bf16 %v9980_v18 }
 0xe2b   :  { %v4412_v35 = vpop.f32.mrf.mxu0  ;;  %v4849_v11 = vpack.c.bf16 %v4811_v54, %v4810_v44 }
 0xe2c   :  { %v4493_v19 = vmul.f32 0.35355338, %v4412_v35  ;;  %v5149_v35 = vmul.f32 %v13651_v24, %v13656_v55 }
 0xe2d   :  { %9292 = vmatmul.msk.bf16.gmra.mxu1 %vm231_vm1, %v4849_v11  ;;  %v5151_v11 = vmul.f32 %v13692_v62, %v13656_v55 }
 0xe2e   :  { %v9256_v0 = vclamps-f32 %v4493_v19, 5.0  ;;  %v5469_v62 = vsel %vm950_vm3, %v5149_v35, %v9986_v7 }
 0xe30   :  { %v4738_v40 = vmul.f32 1.442695, %v9256_v0  ;;  %v10543_v22 = vpop.eup %10542 }
 0xe31   :  { %v4812_v36 = vmul.f32 %v10543_v22, %v16061_v23  ;;  %v9981_v22 = vunpack.i.l.bf16 %v9980_v18  ;;  %v10005_v24 = vpop.permute.xlu0 %10004  ;;  %v5148_v18 = vmul.f32 %v13638_v51, %v13678_v47 }
 0xe32   :  { %10544 = vpow2.f32 %v4738_v40  ;;  %v13791_v27 = vpop.f32.mrf.mxu1  ;;  %v5150_v40 = vmul.f32 %v13668_v45, %v13678_v47  ;;  %v5123_v45 = vmul.f32 %v13390_v56, %v13656_v55  ;;  %v10007_v7 = vunpack.i.h.bf16 %v10005_v24 }
 0xe33   :  { %v4415_v21 = vpop.f32.mrf.mxu0  ;;  %v5468_v35 = vsel %vm950_vm3, %v5148_v18, %v9982_v20  ;;  %v9971_v20 = vunpack.i.l.bf16 %v13786_v9 }
 0xe34   :  { %v4494_v28 = vmul.f32 0.35355338, %v4415_v21 }
 0xe36   :  { %v9257_v46 = vclamps-f32 %v4494_v28, 5.0 }
 0xe38   :  { %v10545_v31 = vpop.eup %10544  ;;  %v4740_v21 = vmul.f32 1.442695, %v9257_v46  ;;  %v5147_v46 = vmul.f32 %v13629_v26, %v13656_v55  ;;  %v10006_v26 = vunpack.i.l.bf16 %v10005_v24 }
 0xe39   :  { %v9990_v17 = vpop.permute.xlu1 %9989  ;;  %v4813_v43 = vmul.f32 %v10545_v31, %v16062_v13 }
 0xe3a   :  { %v9992_v44 = vunpack.i.h.bf16 %v9990_v17  ;;  %v13801_v54 = vpop.f32.mrf.mxu1  ;;  %v9991_v33 = vunpack.i.l.bf16 %v9990_v17  ;;  %v5125_v17 = vmul.f32 %v13405_v42, %v13656_v55  ;;  %10546 = vpow2.f32 %v4740_v21 }
 0xe3b   :  { %v4417_v19 = vpop.f32.mrf.mxu0  ;;  %v4850_v0 = vpack.c.bf16 %v4813_v43, %v4812_v36  ;;  %v5470_v36 = vsel %vm950_vm3, %v5150_v40, %v9987_v25  ;;  %v5126_v43 = vmul.f32 %v13412_v48, %v13678_v47  ;;  %v5467_v56 = vsel %vm950_vm3, %v5147_v46, %v9981_v22 }
 0xe3c   :  { %v5472_v30 = vsel %vm950_vm3, %v5152_v6, %v9992_v44  ;;  %v4495_v28 = vmul.f32 0.35355338, %v4417_v19  ;;  %v5471_v31 = vsel %vm950_vm3, %v5151_v11, %v9991_v33  ;;  %v5519_v44 = vpack.c.bf16 %v5470_v36, %v5469_v62 }
 0xe3d   :  { %9293 = vmatmul.msk.bf16.gmra.mxu1 %vm231_vm1, %v4850_v0  ;;  %v5520_v34 = vpack.c.bf16 %v5472_v30, %v5471_v31  ;;  %v5124_v42 = vmul.f32 %v13397_v61, %v13678_v47  ;;  %v9977_v48 = vunpack.i.h.bf16 %v13789_v50  ;;  %v5145_v40 = vmul.f32 %v13615_v3, %v13656_v55 }
 0xe3e   :  { %v9258_v57 = vclamps-f32 %v4495_v28, 5.0  ;;  %v5146_v61 = vmul.f32 %v13620_v63, %v13678_v47  ;;  %v5518_v22 = vpack.c.bf16 %v5468_v35, %v5467_v56  ;;  %v5443_v36 = vsel %vm950_vm3, %v5123_v45, %v10006_v26  ;;  %v16063_v63 = vld [vmem:[#allocation21_spill] sm:$0xff]  ;;  %v16065_v56 = vld [vmem:[#allocation15_spill] sm:$0xff]  ;;  %v16067_v26 = vld [vmem:[#allocation124_spill] sm:$0xff] }
 0xe3f   :  { %5556 = vmatpush.bf16.msra.mxu3 %v5520_v34  ;;  %v10015_v34 = vpop.permute.xlu2 %10014  ;;  %v5444_v3 = vsel %vm950_vm3, %v5124_v42, %v10007_v7  ;;  %v9972_v46 = vunpack.i.h.bf16 %v13786_v9  ;;  %v5143_v35 = vmul.f32 %v16065_v56, %v13656_v55  ;;  %v16066_v7 = vld [vmem:[#allocation27_spill] sm:$0xff]  ;;  %v16068_v42 = vld [vmem:[#allocation125_spill] sm:$0xff] }
 0xe40   :  { %v4742_v6 = vmul.f32 1.442695, %v9258_v57  ;;  %v9976_v57 = vunpack.i.l.bf16 %v13789_v50  ;;  %v10547_v31 = vpop.eup %10546  ;;  %v10017_v24 = vunpack.i.h.bf16 %v10015_v34  ;;  %v10016_v62 = vunpack.i.l.bf16 %v10015_v34 }
 0xe41   :  { %v9995_v25 = vpop.permute.xlu1 %9994  ;;  %v5144_v9 = vmul.f32 %v16066_v7, %v13678_v47 }
 0xe42   :  { %10548 = vpow2.f32 %v4742_v6  ;;  %v9997_v11 = vunpack.i.h.bf16 %v9995_v25  ;;  %v9996_v51 = vunpack.i.l.bf16 %v9995_v25  ;;  %v13826_v33 = vpop.f32.mrf.mxu1  ;;  %v5465_v18 = vsel %vm950_vm3, %v5145_v40, %v9976_v57  ;;  %v16064_v25 = vld [vmem:[#allocation13_spill] sm:$0xff] }
 0xe43   :  { %v4420_v0 = vpop.f32.mrf.mxu0  ;;  %5557 = vmatpush.bf16.msra.mxu3 %v5519_v44  ;;  %v5121_v6 = vmul.f32 %v16063_v63, %v13656_v55  ;;  %v5122_v44 = vmul.f32 %v16064_v25, %v13678_v47  ;;  %v10020_v63 = vpop.permute.xlu0 %10019 }
 0xe44   :  { %v4496_v21 = vmul.f32 0.35355338, %v4420_v0  ;;  %v5445_v30 = vsel %vm950_vm3, %v5125_v17, %v9996_v51  ;;  %v5446_v28 = vsel %vm950_vm3, %v5126_v43, %v9997_v11  ;;  %v5466_v17 = vsel %vm950_vm3, %v5146_v61, %v9977_v48 }
 0xe45   :  { %v5507_v50 = vpack.c.bf16 %v5446_v28, %v5445_v30  ;;  %v4814_v11 = vmul.f32 %v10547_v31, %v16067_v26  ;;  %v5506_v51 = vpack.c.bf16 %v5444_v3, %v5443_v36  ;;  %v5517_v34 = vpack.c.bf16 %v5466_v17, %v5465_v18  ;;  %v16069_v18 = vld [vmem:[#allocation14_spill] sm:$0xff] }
 0xe46   :  { %v9259_v45 = vclamps-f32 %v4496_v21, 5.0  ;;  %v5441_v0 = vsel %vm950_vm3, %v5121_v6, %v10016_v62  ;;  %v5442_v40 = vsel %vm950_vm3, %v5122_v44, %v10017_v24  ;;  %v5463_v30 = vsel %vm950_vm3, %v5143_v35, %v9971_v20  ;;  %v16070_v24 = vld [vmem:[#allocation24_spill] sm:$0xff] }
 0xe47   :  { %5542 = vmatpush.bf16.msra.mxu2 %v5507_v50  ;;  %5558 = vmatpush.bf16.msra.mxu3 %v5518_v22  ;;  %v10002_v21 = vunpack.i.h.bf16 %v13795_v37  ;;  %v10001_v28 = vunpack.i.l.bf16 %v13795_v37  ;;  %v5464_v22 = vsel %vm950_vm3, %v5144_v9, %v9972_v46  ;;  %v5141_v62 = vmul.f32 %v16069_v18, %v13656_v55 }
 0xe48   :  { %v10549_v43 = vpop.eup %10548  ;;  %v4744_v31 = vmul.f32 1.442695, %v9259_v45  ;;  %v5142_v17 = vmul.f32 %v16070_v24, %v13678_v47  ;;  %v5505_v20 = vpack.c.bf16 %v5442_v40, %v5441_v0  ;;  %v5516_v37 = vpack.c.bf16 %v5464_v22, %v5463_v30 }
 0xe49   :  { %v4815_v48 = vmul.f32 %v10549_v43, %v16068_v42  ;;  %v10010_v36 = vpop.permute.xlu1 %10009  ;;  %v5461_v46 = vsel %vm950_vm3, %v5141_v62, %v10001_v28  ;;  %v5139_v35 = vmul.f32 %v13589_v14, %v13656_v55  ;;  %v5140_v45 = vmul.f32 %v13591_v49, %v13678_v47  ;;  %v16073_v62 = vld [vmem:[#allocation127_spill] sm:$0xff] }
 0xe4a   :  { %v13856_v57 = vpop.f32.mrf.mxu1  ;;  %v10012_v6 = vunpack.i.h.bf16 %v10010_v36  ;;  %v10011_v25 = vunpack.i.l.bf16 %v10010_v36  ;;  %v5462_v44 = vsel %vm950_vm3, %v5142_v17, %v10002_v21  ;;  %10550 = vpow2.f32 %v4744_v31 }
 0xe4b   :  { %v4422_v61 = vpop.f32.mrf.mxu0  ;;  %5543 = vmatpush.bf16.msra.mxu2 %v5506_v51  ;;  %v4851_v50 = vpack.c.bf16 %v4815_v48, %v4814_v11  ;;  %5559 = vmatpush.bf16.msra.mxu3 %v5517_v34  ;;  %v10022_v7 = vunpack.i.h.bf16 %v10020_v63  ;;  %v5515_v11 = vpack.c.bf16 %v5462_v44, %v5461_v46  ;;  %v16071_v51 = vld [vmem:[#allocation181_spill] sm:$0xff]  ;;  %v10021_v48 = vunpack.i.l.bf16 %v10020_v63 }
 0xe4c   :  { %v4497_v3 = vmul.f32 0.35355338, %v4422_v61  ;;  %v5459_v40 = vsel %vm950_vm3, %v5139_v35, %v10011_v25  ;;  %v5460_v30 = vsel %vm950_vm3, %v5140_v45, %v10012_v6  ;;  %v5137_v49 = vmul.f32 %v13584_v15, %v13656_v55  ;;  %v16075_v25 = vld [vmem:[#allocation185_spill] sm:$0xff] }
 0xe4d   :  { %9294 = vmatmul.msk.bf16.gmra.mxu1 %vm231_vm1, %v4851_v50  ;;  %v5138_v21 = vmul.f32 %v13586_v58, %v13678_v47  ;;  %v5514_v61 = vpack.c.bf16 %v5460_v30, %v5459_v40 }
 0xe4e   :  { %v9260_v43 = vclamps-f32 %v4497_v3, 5.0  ;;  %v5457_v50 = vsel %vm950_vm3, %v5137_v49, %v10021_v48  ;;  %v16072_v3 = vld [vmem:[#allocation122_spill] sm:$0xff] }
 0xe4f   :  { %5544 = vmatpush.bf16.msra.mxu2 %v5505_v20  ;;  %5560 = vmatpush.bf16.msra.mxu3 %v5516_v37  ;;  %v5458_v22 = vsel %vm950_vm3, %v5138_v21, %v10022_v7  ;;  %v16074_v37 = vld [vmem:[#allocation179_spill] sm:$0xff] }
 0xe50   :  { %v4746_v56 = vmul.f32 1.442695, %v9260_v43  ;;  %v10551_v28 = vpop.eup %10550  ;;  %v5513_v20 = vpack.c.bf16 %v5458_v22, %v5457_v50  ;;  %v16078_v50 = vld [vmem:[#allocation183_spill] sm:$0xff] }
 0xe51   :  { %v4816_v18 = vmul.f32 %v10551_v28, %v16072_v3 }
 0xe52   :  { %10552 = vpow2.f32 %v4746_v56  ;;  %v13875_v9 = vpop.f32.mrf.mxu1  ;;  %5545 = vmatmul.bf16.vlgmr.msra.gmra.mxu2 %v16071_v51 }
 0xe53   :  { %v10063_v34 = vpack.i.bf16 %v13875_v9, %v13856_v57  ;;  %v4425_v0 = vpop.f32.mrf.mxu0  ;;  %5561 = vmatpush.bf16.msra.mxu3 %v5515_v11  ;;  %v16076_v11 = vld [vmem:[#allocation128_spill] sm:$0xff] }
 0xe54   :  { %v4498_v14 = vmul.f32 0.35355338, %v4425_v0  ;;  %v16077_v0 = vld [vmem:[#allocation126_spill] sm:$0xff] }
 0xe56   :  { %v9261_v36 = vclamps-f32 %v4498_v14, 5.0 }
 0xe57   :  { %5562 = vmatpush.bf16.msra.mxu3 %v5514_v61 }
 0xe58   :  { %v10553_v31 = vpop.eup %10552  ;;  %v4748_v43 = vmul.f32 1.442695, %v9261_v36 }
 0xe59   :  { %v4817_v24 = vmul.f32 %v10553_v31, %v16073_v62 }
 0xe5a   :  { %v13890_v17 = vpop.f32.mrf.mxu1  ;;  %10554 = vpow2.f32 %v4748_v43  ;;  %v16079_v43 = vld [vmem:[#allocation131_spill] sm:$0xff] }
 0xe5b   :  { %v4427_v15 = vpop.f32.mrf.mxu0  ;;  %v4852_v55 = vpack.c.bf16 %v4817_v24, %v4816_v18  ;;  %5563 = vmatpush.bf16.msra.mxu3 %v5513_v20 }
 0xe5c   :  { %v4499_v58 = vmul.f32 0.35355338, %v4427_v15 }
 0xe5d   :  { %9295 = vmatmul.msk.bf16.gmra.mxu1 %vm231_vm1, %v4852_v55 }
 0xe5e   :  { %v9262_v47 = vclamps-f32 %v4499_v58, 5.0  ;;  %5564 = vmatmul.bf16.vlgmr.msra.gmra.mxu3 %v16074_v37 }
 0xe60   :  { %v4750_v63 = vmul.f32 1.442695, %v9262_v47  ;;  %v10555_v35 = vpop.eup %10554  ;;  %v16080_v47 = vld [vmem:[#allocation132_spill] sm:$0xff] }
 0xe61   :  { %v4818_v48 = vmul.f32 %v10555_v35, %v16076_v11 }
 0xe62   :  { %10556 = vpow2.f32 %v4750_v63  ;;  %v13894_v6 = vpop.f32.mrf.mxu1  ;;  %5550 = vmatmul.bf16.gmra.mxu2 %v16075_v25 }
 0xe63   :  { %v10023_v46 = vpack.i.bf16 %v13894_v6, %v13890_v17  ;;  %v4430_v44 = vpop.f32.mrf.mxu0 }
 0xe64   :  { %v4500_v56 = vmul.f32 0.35355338, %v4430_v44 }
 0xe65   :  { %10024 = vrot.lane.b32.xlu1 %v10023_v46, %s10837_s27 }
 0xe66   :  { %v9263_v7 = vclamps-f32 %v4500_v56, 5.0 }
 0xe68   :  { %v10557_v45 = vpop.eup %10556  ;;  %v4752_v21 = vmul.f32 1.442695, %v9263_v7 }
 0xe69   :  { %v4819_v40 = vmul.f32 %v10557_v45, %v16077_v0 }
 0xe6a   :  { %v13902_v30 = vpop.f32.mrf.mxu1  ;;  %10558 = vpow2.f32 %v4752_v21 }
 0xe6b   :  { %v4432_v14 = vpop.f32.mrf.mxu0  ;;  %v4853_v49 = vpack.c.bf16 %v4819_v40, %v4818_v48 }
 0xe6c   :  { %v4501_v28 = vmul.f32 0.35355338, %v4432_v14 }
 0xe6d   :  { %9296 = vmatmul.msk.bf16.gmra.mxu1 %vm231_vm1, %v4853_v49 }
 0xe6e   :  { %v9264_v61 = vclamps-f32 %v4501_v28, 5.0  ;;  %5569 = vmatmul.bf16.gmra.mxu3 %v16078_v50  ;;  %v16081_v28 = vld [vmem:[#allocation129_spill] sm:$0xff] }
 0xe70   :  { %v4754_v22 = vmul.f32 1.442695, %v9264_v61  ;;  %v10559_v20 = vpop.eup %10558 }
 0xe71   :  { %v4820_v58 = vmul.f32 %v10559_v20, %v16079_v43 }
 0xe72   :  { %10560 = vpow2.f32 %v4754_v22  ;;  %v13906_v31 = vpop.f32.mrf.mxu1  ;;  %v16082_v22 = vld [vmem:[#allocation133_spill] sm:$0xff] }
 0xe73   :  { %v10028_v36 = vpack.i.bf16 %v13906_v31, %v13902_v30  ;;  %v4435_v18 = vpop.f32.mrf.mxu0 }
 0xe74   :  { %v4502_v24 = vmul.f32 0.35355338, %v4435_v18 }
 0xe75   :  { %10029 = vrot.lane.b32.xlu2 %v10028_v36, %s10837_s27 }
 0xe76   :  { %v9265_v55 = vclamps-f32 %v4502_v24, 5.0 }
 0xe78   :  { %v10561_v15 = vpop.eup %10560  ;;  %v4756_v35 = vmul.f32 1.442695, %v9265_v55 }
 0xe79   :  { %v4821_v63 = vmul.f32 %v10561_v15, %v16080_v47 }
 0xe7a   :  { %v5071_v46 = vpop.f32.mrf.mxu1  ;;  %10562 = vpow2.f32 %v4756_v35 }
 0xe7b   :  { %v4437_v44 = vpop.f32.mrf.mxu0  ;;  %v4854_v56 = vpack.c.bf16 %v4821_v63, %v4820_v58 }
 0xe7c   :  { %v4503_v45 = vmul.f32 0.35355338, %v4437_v44 }
 0xe7d   :  { %9297 = vmatmul.msk.bf16.gmra.mxu1 %vm231_vm1, %v4854_v56 }
 0xe7e   :  { %v9266_v7 = vclamps-f32 %v4503_v45, 5.0 }
 0xe80   :  { %v4758_v48 = vmul.f32 1.442695, %v9266_v7  ;;  %v10563_v49 = vpop.eup %10562 }
 0xe81   :  { %v4822_v61 = vmul.f32 %v10563_v49, %v16081_v28 }
 0xe82   :  { %10564 = vpow2.f32 %v4758_v48  ;;  %v5073_v40 = vpop.f32.mrf.mxu1 }
 0xe83   :  { %v10033_v14 = vpack.i.bf16 %v5073_v40, %v5071_v46 }
 0xe85   :  { %10034 = vrot.lane.b32.xlu0 %v10033_v14, %s10837_s27 }
 0xe88   :  { %v10565_v21 = vpop.eup %10564 }
 0xe89   :  { %v4823_v36 = vmul.f32 %v10565_v21, %v16082_v22 }
 0xe8a   :  { %v5076_v18 = vpop.f32.mrf.mxu1 }
 0xe8b   :  { %v4855_v24 = vpack.c.bf16 %v4823_v36, %v4822_v61 }
 0xe8d   :  { %9298 = vmatmul.msk.bf16.gmra.mxu1 %vm231_vm1, %v4855_v24  ;;  %v13948_v24 = vpop.f32.mrf.mxu3 }
 0xe8e   :  { %v5167_v22 = vmul.f32 %v5076_v18, %v13948_v24 }
 0xe92   :  { %v5078_v20 = vpop.f32.mrf.mxu1 }
 0xe93   :  { %v10038_v15 = vpack.i.bf16 %v5078_v20, %v5076_v18 }
 0xe95   :  { %10039 = vrot.lane.b32.xlu1 %v10038_v15, %s10837_s27  ;;  %v13962_v37 = vpop.f32.mrf.mxu3 }
 0xe96   :  { %v5166_v42 = vmul.f32 %v5073_v40, %v13962_v37 }
 0xe9a   :  { %v13919_v55 = vpop.f32.mrf.mxu1 }
 0xea2   :  { %v13921_v58 = vpop.f32.mrf.mxu1 }
 0xeaa   :  { %v13923_v63 = vpop.f32.mrf.mxu1 }
 0xeb2   :  { %v13925_v44 = vpop.f32.mrf.mxu1 }
 0xeba   :  { %v13927_v56 = vpop.f32.mrf.mxu1 }
 0xec2   :  { %v13929_v35 = vpop.f32.mrf.mxu1 }
 0xec3   :  { %v10078_v50 = vpack.i.bf16 %v13929_v35, %v13927_v56 }
 0xeca   :  { %v13931_v45 = vpop.f32.mrf.mxu1 }
 0xecf   :  { %v10030_v11 = vpop.permute.xlu2 %10029 }
 0xed0   :  { %v10032_v13 = vunpack.i.h.bf16 %v10030_v11 }
 0xed2   :  { %v13933_v7 = vpop.f32.mrf.mxu1 }
 0xed3   :  { %v10068_v26 = vpack.i.bf16 %v13933_v7, %v13931_v45 }
 0xed7   :  { %v10025_v15 = vpop.permute.xlu1 %10024 }
 0xed8   :  { %v10026_v40 = vunpack.i.l.bf16 %v10025_v15 }
 0xeda   :  { %v13935_v48 = vpop.f32.mrf.mxu1 }
 0xee2   :  { %v13937_v14 = vpop.f32.mrf.mxu1 }
 0xeea   :  { %v13939_v49 = vpop.f32.mrf.mxu1 }
 0xef2   :  { %v13941_v21 = vpop.f32.mrf.mxu1 }
 0xef3   :  { %v10043_v61 = vpack.i.bf16 %v13941_v21, %v13939_v49 }
 0xef5   :  { %10044 = vrot.lane.b32.xlu0 %v10043_v61, %s10837_s27 }
 0xef7   :  { %v10035_v61 = vpop.permute.xlu0 %10034 }
 0xef8   :  { %v10037_v43 = vunpack.i.h.bf16 %v10035_v61  ;;  %v10036_v0 = vunpack.i.l.bf16 %v10035_v61 }
 0xefa   :  { %v13946_v36 = vpop.f32.mrf.mxu1 }
 0xefd   :  { %10064 = vrot.lane.b32.xlu0 %v10063_v34, %s10837_s27  ;;  %v5168_v34 = vmul.f32 %v5078_v20, %v13962_v37  ;;  %v10031_v20 = vunpack.i.l.bf16 %v10030_v11  ;;  %v10027_v11 = vunpack.i.h.bf16 %v10025_v15 }
 0xf02   :  { %v13954_v19 = vpop.f32.mrf.mxu1 }
 0xf03   :  { %v10048_v25 = vpack.i.bf16 %v13954_v19, %v13946_v36 }
 0xf05   :  { %10079 = vrot.lane.b32.xlu0 %v10078_v50, %s10837_s27  ;;  %10049 = vrot.lane.b32.xlu1 %v10048_v25, %s10837_s27  ;;  %v5165_v25 = vmul.f32 %v5071_v46, %v13948_v24  ;;  %v5163_v46 = vmul.f32 %v13902_v30, %v13948_v24 }
 0xf07   :  { %v10040_v51 = vpop.permute.xlu1 %10039 }
 0xf08   :  { %v10042_v28 = vunpack.i.h.bf16 %v10040_v51  ;;  %v10041_v47 = vunpack.i.l.bf16 %v10040_v51  ;;  %v16083_v51 = vpack.i.bf16 %v13778_v16, %v13775_v4 }
 0xf0a   :  { %v5488_v62 = vsel %vm950_vm3, %v5168_v34, %v10042_v28  ;;  %v5487_v3 = vsel %vm950_vm3, %v5167_v22, %v10041_v47  ;;  %v5116_v50 = vpop.f32.mrf.mxu1  ;;  %v5485_v47 = vsel %vm950_vm3, %v5165_v25, %v10036_v0  ;;  %v5486_v28 = vsel %vm950_vm3, %v5166_v42, %v10037_v43 }
 0xf0b   :  { %v5528_v18 = vpack.c.bf16 %v5488_v62, %v5487_v3  ;;  %v5164_v3 = vmul.f32 %v13906_v31, %v13962_v37  ;;  %v5527_v62 = vpack.c.bf16 %v5486_v28, %v5485_v47  ;;  %v5483_v22 = vsel %vm950_vm3, %v5163_v46, %v10031_v20 }
 0xf0c   :  { %v5161_v0 = vmul.f32 %v13890_v17, %v13948_v24  ;;  %v5162_v42 = vmul.f32 %v13894_v6, %v13962_v37  ;;  %v16084_v31 = vpack.i.bf16 %v13791_v27, %v13784_v39  ;;  %v10098_v17 = vpack.i.bf16 %v13921_v58, %v13919_v55 }
 0xf0d   :  { %10094 = vrot.lane.b32.xlu0 %v16083_v51, %s10837_s27  ;;  %10069 = vrot.lane.b32.xlu1 %v10068_v26, %s10837_s27  ;;  %v5484_v61 = vsel %vm950_vm3, %v5164_v3, %v10032_v13  ;;  %v10058_v6 = vpack.i.bf16 %v13937_v14, %v13935_v48  ;;  %v16085_v25 = vpack.i.bf16 %v13826_v33, %v13801_v54 }
 0xf0e   :  { %5575 = vmatpush.bf16.msrb.mxu2 %v5528_v18  ;;  %v5526_v30 = vpack.c.bf16 %v5484_v61, %v5483_v22  ;;  %v5481_v15 = vsel %vm950_vm3, %v5161_v0, %v10026_v40  ;;  %v5482_v13 = vsel %vm950_vm3, %v5162_v42, %v10027_v11  ;;  %v10088_v18 = vpack.i.bf16 %v13925_v44, %v13923_v63 }
 0xf0f   :  { %v5525_v34 = vpack.c.bf16 %v5482_v13, %v5481_v15  ;;  %v5159_v51 = vmul.f32 %v13856_v57, %v13948_v24  ;;  %v5160_v47 = vmul.f32 %v13875_v9, %v13962_v37  ;;  %v5183_v28 = vmul.f32 %v5116_v50, %v13948_v24 }
 0xf12   :  { %5576 = vmatpush.bf16.msrb.mxu2 %v5527_v62  ;;  %v5118_v26 = vpop.f32.mrf.mxu1 }
 0xf13   :  { %v10053_v43 = vpack.i.bf16 %v5118_v26, %v5116_v50  ;;  %v5184_v46 = vmul.f32 %v5118_v26, %v13962_v37 }
 0xf15   :  { %10084 = vrot.lane.b32.xlu1 %v16084_v31, %s10837_s27  ;;  %10054 = vrot.lane.b32.xlu2 %v10053_v43, %s10837_s27 }
 0xf16   :  { %5577 = vmatpush.bf16.msrb.mxu2 %v5526_v30 }
 0xf1a   :  { %5578 = vmatpush.bf16.msrb.mxu2 %v5525_v34  ;;  %v5181_v34 = vmul.f32 %v13946_v36, %v13948_v24 }
 0xf1d   :  { %10099 = vrot.lane.b32.xlu1 %v10098_v17, %s10837_s27  ;;  %10059 = vrot.lane.b32.xlu2 %v10058_v6, %s10837_s27  ;;  %v5182_v17 = vmul.f32 %v13954_v19, %v13962_v37  ;;  %v5153_v19 = vmul.f32 %v13775_v4, %v13948_v24 }
 0xf25   :  { %10074 = vrot.lane.b32.xlu2 %v16085_v25, %s10837_s27 }
 0xf2d   :  { %10089 = vrot.lane.b32.xlu2 %v10088_v18, %s10837_s27  ;;  %v5179_v18 = vmul.f32 %v13939_v49, %v13948_v24  ;;  %v5154_v49 = vmul.f32 %v13778_v16, %v13962_v37 }
 0xf67   :  { %v10045_v20 = vpop.permute.xlu0 %10044 }
 0xf68   :  { %v10047_v31 = vunpack.i.h.bf16 %v10045_v20  ;;  %v10046_v15 = vunpack.i.l.bf16 %v10045_v20 }
 0xf6f   :  { %v10065_v3 = vpop.permute.xlu0 %10064  ;;  %v10055_v62 = vpop.permute.xlu2 %10054 }
 0xf70   :  { %v10067_v11 = vunpack.i.h.bf16 %v10065_v3  ;;  %v10066_v40 = vunpack.i.l.bf16 %v10065_v3  ;;  %v10057_v22 = vunpack.i.h.bf16 %v10055_v62  ;;  %v10056_v61 = vunpack.i.l.bf16 %v10055_v62 }
 0xf72   :  { %v5503_v0 = vsel %vm950_vm3, %v5183_v28, %v10056_v61  ;;  %v5504_v42 = vsel %vm950_vm3, %v5184_v46, %v10057_v22  ;;  %v5479_v43 = vsel %vm950_vm3, %v5159_v51, %v10066_v40  ;;  %v5480_v57 = vsel %vm950_vm3, %v5160_v47, %v10067_v11 }
 0xf73   :  { %v5536_v30 = vpack.c.bf16 %v5504_v42, %v5503_v0  ;;  %v5524_v9 = vpack.c.bf16 %v5480_v57, %v5479_v43  ;;  %v5180_v51 = vmul.f32 %v13941_v21, %v13962_v37  ;;  %v5499_v46 = vsel %vm950_vm3, %v5179_v18, %v10046_v15 }
 0xf74   :  { %v5157_v21 = vmul.f32 %v13801_v54, %v13948_v24  ;;  %v5158_v11 = vmul.f32 %v13826_v33, %v13962_v37  ;;  %v5177_v40 = vmul.f32 %v13935_v48, %v13948_v24  ;;  %v5178_v22 = vmul.f32 %v13937_v14, %v13962_v37 }
 0xf75   :  { %5579 = vmatpush.bf16.msrb.mxu2 %v5524_v9  ;;  %5594 = vmatpush.bf16.msrb.mxu3 %v5536_v30  ;;  %v5500_v36 = vsel %vm950_vm3, %v5180_v51, %v10047_v31 }
 0xf76   :  { %v5534_v42 = vpack.c.bf16 %v5500_v36, %v5499_v46 }
 0xf77   :  { %v14019_v50 = vpop.permute.xlu0 %10079  ;;  %v10060_v26 = vpop.permute.xlu2 %10059 }
 0xf78   :  { %v10050_v13 = vpop.permute.xlu1 %10049  ;;  %v10062_v3 = vunpack.i.h.bf16 %v10060_v26  ;;  %v10061_v62 = vunpack.i.l.bf16 %v10060_v26  ;;  %v10081_v18 = vunpack.i.l.bf16 %v14019_v50 }
 0xf79   :  { %v10052_v6 = vunpack.i.h.bf16 %v10050_v13  ;;  %v10051_v25 = vunpack.i.l.bf16 %v10050_v13  ;;  %v5175_v13 = vmul.f32 %v13931_v45, %v13948_v24  ;;  %v5174_v45 = vmul.f32 %v13929_v35, %v13962_v37 }
 0xf7a   :  { %v5497_v26 = vsel %vm950_vm3, %v5177_v40, %v10061_v62  ;;  %v5498_v33 = vsel %vm950_vm3, %v5178_v22, %v10062_v3  ;;  %v5171_v35 = vmul.f32 %v13923_v63, %v13948_v24  ;;  %v5169_v63 = vmul.f32 %v13919_v55, %v13948_v24  ;;  %v16089_v55 = vld [vmem:[#allocation195_spill] sm:$0xff] }
 0xf7b   :  { %v5501_v47 = vsel %vm950_vm3, %v5181_v34, %v10051_v25  ;;  %v5502_v28 = vsel %vm950_vm3, %v5182_v17, %v10052_v6  ;;  %v5176_v34 = vmul.f32 %v13933_v7, %v13962_v37  ;;  %v10082_v25 = vunpack.i.h.bf16 %v14019_v50 }
 0xf7c   :  { %v5535_v20 = vpack.c.bf16 %v5502_v28, %v5501_v47  ;;  %v5533_v51 = vpack.c.bf16 %v5498_v33, %v5497_v26  ;;  %v5155_v7 = vmul.f32 %v13784_v39, %v13948_v24  ;;  %v5156_v50 = vmul.f32 %v13791_v27, %v13962_v37  ;;  %v16086_v26 = vld [vmem:[#allocation193_spill] sm:$0xff]  ;;  %v16087_v33 = vld [vmem:[#allocation191_spill] sm:$0xff] }
 0xf7d   :  { %v5172_v39 = vmul.f32 %v13925_v44, %v13962_v37  ;;  %v5170_v44 = vmul.f32 %v13921_v58, %v13962_v37  ;;  %v5565_v37 = vpop.f32.mrf.mxu3 }
 0xf7e   :  { %5595 = vmatpush.bf16.msrb.mxu3 %v5535_v20  ;;  %v5173_v20 = vmul.f32 %v13927_v56, %v13948_v24  ;;  %v5546_v24 = vpop.f32.mrf.mxu2 }
 0xf7f   :  { %v10095_v61 = vpop.permute.xlu0 %10094  ;;  %v10075_v0 = vpop.permute.xlu2 %10074 }
 0xf80   :  { %v10097_v4 = vunpack.i.h.bf16 %v10095_v61  ;;  %v10096_v43 = vunpack.i.l.bf16 %v10095_v61  ;;  %v10077_v57 = vunpack.i.h.bf16 %v10075_v0  ;;  %v10076_v16 = vunpack.i.l.bf16 %v10075_v0  ;;  %v10070_v30 = vpop.permute.xlu1 %10069 }
 0xf81   :  { %v10072_v9 = vunpack.i.h.bf16 %v10070_v30  ;;  %v10071_v54 = vunpack.i.l.bf16 %v10070_v30  ;;  %v5493_v62 = vsel %vm950_vm3, %v5173_v20, %v10081_v18 }
 0xf82   :  { %5596 = vmatpush.bf16.msrb.mxu3 %v5534_v42  ;;  %v5477_v48 = vsel %vm950_vm3, %v5157_v21, %v10076_v16  ;;  %v5478_v31 = vsel %vm950_vm3, %v5158_v11, %v10077_v57  ;;  %v5473_v14 = vsel %vm950_vm3, %v5153_v19, %v10096_v43  ;;  %v5474_v15 = vsel %vm950_vm3, %v5154_v49, %v10097_v4 }
 0xf83   :  { %v5523_v17 = vpack.c.bf16 %v5478_v31, %v5477_v48  ;;  %v5521_v6 = vpack.c.bf16 %v5474_v15, %v5473_v14  ;;  %v5495_v47 = vsel %vm950_vm3, %v5175_v13, %v10071_v54  ;;  %v5496_v28 = vsel %vm950_vm3, %v5176_v34, %v10072_v9  ;;  %v16088_v48 = vld [vmem:[#allocation197_spill] sm:$0xff] }
 0xf84   :  { %v5532_v3 = vpack.c.bf16 %v5496_v28, %v5495_v47  ;;  %v5494_v19 = vsel %vm950_vm3, %v5174_v45, %v10082_v25 }
 0xf85   :  { %5580 = vmatpush.bf16.msrb.mxu2 %v5523_v17  ;;  %v5531_v61 = vpack.c.bf16 %v5494_v19, %v5493_v62  ;;  %v5567_v31 = vpop.f32.mrf.mxu3 }
 0xf86   :  { %5597 = vmatpush.bf16.msrb.mxu3 %v5533_v51  ;;  %v5548_v58 = vpop.f32.mrf.mxu2 }
 0xf87   :  { %v10090_v46 = vpop.permute.xlu2 %10089  ;;  %v5568_v20 = vadd.f32 %v5567_v31, %v5548_v58 }
 0xf88   :  { %v10085_v36 = vpop.permute.xlu1 %10084  ;;  %v10092_v49 = vunpack.i.h.bf16 %v10090_v46  ;;  %v10091_v21 = vunpack.i.l.bf16 %v10090_v46 }
 0xf89   :  { %v10087_v56 = vunpack.i.h.bf16 %v10085_v36  ;;  %v10086_v11 = vunpack.i.l.bf16 %v10085_v36 }
 0xf8a   :  { %5598 = vmatpush.bf16.msrb.mxu3 %v5532_v3  ;;  %v5491_v0 = vsel %vm950_vm3, %v5171_v35, %v10091_v21  ;;  %v5492_v42 = vsel %vm950_vm3, %v5172_v39, %v10092_v49 }
 0xf8b   :  { %v5475_v40 = vsel %vm950_vm3, %v5155_v7, %v10086_v11  ;;  %v5476_v27 = vsel %vm950_vm3, %v5156_v50, %v10087_v56  ;;  %v5530_v43 = vpack.c.bf16 %v5492_v42, %v5491_v0 }
 0xf8c   :  { %v5522_v22 = vpack.c.bf16 %v5476_v27, %v5475_v40 }
 0xf8d   :  { %v5570_v15 = vpop.f32.mrf.mxu3 }
 0xf8e   :  { %5581 = vmatpush.bf16.msrb.mxu2 %v5522_v22  ;;  %5599 = vmatpush.bf16.msrb.mxu3 %v5531_v61  ;;  %v5551_v14 = vpop.f32.mrf.mxu2 }
 0xf8f   :  { %v5571_v62 = vadd.f32 %v5570_v15, %v5551_v14  ;;  %v14108_v15 = vld [vmem:[%s15445_s13 + $0x8] sm:$0xff] }
 0xf90   :  { %v10100_v4 = vpop.permute.xlu1 %10099 }
 0xf91   :  { %v10102_v57 = vunpack.i.h.bf16 %v10100_v4  ;;  %v10101_v16 = vunpack.i.l.bf16 %v10100_v4  ;;  %v9721_v4 = vld [vmem:[%s15442_s10 + $0x38] sm:$0xff] }
 0xf92   :  { %5582 = vmatpush.bf16.msrb.mxu2 %v5521_v6  ;;  %5600 = vmatpush.bf16.msrb.mxu3 %v5530_v43  ;;  %v5566_v6 = vadd.f32 %v5565_v37, %v5546_v24  ;;  %v9720_v43 = vld [vmem:[%s15442_s10 + $0x30] sm:$0xff] }
 0xf93   :  { %v5489_v30 = vsel %vm950_vm3, %v5169_v63, %v10101_v16  ;;  %v5490_v9 = vsel %vm950_vm3, %v5170_v44, %v10102_v57  ;;  %v9719_v63 = vld [vmem:[%s15442_s10 + $0x28] sm:$0xff]  ;;  %v9718_v44 = vld [vmem:[%s15442_s10 + $0x20] sm:$0xff] }
 0xf94   :  { %v5529_v54 = vpack.c.bf16 %v5490_v9, %v5489_v30 }
 0xf95   :  { %5583 = vmatmul.bf16.vlgmr.msrb.gmra.mxu2 %v16086_v26  ;;  %v5572_v34 = vpop.f32.mrf.mxu3 }
 0xf96   :  { %5601 = vmatpush.bf16.msrb.mxu3 %v5529_v54  ;;  %v5553_v13 = vpop.f32.mrf.mxu2  ;;  %5690 = vmatpush.bf16.msra.mxu2 %v9721_v4 }
 0xf97   :  { %v5573_v39 = vadd.f32 %v5572_v34, %v5553_v13  ;;  %v5709_v13 = vperm.slane %v14108_v15, 0 }
 0xf99   :  { %5602 = vmatmul.bf16.vlgmr.msrb.gmra.mxu3 %v16087_v33 }
 0xf9a   :  { %5691 = vmatpush.bf16.msra.mxu2 %v9720_v43 }
 0xf9e   :  { %5692 = vmatpush.bf16.msra.mxu2 %v9719_v63 }
 0xfa2   :  { %5693 = vmatpush.bf16.msra.mxu2 %v9718_v44 }
 0xfa5   :  { %5588 = vmatmul.bf16.gmra.mxu2 %v16088_v48 }
 0xfa9   :  { %5607 = vmatmul.bf16.gmra.mxu3 %v16089_v55 }
0x1018   :  { %v5584_v17 = vpop.f32.mrf.mxu2 }
0x1019   :  { %v5585_v25 = vadd.f32 %v5584_v17, %v5566_v6  ;;  %v16090_v17 = vld [vmem:[#allocation205_spill] sm:$0xff] }
0x101c   :  { %v5603_v18 = vpop.f32.mrf.mxu3 }
0x101d   :  { %v5604_v51 = vadd.f32 %v5603_v18, %v5585_v25 }
0x101f   :  { %v5613_v47 = vadd.f32 1e-06, %v5604_v51 }
0x1020   :  { %v5586_v28 = vpop.f32.mrf.mxu2 }
0x1021   :  { %10566 = vrcp.f32 %v5613_v47  ;;  %v5587_v45 = vadd.f32 %v5586_v28, %v5568_v20  ;;  %v16091_v47 = vld [vmem:[#allocation206_spill] sm:$0xff] }
0x1024   :  { %v5605_v7 = vpop.f32.mrf.mxu3 }
0x1025   :  { %v5606_v46 = vadd.f32 %v5605_v7, %v5587_v45 }
0x1027   :  { %v10567_v50 = vpop.eup %10566  ;;  %v5614_v36 = vadd.f32 1e-06, %v5606_v46 }
0x1028   :  { %v5589_v3 = vpop.f32.mrf.mxu2  ;;  %5625 = vrot.lane.b32.xlu2 %v10567_v50, %s10837_s27 }
0x1029   :  { %10568 = vrcp.f32 %v5614_v36  ;;  %v5590_v19 = vadd.f32 %v5589_v3, %v5571_v62 }
0x102c   :  { %v5608_v49 = vpop.f32.mrf.mxu3 }
0x102d   :  { %v5609_v21 = vadd.f32 %v5608_v49, %v5590_v19  ;;  %v16093_v19 = vld [vmem:[#allocation204_spill] sm:$0xff] }
0x102f   :  { %v10569_v56 = vpop.eup %10568  ;;  %v5615_v11 = vadd.f32 1e-06, %v5609_v21 }
0x1030   :  { %v5591_v35 = vpop.f32.mrf.mxu2  ;;  %5627 = vrot.lane.b32.xlu0 %v10569_v56, %s10837_s27 }
0x1031   :  { %10570 = vrcp.f32 %v5615_v11  ;;  %v5592_v40 = vadd.f32 %v5591_v35, %v5573_v39  ;;  %v16094_v35 = vld [vmem:[#allocation8_spill] sm:$0xff] }
0x1034   :  { %v5610_v27 = vpop.f32.mrf.mxu3 }
0x1035   :  { %v5611_v22 = vadd.f32 %v5610_v27, %v5592_v40 }
0x1037   :  { %v10571_v61 = vpop.eup %10570  ;;  %v5616_v0 = vadd.f32 1e-06, %v5611_v22 }
0x1038   :  { %5629 = vrot.lane.b32.xlu1 %v10571_v61, %s10837_s27 }
0x1039   :  { %10572 = vrcp.f32 %v5616_v0 }
0x103f   :  { %v10573_v42 = vpop.eup %10572 }
0x1040   :  { %5631 = vrot.lane.b32.xlu2 %v10573_v42, %s10837_s27 }
0x1082   :  { %v5626_v57 = vpop.permute.xlu2 %5625 }
0x1083   :  { %v5637_v30 = vmul.f32 %v5626_v57, %v5604_v51 }
0x109a   :  { %v5632_v37 = vpop.permute.xlu2 %5631 }
0x109b   :  { %v5640_v31 = vmul.f32 %v5632_v37, %v5611_v22 }
0x10a2   :  { %v5628_v16 = vpop.permute.xlu0 %5627 }
0x10a3   :  { %v5638_v9 = vmul.f32 %v5628_v16, %v5606_v46  ;;  %v16092_v46 = vld [vmem:[#allocation9_spill] sm:$0xff] }
0x10a5   :  { %v5654_v54 = vpack.c.bf16 %v5638_v9, %v5637_v30  ;;  %v5714_v9 = vperm.slane %v14108_v15, 1 }
0x10a7   :  { %9325 = vmatmul.msk.bf16.vlgmr.msra.gmra.mxu2 %vm950_vm3, %v5654_v54 }
0x10aa   :  { %v5630_v24 = vpop.permute.xlu1 %5629 }
0x10ab   :  { %v5639_v58 = vmul.f32 %v5630_v24, %v5609_v21 }
0x10ad   :  { %v5655_v14 = vpack.c.bf16 %v5640_v31, %v5639_v58  ;;  %v9723_v58 = vld [vmem:[%s15443_s11 + $0x18] sm:$0xff] }
0x10ae   :  { %5879 = vmatpush.bf16.msra.mxu3 %v9723_v58 }
0x10b7   :  { %9326 = vmatmul.msk.bf16.gmra.mxu2 %vm950_vm3, %v5655_v14 }
0x112a   :  { %v14111_v34 = vpop.f32.mrf.mxu2 }
0x112b   :  { %v5705_v6 = vadd.f32 %v14111_v34, %v16090_v17 }
0x112d   :  { %v5710_v25 = vadd.f32 %v5709_v13, %v5705_v6  ;;  %v9722_v6 = vld [vmem:[%s15443_s11 + $0x10] sm:$0xff] }
0x112e   :  { %5880 = vmatpush.bf16.msra.mxu3 %v9722_v6 }
0x112f   :  { %v5747_v18 = vsel %vm445_vm2, %v5710_v25, 0.0 }
0x1130   :  { %5748 = vadd.xlane.f32.xlu0 %v5747_v18 }
0x1132   :  { %v14116_v51 = vpop.f32.mrf.mxu2 }
0x1133   :  { %v5706_v28 = vadd.f32 %v14116_v51, %v16091_v47 }
0x1135   :  { %v5711_v20 = vadd.f32 %v5709_v13, %v5706_v28 }
0x1137   :  { %v5750_v45 = vsel %vm445_vm2, %v5711_v20, 0.0 }
0x1138   :  { %5751 = vadd.xlane.f32.xlu1 %v5750_v45 }
0x113a   :  { %v14121_v7 = vpop.f32.mrf.mxu2 }
0x113b   :  { %v5707_v50 = vadd.f32 %v14121_v7, %v16092_v46 }
0x113d   :  { %v5712_v36 = vadd.f32 %v5709_v13, %v5707_v50 }
0x113f   :  { %v5753_v3 = vsel %vm445_vm2, %v5712_v36, 0.0 }
0x1140   :  { %5754 = vadd.xlane.f32.xlu1 %v5753_v3 }
0x1142   :  { %v14127_v56 = vpop.f32.mrf.mxu2 }
0x1143   :  { %v5708_v39 = vadd.f32 %v14127_v56, %v16094_v35 }
0x1145   :  { %v5713_v0 = vadd.f32 %v5709_v13, %v5708_v39 }
0x1147   :  { %v5756_v43 = vsel %vm445_vm2, %v5713_v0, 0.0 }
0x11a3   :  { %v5749_v62 = vpop.xlane.xlu0 %5748 }
0x11a4   :  { %v5759_v49 = vmul.f32 %v5749_v62, %v16093_v19 }
0x11a6   :  { %v5763_v21 = vsub.f32 %v5710_v25, %v5759_v49 }
0x11a8   :  { %v5767_v11 = vmul.f32 %v5763_v21, %v5763_v21 }
0x11aa   :  { %v5771_v40 = vsel %vm445_vm2, %v5767_v11, 0.0 }
0x11ab   :  { %v5752_v27 = vpop.xlane.xlu1 %5751  ;;  %5772 = vadd.xlane.f32.xlu2 %v5771_v40 }
0x11ac   :  { %v5760_v22 = vmul.f32 %v5752_v27, %v16093_v19  ;;  %v5835_v27 = vperm.slane %v14108_v15, 2 }
0x11ae   :  { %v5764_v61 = vsub.f32 %v5711_v20, %v5760_v22 }
0x11b0   :  { %v5768_v42 = vmul.f32 %v5764_v61, %v5764_v61 }
0x11b2   :  { %v5774_v4 = vsel %vm445_vm2, %v5768_v42, 0.0 }
0x11b3   :  { %5775 = vadd.xlane.f32.xlu0 %v5774_v4  ;;  %v5755_v63 = vpop.xlane.xlu1 %5754  ;;  %5757 = vadd.xlane.f32.xlu2 %v5756_v43  ;;  %v5840_v4 = vperm.slane %v14108_v15, 3 }
0x11b4   :  { %v5761_v44 = vmul.f32 %v5755_v63, %v16093_v19 }
0x11b6   :  { %v14136_v57 = vsub.f32 %v5712_v36, %v5761_v44 }
0x11b8   :  { %v5769_v16 = vmul.f32 %v14136_v57, %v14136_v57 }
0x11ba   :  { %v5777_v30 = vsel %vm445_vm2, %v5769_v16, 0.0 }
0x11bb   :  { %5778 = vadd.xlane.f32.xlu0 %v5777_v30 }
0x11cb   :  { %5716 = vrot.lane.b32.xlu2 %v5714_v9, %s10835_s6 }
0x121e   :  { %v5773_v54 = vpop.xlane.xlu2 %5772 }
0x121f   :  { %v5783_v24 = vmul.f32 %v5773_v54, %v16093_v19 }
0x1221   :  { %v5787_v37 = vadd.f32 1e-05, %v5783_v24 }
0x1223   :  { %10574 = vrsqrt.f32 %v5787_v37  ;;  %vm5797_vm6 = vweird.f32 %v5787_v37 }
0x1226   :  { %v5776_v31 = vpop.xlane.xlu0 %5775  ;;  %v5758_v14 = vpop.xlane.xlu2 %5757 }
0x1227   :  { %v5784_v13 = vmul.f32 %v5776_v31, %v16093_v19  ;;  %v5762_v17 = vmul.f32 %v5758_v14, %v16093_v19 }
0x1229   :  { %v10575_v25 = vpop.eup %10574  ;;  %v5788_v18 = vadd.f32 1e-05, %v5784_v13  ;;  %v14152_v47 = vsub.f32 %v5713_v0, %v5762_v17 }
0x122a   :  { %v5792_v28 = vmul.f32 %v10575_v25, %v5787_v37  ;;  %vm5798_vm5 = vweird.f32 %v10575_v25 }
0x122b   :  { %10576 = vrsqrt.f32 %v5788_v18  ;;  %v5770_v20 = vmul.f32 %v14152_v47, %v14152_v47  ;;  %vm5799_vm7 = vmor %vm5797_vm6, %vm5798_vm5  ;;  %vm5807_vm9 = vweird.f32 %v5788_v18 }
0x122c   :  { %v5793_v45 = vmul.f32 %v10575_v25, %v5792_v28 }
0x122d   :  { %v5780_v46 = vsel %vm445_vm2, %v5770_v20, 0.0 }
0x122e   :  { %v5794_v50 = vmul.f32 0.5, %v5793_v45  ;;  %5781 = vadd.xlane.f32.xlu1 %v5780_v46  ;;  %v5779_v54 = vpop.xlane.xlu0 %5778  ;;  %v9726_v45 = vld [vmem:[%s15444_s12 + $0x30] sm:$0xff] }
0x1230   :  { %v5795_v36 = vsub.f32 1.5, %v5794_v50 }
0x1231   :  { %v10577_v3 = vpop.eup %10576 }
0x1232   :  { %v5796_v62 = vmul.f32 %v10575_v25, %v5795_v36  ;;  %v5802_v49 = vmul.f32 %v10577_v3, %v5788_v18  ;;  %vm5808_vm8 = vweird.f32 %v10577_v3 }
0x1233   :  { %vm5809_vm10 = vmor %vm5807_vm9, %vm5808_vm8 }
0x1234   :  { %v5803_v11 = vmul.f32 %v10577_v3, %v5802_v49  ;;  %v5800_v35 = vsel %vm5799_vm7, %v10575_v25, %v5796_v62  ;;  %v9727_v25 = vld [vmem:[%s15444_s12 + $0x38] sm:$0xff] }
0x1235   :  { %v5831_v22 = vmul.f32 %v5800_v35, %v5763_v21  ;;  %v5785_v21 = vmul.f32 %v5779_v54, %v16093_v19  ;;  %5942 = vmatpush.bf16.msrb.mxu2 %v9727_v25 }
0x1236   :  { %v5804_v39 = vmul.f32 0.5, %v5803_v11  ;;  %v9725_v11 = vld [vmem:[%s15444_s12 + $0x28] sm:$0xff] }
0x1237   :  { %v5836_v43 = vmul.f32 %v5835_v27, %v5831_v22  ;;  %v5789_v24 = vadd.f32 1e-05, %v5785_v21 }
0x1238   :  { %v5805_v40 = vsub.f32 1.5, %v5804_v39  ;;  %v9724_v39 = vld [vmem:[%s15444_s12 + $0x20] sm:$0xff] }
0x1239   :  { %v14159_v16 = vadd.f32 %v5840_v4, %v5836_v43  ;;  %10578 = vrsqrt.f32 %v5789_v24  ;;  %vm5817_vm12 = vweird.f32 %v5789_v24  ;;  %5943 = vmatpush.bf16.msrb.mxu2 %v9726_v45 }
0x123a   :  { %v5806_v0 = vmul.f32 %v10577_v3, %v5805_v40 }
0x123c   :  { %v5810_v42 = vsel %vm5809_vm10, %v10577_v3, %v5806_v0 }
0x123d   :  { %v5832_v63 = vmul.f32 %v5810_v42, %v5764_v61  ;;  %5944 = vmatpush.bf16.msrb.mxu2 %v9725_v11 }
0x123f   :  { %v5837_v44 = vmul.f32 %v5835_v27, %v5832_v63  ;;  %v10579_v37 = vpop.eup %10578 }
0x1240   :  { %v5812_v58 = vmul.f32 %v10579_v37, %v5789_v24  ;;  %vm5818_vm11 = vweird.f32 %v10579_v37 }
0x1241   :  { %v14161_v30 = vadd.f32 %v5840_v4, %v5837_v44  ;;  %vm5819_vm13 = vmor %vm5817_vm12, %vm5818_vm11  ;;  %5945 = vmatpush.bf16.msrb.mxu2 %v9724_v39  ;;  %v10274_v44 = vld [vmem:[%s15446_s14 + $0x1] ss:$0 sm:$0xff] }
0x1242   :  { %v5813_v31 = vmul.f32 %v10579_v37, %v5812_v58 }
0x1243   :  { %v5845_v9 = vpack.c.bf16 %v14161_v30, %v14159_v16 }
0x1244   :  { %v5814_v17 = vmul.f32 0.5, %v5813_v31 }
0x1245   :  { %9339 = vmatmul.msk.bf16.vlgmr.msra.gmra.mxu3 %vm445_vm2, %v5845_v9 }
0x1246   :  { %v5815_v6 = vsub.f32 1.5, %v5814_v17  ;;  %v5907_v17 = vperm.slane %v14108_v15, 4 }
0x1248   :  { %v5816_v28 = vmul.f32 %v10579_v37, %v5815_v6 }
0x124a   :  { %v5820_v50 = vsel %vm5819_vm13, %v10579_v37, %v5816_v28 }
0x124b   :  { %v5833_v62 = vmul.f32 %v5820_v50, %v14136_v57  ;;  %v5717_v50 = vpop.permute.xlu2 %5716 }
0x124d   :  { %v5838_v22 = vmul.f32 %v5835_v27, %v5833_v62 }
0x124f   :  { %v14182_v42 = vadd.f32 %v5840_v4, %v5838_v22 }
0x12a1   :  { %v5782_v14 = vpop.xlane.xlu1 %5781 }
0x12a2   :  { %v5786_v61 = vmul.f32 %v5782_v14, %v16093_v19 }
0x12a4   :  { %v5790_v13 = vadd.f32 1e-05, %v5786_v61 }
0x12a6   :  { %10580 = vrsqrt.f32 %v5790_v13  ;;  %vm5827_vm15 = vweird.f32 %v5790_v13 }
0x12ac   :  { %v10581_v18 = vpop.eup %10580 }
0x12ad   :  { %v5822_v20 = vmul.f32 %v10581_v18, %v5790_v13  ;;  %vm5828_vm14 = vweird.f32 %v10581_v18 }
0x12ae   :  { %vm5829_vm4 = vmor %vm5827_vm15, %vm5828_vm14 }
0x12af   :  { %v5823_v46 = vmul.f32 %v10581_v18, %v5822_v20 }
0x12b1   :  { %v5824_v36 = vmul.f32 0.5, %v5823_v46 }
0x12b3   :  { %v5825_v3 = vsub.f32 1.5, %v5824_v36 }
0x12b5   :  { %v5826_v49 = vmul.f32 %v10581_v18, %v5825_v3  ;;  %v5719_v3 = vadd.f32 %v5717_v50, %v14111_v34 }
0x12b7   :  { %v5830_v35 = vsel %vm5829_vm4, %v10581_v18, %v5826_v49  ;;  %10582 = vtanh.f32 %v5719_v3  ;;  %v5720_v49 = vadd.f32 %v5717_v50, %v14116_v51  ;;  %v9733_v3 = vld [vmem:[%s15440_s8 + $0xa4] sm:$0xf0] }
0x12b8   :  { %v5834_v40 = vmul.f32 %v5830_v35, %v14152_v47 }
0x12b9   :  { %10584 = vtanh.f32 %v5720_v49 }
0x12ba   :  { %v5839_v0 = vmul.f32 %v5835_v27, %v5834_v40 }
0x12bc   :  { %v5844_v57 = vadd.f32 %v5840_v4, %v5839_v0 }
0x12bd   :  { %v10583_v62 = vpop.eup %10582 }
0x12be   :  { %v5846_v43 = vpack.c.bf16 %v5844_v57, %v14182_v42 }
0x12c0   :  { %9340 = vmatmul.msk.bf16.gmra.mxu3 %vm445_vm2, %v5846_v43 }
0x12c8   :  { %v5882_v63 = vpop.f32.mrf.mxu3 }
0x12c9   :  { %v5883_v9 = vadd.f32 %v10274_v44, %v5882_v63 }
0x12cb   :  { %v5892_v24 = vmax.f32 %v5883_v9, 0.0 }
0x12d0   :  { %v5884_v54 = vpop.f32.mrf.mxu3 }
0x12d1   :  { %v5885_v21 = vadd.f32 %v10274_v44, %v5884_v54 }
0x12d3   :  { %v5893_v47 = vmax.f32 %v5885_v21, 0.0 }
0x12d5   :  { %v5896_v37 = vpack.c.bf16 %v5893_v47, %v5892_v24  ;;  %v5722_v24 = vadd.f32 %v5717_v50, %v14127_v56  ;;  %v5721_v47 = vadd.f32 %v5717_v50, %v14121_v7 }
0x12d7   :  { %9365 = vmatmul.msk.bf16.vlgmr.msrb.gmra.mxu2 %vm950_vm3, %v5896_v37  ;;  %10586 = vtanh.f32 %v5722_v24  ;;  %v9729_v24 = vld [vmem:[%s15440_s8 + $0x84] sm:$0xf0] }
0x12d8   :  { %10588 = vtanh.f32 %v5721_v47 }
0x1343   :  { %v5887_v27 = vpop.f32.mrf.mxu3 }
0x1344   :  { %v5888_v58 = vadd.f32 %v10274_v44, %v5887_v27 }
0x1346   :  { %v5894_v14 = vmax.f32 %v5888_v58, 0.0  ;;  %v16095_v58 = vld [vmem:[#allocation6_spill] sm:$0xff] }
0x134b   :  { %v5889_v4 = vpop.f32.mrf.mxu3 }
0x134c   :  { %v5890_v31 = vadd.f32 %v10274_v44, %v5889_v4 }
0x134e   :  { %v5895_v61 = vmax.f32 %v5890_v31, 0.0 }
0x1350   :  { %v5897_v13 = vpack.c.bf16 %v5895_v61, %v5894_v14 }
0x1352   :  { %9366 = vmatmul.msk.bf16.gmra.mxu2 %vm950_vm3, %v5897_v13 }
0x135a   :  { %v5947_v6 = vpop.f32.mrf.mxu2 }
0x135b   :  { %v5948_v25 = vadd.f32 %v5947_v6, %v5907_v17 }
0x135d   :  { %v5957_v18 = vadd.f32 %v5948_v25, %v14159_v16  ;;  %v10585_v16 = vpop.eup %10584 }
0x135e   :  { %v10587_v14 = vpop.eup %10586 }
0x135f   :  { %v5961_v28 = vsel %vm445_vm2, %v5957_v18, 0.0  ;;  %v10589_v56 = vpop.eup %10588 }
0x1360   :  { %5962 = vadd.xlane.f32.xlu0 %v5961_v28  ;;  %v9401_v28 = vld [vmem:[%s15440_s8 + $0xb0] sm:$0xf] }
0x1362   :  { %v5949_v20 = vpop.f32.mrf.mxu2 }
0x1363   :  { %v5950_v45 = vadd.f32 %v5949_v20, %v5907_v17  ;;  %v9735_v20 = vld [vmem:[%s15440_s8 + $0xb4] sm:$0xf0] }
0x1365   :  { %v5958_v46 = vadd.f32 %v5950_v45, %v14161_v30  ;;  %v9403_v45 = vld [vmem:[%s15440_s8 + $0xb8] sm:$0xf0] }
0x1367   :  { %v5964_v36 = vsel %vm445_vm2, %v5958_v46, 0.0 }
0x1368   :  { %5965 = vadd.xlane.f32.xlu1 %v5964_v36  ;;  %v9393_v36 = vld [vmem:[%s15440_s8 + $0xa0] sm:$0xf] }
0x1369   :  { %v9394_v49 = vor.u32 %v9733_v3, %v9393_v36  ;;  %v10805_v36 = vld [vmem:[%s15737_s29 + $0x10] sm:$0xff] }
0x1374   :  { %5731 = vrot.lane.b32.xlu0 %v10583_v62, %s10839_s9  ;;  %v9732_v62 = vld [vmem:[%s15440_s8 + $0xa4] sm:$0xf] }
0x1381   :  { %5733 = vrot.lane.b32.xlu1 %v10585_v16, %s10839_s9  ;;  %v9395_v16 = vld [vmem:[%s15440_s8 + $0xa8] sm:$0xf0] }
0x13d3   :  { %v5963_v11 = vpop.xlane.xlu0 %5962 }
0x13d4   :  { %v5973_v35 = vmul.f32 %v5963_v11, %v16093_v19  ;;  %v9385_v11 = vld [vmem:[%s15440_s8 + $0x90] sm:$0xf] }
0x13d5   :  { %v5952_v30 = vpop.f32.mrf.mxu2 }
0x13d6   :  { %v14201_v39 = vsub.f32 %v5957_v18, %v5973_v35  ;;  %v5953_v7 = vadd.f32 %v5952_v30, %v5907_v17  ;;  %v9731_v35 = vld [vmem:[%s15440_s8 + $0x94] sm:$0xf0] }
0x13d8   :  { %v5981_v40 = vmul.f32 %v14201_v39, %v14201_v39  ;;  %v14227_v13 = vadd.f32 %v5953_v7, %v14182_v42  ;;  %v9734_v42 = vld [vmem:[%s15440_s8 + $0xb4] sm:$0xf] }
0x13d9   :  { %v9406_v50 = vor.u32 %v9734_v42, %v9403_v45  ;;  %v16099_v42 = vld [vmem:[#allocation49_spill] sm:$0xff] }
0x13da   :  { %v5985_v34 = vsel %vm445_vm2, %v5981_v40, 0.0  ;;  %v5967_v6 = vsel %vm445_vm2, %v14227_v13, 0.0 }
0x13db   :  { %5986 = vadd.xlane.f32.xlu2 %v5985_v34  ;;  %v5966_v22 = vpop.xlane.xlu1 %5965  ;;  %6159 = vmatpush.bf16.msra.mxu2 %v9406_v50  ;;  %v9398_v34 = vor.u32 %v9732_v62, %v9395_v16 }
0x13dc   :  { %v5974_v0 = vmul.f32 %v5966_v22, %v16093_v19  ;;  %v9730_v22 = vld [vmem:[%s15440_s8 + $0x94] sm:$0xf] }
0x13dd   :  { %v5954_v51 = vpop.f32.mrf.mxu2 }
0x13de   :  { %v14207_v43 = vsub.f32 %v5958_v46, %v5974_v0  ;;  %v5955_v63 = vadd.f32 %v5954_v51, %v5907_v17  ;;  %v9402_v17 = vor.u32 %v9735_v20, %v9401_v28  ;;  %v9387_v0 = vld [vmem:[%s15440_s8 + $0x98] sm:$0xf0] }
0x13df   :  { %6160 = vmatpush.bf16.msra.mxu2 %v9398_v34  ;;  %v10804_v28 = vld [vmem:[%s15737_s29 + $0x18] sm:$0xff]  ;;  %v16100_v34 = vld [vmem:[#allocation5_spill] sm:$0xff] }
0x13e0   :  { %v5960_v44 = vadd.f32 %v5955_v63, %v5844_v57  ;;  %v5982_v9 = vmul.f32 %v14207_v43, %v14207_v43  ;;  %v16097_v57 = vld [vmem:[#allocation7_spill] sm:$0xff]  ;;  %6140 = vmatpush.bf16.msrb.mxu3 %v9402_v17 }
0x13e2   :  { %v5970_v54 = vsel %vm445_vm2, %v5960_v44, 0.0  ;;  %v5988_v21 = vsel %vm445_vm2, %v5982_v9, 0.0  ;;  %v9386_v9 = vor.u32 %v9731_v35, %v9385_v11  ;;  %v10806_v11 = vld [vmem:[%s15737_s29 + $0x8] sm:$0xff]  ;;  %v14298_v35 = vperm.slane %v14108_v15, 5 }
0x13e3   :  { %5971 = vadd.xlane.f32.xlu2 %v5970_v54  ;;  %5989 = vadd.xlane.f32.xlu0 %v5988_v21  ;;  %v9390_v54 = vor.u32 %v9730_v22, %v9387_v0  ;;  %v9377_v21 = vld [vmem:[%s15440_s8 + $0x80] sm:$0xf] }
0x13e4   :  { %6141 = vmatpush.bf16.msrb.mxu3 %v9394_v49  ;;  %v16102_v0 = vld [vmem:[#allocation12_spill] sm:$0xff] }
0x13e5   :  { %6161 = vmatpush.bf16.msra.mxu2 %v9390_v54 }
0x13e6   :  { %v5732_v37 = vpop.permute.xlu0 %5731 }
0x13e7   :  { %v14216_v4 = vadd.f32 %v5732_v37, %v16095_v58  ;;  %v9728_v58 = vld [vmem:[%s15440_s8 + $0x84] sm:$0xf] }
0x13e8   :  { %6142 = vmatpush.bf16.msrb.mxu3 %v9386_v9 }
0x13e9   :  { %16096 = vst [vmem:[#allocation16_spill] sm:$0xff] %v14216_v4 }
0x13f3   :  { %v5734_v27 = vpop.permute.xlu1 %5733 }
0x13f4   :  { %v14219_v31 = vadd.f32 %v5734_v27, %v16097_v57  ;;  %v9379_v57 = vld [vmem:[%s15440_s8 + $0x88] sm:$0xf0] }
0x13f6   :  { %16098 = vst [vmem:[#allocation30_spill] sm:$0xff] %v14219_v31  ;;  %v10103_v61 = vpack.i.bf16 %v14219_v31, %v14216_v4 }
0x13f7   :  { %5737 = vrot.lane.b32.xlu0 %v10587_v14, %s10839_s9 }
0x13f8   :  { %10104 = vrot.lane.b32.xlu1 %v10103_v61, %s10835_s6 }
0x13fb   :  { %5735 = vrot.lane.b32.xlu2 %v10589_v56, %s10839_s9  ;;  %v9378_v56 = vor.u32 %v9729_v24, %v9377_v21  ;;  %v10807_v21 = vld [vmem:[%s15737_s29] sm:$0xff] }
0x13fd   :  { %6143 = vmatpush.bf16.msrb.mxu3 %v9378_v56 }
0x1401   :  { %6542 = vmatpush.bf16.msra.mxu3 %v10804_v28 }
0x1405   :  { %6543 = vmatpush.bf16.msra.mxu3 %v10805_v36 }
0x1409   :  { %6544 = vmatpush.bf16.msra.mxu3 %v10806_v11 }
0x140d   :  { %6545 = vmatpush.bf16.msra.mxu3 %v10807_v21 }
0x1422   :  { %5968 = vadd.xlane.f32.xlu1 %v5967_v6  ;;  %v9382_v6 = vor.u32 %v9728_v58, %v9379_v57 }
0x1424   :  { %6162 = vmatpush.bf16.msra.mxu2 %v9382_v6 }
0x1428   :  { %7226 = vmatpush.bf16.msrb.mxu2 %v16099_v42 }
0x144e   :  { %v5987_v25 = vpop.xlane.xlu2 %5986 }
0x144f   :  { %v5997_v18 = vmul.f32 %v5987_v25, %v16093_v19 }
0x1451   :  { %v6001_v46 = vadd.f32 1e-05, %v5997_v18 }
0x1453   :  { %10590 = vrsqrt.f32 %v6001_v46  ;;  %vm6011_vm6 = vweird.f32 %v6001_v46 }
0x1456   :  { %v5990_v30 = vpop.xlane.xlu0 %5989  ;;  %v5972_v40 = vpop.xlane.xlu2 %5971 }
0x1457   :  { %v5998_v51 = vmul.f32 %v5990_v30, %v16093_v19  ;;  %v5976_v63 = vmul.f32 %v5972_v40, %v16093_v19 }
0x1459   :  { %v10591_v47 = vpop.eup %10590  ;;  %v6002_v37 = vadd.f32 1e-05, %v5998_v51  ;;  %v14276_v27 = vsub.f32 %v5960_v44, %v5976_v63 }
0x145a   :  { %v6006_v14 = vmul.f32 %v10591_v47, %v6001_v46  ;;  %vm6012_vm5 = vweird.f32 %v10591_v47 }
0x145b   :  { %10592 = vrsqrt.f32 %v6002_v37  ;;  %v5984_v61 = vmul.f32 %v14276_v27, %v14276_v27  ;;  %vm6013_vm7 = vmor %vm6011_vm6, %vm6012_vm5  ;;  %vm6021_vm9 = vweird.f32 %v6002_v37 }
0x145c   :  { %v6007_v7 = vmul.f32 %v10591_v47, %v6006_v14 }
0x145d   :  { %v5994_v44 = vsel %vm445_vm2, %v5984_v61, 0.0 }
0x145e   :  { %v6008_v25 = vmul.f32 0.5, %v6007_v7  ;;  %5995 = vadd.xlane.f32.xlu0 %v5994_v44  ;;  %v5736_v49 = vpop.permute.xlu2 %5735 }
0x145f   :  { %v14302_v22 = vadd.f32 %v5736_v49, %v16100_v34 }
0x1460   :  { %v6009_v18 = vsub.f32 1.5, %v6008_v25 }
0x1461   :  { %v10593_v20 = vpop.eup %10592  ;;  %16101 = vst [vmem:[#allocation17_spill] sm:$0xff] %v14302_v22 }
0x1462   :  { %v6010_v17 = vmul.f32 %v10591_v47, %v6009_v18  ;;  %v6016_v45 = vmul.f32 %v10593_v20, %v6002_v37  ;;  %vm6022_vm8 = vweird.f32 %v10593_v20 }
0x1463   :  { %vm6023_vm10 = vmor %vm6021_vm9, %vm6022_vm8 }
0x1464   :  { %v6017_v50 = vmul.f32 %v10593_v20, %v6016_v45  ;;  %v6014_v3 = vsel %vm6013_vm7, %v10591_v47, %v6010_v17  ;;  %v6054_v47 = vperm.slane %v14108_v15, 6 }
0x1465   :  { %v6045_v46 = vmul.f32 %v6014_v3, %v14201_v39 }
0x1466   :  { %v6018_v62 = vmul.f32 0.5, %v6017_v50 }
0x1467   :  { %v6050_v39 = vmul.f32 %v14298_v35, %v6045_v46 }
0x1468   :  { %v6019_v16 = vsub.f32 1.5, %v6018_v62 }
0x1469   :  { %v5738_v30 = vpop.permute.xlu0 %5737  ;;  %v14317_v14 = vadd.f32 %v6054_v47, %v6050_v39 }
0x146a   :  { %v6020_v40 = vmul.f32 %v10593_v20, %v6019_v16  ;;  %v14305_v51 = vadd.f32 %v5738_v30, %v16102_v0  ;;  %v10105_v54 = vpop.permute.xlu1 %10104 }
0x146b   :  { %v10106_v58 = vunpack.i.l.bf16 %v10105_v54  ;;  %v10107_v57 = vunpack.i.h.bf16 %v10105_v54  ;;  %16104 = vst [vmem:[#allocation18_spill] sm:$0xff] %v14317_v14 }
0x146c   :  { %16103 = vst [vmem:[#allocation33_spill] sm:$0xff] %v14305_v51  ;;  %v6024_v63 = vsel %vm6023_vm10, %v10593_v20, %v6020_v40  ;;  %v10108_v9 = vpack.i.bf16 %v14305_v51, %v14302_v22 }
0x146d   :  { %v6046_v24 = vmul.f32 %v6024_v63, %v14207_v43  ;;  %v6075_v56 = vsel %vm445_vm2, %v14317_v14, %v10106_v58 }
0x146e   :  { %10109 = vrot.lane.b32.xlu2 %v10108_v9, %s10835_s6 }
0x146f   :  { %v6051_v37 = vmul.f32 %v14298_v35, %v6046_v24 }
0x1471   :  { %v14319_v61 = vadd.f32 %v6054_v47, %v6051_v37 }
0x1473   :  { %16105 = vst [vmem:[#allocation36_spill] sm:$0xff] %v14319_v61  ;;  %v6076_v7 = vsel %vm445_vm2, %v14319_v61, %v10107_v57  ;;  %v16203_v61 = vld [vmem:[#allocation190_spill] sm:$0xff] }
0x1474   :  { %v6079_v6 = vpack.c.bf16 %v6076_v7, %v6075_v56 }
0x1476   :  { %9407 = vmatmul.msk.bf16.vlgmr.msrb.gmra.mxu3 %vm950_vm3, %v6079_v6  ;;  %9409 = vmatmul.msk.bf16.vlgmr.msra.gmra.mxu2 %vm950_vm3, %v6079_v6 }
0x1495   :  { %v5969_v15 = vpop.xlane.xlu1 %5968 }
0x1496   :  { %v5975_v43 = vmul.f32 %v5969_v15, %v16093_v19 }
0x1498   :  { %v5979_v44 = vsub.f32 %v14227_v13, %v5975_v43 }
0x149a   :  { %v5983_v25 = vmul.f32 %v5979_v44, %v5979_v44 }
0x149c   :  { %v5991_v18 = vsel %vm445_vm2, %v5983_v25, 0.0 }
0x149d   :  { %5992 = vadd.xlane.f32.xlu1 %v5991_v18 }
0x14c8   :  { %v10110_v58 = vpop.permute.xlu2 %10109 }
0x14c9   :  { %v10112_v7 = vunpack.i.h.bf16 %v10110_v58  ;;  %v10111_v6 = vunpack.i.l.bf16 %v10110_v58 }
0x14d1   :  { %v5996_v28 = vpop.xlane.xlu0 %5995 }
0x14d2   :  { %v6000_v20 = vmul.f32 %v5996_v28, %v16093_v19 }
0x14d4   :  { %v6004_v17 = vadd.f32 1e-05, %v6000_v20  ;;  %v16108_v20 = vld [vmem:[#allocation134_spill] sm:$0xff] }
0x14d6   :  { %10594 = vrsqrt.f32 %v6004_v17  ;;  %vm6041_vm12 = vweird.f32 %v6004_v17 }
0x14dc   :  { %v10595_v13 = vpop.eup %10594 }
0x14dd   :  { %v6036_v50 = vmul.f32 %v10595_v13, %v6004_v17  ;;  %vm6042_vm11 = vweird.f32 %v10595_v13 }
0x14de   :  { %vm6043_vm13 = vmor %vm6041_vm12, %vm6042_vm11 }
0x14df   :  { %v6037_v36 = vmul.f32 %v10595_v13, %v6036_v50 }
0x14e1   :  { %v6038_v49 = vmul.f32 0.5, %v6037_v36 }
0x14e3   :  { %v6039_v11 = vsub.f32 1.5, %v6038_v49 }
0x14e5   :  { %v6040_v46 = vmul.f32 %v10595_v13, %v6039_v11  ;;  %v16110_v11 = vld [vmem:[#allocation136_spill] sm:$0xff] }
0x14e7   :  { %v6044_v34 = vsel %vm6043_vm13, %v10595_v13, %v6040_v46  ;;  %v16109_v13 = vld [vmem:[#allocation135_spill] sm:$0xff] }
0x14e8   :  { %v6048_v9 = vmul.f32 %v6044_v34, %v14276_v27 }
0x14ea   :  { %v6053_v39 = vmul.f32 %v14298_v35, %v6048_v9 }
0x14ec   :  { %v14343_v56 = vadd.f32 %v6054_v47, %v6053_v39 }
0x14ee   :  { %16106 = vst [vmem:[#allocation39_spill] sm:$0xff] %v14343_v56  ;;  %v6078_v43 = vsel %vm445_vm2, %v14343_v56, %v10112_v7 }
0x14f9   :  { %v14331_v42 = vpop.f32.mrf.mxu3 }
0x14fa   :  { %6270 = vrot.lane.b32.xlu1 %v14331_v42, %s10837_s27 }
0x1501   :  { %v14335_v45 = vpop.f32.mrf.mxu3 }
0x1502   :  { %6272 = vrot.lane.b32.xlu2 %v14335_v45, %s10837_s27 }
0x1510   :  { %v5993_v3 = vpop.xlane.xlu1 %5992 }
0x1511   :  { %v5999_v62 = vmul.f32 %v5993_v3, %v16093_v19  ;;  %v6178_v3 = vrot.slane %v14331_v42, 1 }
0x1513   :  { %v6003_v16 = vadd.f32 1e-05, %v5999_v62  ;;  %v6207_v62 = vperm.slane %v6178_v3, 0 }
0x1515   :  { %10596 = vrsqrt.f32 %v6003_v16  ;;  %vm6031_vm15 = vweird.f32 %v6003_v16 }
0x151b   :  { %v10597_v30 = vpop.eup %10596 }
0x151c   :  { %v6026_v40 = vmul.f32 %v10597_v30, %v6003_v16  ;;  %vm6032_vm14 = vweird.f32 %v10597_v30 }
0x151d   :  { %vm6033_vm4 = vmor %vm6031_vm15, %vm6032_vm14 }
0x151e   :  { %v6027_v0 = vmul.f32 %v10597_v30, %v6026_v40 }
0x1520   :  { %v6028_v63 = vmul.f32 0.5, %v6027_v0  ;;  %v6179_v0 = vrot.slane %v14331_v42, 2 }
0x1522   :  { %v6029_v54 = vsub.f32 1.5, %v6028_v63  ;;  %v6208_v63 = vperm.slane %v6179_v0, 0 }
0x1524   :  { %v6030_v21 = vmul.f32 %v10597_v30, %v6029_v54 }
0x1526   :  { %v6034_v24 = vsel %vm6033_vm4, %v10597_v30, %v6030_v21  ;;  %v16111_v30 = vld [vmem:[#allocation137_spill] sm:$0xff]  ;;  %v16112_v21 = vld [vmem:[#allocation138_spill] sm:$0xff] }
0x1527   :  { %v6047_v37 = vmul.f32 %v6034_v24, %v5979_v44  ;;  %v16113_v24 = vld [vmem:[#allocation139_spill] sm:$0xff] }
0x1529   :  { %v6052_v57 = vmul.f32 %v14298_v35, %v6047_v37  ;;  %v6206_v35 = vperm.slane %v14331_v42, 0 }
0x152b   :  { %v14345_v15 = vadd.f32 %v6054_v47, %v6052_v57  ;;  %v6180_v57 = vrot.slane %v14331_v42, 3 }
0x152d   :  { %16107 = vst [vmem:[#allocation19_spill] sm:$0xff] %v14345_v15  ;;  %v6077_v27 = vsel %vm445_vm2, %v14345_v15, %v10111_v6  ;;  %v6209_v7 = vperm.slane %v6180_v57, 0 }
0x152e   :  { %v6080_v25 = vpack.c.bf16 %v6078_v43, %v6077_v27  ;;  %v16114_v43 = vld [vmem:[#allocation140_spill] sm:$0xff] }
0x1530   :  { %9408 = vmatmul.msk.bf16.gmra.mxu3 %vm950_vm3, %v6080_v25  ;;  %9410 = vmatmul.msk.bf16.gmra.mxu2 %vm950_vm3, %v6080_v25 }
0x155c   :  { %v14353_v44 = vpop.permute.xlu2 %6272 }
0x155d   :  { %v6283_v18 = vmul.f32 %v14353_v44, %v6206_v35  ;;  %v6285_v16 = vmul.f32 %v14353_v44, %v6207_v62  ;;  %v6287_v54 = vmul.f32 %v14353_v44, %v6208_v63  ;;  %v6289_v27 = vmul.f32 %v14353_v44, %v6209_v7 }
0x155f   :  { %v6347_v50 = vmul.f32 %v6283_v18, %v16109_v13  ;;  %v6349_v40 = vmul.f32 %v6285_v16, %v16111_v30  ;;  %v6351_v37 = vmul.f32 %v6287_v54, %v16113_v24  ;;  %v16119_v54 = vld [vmem:[#allocation145_spill] sm:$0xff]  ;;  %v6183_v24 = vrot.slane %v14331_v42, 6 }
0x156c   :  { %v14357_v28 = vpop.permute.xlu1 %6270 }
0x156d   :  { %v6282_v47 = vmul.f32 %v14357_v28, %v6206_v35  ;;  %v6284_v49 = vmul.f32 %v14357_v28, %v6207_v62  ;;  %v6286_v9 = vmul.f32 %v14357_v28, %v6208_v63  ;;  %v6288_v6 = vmul.f32 %v14357_v28, %v6209_v7  ;;  %v16115_v35 = vld [vmem:[#allocation141_spill] sm:$0xff]  ;;  %v16117_v62 = vld [vmem:[#allocation143_spill] sm:$0xff]  ;;  %v16118_v63 = vld [vmem:[#allocation144_spill] sm:$0xff] }
0x156e   :  { %v6353_v18 = vmul.f32 %v6289_v27, %v16115_v35  ;;  %v16120_v7 = vld [vmem:[#allocation146_spill] sm:$0xff]  ;;  %v16121_v27 = vld [vmem:[#allocation147_spill] sm:$0xff]  ;;  %v6184_v35 = vrot.slane %v14331_v42, 7 }
0x156f   :  { %v6346_v17 = vmul.f32 %v6282_v47, %v16108_v20  ;;  %v6348_v46 = vmul.f32 %v6284_v49, %v16110_v11  ;;  %v6350_v39 = vmul.f32 %v6286_v9, %v16112_v21  ;;  %v6352_v25 = vmul.f32 %v6288_v6, %v16114_v43 }
0x1570   :  { %v6181_v20 = vrot.slane %v14331_v42, 4 }
0x1571   :  { %v6410_v36 = vpack.c.bf16 %v6347_v50, %v6346_v17  ;;  %v6411_v34 = vpack.c.bf16 %v6349_v40, %v6348_v46  ;;  %v6412_v58 = vpack.c.bf16 %v6351_v37, %v6350_v39  ;;  %v6413_v47 = vpack.c.bf16 %v6353_v18, %v6352_v25 }
0x1572   :  { %v6210_v17 = vperm.slane %v6181_v20, 0  ;;  %v6182_v46 = vrot.slane %v14331_v42, 5  ;;  %v6212_v37 = vperm.slane %v6183_v24, 0  ;;  %v6213_v18 = vperm.slane %v6184_v35, 0 }
0x1573   :  { %9411 = vmatmul.msk.bf16.vlgmr.msra.gmra.mxu3 %vm950_vm3, %v6410_v36  ;;  %v16116_v36 = vld [vmem:[#allocation142_spill] sm:$0xff] }
0x1574   :  { %v6290_v13 = vmul.f32 %v14357_v28, %v6210_v17  ;;  %v6291_v50 = vmul.f32 %v14353_v44, %v6210_v17  ;;  %v6211_v30 = vperm.slane %v6182_v46, 0  ;;  %v6295_v57 = vmul.f32 %v14353_v44, %v6212_v37  ;;  %v16122_v17 = vld [vmem:[#allocation148_spill] sm:$0xff]  ;;  %v16124_v46 = vld [vmem:[#allocation150_spill] sm:$0xff] }
0x1575   :  { %v6297_v20 = vmul.f32 %v14353_v44, %v6213_v18 }
0x1576   :  { %v6354_v3 = vmul.f32 %v6290_v13, %v16116_v36  ;;  %v6355_v49 = vmul.f32 %v6291_v50, %v16117_v62  ;;  %v6292_v40 = vmul.f32 %v14357_v28, %v6211_v30  ;;  %v6293_v0 = vmul.f32 %v14353_v44, %v6211_v30  ;;  %v16123_v50 = vld [vmem:[#allocation149_spill] sm:$0xff]  ;;  %v16125_v30 = vld [vmem:[#allocation151_spill] sm:$0xff] }
0x1577   :  { %v6359_v43 = vmul.f32 %v6295_v57, %v16121_v27  ;;  %v6361_v36 = vmul.f32 %v6297_v20, %v16123_v50  ;;  %v6214_v62 = vperm.slane %v14335_v45, 0  ;;  %v6186_v20 = vrot.slane %v14335_v45, 2 }
0x1578   :  { %v6414_v16 = vpack.c.bf16 %v6355_v49, %v6354_v3  ;;  %v6356_v9 = vmul.f32 %v6292_v40, %v16118_v63  ;;  %v6357_v21 = vmul.f32 %v6293_v0, %v16119_v54  ;;  %v6185_v63 = vrot.slane %v14335_v45, 1 }
0x1579   :  { %v6298_v49 = vmul.f32 %v14357_v28, %v6214_v62  ;;  %v6216_v50 = vperm.slane %v6186_v20, 0 }
0x157a   :  { %v6415_v39 = vpack.c.bf16 %v6357_v21, %v6356_v9  ;;  %v6215_v21 = vperm.slane %v6185_v63, 0  ;;  %v16129_v63 = vld [vmem:[#allocation51_spill] sm:$0xff] }
0x157b   :  { %v6362_v42 = vmul.f32 %v6298_v49, %v16124_v46 }
0x1583   :  { %9412 = vmatmul.msk.bf16.gmra.mxu3 %vm950_vm3, %v6411_v34 }
0x1593   :  { %9413 = vmatmul.msk.bf16.gmra.mxu3 %vm950_vm3, %v6412_v58  ;;  %v6294_v58 = vmul.f32 %v14357_v28, %v6212_v37  ;;  %v6301_v37 = vmul.f32 %v14353_v44, %v6215_v21 }
0x1595   :  { %v6358_v6 = vmul.f32 %v6294_v58, %v16120_v7  ;;  %v16126_v58 = vld [vmem:[#allocation152_spill] sm:$0xff] }
0x1597   :  { %v6416_v25 = vpack.c.bf16 %v6359_v43, %v6358_v6  ;;  %v16127_v43 = vld [vmem:[#allocation153_spill] sm:$0xff] }
0x15a3   :  { %9414 = vmatmul.msk.bf16.gmra.mxu3 %vm950_vm3, %v6413_v47  ;;  %v6296_v47 = vmul.f32 %v14357_v28, %v6213_v18 }
0x15a5   :  { %v6360_v13 = vmul.f32 %v6296_v47, %v16122_v17 }
0x15a7   :  { %v6417_v3 = vpack.c.bf16 %v6361_v36, %v6360_v13 }
0x15b3   :  { %v14386_v11 = vpop.f32.mrf.mxu3  ;;  %9415 = vmatmul.msk.bf16.gmra.mxu3 %vm950_vm3, %v6414_v16  ;;  %v6299_v16 = vmul.f32 %v14353_v44, %v6214_v62 }
0x15b4   :  { %6274 = vrot.lane.b32.xlu2 %v14386_v11, %s10837_s27  ;;  %v6195_v62 = vrot.slane %v14386_v11, 4  ;;  %v6196_v49 = vrot.slane %v14386_v11, 5 }
0x15b5   :  { %v6363_v40 = vmul.f32 %v6299_v16, %v16125_v30  ;;  %v6197_v16 = vrot.slane %v14386_v11, 6  ;;  %v6303_v30 = vmul.f32 %v14353_v44, %v6216_v50 }
0x15b7   :  { %v6418_v0 = vpack.c.bf16 %v6363_v40, %v6362_v42  ;;  %v16128_v40 = vld [vmem:[#allocation50_spill] sm:$0xff] }
0x15bb   :  { %v14393_v34 = vpop.f32.mrf.mxu3 }
0x15bc   :  { %6276 = vrot.lane.b32.xlu2 %v14393_v34, %s10837_s27 }
0x15c3   :  { %9416 = vmatmul.msk.bf16.gmra.mxu3 %vm950_vm3, %v6415_v39  ;;  %v6300_v39 = vmul.f32 %v14357_v28, %v6215_v21 }
0x15c5   :  { %v6364_v57 = vmul.f32 %v6300_v39, %v16126_v58  ;;  %v6198_v39 = vrot.slane %v14386_v11, 7 }
0x15d3   :  { %9417 = vmatmul.msk.bf16.gmra.mxu3 %vm950_vm3, %v6416_v25  ;;  %v6365_v25 = vmul.f32 %v6301_v37, %v16127_v43 }
0x15d5   :  { %v6419_v18 = vpack.c.bf16 %v6365_v25, %v6364_v57  ;;  %v6226_v57 = vperm.slane %v6195_v62, 0  ;;  %v16131_v25 = vld [vmem:[#allocation155_spill] sm:$0xff] }
0x15e3   :  { %9418 = vmatmul.msk.bf16.gmra.mxu3 %vm950_vm3, %v6417_v3  ;;  %v6302_v3 = vmul.f32 %v14357_v28, %v6216_v50  ;;  %v6229_v50 = vperm.slane %v6198_v39, 0 }
0x15f3   :  { %9419 = vmatmul.msk.bf16.gmra.mxu3 %vm950_vm3, %v6418_v0 }
0x15f6   :  { %v6547_v9 = vpop.f32.mrf.mxu3 }
0x15f7   :  { %v6707_v54 = vmul.f32 0.35355338, %v6547_v9 }
0x15f9   :  { %v9443_v24 = vclamps-f32 %v6707_v54, 5.0  ;;  %v16130_v54 = vld [vmem:[#allocation154_spill] sm:$0xff] }
0x15fa   :  { %v6366_v21 = vmul.f32 %v6302_v3, %v16130_v54  ;;  %v6187_v3 = vrot.slane %v14335_v45, 3 }
0x15fb   :  { %v6899_v6 = vmul.f32 1.442695, %v9443_v24 }
0x15fd   :  { %10598 = vpow2.f32 %v6899_v6  ;;  %v6228_v6 = vperm.slane %v6197_v16, 0 }
0x15fe   :  { %v6549_v7 = vpop.f32.mrf.mxu3 }
0x15ff   :  { %v6708_v27 = vmul.f32 0.35355338, %v6549_v7  ;;  %v6227_v7 = vperm.slane %v6196_v49, 0 }
0x1601   :  { %v9444_v35 = vclamps-f32 %v6708_v27, 5.0 }
0x1603   :  { %v6901_v47 = vmul.f32 1.442695, %v9444_v35  ;;  %9420 = vmatmul.msk.bf16.gmra.mxu3 %vm950_vm3, %v6419_v18  ;;  %v10599_v36 = vpop.eup %10598  ;;  %v6367_v35 = vmul.f32 %v6303_v30, %v16131_v25  ;;  %v16135_v25 = vld [vmem:[#allocation175_spill] sm:$0xff] }
0x1604   :  { %v7027_v0 = vmul.f32 %v10599_v36, %v16128_v40 }
0x1605   :  { %10600 = vpow2.f32 %v6901_v47 }
0x1606   :  { %v6552_v17 = vpop.f32.mrf.mxu3 }
0x1607   :  { %v6709_v13 = vmul.f32 0.35355338, %v6552_v17 }
0x1609   :  { %v9445_v42 = vclamps-f32 %v6709_v13, 5.0  ;;  %v6420_v13 = vpack.c.bf16 %v6367_v35, %v6366_v21  ;;  %v16132_v21 = vld [vmem:[#allocation172_spill] sm:$0xff] }
0x160b   :  { %v10601_v46 = vpop.eup %10600  ;;  %v6903_v27 = vmul.f32 1.442695, %v9445_v42  ;;  %v6217_v42 = vperm.slane %v6187_v3, 0  ;;  %v16138_v3 = vld [vmem:[#allocation53_spill] sm:$0xff] }
0x160c   :  { %v7028_v9 = vmul.f32 %v10601_v46, %v16129_v63 }
0x160d   :  { %10602 = vpow2.f32 %v6903_v27  ;;  %v6305_v54 = vmul.f32 %v14353_v44, %v6217_v42  ;;  %v16134_v27 = vld [vmem:[#allocation174_spill] sm:$0xff] }
0x160e   :  { %v7091_v24 = vpack.c.bf16 %v7028_v9, %v7027_v0  ;;  %v14435_v37 = vpop.permute.xlu2 %6274  ;;  %v6554_v58 = vpop.f32.mrf.mxu3  ;;  %v6304_v9 = vmul.f32 %v14357_v28, %v6217_v42 }
0x160f   :  { %v6710_v43 = vmul.f32 0.35355338, %v6554_v58  ;;  %v6322_v18 = vmul.f32 %v14435_v37, %v6226_v57  ;;  %v6324_v47 = vmul.f32 %v14435_v37, %v6227_v7  ;;  %v6326_v20 = vmul.f32 %v14435_v37, %v6228_v6 }
0x1610   :  { %9507 = vmatmul.msk.bf16.vlgmr.msrb.gmra.mxu2 %vm231_vm1, %v7091_v24  ;;  %v6328_v62 = vmul.f32 %v14435_v37, %v6229_v50  ;;  %v16133_v24 = vld [vmem:[#allocation173_spill] sm:$0xff] }
0x1611   :  { %v9446_v17 = vclamps-f32 %v6710_v43, 5.0  ;;  %v14453_v39 = vmul.f32 %v6322_v18, %v16132_v21  ;;  %v14459_v43 = vmul.f32 %v6324_v47, %v16134_v27  ;;  %v16141_v27 = vld [vmem:[#allocation157_spill] sm:$0xff]  ;;  %v16147_v47 = vld [vmem:[#allocation159_spill] sm:$0xff] }
0x1613   :  { %v6905_v36 = vmul.f32 1.442695, %v9446_v17  ;;  %9421 = vmatmul.msk.bf16.gmra.mxu3 %vm950_vm3, %v6420_v13  ;;  %v10603_v63 = vpop.eup %10602  ;;  %v16137_v13 = vld [vmem:[#allocation176_spill] sm:$0xff] }
0x1614   :  { %v7029_v18 = vmul.f32 %v10603_v63, %v16138_v3  ;;  %v16143_v3 = vld [vmem:[#allocation180_spill] sm:$0xff] }
0x1615   :  { %10604 = vpow2.f32 %v6905_v36  ;;  %v14468_v36 = vmul.f32 %v6326_v20, %v16137_v13 }
0x1616   :  { %v14445_v49 = vpop.permute.xlu2 %6276  ;;  %v6557_v16 = vpop.f32.mrf.mxu3 }
0x1617   :  { %v6711_v46 = vmul.f32 0.35355338, %v6557_v16  ;;  %v6323_v30 = vmul.f32 %v14445_v49, %v6226_v57  ;;  %v6325_v40 = vmul.f32 %v14445_v49, %v6227_v7  ;;  %v6327_v0 = vmul.f32 %v14445_v49, %v6228_v6  ;;  %v16136_v7 = vld [vmem:[#allocation177_spill] sm:$0xff]  ;;  %v16139_v16 = vld [vmem:[#allocation52_spill] sm:$0xff] }
0x1619   :  { %v14456_v58 = vmul.f32 %v6323_v30, %v16133_v24  ;;  %v14462_v57 = vmul.f32 %v6325_v40, %v16135_v25  ;;  %v14465_v35 = vmul.f32 %v6327_v0, %v16136_v7  ;;  %v9447_v17 = vclamps-f32 %v6711_v46, 5.0  ;;  %v16140_v40 = vld [vmem:[#allocation156_spill] sm:$0xff] }
0x161a   :  { %v6368_v21 = vmul.f32 %v6304_v9, %v16140_v40  ;;  %v6329_v46 = vmul.f32 %v14445_v49, %v6229_v50  ;;  %v6369_v25 = vmul.f32 %v6305_v54, %v16141_v27  ;;  %v6188_v54 = vrot.slane %v14335_v45, 4  ;;  %v16144_v27 = vld [vmem:[#allocation54_spill] sm:$0xff] }
0x161b   :  { %v10605_v6 = vpop.eup %10604  ;;  %v6907_v63 = vmul.f32 1.442695, %v9447_v17 }
0x161c   :  { %v7030_v42 = vmul.f32 %v10605_v6, %v16139_v16  ;;  %v16142_v6 = vld [vmem:[#allocation178_spill] sm:$0xff]  ;;  %v14485_v16 = vmul.f32 %v6329_v46, %v16143_v3  ;;  %v6421_v40 = vpack.c.bf16 %v6369_v25, %v6368_v21 }
0x161d   :  { %v14482_v13 = vmul.f32 %v6328_v62, %v16142_v6  ;;  %10606 = vpow2.f32 %v6907_v63  ;;  %v16146_v6 = vld [vmem:[#allocation158_spill] sm:$0xff] }
0x161e   :  { %v6559_v24 = vpop.f32.mrf.mxu3  ;;  %v7092_v20 = vpack.c.bf16 %v7030_v42, %v7029_v18  ;;  %v6218_v18 = vperm.slane %v6188_v54, 0 }
0x161f   :  { %v6712_v7 = vmul.f32 0.35355338, %v6559_v24 }
0x1620   :  { %9508 = vmatmul.msk.bf16.gmra.mxu2 %vm231_vm1, %v7092_v20  ;;  %v6306_v46 = vmul.f32 %v14357_v28, %v6218_v18  ;;  %v6307_v21 = vmul.f32 %v14353_v44, %v6218_v18  ;;  %v6189_v18 = vrot.slane %v14335_v45, 5 }
0x1621   :  { %v9448_v9 = vclamps-f32 %v6712_v7, 5.0  ;;  %v16145_v7 = vld [vmem:[#allocation55_spill] sm:$0xff] }
0x1622   :  { %v6370_v3 = vmul.f32 %v6306_v46, %v16146_v6  ;;  %v6219_v46 = vperm.slane %v6189_v18, 0  ;;  %v16149_v6 = vld [vmem:[#allocation57_spill] sm:$0xff] }
0x1623   :  { %v6909_v50 = vmul.f32 1.442695, %v9448_v9  ;;  %9422 = vmatmul.msk.bf16.gmra.mxu3 %vm950_vm3, %v6421_v40  ;;  %v10607_v42 = vpop.eup %10606 }
0x1624   :  { %v7031_v25 = vmul.f32 %v10607_v42, %v16144_v27 }
0x1625   :  { %10608 = vpow2.f32 %v6909_v50 }
0x1626   :  { %v6562_v17 = vpop.f32.mrf.mxu3 }
0x1627   :  { %v6713_v62 = vmul.f32 0.35355338, %v6562_v17  ;;  %v6371_v17 = vmul.f32 %v6307_v21, %v16147_v47  ;;  %v6309_v47 = vmul.f32 %v14353_v44, %v6219_v46  ;;  %v16148_v21 = vld [vmem:[#allocation56_spill] sm:$0xff] }
0x1629   :  { %v9449_v20 = vclamps-f32 %v6713_v62, 5.0  ;;  %v6422_v30 = vpack.c.bf16 %v6371_v17, %v6370_v3  ;;  %v16150_v3 = vld [vmem:[#allocation160_spill] sm:$0xff] }
0x162b   :  { %v10609_v24 = vpop.eup %10608  ;;  %v6911_v0 = vmul.f32 1.442695, %v9449_v20  ;;  %v6308_v20 = vmul.f32 %v14357_v28, %v6219_v46  ;;  %v6190_v46 = vrot.slane %v14335_v45, 6 }
0x162c   :  { %v7032_v63 = vmul.f32 %v10609_v24, %v16145_v7 }
0x162d   :  { %10610 = vpow2.f32 %v6911_v0 }
0x162e   :  { %v6564_v9 = vpop.f32.mrf.mxu3  ;;  %v7093_v40 = vpack.c.bf16 %v7032_v63, %v7031_v25 }
0x162f   :  { %v6714_v50 = vmul.f32 0.35355338, %v6564_v9  ;;  %v6372_v9 = vmul.f32 %v6308_v20, %v16150_v3  ;;  %v6220_v20 = vperm.slane %v6190_v46, 0 }
0x1630   :  { %9509 = vmatmul.msk.bf16.gmra.mxu2 %vm231_vm1, %v7093_v40 }
0x1631   :  { %v9450_v54 = vclamps-f32 %v6714_v50, 5.0 }
0x1633   :  { %v6913_v62 = vmul.f32 1.442695, %v9450_v54  ;;  %9423 = vmatmul.msk.bf16.gmra.mxu3 %vm950_vm3, %v6422_v30  ;;  %v10611_v27 = vpop.eup %10610  ;;  %v16151_v54 = vld [vmem:[#allocation161_spill] sm:$0xff] }
0x1634   :  { %v7033_v63 = vmul.f32 %v10611_v27, %v16148_v21 }
0x1635   :  { %10612 = vpow2.f32 %v6913_v62  ;;  %v6373_v62 = vmul.f32 %v6309_v47, %v16151_v54  ;;  %v6311_v47 = vmul.f32 %v14353_v44, %v6220_v20 }
0x1636   :  { %v6567_v42 = vpop.f32.mrf.mxu3 }
0x1637   :  { %v6715_v24 = vmul.f32 0.35355338, %v6567_v42  ;;  %v6423_v42 = vpack.c.bf16 %v6373_v62, %v6372_v9  ;;  %v16153_v9 = vld [vmem:[#allocation58_spill] sm:$0xff] }
0x1639   :  { %v9451_v7 = vclamps-f32 %v6715_v24, 5.0 }
0x163b   :  { %v10613_v25 = vpop.eup %10612  ;;  %v6915_v50 = vmul.f32 1.442695, %v9451_v7  ;;  %v6310_v7 = vmul.f32 %v14357_v28, %v6220_v20  ;;  %v6191_v20 = vrot.slane %v14335_v45, 7 }
0x163c   :  { %v7034_v0 = vmul.f32 %v10613_v25, %v16149_v6 }
0x163d   :  { %10614 = vpow2.f32 %v6915_v50 }
0x163e   :  { %v6569_v30 = vpop.f32.mrf.mxu3  ;;  %v7094_v40 = vpack.c.bf16 %v7034_v0, %v7033_v63  ;;  %v16152_v0 = vld [vmem:[#allocation59_spill] sm:$0xff] }
0x163f   :  { %v6716_v17 = vmul.f32 0.35355338, %v6569_v30 }
0x1640   :  { %9510 = vmatmul.msk.bf16.gmra.mxu2 %vm231_vm1, %v7094_v40  ;;  %v16154_v40 = vld [vmem:[#allocation162_spill] sm:$0xff] }
0x1641   :  { %v9452_v18 = vclamps-f32 %v6716_v17, 5.0  ;;  %v6374_v50 = vmul.f32 %v6310_v7, %v16154_v40  ;;  %v6221_v7 = vperm.slane %v6191_v20, 0 }
0x1643   :  { %v6917_v24 = vmul.f32 1.442695, %v9452_v18  ;;  %9424 = vmatmul.msk.bf16.gmra.mxu3 %vm950_vm3, %v6423_v42  ;;  %v10615_v21 = vpop.eup %10614  ;;  %v16155_v42 = vld [vmem:[#allocation163_spill] sm:$0xff] }
0x1644   :  { %v7035_v3 = vmul.f32 %v10615_v21, %v16152_v0 }
0x1645   :  { %10616 = vpow2.f32 %v6917_v24  ;;  %v6375_v24 = vmul.f32 %v6311_v47, %v16155_v42  ;;  %v6313_v47 = vmul.f32 %v14353_v44, %v6221_v7 }
0x1646   :  { %v6572_v27 = vpop.f32.mrf.mxu3 }
0x1647   :  { %v6717_v25 = vmul.f32 0.35355338, %v6572_v27  ;;  %v6424_v27 = vpack.c.bf16 %v6375_v24, %v6374_v50  ;;  %v16157_v50 = vld [vmem:[#allocation61_spill] sm:$0xff] }
0x1649   :  { %v9453_v6 = vclamps-f32 %v6717_v25, 5.0 }
0x164b   :  { %v10617_v63 = vpop.eup %10616  ;;  %v6919_v62 = vmul.f32 1.442695, %v9453_v6  ;;  %v6312_v6 = vmul.f32 %v14357_v28, %v6221_v7 }
0x164c   :  { %v7036_v30 = vmul.f32 %v10617_v63, %v16153_v9 }
0x164d   :  { %10618 = vpow2.f32 %v6919_v62 }
0x164e   :  { %v6574_v17 = vpop.f32.mrf.mxu3  ;;  %v7095_v54 = vpack.c.bf16 %v7036_v30, %v7035_v3  ;;  %v16156_v30 = vld [vmem:[#allocation60_spill] sm:$0xff] }
0x164f   :  { %v6718_v18 = vmul.f32 0.35355338, %v6574_v17 }
0x1650   :  { %9511 = vmatmul.msk.bf16.gmra.mxu2 %vm231_vm1, %v7095_v54  ;;  %v16158_v54 = vld [vmem:[#allocation164_spill] sm:$0xff] }
0x1651   :  { %v9454_v46 = vclamps-f32 %v6718_v18, 5.0  ;;  %v6376_v62 = vmul.f32 %v6312_v6, %v16158_v54 }
0x1653   :  { %v6921_v25 = vmul.f32 1.442695, %v9454_v46  ;;  %9425 = vmatmul.msk.bf16.gmra.mxu3 %vm950_vm3, %v6424_v27  ;;  %v10619_v0 = vpop.eup %10618  ;;  %v16159_v46 = vld [vmem:[#allocation165_spill] sm:$0xff] }
0x1654   :  { %v7037_v40 = vmul.f32 %v10619_v0, %v16156_v30  ;;  %v6377_v27 = vmul.f32 %v6313_v47, %v16159_v46  ;;  %v16160_v47 = vld [vmem:[#allocation62_spill] sm:$0xff] }
0x1655   :  { %10620 = vpow2.f32 %v6921_v25  ;;  %v16163_v46 = vld [vmem:[#allocation166_spill] sm:$0xff] }
0x1656   :  { %v6577_v21 = vpop.f32.mrf.mxu3  ;;  %v6425_v28 = vpack.c.bf16 %v6377_v27, %v6376_v62 }
0x1657   :  { %v6719_v63 = vmul.f32 0.35355338, %v6577_v21 }
0x1659   :  { %v9455_v9 = vclamps-f32 %v6719_v63, 5.0  ;;  %v6222_v63 = vperm.slane %v14386_v11, 0 }
0x165b   :  { %v10621_v3 = vpop.eup %10620  ;;  %v6923_v45 = vmul.f32 1.442695, %v9455_v9  ;;  %v6315_v0 = vmul.f32 %v14445_v49, %v6222_v63  ;;  %v6314_v9 = vmul.f32 %v14435_v37, %v6222_v63 }
0x165c   :  { %v7038_v17 = vmul.f32 %v10621_v3, %v16157_v50 }
0x165d   :  { %10622 = vpow2.f32 %v6923_v45  ;;  %v6378_v27 = vmul.f32 %v6314_v9, %v16163_v46 }
0x165e   :  { %v6579_v18 = vpop.f32.mrf.mxu3  ;;  %v7096_v42 = vpack.c.bf16 %v7038_v17, %v7037_v40  ;;  %v16161_v40 = vld [vmem:[#allocation63_spill] sm:$0xff] }
0x165f   :  { %v6720_v24 = vmul.f32 0.35355338, %v6579_v18  ;;  %v16162_v17 = vld [vmem:[#allocation167_spill] sm:$0xff] }
0x1660   :  { %9512 = vmatmul.msk.bf16.gmra.mxu2 %vm231_vm1, %v7096_v42  ;;  %v6379_v54 = vmul.f32 %v6315_v0, %v16162_v17  ;;  %v14533_v42 = vpop.f32.mrf.mxu2  ;;  %v16165_v17 = vld [vmem:[#allocation66_spill] sm:$0xff] }
0x1661   :  { %v9456_v25 = vclamps-f32 %v6720_v24, 5.0 }
0x1663   :  { %v6925_v20 = vmul.f32 1.442695, %v9456_v25  ;;  %9426 = vmatmul.msk.bf16.gmra.mxu3 %vm950_vm3, %v6425_v28  ;;  %v10623_v7 = vpop.eup %10622  ;;  %v6426_v28 = vpack.c.bf16 %v6379_v54, %v6378_v27 }
0x1664   :  { %v7039_v30 = vmul.f32 %v10623_v7, %v16160_v47 }
0x1665   :  { %10624 = vpow2.f32 %v6925_v20 }
0x1666   :  { %v6582_v44 = vpop.f32.mrf.mxu3 }
0x1667   :  { %v6721_v21 = vmul.f32 0.35355338, %v6582_v44  ;;  %v6192_v44 = vrot.slane %v14386_v11, 1 }
0x1669   :  { %v9457_v3 = vclamps-f32 %v6721_v21, 5.0  ;;  %v6223_v7 = vperm.slane %v6192_v44, 0 }
0x166b   :  { %v10625_v6 = vpop.eup %10624  ;;  %v6927_v45 = vmul.f32 1.442695, %v9457_v3  ;;  %v6317_v3 = vmul.f32 %v14445_v49, %v6223_v7 }
0x166c   :  { %v7040_v50 = vmul.f32 %v10625_v6, %v16161_v40  ;;  %v14539_v6 = vpop.f32.mrf.mxu2  ;;  %v16164_v40 = vld [vmem:[#allocation65_spill] sm:$0xff] }
0x166d   :  { %10626 = vpow2.f32 %v6927_v45 }
0x166e   :  { %v6584_v62 = vpop.f32.mrf.mxu3  ;;  %v7097_v18 = vpack.c.bf16 %v7040_v50, %v7039_v30  ;;  %v6316_v30 = vmul.f32 %v14435_v37, %v6223_v7  ;;  %v6193_v7 = vrot.slane %v14386_v11, 2 }
0x166f   :  { %v6722_v24 = vmul.f32 0.35355338, %v6584_v62  ;;  %v16166_v62 = vld [vmem:[#allocation67_spill] sm:$0xff] }
0x1670   :  { %9513 = vmatmul.msk.bf16.gmra.mxu2 %vm231_vm1, %v7097_v18  ;;  %v6381_v18 = vmul.f32 %v6317_v3, %v16166_v62  ;;  %v16168_v62 = vld [vmem:[#allocation71_spill] sm:$0xff] }
0x1671   :  { %v9458_v25 = vclamps-f32 %v6722_v24, 5.0 }
0x1673   :  { %v6929_v20 = vmul.f32 1.442695, %v9458_v25  ;;  %9427 = vmatmul.msk.bf16.gmra.mxu3 %vm950_vm3, %v6426_v28  ;;  %v10627_v0 = vpop.eup %10626  ;;  %v16167_v25 = vld [vmem:[#allocation168_spill] sm:$0xff] }
0x1674   :  { %v7041_v50 = vmul.f32 %v10627_v0, %v16164_v40  ;;  %v6380_v28 = vmul.f32 %v6316_v30, %v16167_v25 }
0x1675   :  { %10628 = vpow2.f32 %v6929_v20  ;;  %v14548_v20 = vpop.f32.mrf.mxu2 }
0x1676   :  { %v6587_v21 = vpop.f32.mrf.mxu3 }
0x1677   :  { %v6723_v63 = vmul.f32 0.35355338, %v6587_v21  ;;  %v6427_v21 = vpack.c.bf16 %v6381_v18, %v6380_v28 }
0x1679   :  { %v9459_v47 = vclamps-f32 %v6723_v63, 5.0 }
0x167b   :  { %v10629_v9 = vpop.eup %10628  ;;  %v6931_v46 = vmul.f32 1.442695, %v9459_v47 }
0x167c   :  { %v7042_v54 = vmul.f32 %v10629_v9, %v16165_v17  ;;  %v6224_v9 = vperm.slane %v6193_v7, 0 }
0x167d   :  { %10630 = vpow2.f32 %v6931_v46  ;;  %v16170_v46 = vld [vmem:[#allocation169_spill] sm:$0xff] }
0x167e   :  { %v6589_v45 = vpop.f32.mrf.mxu3  ;;  %v7098_v24 = vpack.c.bf16 %v7042_v54, %v7041_v50  ;;  %v6319_v40 = vmul.f32 %v14445_v49, %v6224_v9  ;;  %v14553_v50 = vpop.f32.mrf.mxu2  ;;  %v6318_v54 = vmul.f32 %v14435_v37, %v6224_v9 }
0x167f   :  { %v6724_v27 = vmul.f32 0.35355338, %v6589_v45  ;;  %v16169_v45 = vld [vmem:[#allocation72_spill] sm:$0xff] }
0x1680   :  { %9514 = vmatmul.msk.bf16.gmra.mxu2 %vm231_vm1, %v7098_v24 }
0x1681   :  { %v9460_v44 = vclamps-f32 %v6724_v27, 5.0  ;;  %v6383_v27 = vmul.f32 %v6319_v40, %v16170_v46 }
0x1683   :  { %v6933_v63 = vmul.f32 1.442695, %v9460_v44  ;;  %9428 = vmatmul.msk.bf16.gmra.mxu3 %vm950_vm3, %v6427_v21  ;;  %v10631_v47 = vpop.eup %10630 }
0x1684   :  { %v7043_v18 = vmul.f32 %v10631_v47, %v16168_v62  ;;  %v6194_v47 = vrot.slane %v14386_v11, 3 }
0x1685   :  { %10632 = vpow2.f32 %v6933_v63  ;;  %v16171_v63 = vld [vmem:[#allocation69_spill] sm:$0xff] }
0x1686   :  { %v6592_v0 = vpop.f32.mrf.mxu3  ;;  %v6382_v7 = vmul.f32 %v6318_v54, %v16171_v63  ;;  %v6225_v62 = vperm.slane %v6194_v47, 0  ;;  %v16175_v47 = vld [vmem:[#allocation170_spill] sm:$0xff] }
0x1687   :  { %v6725_v3 = vmul.f32 0.35355338, %v6592_v0 }
0x1688   :  { %v6428_v22 = vpack.c.bf16 %v6383_v27, %v6382_v7  ;;  %v6320_v46 = vmul.f32 %v14435_v37, %v6225_v62  ;;  %v16172_v27 = vld [vmem:[#allocation75_spill] sm:$0xff] }
0x1689   :  { %v9461_v17 = vclamps-f32 %v6725_v3, 5.0 }
0x168b   :  { %v10633_v30 = vpop.eup %10632  ;;  %v6935_v44 = vmul.f32 1.442695, %v9461_v17 }
0x168c   :  { %v7044_v24 = vmul.f32 %v10633_v30, %v16169_v45 }
0x168d   :  { %10634 = vpow2.f32 %v6935_v44  ;;  %v16174_v44 = vld [vmem:[#allocation171_spill] sm:$0xff] }
0x168e   :  { %v6594_v25 = vpop.f32.mrf.mxu3  ;;  %v7099_v28 = vpack.c.bf16 %v7044_v24, %v7043_v18  ;;  %v6321_v18 = vmul.f32 %v14445_v49, %v6225_v62 }
0x168f   :  { %v6726_v21 = vmul.f32 0.35355338, %v6594_v25 }
0x1690   :  { %9515 = vmatmul.msk.bf16.gmra.mxu2 %vm231_vm1, %v7099_v28  ;;  %v16173_v28 = vld [vmem:[#allocation74_spill] sm:$0xff] }
0x1691   :  { %v9462_v0 = vclamps-f32 %v6726_v21, 5.0  ;;  %v6385_v21 = vmul.f32 %v6321_v18, %v16174_v44 }
0x1693   :  { %v6937_v3 = vmul.f32 1.442695, %v9462_v0  ;;  %9429 = vmatmul.msk.bf16.gmra.mxu3 %vm950_vm3, %v6428_v22  ;;  %v14562_v9 = vpop.f32.mrf.mxu2  ;;  %v10635_v17 = vpop.eup %10634 }
0x1694   :  { %v7045_v25 = vmul.f32 %v10635_v17, %v16172_v27 }
0x1695   :  { %10636 = vpow2.f32 %v6937_v3 }
0x1696   :  { %v6597_v40 = vpop.f32.mrf.mxu3 }
0x1697   :  { %v6727_v30 = vmul.f32 0.35355338, %v6597_v40  ;;  %v6384_v40 = vmul.f32 %v6320_v46, %v16175_v47 }
0x1699   :  { %v9463_v45 = vclamps-f32 %v6727_v30, 5.0  ;;  %v6429_v51 = vpack.c.bf16 %v6385_v21, %v6384_v40  ;;  %v16177_v21 = vld [vmem:[#allocation79_spill] sm:$0xff] }
0x169b   :  { %v10637_v54 = vpop.eup %10636  ;;  %v14566_v24 = vpop.f32.mrf.mxu2  ;;  %v6939_v0 = vmul.f32 1.442695, %v9463_v45 }
0x169c   :  { %v7046_v11 = vmul.f32 %v10637_v54, %v16173_v28 }
0x169d   :  { %10638 = vpow2.f32 %v6939_v0 }
0x169e   :  { %v6599_v63 = vpop.f32.mrf.mxu3  ;;  %v7100_v7 = vpack.c.bf16 %v7046_v11, %v7045_v25  ;;  %v16176_v11 = vld [vmem:[#allocation78_spill] sm:$0xff] }
0x169f   :  { %v6728_v3 = vmul.f32 0.35355338, %v6599_v63 }
0x16a0   :  { %9516 = vmatmul.msk.bf16.gmra.mxu2 %vm231_vm1, %v7100_v7 }
0x16a1   :  { %v9464_v30 = vclamps-f32 %v6728_v3, 5.0 }
0x16a3   :  { %v6941_v62 = vmul.f32 1.442695, %v9464_v30  ;;  %9430 = vmatmul.msk.bf16.gmra.mxu3 %vm950_vm3, %v6429_v51  ;;  %v14577_v17 = vpop.f32.mrf.mxu2  ;;  %v10639_v18 = vpop.eup %10638  ;;  %v16178_v30 = vpack.c.bf16 %v14456_v58, %v14453_v39 }
0x16a4   :  { %v7047_v46 = vmul.f32 %v10639_v18, %v16176_v11 }
0x16a5   :  { %10640 = vpow2.f32 %v6941_v62 }
0x16a6   :  { %v6602_v54 = vpop.f32.mrf.mxu3 }
0x16a7   :  { %v6729_v27 = vmul.f32 0.35355338, %v6602_v54 }
0x16a9   :  { %v9465_v25 = vclamps-f32 %v6729_v27, 5.0 }
0x16ab   :  { %v10641_v28 = vpop.eup %10640  ;;  %v14579_v45 = vpop.f32.mrf.mxu2  ;;  %v6943_v51 = vmul.f32 1.442695, %v9465_v25 }
0x16ac   :  { %v7048_v63 = vmul.f32 %v10641_v28, %v16177_v21 }
0x16ad   :  { %10642 = vpow2.f32 %v6943_v51 }
0x16ae   :  { %v6604_v7 = vpop.f32.mrf.mxu3  ;;  %v7101_v0 = vpack.c.bf16 %v7048_v63, %v7047_v46  ;;  %v16179_v46 = vld [vmem:[#allocation82_spill] sm:$0xff] }
0x16af   :  { %v6730_v3 = vmul.f32 0.35355338, %v6604_v7  ;;  %v16180_v7 = vld [vmem:[#allocation83_spill] sm:$0xff] }
0x16b0   :  { %9517 = vmatmul.msk.bf16.gmra.mxu2 %vm231_vm1, %v7101_v0 }
0x16b1   :  { %v9466_v47 = vclamps-f32 %v6730_v3, 5.0 }
0x16b3   :  { %v6945_v40 = vmul.f32 1.442695, %v9466_v47  ;;  %9431 = vmatmul.msk.bf16.gmra.mxu3 %vm950_vm3, %v16178_v30  ;;  %v14590_v62 = vpop.f32.mrf.mxu2  ;;  %v10643_v18 = vpop.eup %10642  ;;  %v16181_v30 = vpack.c.bf16 %v14462_v57, %v14459_v43 }
0x16b4   :  { %v7049_v21 = vmul.f32 %v10643_v18, %v16179_v46 }
0x16b5   :  { %10644 = vpow2.f32 %v6945_v40 }
0x16b6   :  { %v6607_v54 = vpop.f32.mrf.mxu3 }
0x16b7   :  { %v6731_v27 = vmul.f32 0.35355338, %v6607_v54 }
0x16b9   :  { %v9467_v11 = vclamps-f32 %v6731_v27, 5.0 }
0x16bb   :  { %v10645_v28 = vpop.eup %10644  ;;  %v14592_v25 = vpop.f32.mrf.mxu2  ;;  %v6947_v51 = vmul.f32 1.442695, %v9467_v11 }
0x16bc   :  { %v10113_v63 = vpack.i.bf16 %v14592_v25, %v14590_v62  ;;  %v7050_v0 = vmul.f32 %v10645_v28, %v16180_v7 }
0x16bd   :  { %10646 = vpow2.f32 %v6947_v51 }
0x16be   :  { %10114 = vrot.lane.b32.xlu0 %v10113_v63, %s10837_s27  ;;  %v6609_v39 = vpop.f32.mrf.mxu3  ;;  %v7102_v58 = vpack.c.bf16 %v7050_v0, %v7049_v21  ;;  %v16182_v63 = vld [vmem:[#allocation87_spill] sm:$0xff] }
0x16bf   :  { %v6732_v3 = vmul.f32 0.35355338, %v6609_v39  ;;  %v16183_v39 = vld [vmem:[#allocation86_spill] sm:$0xff] }
0x16c0   :  { %9518 = vmatmul.msk.bf16.gmra.mxu2 %vm231_vm1, %v7102_v58 }
0x16c1   :  { %v9468_v47 = vclamps-f32 %v6732_v3, 5.0 }
0x16c3   :  { %v6949_v40 = vmul.f32 1.442695, %v9468_v47  ;;  %9432 = vmatmul.msk.bf16.gmra.mxu3 %vm950_vm3, %v16181_v30  ;;  %v14604_v54 = vpop.f32.mrf.mxu2  ;;  %v10647_v28 = vpop.eup %10646  ;;  %v16184_v30 = vpack.c.bf16 %v14465_v35, %v14468_v36 }
0x16c4   :  { %v7051_v7 = vmul.f32 %v10647_v28, %v16182_v63 }
0x16c5   :  { %10648 = vpow2.f32 %v6949_v40 }
0x16c6   :  { %v6612_v27 = vpop.f32.mrf.mxu3 }
0x16c7   :  { %v6733_v18 = vmul.f32 0.35355338, %v6612_v27 }
0x16c9   :  { %v9469_v21 = vclamps-f32 %v6733_v18, 5.0 }
0x16cb   :  { %v10649_v46 = vpop.eup %10648  ;;  %v14606_v11 = vpop.f32.mrf.mxu2  ;;  %v6951_v51 = vmul.f32 1.442695, %v9469_v21 }
0x16cc   :  { %v10118_v0 = vpack.i.bf16 %v14606_v11, %v14604_v54  ;;  %v7052_v58 = vmul.f32 %v10649_v46, %v16183_v39 }
0x16cd   :  { %10650 = vpow2.f32 %v6951_v51 }
0x16ce   :  { %10119 = vrot.lane.b32.xlu2 %v10118_v0, %s10837_s27  ;;  %v6614_v43 = vpop.f32.mrf.mxu3  ;;  %v7103_v57 = vpack.c.bf16 %v7052_v58, %v7051_v7  ;;  %v16185_v0 = vld [vmem:[#allocation85_spill] sm:$0xff] }
0x16cf   :  { %v6734_v3 = vmul.f32 0.35355338, %v6614_v43  ;;  %v16186_v43 = vld [vmem:[#allocation91_spill] sm:$0xff] }
0x16d0   :  { %9519 = vmatmul.msk.bf16.gmra.mxu2 %vm231_vm1, %v7103_v57 }
0x16d1   :  { %v9470_v47 = vclamps-f32 %v6734_v3, 5.0 }
0x16d3   :  { %v6953_v40 = vmul.f32 1.442695, %v9470_v47  ;;  %9433 = vmatmul.msk.bf16.gmra.mxu3 %vm950_vm3, %v16184_v30  ;;  %v14618_v27 = vpop.f32.mrf.mxu2  ;;  %v10651_v46 = vpop.eup %10650  ;;  %v16187_v30 = vpack.c.bf16 %v14485_v16, %v14482_v13 }
0x16d4   :  { %v7053_v39 = vmul.f32 %v10651_v46, %v16185_v0 }
0x16d5   :  { %10652 = vpow2.f32 %v6953_v40 }
0x16d6   :  { %v6617_v18 = vpop.f32.mrf.mxu3 }
0x16d7   :  { %v6735_v28 = vmul.f32 0.35355338, %v6617_v18 }
0x16d9   :  { %v9471_v7 = vclamps-f32 %v6735_v28, 5.0 }
0x16db   :  { %v10653_v63 = vpop.eup %10652  ;;  %v14620_v21 = vpop.f32.mrf.mxu2  ;;  %v6955_v51 = vmul.f32 1.442695, %v9471_v7 }
0x16dc   :  { %v10123_v58 = vpack.i.bf16 %v14620_v21, %v14618_v27  ;;  %v7054_v57 = vmul.f32 %v10653_v63, %v16186_v43  ;;  %v6230_v63 = vperm.slane %v14393_v34, 0 }
0x16dd   :  { %10654 = vpow2.f32 %v6955_v51 }
0x16de   :  { %10124 = vrot.lane.b32.xlu2 %v10123_v58, %s10837_s27  ;;  %v6619_v35 = vpop.f32.mrf.mxu3  ;;  %v7104_v36 = vpack.c.bf16 %v7054_v57, %v7053_v39  ;;  %v6331_v7 = vmul.f32 %v14445_v49, %v6230_v63  ;;  %v6330_v57 = vmul.f32 %v14435_v37, %v6230_v63 }
0x16df   :  { %v6736_v3 = vmul.f32 0.35355338, %v6619_v35  ;;  %v16188_v35 = vld [vmem:[#allocation92_spill] sm:$0xff] }
0x16e0   :  { %9520 = vmatmul.msk.bf16.gmra.mxu2 %vm231_vm1, %v7104_v36  ;;  %v16189_v36 = vld [vmem:[#allocation89_spill] sm:$0xff] }
0x16e1   :  { %v9472_v47 = vclamps-f32 %v6736_v3, 5.0  ;;  %v16190_v3 = vld [vmem:[#allocation184_spill] sm:$0xff] }
0x16e3   :  { %v6957_v40 = vmul.f32 1.442695, %v9472_v47  ;;  %9434 = vmatmul.msk.bf16.gmra.mxu3 %vm950_vm3, %v16187_v30  ;;  %v14632_v18 = vpop.f32.mrf.mxu2  ;;  %v10655_v0 = vpop.eup %10654  ;;  %v6395_v47 = vmul.f32 %v6331_v7, %v16190_v3  ;;  %v6199_v7 = vrot.slane %v14393_v34, 1 }
0x16e4   :  { %v7055_v13 = vmul.f32 %v10655_v0, %v16188_v35 }
0x16e5   :  { %10656 = vpow2.f32 %v6957_v40 }
0x16e6   :  { %v6622_v28 = vpop.f32.mrf.mxu3 }
0x16e7   :  { %v6737_v46 = vmul.f32 0.35355338, %v6622_v28 }
0x16e9   :  { %v9473_v58 = vclamps-f32 %v6737_v46, 5.0  ;;  %v16191_v46 = vld [vmem:[#allocation182_spill] sm:$0xff] }
0x16ea   :  { %v6394_v44 = vmul.f32 %v6330_v57, %v16191_v46 }
0x16eb   :  { %v10657_v39 = vpop.eup %10656  ;;  %v14636_v43 = vpop.f32.mrf.mxu2  ;;  %v6959_v28 = vmul.f32 1.442695, %v9473_v58 }
0x16ec   :  { %v10128_v16 = vpack.i.bf16 %v14636_v43, %v14632_v18  ;;  %v7056_v51 = vmul.f32 %v10657_v39, %v16189_v36  ;;  %v6434_v31 = vpack.c.bf16 %v6395_v47, %v6394_v44  ;;  %v16192_v44 = vld [vmem:[#allocation95_spill] sm:$0xff] }
0x16ed   :  { %10658 = vpow2.f32 %v6959_v28  ;;  %v16194_v28 = vld [vmem:[#allocation187_spill] sm:$0xff] }
0x16ee   :  { %10129 = vrot.lane.b32.xlu0 %v10128_v16, %s10837_s27  ;;  %v6624_v40 = vpop.f32.mrf.mxu3  ;;  %v7105_v30 = vpack.c.bf16 %v7056_v51, %v7055_v13  ;;  %v6231_v13 = vperm.slane %v6199_v7, 0 }
0x16ef   :  { %v6738_v22 = vmul.f32 0.35355338, %v6624_v40  ;;  %v16193_v40 = vld [vmem:[#allocation96_spill] sm:$0xff] }
0x16f0   :  { %9521 = vmatmul.msk.bf16.gmra.mxu2 %vm231_vm1, %v7105_v30  ;;  %v6333_v36 = vmul.f32 %v14445_v49, %v6231_v13 }
0x16f1   :  { %v9474_v63 = vclamps-f32 %v6738_v22, 5.0  ;;  %v6332_v22 = vmul.f32 %v14435_v37, %v6231_v13 }
0x16f2   :  { %v6397_v46 = vmul.f32 %v6333_v36, %v16194_v28  ;;  %v6200_v36 = vrot.slane %v14393_v34, 2 }
0x16f3   :  { %v6961_v0 = vmul.f32 1.442695, %v9474_v63  ;;  %9435 = vmatmul.msk.bf16.gmra.mxu3 %vm950_vm3, %v6434_v31  ;;  %v14648_v35 = vpop.f32.mrf.mxu2  ;;  %v10659_v58 = vpop.eup %10658 }
0x16f4   :  { %v7057_v47 = vmul.f32 %v10659_v58, %v16192_v44 }
0x16f5   :  { %10660 = vpow2.f32 %v6961_v0 }
0x16f6   :  { %v6627_v39 = vpop.f32.mrf.mxu3 }
0x16f7   :  { %v6739_v16 = vmul.f32 0.35355338, %v6627_v39 }
0x16f9   :  { %v9475_v51 = vclamps-f32 %v6739_v16, 5.0  ;;  %v16195_v16 = vld [vmem:[#allocation186_spill] sm:$0xff] }
0x16fa   :  { %v6396_v4 = vmul.f32 %v6332_v22, %v16195_v16 }
0x16fb   :  { %v10661_v57 = vpop.eup %10660  ;;  %v14652_v3 = vpop.f32.mrf.mxu2  ;;  %v6963_v7 = vmul.f32 1.442695, %v9475_v51 }
0x16fc   :  { %v10133_v31 = vpack.i.bf16 %v14652_v3, %v14648_v35  ;;  %v7058_v30 = vmul.f32 %v10661_v57, %v16193_v40  ;;  %v6435_v19 = vpack.c.bf16 %v6397_v46, %v6396_v4  ;;  %v16196_v46 = vld [vmem:[#allocation93_spill] sm:$0xff] }
0x16fd   :  { %10662 = vpow2.f32 %v6963_v7 }
0x16fe   :  { %10134 = vrot.lane.b32.xlu1 %v10133_v31, %s10837_s27  ;;  %v6629_v63 = vpop.f32.mrf.mxu3  ;;  %v7106_v0 = vpack.c.bf16 %v7058_v30, %v7057_v47  ;;  %v6232_v47 = vperm.slane %v6200_v36, 0 }
0x16ff   :  { %v6740_v39 = vmul.f32 0.35355338, %v6629_v63 }
0x1700   :  { %9522 = vmatmul.msk.bf16.gmra.mxu2 %vm231_vm1, %v7106_v0  ;;  %v6335_v40 = vmul.f32 %v14445_v49, %v6232_v47  ;;  %v6334_v4 = vmul.f32 %v14435_v37, %v6232_v47  ;;  %v16197_v0 = vld [vmem:[#allocation99_spill] sm:$0xff] }
0x1701   :  { %v9476_v13 = vclamps-f32 %v6740_v39, 5.0  ;;  %v16198_v39 = vld [vmem:[#allocation189_spill] sm:$0xff] }
0x1702   :  { %v6399_v16 = vmul.f32 %v6335_v40, %v16198_v39  ;;  %v6201_v40 = vrot.slane %v14393_v34, 3 }
0x1703   :  { %v6965_v58 = vmul.f32 1.442695, %v9476_v13  ;;  %9436 = vmatmul.msk.bf16.gmra.mxu3 %vm950_vm3, %v6435_v19  ;;  %v14664_v44 = vpop.f32.mrf.mxu2  ;;  %v10663_v51 = vpop.eup %10662 }
0x1704   :  { %v7059_v63 = vmul.f32 %v10663_v51, %v16196_v46 }
0x1705   :  { %10664 = vpow2.f32 %v6965_v58 }
0x1706   :  { %v6632_v57 = vpop.f32.mrf.mxu3 }
0x1707   :  { %v6741_v31 = vmul.f32 0.35355338, %v6632_v57 }
0x1709   :  { %v9477_v30 = vclamps-f32 %v6741_v31, 5.0  ;;  %v16199_v31 = vld [vmem:[#allocation188_spill] sm:$0xff] }
0x170a   :  { %v6398_v56 = vmul.f32 %v6334_v4, %v16199_v31 }
0x170b   :  { %v10665_v22 = vpop.eup %10664  ;;  %v14668_v28 = vpop.f32.mrf.mxu2  ;;  %v6967_v36 = vmul.f32 1.442695, %v9477_v30 }
0x170c   :  { %v10138_v19 = vpack.i.bf16 %v14668_v28, %v14664_v44  ;;  %v7060_v7 = vmul.f32 %v10665_v22, %v16197_v0  ;;  %v6436_v15 = vpack.c.bf16 %v6399_v16, %v6398_v56  ;;  %v16200_v16 = vld [vmem:[#allocation100_spill] sm:$0xff] }
0x170d   :  { %10666 = vpow2.f32 %v6967_v36 }
0x170e   :  { %10139 = vrot.lane.b32.xlu1 %v10138_v19, %s10837_s27  ;;  %v6634_v13 = vpop.f32.mrf.mxu3  ;;  %v7107_v58 = vpack.c.bf16 %v7060_v7, %v7059_v63  ;;  %v6233_v63 = vperm.slane %v6201_v40, 0 }
0x170f   :  { %v6742_v57 = vmul.f32 0.35355338, %v6634_v13 }
0x1710   :  { %9523 = vmatmul.msk.bf16.gmra.mxu2 %vm231_vm1, %v7107_v58  ;;  %v6337_v0 = vmul.f32 %v14445_v49, %v6233_v63  ;;  %v6336_v56 = vmul.f32 %v14435_v37, %v6233_v63  ;;  %v16201_v58 = vld [vmem:[#allocation97_spill] sm:$0xff]  ;;  %v6202_v63 = vrot.slane %v14393_v34, 4 }
0x1711   :  { %v9478_v47 = vclamps-f32 %v6742_v57, 5.0  ;;  %v16202_v57 = vld [vmem:[#allocation192_spill] sm:$0xff] }
0x1712   :  { %v6401_v31 = vmul.f32 %v6337_v0, %v16202_v57  ;;  %v6400_v14 = vmul.f32 %v6336_v56, %v16203_v61  ;;  %v6234_v0 = vperm.slane %v6202_v63, 0  ;;  %v7394_v56 = vmul.f32 %v14604_v54, %v14533_v42  ;;  %v16205_v54 = vld [vmem:[#allocation103_spill] sm:$0xff] }
0x1713   :  { %v6969_v51 = vmul.f32 1.442695, %v9478_v47  ;;  %9437 = vmatmul.msk.bf16.gmra.mxu3 %vm950_vm3, %v6436_v15  ;;  %v14680_v46 = vpop.f32.mrf.mxu2  ;;  %v10667_v30 = vpop.eup %10666 }
0x1714   :  { %v7061_v13 = vmul.f32 %v10667_v30, %v16200_v16  ;;  %v6437_v55 = vpack.c.bf16 %v6401_v31, %v6400_v14  ;;  %v7395_v14 = vmul.f32 %v14606_v11, %v14539_v6 }
0x1715   :  { %10668 = vpow2.f32 %v6969_v51 }
0x1716   :  { %v6637_v22 = vpop.f32.mrf.mxu3 }
0x1717   :  { %v6743_v19 = vmul.f32 0.35355338, %v6637_v22 }
0x1719   :  { %v9479_v7 = vclamps-f32 %v6743_v19, 5.0 }
0x171b   :  { %v10669_v4 = vpop.eup %10668  ;;  %v14684_v39 = vpop.f32.mrf.mxu2  ;;  %v6971_v40 = vmul.f32 1.442695, %v9479_v7  ;;  %v6339_v7 = vmul.f32 %v14445_v49, %v6234_v0 }
0x171c   :  { %v7062_v36 = vmul.f32 %v10669_v4, %v16201_v58 }
0x171d   :  { %10670 = vpow2.f32 %v6971_v40  ;;  %v16204_v40 = vld [vmem:[#allocation196_spill] sm:$0xff] }
0x171e   :  { %v6639_v47 = vpop.f32.mrf.mxu3  ;;  %v7108_v51 = vpack.c.bf16 %v7062_v36, %v7061_v13 }
0x171f   :  { %v6744_v22 = vmul.f32 0.35355338, %v6639_v47 }
0x1720   :  { %9524 = vmatmul.msk.bf16.gmra.mxu2 %vm231_vm1, %v7108_v51 }
0x1721   :  { %v9480_v19 = vclamps-f32 %v6744_v22, 5.0  ;;  %v6403_v22 = vmul.f32 %v6339_v7, %v16204_v40  ;;  %v16207_v40 = vld [vmem:[#allocation194_spill] sm:$0xff] }
0x1723   :  { %v6973_v30 = vmul.f32 1.442695, %v9480_v19  ;;  %9438 = vmatmul.msk.bf16.gmra.mxu3 %vm950_vm3, %v6437_v55  ;;  %v14696_v16 = vpop.f32.mrf.mxu2  ;;  %v10671_v61 = vpop.eup %10670  ;;  %v6338_v55 = vmul.f32 %v14435_v37, %v6234_v0 }
0x1725   :  { %10672 = vpow2.f32 %v6973_v30  ;;  %v7063_v30 = vmul.f32 %v10671_v61, %v16205_v54 }
0x1726   :  { %v6642_v4 = vpop.f32.mrf.mxu3 }
0x1727   :  { %v6745_v13 = vmul.f32 0.35355338, %v6642_v4  ;;  %v16206_v4 = vld [vmem:[#allocation104_spill] sm:$0xff] }
0x1728   :  { %v10120_v58 = vpop.permute.xlu2 %10119 }
0x1729   :  { %v10122_v36 = vunpack.i.h.bf16 %v10120_v58  ;;  %v10121_v57 = vunpack.i.l.bf16 %v10120_v58  ;;  %v9481_v47 = vclamps-f32 %v6745_v13, 5.0 }
0x172b   :  { %v10673_v31 = vpop.eup %10672  ;;  %v14704_v51 = vpop.f32.mrf.mxu2  ;;  %v14708_v19 = vsel %vm950_vm3, %v7394_v56, %v10121_v57  ;;  %v14711_v63 = vsel %vm950_vm3, %v7395_v14, %v10122_v36  ;;  %v6402_v56 = vmul.f32 %v6338_v55, %v16207_v40  ;;  %v6975_v57 = vmul.f32 1.442695, %v9481_v47 }
0x172c   :  { %v10178_v11 = vpack.i.bf16 %v14704_v51, %v14696_v16  ;;  %v7064_v58 = vmul.f32 %v10673_v31, %v16206_v4  ;;  %v7392_v14 = vmul.f32 %v14590_v62, %v14533_v42  ;;  %v7393_v31 = vmul.f32 %v14592_v25, %v14539_v6 }
0x172d   :  { %v6438_v36 = vpack.c.bf16 %v6403_v22, %v6402_v56  ;;  %10674 = vpow2.f32 %v6975_v57  ;;  %v7396_v56 = vmul.f32 %v14618_v27, %v14533_v42 }
0x172e   :  { %10179 = vrot.lane.b32.xlu0 %v10178_v11, %s10837_s27  ;;  %v6644_v13 = vpop.f32.mrf.mxu3  ;;  %v7109_v7 = vpack.c.bf16 %v7064_v58, %v7063_v30  ;;  %v6203_v11 = vrot.slane %v14393_v34, 5 }
0x172f   :  { %v6746_v15 = vmul.f32 0.35355338, %v6644_v13 }
0x1730   :  { %v10115_v61 = vpop.permute.xlu0 %10114  ;;  %9525 = vmatmul.msk.bf16.gmra.mxu2 %vm231_vm1, %v7109_v7  ;;  %v6235_v22 = vperm.slane %v6203_v11, 0 }
0x1731   :  { %v9482_v54 = vclamps-f32 %v6746_v15, 5.0  ;;  %v10117_v4 = vunpack.i.h.bf16 %v10115_v61  ;;  %v10116_v0 = vunpack.i.l.bf16 %v10115_v61 }
0x1732   :  { %v6341_v7 = vmul.f32 %v14445_v49, %v6235_v22 }
0x1733   :  { %v6977_v30 = vmul.f32 1.442695, %v9482_v54  ;;  %9439 = vmatmul.msk.bf16.gmra.mxu3 %vm950_vm3, %v6438_v36  ;;  %v14728_v55 = vpop.f32.mrf.mxu2  ;;  %v14731_v62 = vsel %vm950_vm3, %v7392_v14, %v10116_v0  ;;  %v14734_v47 = vsel %vm950_vm3, %v7393_v31, %v10117_v4  ;;  %v10675_v40 = vpop.eup %10674  ;;  %v7397_v0 = vmul.f32 %v14620_v21, %v14539_v6 }
0x1734   :  { %v6340_v54 = vmul.f32 %v14435_v37, %v6235_v22 }
0x1735   :  { %10676 = vpow2.f32 %v6977_v30  ;;  %v7065_v30 = vmul.f32 %v10675_v40, %v16050_v41 }
0x1736   :  { %v6647_v15 = vpop.f32.mrf.mxu3 }
0x1737   :  { %v6747_v58 = vmul.f32 0.35355338, %v6647_v15 }
0x1738   :  { %v10125_v13 = vpop.permute.xlu2 %10124 }
0x1739   :  { %v10127_v57 = vunpack.i.h.bf16 %v10125_v13  ;;  %v10126_v14 = vunpack.i.l.bf16 %v10125_v13  ;;  %v9483_v36 = vclamps-f32 %v6747_v58, 5.0  ;;  %v16208_v58 = vld [vmem:[#allocation199_spill] sm:$0xff] }
0x173a   :  { %v6405_v13 = vmul.f32 %v6341_v7, %v16208_v58 }
0x173b   :  { %v10677_v61 = vpop.eup %10676  ;;  %v14743_v31 = vpop.f32.mrf.mxu2  ;;  %v14747_v4 = vsel %vm950_vm3, %v7396_v56, %v10126_v14  ;;  %v14750_v11 = vsel %vm950_vm3, %v7397_v0, %v10127_v57  ;;  %v6979_v48 = vmul.f32 1.442695, %v9483_v36  ;;  %v16209_v14 = vld [vmem:[#allocation198_spill] sm:$0xff]  ;;  %v6204_v57 = vrot.slane %v14393_v34, 6 }
0x173c   :  { %v7066_v21 = vmul.f32 %v10677_v61, %v16051_v29  ;;  %v7776_v15 = vpack.c.bf16 %v14750_v11, %v14747_v4  ;;  %v6404_v33 = vmul.f32 %v6340_v54, %v16209_v14  ;;  %v16218_v4 = vpack.c.bf16 %v14734_v47, %v14731_v62 }
0x173d   :  { %10678 = vpow2.f32 %v6979_v48 }
0x173e   :  { %v6649_v25 = vpop.f32.mrf.mxu3  ;;  %v7110_v22 = vpack.c.bf16 %v7066_v21, %v7065_v30  ;;  %v6439_v41 = vpack.c.bf16 %v6405_v13, %v6404_v33  ;;  %v6236_v30 = vperm.slane %v6204_v57, 0 }
0x173f   :  { %v6748_v56 = vmul.f32 0.35355338, %v6649_v25 }
0x1740   :  { %9526 = vmatmul.msk.bf16.gmra.mxu2 %vm231_vm1, %v7110_v22  ;;  %v6343_v25 = vmul.f32 %v14445_v49, %v6236_v30  ;;  %v6342_v33 = vmul.f32 %v14435_v37, %v6236_v30 }
0x1741   :  { %v9484_v0 = vclamps-f32 %v6748_v56, 5.0  ;;  %v16210_v56 = vld [vmem:[#allocation201_spill] sm:$0xff] }
0x1742   :  { %v6407_v14 = vmul.f32 %v6343_v25, %v16210_v56 }
0x1743   :  { %v6981_v40 = vmul.f32 1.442695, %v9484_v0  ;;  %9440 = vmatmul.msk.bf16.gmra.mxu3 %vm950_vm3, %v6439_v41  ;;  %v14762_v29 = vpop.f32.mrf.mxu2  ;;  %v10679_v36 = vpop.eup %10678 }
0x1744   :  { %v7067_v48 = vmul.f32 %v10679_v36, %v16052_v12  ;;  %v6205_v12 = vrot.slane %v14393_v34, 7 }
0x1745   :  { %10680 = vpow2.f32 %v6981_v40 }
0x1746   :  { %v6652_v7 = vpop.f32.mrf.mxu3 }
0x1747   :  { %v6749_v61 = vmul.f32 0.35355338, %v6652_v7  ;;  %v16211_v7 = vld [vmem:[#allocation200_spill] sm:$0xff] }
0x1749   :  { %v9485_v21 = vclamps-f32 %v6749_v61, 5.0  ;;  %v6406_v61 = vmul.f32 %v6342_v33, %v16211_v7  ;;  %v16213_v7 = vld [vmem:[#allocation202_spill] sm:$0xff] }
0x174b   :  { %v10681_v54 = vpop.eup %10680  ;;  %v14766_v58 = vpop.f32.mrf.mxu2  ;;  %v6983_v40 = vmul.f32 1.442695, %v9485_v21  ;;  %v6440_v27 = vpack.c.bf16 %v6407_v14, %v6406_v61 }
0x174c   :  { %v10143_v13 = vpack.i.bf16 %v14766_v58, %v14762_v29  ;;  %v7068_v22 = vmul.f32 %v10681_v54, %v16053_v1  ;;  %v6237_v54 = vperm.slane %v6205_v12, 0  ;;  %v7398_v12 = vmul.f32 %v14632_v18, %v14533_v42 }
0x174d   :  { %10682 = vpow2.f32 %v6983_v40 }
0x174e   :  { %10144 = vrot.lane.b32.xlu1 %v10143_v13, %s10837_s27  ;;  %v6654_v0 = vpop.f32.mrf.mxu3  ;;  %v7111_v41 = vpack.c.bf16 %v7068_v22, %v7067_v48  ;;  %v6345_v21 = vmul.f32 %v14445_v49, %v6237_v54  ;;  %v6344_v33 = vmul.f32 %v14435_v37, %v6237_v54 }
0x174f   :  { %v6750_v57 = vmul.f32 0.35355338, %v6654_v0 }
0x1750   :  { %9527 = vmatmul.msk.bf16.gmra.mxu2 %vm231_vm1, %v7111_v41  ;;  %v16212_v41 = vld [vmem:[#allocation203_spill] sm:$0xff]  ;;  %v6408_v61 = vmul.f32 %v6344_v33, %v16213_v7 }
0x1751   :  { %v9486_v30 = vclamps-f32 %v6750_v57, 5.0  ;;  %v6409_v40 = vmul.f32 %v6345_v21, %v16212_v41 }
0x1753   :  { %v6985_v36 = vmul.f32 1.442695, %v9486_v30  ;;  %9441 = vmatmul.msk.bf16.gmra.mxu3 %vm950_vm3, %v6440_v27  ;;  %v14779_v1 = vpop.f32.mrf.mxu2  ;;  %v10683_v13 = vpop.eup %10682 }
0x1754   :  { %v7069_v34 = vmul.f32 %v10683_v13, %v11924_v10  ;;  %v6441_v10 = vpack.c.bf16 %v6409_v40, %v6408_v61 }
0x1755   :  { %10684 = vpow2.f32 %v6985_v36 }
0x1756   :  { %v6657_v25 = vpop.f32.mrf.mxu3 }
0x1757   :  { %v6751_v48 = vmul.f32 0.35355338, %v6657_v25 }
0x1759   :  { %v9487_v56 = vclamps-f32 %v6751_v48, 5.0 }
0x175b   :  { %v10685_v22 = vpop.eup %10684  ;;  %v14783_v14 = vpop.f32.mrf.mxu2  ;;  %v6987_v37 = vmul.f32 1.442695, %v9487_v56 }
0x175c   :  { %v10148_v27 = vpack.i.bf16 %v14783_v14, %v14779_v1  ;;  %v7070_v0 = vmul.f32 %v10685_v22, %v16054_v2  ;;  %v7399_v2 = vmul.f32 %v14636_v43, %v14539_v6 }
0x175d   :  { %10686 = vpow2.f32 %v6987_v37 }
0x175e   :  { %10149 = vrot.lane.b32.xlu1 %v10148_v27, %s10837_s27  ;;  %v6659_v57 = vpop.f32.mrf.mxu3  ;;  %v7112_v49 = vpack.c.bf16 %v7070_v0, %v7069_v34 }
0x175f   :  { %v6752_v30 = vmul.f32 0.35355338, %v6659_v57 }
0x1760   :  { %v10130_v36 = vpop.permute.xlu0 %10129  ;;  %9528 = vmatmul.msk.bf16.gmra.mxu2 %vm231_vm1, %v7112_v49 }
0x1761   :  { %v9488_v25 = vclamps-f32 %v6752_v30, 5.0  ;;  %v10132_v54 = vunpack.i.h.bf16 %v10130_v36  ;;  %v10131_v48 = vunpack.i.l.bf16 %v10130_v36 }
0x1763   :  { %v6989_v21 = vmul.f32 1.442695, %v9488_v25  ;;  %9442 = vmatmul.msk.bf16.gmra.mxu3 %vm950_vm3, %v6441_v10  ;;  %v14798_v13 = vpop.f32.mrf.mxu2  ;;  %v14801_v33 = vsel %vm950_vm3, %v7398_v12, %v10131_v48  ;;  %v14804_v18 = vsel %vm950_vm3, %v7399_v2, %v10132_v54  ;;  %v10687_v34 = vpop.eup %10686  ;;  %v7400_v12 = vmul.f32 %v14648_v35, %v14533_v42 }
0x1764   :  { %v7777_v22 = vpack.c.bf16 %v14804_v18, %v14801_v33  ;;  %v7071_v40 = vmul.f32 %v10687_v34, %v16055_v53  ;;  %v7401_v53 = vmul.f32 %v14652_v3, %v14539_v6  ;;  %v16214_v35 = vpack.i.bf16 %v14579_v45, %v14577_v17 }
0x1765   :  { %10688 = vpow2.f32 %v6989_v21  ;;  %v16216_v33 = vpack.c.bf16 %v14711_v63, %v14708_v19  ;;  %v16217_v18 = vpack.i.bf16 %v14743_v31, %v14728_v55 }
0x1766   :  { %v6662_v43 = vpop.f32.mrf.mxu3 }
0x1767   :  { %v6753_v56 = vmul.f32 0.35355338, %v6662_v43 }
0x1769   :  { %v9489_v0 = vclamps-f32 %v6753_v56, 5.0 }
0x176b   :  { %v10689_v27 = vpop.eup %10688  ;;  %v14808_v41 = vpop.f32.mrf.mxu2  ;;  %v6991_v37 = vmul.f32 1.442695, %v9489_v0 }
0x176c   :  { %v7072_v57 = vmul.f32 %v10689_v27, %v16056_v59  ;;  %v10153_v49 = vpack.i.bf16 %v14808_v41, %v14798_v13 }
0x176d   :  { %10690 = vpow2.f32 %v6991_v37 }
0x176e   :  { %10154 = vrot.lane.b32.xlu1 %v10153_v49, %s10837_s27  ;;  %v6664_v7 = vpop.f32.mrf.mxu3  ;;  %v7113_v61 = vpack.c.bf16 %v7072_v57, %v7071_v40 }
0x176f   :  { %v6754_v30 = vmul.f32 0.35355338, %v6664_v7 }
0x1770   :  { %v10135_v36 = vpop.permute.xlu1 %10134  ;;  %9529 = vmatmul.msk.bf16.gmra.mxu2 %vm231_vm1, %v7113_v61  ;;  %v16215_v61 = vpack.i.bf16 %v14684_v39, %v14680_v46 }
0x1771   :  { %v9490_v10 = vclamps-f32 %v6754_v30, 5.0  ;;  %v10137_v59 = vunpack.i.h.bf16 %v10135_v36  ;;  %v10136_v2 = vunpack.i.l.bf16 %v10135_v36 }
0x1773   :  { %v6993_v25 = vmul.f32 1.442695, %v9490_v10  ;;  %v14820_v54 = vpop.f32.mrf.mxu2  ;;  %v7720_v48 = vsel %vm950_vm3, %v7400_v12, %v10136_v2  ;;  %v7721_v21 = vsel %vm950_vm3, %v7401_v53, %v10137_v59  ;;  %v10691_v34 = vpop.eup %10690  ;;  %v7402_v53 = vmul.f32 %v14664_v44, %v14533_v42 }
0x1774   :  { %v7778_v43 = vpack.c.bf16 %v7721_v21, %v7720_v48  ;;  %v7073_v57 = vmul.f32 %v10691_v34, %v11951_v8 }
0x1775   :  { %10692 = vpow2.f32 %v6993_v25 }
0x1776   :  { %10174 = vrot.lane.b32.xlu1 %v16214_v35, %s10837_s27  ;;  %v6667_v56 = vpop.f32.mrf.mxu3 }
0x1777   :  { %v6755_v3 = vmul.f32 0.35355338, %v6667_v56 }
0x1779   :  { %v9491_v0 = vclamps-f32 %v6755_v3, 5.0 }
0x177b   :  { %v10693_v27 = vpop.eup %10692  ;;  %v14828_v40 = vpop.f32.mrf.mxu2  ;;  %v6995_v12 = vmul.f32 1.442695, %v9491_v0 }
0x177c   :  { %v7074_v49 = vmul.f32 %v10693_v27, %v11938_v5  ;;  %v10158_v7 = vpack.i.bf16 %v14828_v40, %v14820_v54  ;;  %v7403_v5 = vmul.f32 %v14668_v28, %v14539_v6 }
0x177d   :  { %10694 = vpow2.f32 %v6995_v12 }
0x177e   :  { %10189 = vrot.lane.b32.xlu1 %v16215_v61, %s10837_s27  ;;  %10159 = vrot.lane.b32.xlu2 %v10158_v7, %s10837_s27  ;;  %v6669_v37 = vpop.f32.mrf.mxu3  ;;  %v7114_v30 = vpack.c.bf16 %v7074_v49, %v7073_v57 }
0x177f   :  { %v6756_v36 = vmul.f32 0.35355338, %v6669_v37 }
0x1780   :  { %v10140_v8 = vpop.permute.xlu1 %10139  ;;  %9530 = vmatmul.msk.bf16.gmra.mxu2 %vm231_vm1, %v7114_v30 }
0x1781   :  { %v9492_v10 = vclamps-f32 %v6756_v36, 5.0  ;;  %v10142_v59 = vunpack.i.h.bf16 %v10140_v8  ;;  %v10141_v2 = vunpack.i.l.bf16 %v10140_v8 }
0x1783   :  { %v6997_v25 = vmul.f32 1.442695, %v9492_v10  ;;  %v7722_v48 = vsel %vm950_vm3, %v7402_v53, %v10141_v2  ;;  %v7723_v21 = vsel %vm950_vm3, %v7403_v5, %v10142_v59  ;;  %v14846_v35 = vpop.f32.mrf.mxu2  ;;  %v10695_v34 = vpop.eup %10694  ;;  %v16219_v10 = vpack.i.bf16 %v14566_v24, %v14562_v9 }
0x1784   :  { %v7779_v56 = vpack.c.bf16 %v7723_v21, %v7722_v48  ;;  %v7075_v57 = vmul.f32 %v10695_v34, %v16057_v52 }
0x1785   :  { %10696 = vpow2.f32 %v6997_v25  ;;  %v7406_v25 = vmul.f32 %v14696_v16, %v14533_v42 }
0x1786   :  { %v6672_v44 = vpop.f32.mrf.mxu3  ;;  %7804 = vmatpush.bf16.msrb.mxu0 %v7779_v56 }
0x1787   :  { %v6757_v3 = vmul.f32 0.35355338, %v6672_v44 }
0x1789   :  { %v9493_v28 = vclamps-f32 %v6757_v3, 5.0 }
0x178a   :  { %7805 = vmatpush.bf16.msrb.mxu0 %v7778_v43 }
0x178b   :  { %v10697_v27 = vpop.eup %10696  ;;  %v14848_v0 = vpop.f32.mrf.mxu2  ;;  %v6999_v43 = vmul.f32 1.442695, %v9493_v28 }
0x178c   :  { %v7076_v49 = vmul.f32 %v10697_v27, %v16058_v32  ;;  %v10163_v7 = vpack.i.bf16 %v14848_v0, %v14846_v35 }
0x178d   :  { %10698 = vpow2.f32 %v6999_v43  ;;  %v16220_v43 = vld [vmem:[#allocation118_spill] sm:$0xff] }
0x178e   :  { %7806 = vmatpush.bf16.msrb.mxu0 %v7777_v22  ;;  %10164 = vrot.lane.b32.xlu2 %v10163_v7, %s10837_s27  ;;  %v6674_v61 = vpop.f32.mrf.mxu3  ;;  %v7115_v37 = vpack.c.bf16 %v7076_v49, %v7075_v57 }
0x178f   :  { %v6758_v30 = vmul.f32 0.35355338, %v6674_v61 }
0x1790   :  { %9531 = vmatmul.msk.bf16.gmra.mxu2 %vm231_vm1, %v7115_v37 }
0x1791   :  { %v9494_v12 = vclamps-f32 %v6758_v30, 5.0 }
0x1792   :  { %7807 = vmatpush.bf16.msrb.mxu0 %v7776_v15 }
0x1793   :  { %v7001_v52 = vmul.f32 1.442695, %v9494_v12  ;;  %v14862_v32 = vpop.f32.mrf.mxu2  ;;  %v10699_v53 = vpop.eup %10698 }
0x1794   :  { %v7077_v5 = vmul.f32 %v10699_v53, %v16059_v38  ;;  %v7407_v38 = vmul.f32 %v14704_v51, %v14539_v6 }
0x1795   :  { %10700 = vpow2.f32 %v7001_v52 }
0x1796   :  { %7808 = vmatpush.bf16.msrb.mxu0 %v16216_v33  ;;  %10169 = vrot.lane.b32.xlu2 %v16217_v18, %s10837_s27  ;;  %v6677_v22 = vpop.f32.mrf.mxu3 }
0x1797   :  { %v6759_v36 = vmul.f32 0.35355338, %v6677_v22 }
0x1799   :  { %v9495_v15 = vclamps-f32 %v6759_v36, 5.0 }
0x179a   :  { %7809 = vmatpush.bf16.msrb.mxu0 %v16218_v4 }
0x179b   :  { %v10701_v11 = vpop.eup %10700  ;;  %v14874_v8 = vpop.f32.mrf.mxu2  ;;  %v7003_v62 = vmul.f32 1.442695, %v9495_v15 }
0x179c   :  { %v7078_v19 = vmul.f32 %v10701_v11, %v16060_v60  ;;  %v10263_v63 = vpack.i.bf16 %v14874_v8, %v14862_v32 }
0x179d   :  { %10702 = vpow2.f32 %v7003_v62  ;;  %v16222_v62 = vld [vmem:[#allocation125_spill] sm:$0xff] }
0x179e   :  { %10184 = vrot.lane.b32.xlu2 %v16219_v10, %s10837_s27  ;;  %v6679_v59 = vpop.f32.mrf.mxu3  ;;  %v7116_v2 = vpack.c.bf16 %v7078_v19, %v7077_v5 }
0x179f   :  { %v6760_v47 = vmul.f32 0.35355338, %v6679_v59  ;;  %v16221_v59 = vld [vmem:[#allocation124_spill] sm:$0xff] }
0x17a0   :  { %v10180_v48 = vpop.permute.xlu0 %10179  ;;  %9532 = vmatmul.msk.bf16.gmra.mxu2 %vm231_vm1, %v7116_v2 }
0x17a1   :  { %v9496_v60 = vclamps-f32 %v6760_v47, 5.0  ;;  %v10182_v21 = vunpack.i.h.bf16 %v10180_v48  ;;  %v10181_v56 = vunpack.i.l.bf16 %v10180_v48 }
0x17a3   :  { %v7005_v44 = vmul.f32 1.442695, %v9496_v60  ;;  %v14889_v3 = vpop.f32.mrf.mxu2  ;;  %v14892_v34 = vsel %vm950_vm3, %v7406_v25, %v10181_v56  ;;  %v14895_v27 = vsel %vm950_vm3, %v7407_v38, %v10182_v21  ;;  %v10703_v51 = vpop.eup %10702  ;;  %v7410_v56 = vmul.f32 %v14762_v29, %v14533_v42 }
0x17a4   :  { %v7781_v16 = vpack.c.bf16 %v14895_v27, %v14892_v34  ;;  %v7079_v37 = vmul.f32 %v10703_v51, %v16061_v23 }
0x17a5   :  { %10704 = vpow2.f32 %v7005_v44 }
0x17a6   :  { %v6682_v28 = vpop.f32.mrf.mxu3 }
0x17a7   :  { %v6761_v57 = vmul.f32 0.35355338, %v6682_v28  ;;  %v7411_v28 = vmul.f32 %v14766_v58, %v14539_v6 }
0x17a9   :  { %v9497_v7 = vclamps-f32 %v6761_v57, 5.0 }
0x17ab   :  { %v10705_v49 = vpop.eup %10704  ;;  %v14899_v61 = vpop.f32.mrf.mxu2  ;;  %v7007_v18 = vmul.f32 1.442695, %v9497_v7 }
0x17ac   :  { %v7080_v30 = vmul.f32 %v10705_v49, %v16220_v43  ;;  %v10253_v12 = vpack.i.bf16 %v14899_v61, %v14889_v3 }
0x17ad   :  { %10706 = vpow2.f32 %v7007_v18 }
0x17ae   :  { %v6684_v52 = vpop.f32.mrf.mxu3  ;;  %v7117_v33 = vpack.c.bf16 %v7080_v30, %v7079_v37 }
0x17af   :  { %v6762_v22 = vmul.f32 0.35355338, %v6684_v52 }
0x17b0   :  { %9533 = vmatmul.msk.bf16.gmra.mxu2 %vm231_vm1, %v7117_v33 }
0x17b1   :  { %v9498_v36 = vclamps-f32 %v6762_v22, 5.0 }
0x17b3   :  { %v7009_v53 = vmul.f32 1.442695, %v9498_v36  ;;  %v14906_v4 = vpop.f32.mrf.mxu2  ;;  %v10707_v23 = vpop.eup %10706 }
0x17b4   :  { %v7081_v2 = vmul.f32 %v10707_v23, %v16221_v59 }
0x17b5   :  { %10708 = vpow2.f32 %v7009_v53  ;;  %v16223_v53 = vld [vmem:[#allocation122_spill] sm:$0xff] }
0x17b6   :  { %v6687_v11 = vpop.f32.mrf.mxu3 }
0x17b7   :  { %v6763_v15 = vmul.f32 0.35355338, %v6687_v11 }
0x17b9   :  { %v9499_v19 = vclamps-f32 %v6763_v15, 5.0  ;;  %v16224_v15 = vld [vmem:[#allocation127_spill] sm:$0xff] }
0x17bb   :  { %v10709_v5 = vpop.eup %10708  ;;  %v14908_v10 = vpop.f32.mrf.mxu2  ;;  %v7011_v60 = vmul.f32 1.442695, %v9499_v19 }
0x17bc   :  { %v7082_v47 = vmul.f32 %v10709_v5, %v16222_v62  ;;  %v10243_v25 = vpack.i.bf16 %v14908_v10, %v14906_v4 }
0x17bd   :  { %10710 = vpow2.f32 %v7011_v60 }
0x17be   :  { %v6689_v48 = vpop.f32.mrf.mxu3  ;;  %v7118_v38 = vpack.c.bf16 %v7082_v47, %v7081_v2  ;;  %v7412_v47 = vmul.f32 %v14779_v1, %v14533_v42 }
0x17bf   :  { %v6764_v21 = vmul.f32 0.35355338, %v6689_v48 }
0x17c0   :  { %v10145_v44 = vpop.permute.xlu1 %10144  ;;  %9534 = vmatmul.msk.bf16.gmra.mxu2 %vm231_vm1, %v7118_v38  ;;  %v7413_v38 = vmul.f32 %v14783_v14, %v14539_v6 }
0x17c1   :  { %v9500_v57 = vclamps-f32 %v6764_v21, 5.0  ;;  %v10147_v51 = vunpack.i.h.bf16 %v10145_v44  ;;  %v10146_v49 = vunpack.i.l.bf16 %v10145_v44 }
0x17c3   :  { %v7013_v7 = vmul.f32 1.442695, %v9500_v57  ;;  %v14919_v37 = vpop.f32.mrf.mxu2  ;;  %v14922_v43 = vsel %vm950_vm3, %v7410_v56, %v10146_v49  ;;  %v14925_v30 = vsel %vm950_vm3, %v7411_v28, %v10147_v51  ;;  %v10711_v58 = vpop.eup %10710 }
0x17c4   :  { %v7783_v29 = vpack.c.bf16 %v14925_v30, %v14922_v43  ;;  %v7083_v11 = vmul.f32 %v10711_v58, %v16223_v53  ;;  %v7417_v58 = vmul.f32 %v14828_v40, %v14539_v6 }
0x17c5   :  { %10712 = vpow2.f32 %v7013_v7 }
0x17c6   :  { %v6692_v52 = vpop.f32.mrf.mxu3 }
0x17c7   :  { %v6765_v33 = vmul.f32 0.35355338, %v6692_v52 }
0x17c9   :  { %v9501_v22 = vclamps-f32 %v6765_v33, 5.0  ;;  %v7416_v33 = vmul.f32 %v14820_v54, %v14533_v42 }
0x17cb   :  { %v10713_v18 = vpop.eup %10712  ;;  %v14929_v36 = vpop.f32.mrf.mxu2  ;;  %v7015_v2 = vmul.f32 1.442695, %v9501_v22 }
0x17cc   :  { %v7084_v23 = vmul.f32 %v10713_v18, %v16224_v15  ;;  %v10233_v5 = vpack.i.bf16 %v14929_v36, %v14919_v37 }
0x17cd   :  { %10714 = vpow2.f32 %v7015_v2 }
0x17ce   :  { %v6694_v19 = vpop.f32.mrf.mxu3  ;;  %v7119_v59 = vpack.c.bf16 %v7084_v23, %v7083_v11 }
0x17cf   :  { %v6766_v62 = vmul.f32 0.35355338, %v6694_v19 }
0x17d0   :  { %v10150_v48 = vpop.permute.xlu1 %10149  ;;  %9535 = vmatmul.msk.bf16.gmra.mxu2 %vm231_vm1, %v7119_v59  ;;  %v16225_v59 = vld [vmem:[#allocation128_spill] sm:$0xff] }
0x17d1   :  { %v9502_v60 = vclamps-f32 %v6766_v62, 5.0  ;;  %v10152_v21 = vunpack.i.h.bf16 %v10150_v48  ;;  %v10151_v56 = vunpack.i.l.bf16 %v10150_v48  ;;  %v16226_v62 = vld [vmem:[#allocation126_spill] sm:$0xff] }
0x17d3   :  { %v7017_v44 = vmul.f32 1.442695, %v9502_v60  ;;  %v14940_v28 = vpop.f32.mrf.mxu2  ;;  %v14943_v57 = vsel %vm950_vm3, %v7412_v47, %v10151_v56  ;;  %v14946_v51 = vsel %vm950_vm3, %v7413_v38, %v10152_v21  ;;  %v10715_v52 = vpop.eup %10714  ;;  %v7414_v56 = vmul.f32 %v14798_v13, %v14533_v42 }
0x17d4   :  { %v7784_v1 = vpack.c.bf16 %v14946_v51, %v14943_v57  ;;  %v7085_v2 = vmul.f32 %v10715_v52, %v16225_v59  ;;  %v7390_v59 = vmul.f32 %v14577_v17, %v14533_v42 }
0x17d5   :  { %10716 = vpow2.f32 %v7017_v44 }
0x17d6   :  { %v6697_v49 = vpop.f32.mrf.mxu3 }
0x17d7   :  { %v6767_v7 = vmul.f32 0.35355338, %v6697_v49  ;;  %v7415_v49 = vmul.f32 %v14808_v41, %v14539_v6  ;;  %v7391_v41 = vmul.f32 %v14579_v45, %v14539_v6 }
0x17d8   :  { %v10160_v14 = vpop.permute.xlu2 %10159 }
0x17d9   :  { %v10162_v18 = vunpack.i.h.bf16 %v10160_v14  ;;  %v10161_v22 = vunpack.i.l.bf16 %v10160_v14  ;;  %v9503_v11 = vclamps-f32 %v6767_v7, 5.0 }
0x17db   :  { %v10717_v53 = vpop.eup %10716  ;;  %v14954_v15 = vpop.f32.mrf.mxu2  ;;  %v14957_v23 = vsel %vm950_vm3, %v7416_v33, %v10161_v22  ;;  %v14960_v19 = vsel %vm950_vm3, %v7417_v58, %v10162_v18  ;;  %v7019_v60 = vmul.f32 1.442695, %v9503_v11 }
0x17dc   :  { %v7086_v47 = vmul.f32 %v10717_v53, %v16226_v62  ;;  %v10193_v54 = vpack.i.bf16 %v14954_v15, %v14940_v28  ;;  %v7786_v40 = vpack.c.bf16 %v14960_v19, %v14957_v23  ;;  %v7388_v23 = vmul.f32 %v14562_v9, %v14533_v42 }
0x17dd   :  { %10718 = vpow2.f32 %v7019_v60  ;;  %v7389_v19 = vmul.f32 %v14566_v24, %v14539_v6  ;;  %v16231_v24 = vld [vmem:[#allocation181_spill] sm:$0xff] }
0x17de   :  { %10194 = vrot.lane.b32.xlu0 %v10193_v54, %s10837_s27  ;;  %v6699_v48 = vpop.f32.mrf.mxu3  ;;  %v7120_v38 = vpack.c.bf16 %v7086_v47, %v7085_v2  ;;  %v7419_v54 = vmul.f32 %v14848_v0, %v14539_v6  ;;  %v16228_v0 = vld [vmem:[#allocation132_spill] sm:$0xff] }
0x17df   :  { %v6768_v21 = vmul.f32 0.35355338, %v6699_v48 }
0x17e0   :  { %v10155_v44 = vpop.permute.xlu1 %10154  ;;  %9536 = vmatmul.msk.bf16.gmra.mxu2 %vm231_vm1, %v7120_v38 }
0x17e1   :  { %v9504_v7 = vclamps-f32 %v6768_v21, 5.0  ;;  %v10157_v14 = vunpack.i.h.bf16 %v10155_v44  ;;  %v10156_v52 = vunpack.i.l.bf16 %v10155_v44  ;;  %v7418_v21 = vmul.f32 %v14846_v35, %v14533_v42 }
0x17e3   :  { %v7021_v33 = vmul.f32 1.442695, %v9504_v7  ;;  %v14974_v58 = vpop.f32.mrf.mxu2  ;;  %v7734_v18 = vsel %vm950_vm3, %v7414_v56, %v10156_v52  ;;  %v7735_v22 = vsel %vm950_vm3, %v7415_v49, %v10157_v14  ;;  %v10719_v47 = vpop.eup %10718  ;;  %v16227_v52 = vld [vmem:[#allocation131_spill] sm:$0xff] }
0x17e4   :  { %v7785_v53 = vpack.c.bf16 %v7735_v22, %v7734_v18 }
0x17e5   :  { %10720 = vpow2.f32 %v7021_v33  ;;  %v7087_v33 = vmul.f32 %v10719_v47, %v16227_v52  ;;  %v7405_v47 = vmul.f32 %v14684_v39, %v14539_v6 }
0x17e6   :  { %v6702_v13 = vpop.f32.mrf.mxu3 }
0x17e7   :  { %v6769_v11 = vmul.f32 0.35355338, %v6702_v13 }
0x17e8   :  { %v10175_v2 = vpop.permute.xlu1 %10174  ;;  %v10165_v62 = vpop.permute.xlu2 %10164 }
0x17e9   :  { %v10177_v48 = vunpack.i.h.bf16 %v10175_v2  ;;  %v10176_v38 = vunpack.i.l.bf16 %v10175_v2  ;;  %v10167_v60 = vunpack.i.h.bf16 %v10165_v62  ;;  %v9505_v56 = vclamps-f32 %v6769_v11, 5.0 }
0x17ea   :  { %v10166_v44 = vunpack.i.l.bf16 %v10165_v62 }
0x17eb   :  { %v10721_v49 = vpop.eup %10720  ;;  %v7739_v17 = vsel %vm950_vm3, %v7419_v54, %v10167_v60  ;;  %v14987_v7 = vpop.f32.mrf.mxu2  ;;  %v7710_v45 = vsel %vm950_vm3, %v7390_v59, %v10176_v38  ;;  %v7711_v14 = vsel %vm950_vm3, %v7391_v41, %v10177_v48  ;;  %v7023_v2 = vmul.f32 1.442695, %v9505_v56 }
0x17ec   :  { %v7088_v18 = vmul.f32 %v10721_v49, %v16228_v0  ;;  %v7738_v22 = vsel %vm950_vm3, %v7418_v21, %v10166_v44  ;;  %v10198_v35 = vpack.i.bf16 %v14987_v7, %v14974_v58  ;;  %v7773_v11 = vpack.c.bf16 %v7711_v14, %v7710_v45 }
0x17ed   :  { %v7787_v13 = vpack.c.bf16 %v7739_v17, %v7738_v22  ;;  %v7404_v41 = vmul.f32 %v14680_v46, %v14533_v42  ;;  %v7409_v48 = vmul.f32 %v14743_v31, %v14539_v6  ;;  %v7408_v17 = vmul.f32 %v14728_v55, %v14533_v42 }
0x17ee   :  { %10199 = vrot.lane.b32.xlu2 %v10198_v35, %s10837_s27  ;;  %v6704_v62 = vpop.f32.mrf.mxu3  ;;  %v7121_v54 = vpack.c.bf16 %v7088_v18, %v7087_v33  ;;  %7810 = vmatpush.bf16.msrb.mxu0 %v7773_v11  ;;  %10722 = vpow2.f32 %v7023_v2 }
0x17ef   :  { %7823 = vmatpush.bf16.msrb.mxu1 %v7787_v13  ;;  %v6770_v59 = vmul.f32 0.35355338, %v6704_v62  ;;  %v16229_v62 = vld [vmem:[#allocation129_spill] sm:$0xff] }
0x17f0   :  { %v10190_v38 = vpop.permute.xlu1 %10189  ;;  %v10170_v60 = vpop.permute.xlu2 %10169  ;;  %9537 = vmatmul.msk.bf16.gmra.mxu2 %vm231_vm1, %v7121_v54 }
0x17f1   :  { %v9506_v21 = vclamps-f32 %v6770_v59, 5.0  ;;  %v10192_v56 = vunpack.i.h.bf16 %v10190_v38  ;;  %v10191_v44 = vunpack.i.l.bf16 %v10190_v38  ;;  %v10172_v49 = vunpack.i.h.bf16 %v10170_v60  ;;  %v16230_v59 = vld [vmem:[#allocation133_spill] sm:$0xff]  ;;  %v16234_v38 = vld [vmem:[#allocation183_spill] sm:$0xff] }
0x17f2   :  { %v10171_v45 = vunpack.i.l.bf16 %v10170_v60 }
0x17f3   :  { %v7025_v46 = vmul.f32 1.442695, %v9506_v21  ;;  %7824 = vmatpush.bf16.msrb.mxu1 %v7786_v40  ;;  %v15009_v39 = vpop.f32.mrf.mxu2  ;;  %v7729_v31 = vsel %vm950_vm3, %v7409_v48, %v10172_v49  ;;  %v7724_v14 = vsel %vm950_vm3, %v7404_v41, %v10191_v44  ;;  %v7725_v52 = vsel %vm950_vm3, %v7405_v47, %v10192_v56  ;;  %v16232_v47 = vld [vmem:[#allocation179_spill] sm:$0xff]  ;;  %v16233_v48 = vld [vmem:[#allocation185_spill] sm:$0xff] }
0x17f4   :  { %v7728_v33 = vsel %vm950_vm3, %v7408_v17, %v10171_v45  ;;  %v7780_v0 = vpack.c.bf16 %v7725_v52, %v7724_v14  ;;  %v10723_v18 = vpop.eup %10722  ;;  %v7430_v17 = vmul.f32 %v14974_v58, %v14548_v20  ;;  %v7431_v45 = vmul.f32 %v14987_v7, %v14553_v50 }
0x17f5   :  { %10724 = vpow2.f32 %v7025_v46  ;;  %v7782_v55 = vpack.c.bf16 %v7729_v31, %v7728_v33  ;;  %v7089_v54 = vmul.f32 %v10723_v18, %v16229_v62  ;;  %v7428_v18 = vmul.f32 %v14940_v28, %v14548_v20 }
0x17f7   :  { %7825 = vmatpush.bf16.msrb.mxu1 %v7785_v53 }
0x17f8   :  { %v10185_v22 = vpop.permute.xlu2 %10184 }
0x17f9   :  { %v10187_v40 = vunpack.i.h.bf16 %v10185_v22  ;;  %v10186_v35 = vunpack.i.l.bf16 %v10185_v22  ;;  %v7429_v22 = vmul.f32 %v14954_v15, %v14553_v50  ;;  %v7432_v15 = vmul.f32 %v15009_v39, %v14548_v20 }
0x17fb   :  { %v10725_v13 = vpop.eup %10724  ;;  %7826 = vmatpush.bf16.msrb.mxu1 %v7784_v1  ;;  %v7340_v11 = vpop.f32.mrf.mxu2  ;;  %v7708_v2 = vsel %vm950_vm3, %v7388_v23, %v10186_v35  ;;  %v7709_v53 = vsel %vm950_vm3, %v7389_v19, %v10187_v40 }
0x17fc   :  { %v7090_v41 = vmul.f32 %v10725_v13, %v16230_v59  ;;  %v10203_v42 = vpack.i.bf16 %v7340_v11, %v15009_v39  ;;  %v7772_v9 = vpack.c.bf16 %v7709_v53, %v7708_v2 }
0x17fe   :  { %7811 = vmatpush.bf16.msrb.mxu0 %v7772_v9  ;;  %10204 = vrot.lane.b32.xlu1 %v10203_v42, %s10837_s27  ;;  %v7122_v6 = vpack.c.bf16 %v7090_v41, %v7089_v54  ;;  %v7433_v54 = vmul.f32 %v7340_v11, %v14553_v50 }
0x17ff   :  { %7827 = vmatpush.bf16.msrb.mxu1 %v7783_v29 }
0x1800   :  { %9538 = vmatmul.msk.bf16.gmra.mxu2 %vm231_vm1, %v7122_v6 }
0x1801   :  { %7812 = vmatmul.bf16.vlgmr.msrb.gmra.mxu0 %v16231_v24 }
0x1803   :  { %7828 = vmatpush.bf16.msrb.mxu1 %v7782_v55  ;;  %v7343_v57 = vpop.f32.mrf.mxu2 }
0x1804   :  { %v7434_v11 = vmul.f32 %v7343_v57, %v14548_v20 }
0x1807   :  { %7829 = vmatpush.bf16.msrb.mxu1 %v7781_v16 }
0x180b   :  { %7830 = vmatpush.bf16.msrb.mxu1 %v7780_v0  ;;  %v7345_v51 = vpop.f32.mrf.mxu2 }
0x180c   :  { %v10208_v1 = vpack.i.bf16 %v7345_v51, %v7343_v57 }
0x180e   :  { %10209 = vrot.lane.b32.xlu0 %v10208_v1, %s10837_s27  ;;  %7831 = vmatmul.bf16.vlgmr.msrb.gmra.mxu1 %v16232_v47 }
0x1811   :  { %7817 = vmatmul.bf16.gmra.mxu0 %v16233_v48  ;;  %v7435_v48 = vmul.f32 %v7345_v51, %v14553_v50 }
0x1813   :  { %v15039_v43 = vpop.f32.mrf.mxu2 }
0x181b   :  { %v15041_v30 = vpop.f32.mrf.mxu2 }
0x181c   :  { %v10268_v29 = vpack.i.bf16 %v15041_v30, %v15039_v43 }
0x181e   :  { %7836 = vmatmul.bf16.gmra.mxu1 %v16234_v38 }
0x1823   :  { %v15046_v34 = vpop.f32.mrf.mxu2 }
0x182b   :  { %v15048_v27 = vpop.f32.mrf.mxu2 }
0x182c   :  { %v10258_v16 = vpack.i.bf16 %v15048_v27, %v15046_v34 }
0x1833   :  { %v15052_v60 = vpop.f32.mrf.mxu2 }
0x183b   :  { %v15054_v21 = vpop.f32.mrf.mxu2 }
0x183c   :  { %v10248_v56 = vpack.i.bf16 %v15054_v21, %v15052_v60 }
0x1843   :  { %v15058_v44 = vpop.f32.mrf.mxu2 }
0x1848   :  { %v10200_v49 = vpop.permute.xlu2 %10199 }
0x1849   :  { %v10202_v46 = vunpack.i.h.bf16 %v10200_v49  ;;  %v10201_v31 = vunpack.i.l.bf16 %v10200_v49 }
0x184b   :  { %v15064_v14 = vpop.f32.mrf.mxu2  ;;  %v7750_v52 = vsel %vm950_vm3, %v7430_v17, %v10201_v31  ;;  %v7751_v33 = vsel %vm950_vm3, %v7431_v45, %v10202_v46 }
0x184c   :  { %v7793_v0 = vpack.c.bf16 %v7751_v33, %v7750_v52 }
0x1850   :  { %v10195_v55 = vpop.permute.xlu0 %10194 }
0x1851   :  { %v10197_v58 = vunpack.i.h.bf16 %v10195_v55  ;;  %v10196_v23 = vunpack.i.l.bf16 %v10195_v55 }
0x1853   :  { %v15072_v19 = vpop.f32.mrf.mxu2  ;;  %v7748_v7 = vsel %vm950_vm3, %v7428_v18, %v10196_v23  ;;  %v7749_v40 = vsel %vm950_vm3, %v7429_v22, %v10197_v58  ;;  %v7427_v22 = vmul.f32 %v14929_v36, %v14553_v50 }
0x1854   :  { %v7792_v35 = vpack.c.bf16 %v7749_v40, %v7748_v7 }
0x185b   :  { %v15076_v13 = vpop.f32.mrf.mxu2 }
0x1863   :  { %v7373_v2 = vpop.f32.mrf.mxu2 }
0x186b   :  { %v7375_v53 = vpop.f32.mrf.mxu2 }
0x186c   :  { %v10213_v62 = vpack.i.bf16 %v7375_v53, %v7373_v2  ;;  %v7447_v52 = vmul.f32 %v7375_v53, %v14553_v50 }
0x186e   :  { %10214 = vrot.lane.b32.xlu1 %v10213_v62, %s10837_s27 }
0x1870   :  { %v10205_v28 = vpop.permute.xlu1 %10204 }
0x1871   :  { %v10207_v59 = vunpack.i.h.bf16 %v10205_v28  ;;  %v10206_v41 = vunpack.i.l.bf16 %v10205_v28 }
0x1873   :  { %v7378_v42 = vpop.f32.mrf.mxu2  ;;  %v7752_v9 = vsel %vm950_vm3, %v7432_v15, %v10206_v41  ;;  %v7753_v6 = vsel %vm950_vm3, %v7433_v54, %v10207_v59  ;;  %v7440_v59 = vmul.f32 %v15052_v60, %v14548_v20  ;;  %v7441_v41 = vmul.f32 %v15054_v21, %v14553_v50 }
0x1874   :  { %v7794_v24 = vpack.c.bf16 %v7753_v6, %v7752_v9  ;;  %v7448_v9 = vmul.f32 %v7378_v42, %v14548_v20  ;;  %v7445_v60 = vmul.f32 %v15076_v13, %v14553_v50 }
0x1876   :  { %10234 = vrot.lane.b32.xlu1 %v10233_v5, %s10837_s27  ;;  %v10238_v5 = vpack.i.bf16 %v15064_v14, %v15058_v44 }
0x187b   :  { %v7380_v1 = vpop.f32.mrf.mxu2 }
0x187c   :  { %v10218_v47 = vpack.i.bf16 %v7380_v1, %v7378_v42  ;;  %v7449_v6 = vmul.f32 %v7380_v1, %v14553_v50 }
0x187e   :  { %10249 = vrot.lane.b32.xlu1 %v10248_v56, %s10837_s27  ;;  %10219 = vrot.lane.b32.xlu0 %v10218_v47, %s10837_s27  ;;  %v10228_v56 = vpack.i.bf16 %v15076_v13, %v15072_v19  ;;  %v7420_v13 = vmul.f32 %v14862_v32, %v14548_v20 }
0x1880   :  { %v10210_v39 = vpop.permute.xlu0 %10209 }
0x1881   :  { %v10212_v38 = vunpack.i.h.bf16 %v10210_v39  ;;  %v10211_v49 = vunpack.i.l.bf16 %v10210_v39 }
0x1883   :  { %v7754_v17 = vsel %vm950_vm3, %v7434_v11, %v10211_v49  ;;  %v7755_v45 = vsel %vm950_vm3, %v7435_v48, %v10212_v38  ;;  %v7383_v46 = vpop.f32.mrf.mxu2 }
0x1884   :  { %v7795_v31 = vpack.c.bf16 %v7755_v45, %v7754_v17  ;;  %v7444_v17 = vmul.f32 %v15072_v19, %v14548_v20 }
0x1886   :  { %7842 = vmatpush.bf16.msra.mxu0 %v7795_v31  ;;  %10264 = vrot.lane.b32.xlu1 %v10263_v63, %s10837_s27 }
0x1887   :  { %10239 = vrot.lane.b32.xlu0 %v10238_v5, %s10837_s27 }
0x188a   :  { %7843 = vmatpush.bf16.msra.mxu0 %v7794_v24 }
0x188b   :  { %v7385_v57 = vpop.f32.mrf.mxu2 }
0x188c   :  { %v10223_v51 = vpack.i.bf16 %v7385_v57, %v7383_v46  ;;  %v7451_v58 = vmul.f32 %v7385_v57, %v14553_v50 }
0x188e   :  { %7844 = vmatpush.bf16.msra.mxu0 %v7793_v0  ;;  %10224 = vrot.lane.b32.xlu2 %v10223_v51, %s10837_s27 }
0x188f   :  { %10254 = vrot.lane.b32.xlu0 %v10253_v12, %s10837_s27  ;;  %v7446_v12 = vmul.f32 %v7373_v2, %v14548_v20 }
0x1892   :  { %7845 = vmatpush.bf16.msra.mxu0 %v7792_v35 }
0x1896   :  { %10229 = vrot.lane.b32.xlu2 %v10228_v56, %s10837_s27 }
0x1897   :  { %10269 = vrot.lane.b32.xlu0 %v10268_v29, %s10837_s27 }
0x189e   :  { %10244 = vrot.lane.b32.xlu2 %v10243_v25, %s10837_s27  ;;  %v7426_v25 = vmul.f32 %v14919_v37, %v14548_v20 }
0x18a6   :  { %10259 = vrot.lane.b32.xlu2 %v10258_v16, %s10837_s27  ;;  %v7450_v16 = vmul.f32 %v7383_v46, %v14548_v20 }
0x18e0   :  { %v10215_v63 = vpop.permute.xlu1 %10214 }
0x18e1   :  { %v10217_v33 = vunpack.i.h.bf16 %v10215_v63  ;;  %v10216_v0 = vunpack.i.l.bf16 %v10215_v63  ;;  %v7421_v63 = vmul.f32 %v14874_v8, %v14553_v50 }
0x18e3   :  { %v7766_v55 = vsel %vm950_vm3, %v7446_v12, %v10216_v0  ;;  %v7767_v29 = vsel %vm950_vm3, %v7447_v52, %v10217_v33  ;;  %v7424_v12 = vmul.f32 %v14906_v4, %v14548_v20  ;;  %v7425_v52 = vmul.f32 %v14908_v10, %v14553_v50 }
0x18e4   :  { %v7801_v18 = vpack.c.bf16 %v7767_v29, %v7766_v55  ;;  %v7442_v0 = vmul.f32 %v15058_v44, %v14548_v20  ;;  %v7443_v55 = vmul.f32 %v15064_v14, %v14553_v50 }
0x18e8   :  { %v10235_v23 = vpop.permute.xlu1 %10234  ;;  %v10225_v7 = vpop.permute.xlu2 %10224 }
0x18e9   :  { %v10237_v40 = vunpack.i.h.bf16 %v10235_v23  ;;  %v10236_v35 = vunpack.i.l.bf16 %v10235_v23  ;;  %v10227_v2 = vunpack.i.h.bf16 %v10225_v7  ;;  %v10226_v53 = vunpack.i.l.bf16 %v10225_v7 }
0x18eb   :  { %v7770_v62 = vsel %vm950_vm3, %v7450_v16, %v10226_v53  ;;  %v7771_v28 = vsel %vm950_vm3, %v7451_v58, %v10227_v2  ;;  %v7746_v15 = vsel %vm950_vm3, %v7426_v25, %v10236_v35  ;;  %v7747_v37 = vsel %vm950_vm3, %v7427_v22, %v10237_v40 }
0x18ec   :  { %v7803_v54 = vpack.c.bf16 %v7771_v28, %v7770_v62  ;;  %v7791_v36 = vpack.c.bf16 %v7747_v37, %v7746_v15  ;;  %v7423_v62 = vmul.f32 %v14899_v61, %v14553_v50  ;;  %v7438_v28 = vmul.f32 %v15046_v34, %v14548_v20 }
0x18ed   :  { %v7439_v15 = vmul.f32 %v15048_v27, %v14553_v50 }
0x18ee   :  { %7846 = vmatpush.bf16.msra.mxu0 %v7791_v36  ;;  %7861 = vmatpush.bf16.msra.mxu1 %v7803_v54 }
0x18f0   :  { %v10250_v24 = vpop.permute.xlu1 %10249  ;;  %v10220_v47 = vpop.permute.xlu0 %10219 }
0x18f1   :  { %v10252_v39 = vunpack.i.h.bf16 %v10250_v24  ;;  %v10251_v11 = vunpack.i.l.bf16 %v10250_v24  ;;  %v10222_v48 = vunpack.i.h.bf16 %v10220_v47  ;;  %v10221_v38 = vunpack.i.l.bf16 %v10220_v47  ;;  %v10230_v49 = vpop.permute.xlu2 %10229 }
0x18f2   :  { %v10232_v45 = vunpack.i.h.bf16 %v10230_v49  ;;  %v10231_v46 = vunpack.i.l.bf16 %v10230_v49 }
0x18f3   :  { %v7768_v21 = vsel %vm950_vm3, %v7448_v9, %v10221_v38  ;;  %v7769_v42 = vsel %vm950_vm3, %v7449_v6, %v10222_v48  ;;  %v7760_v1 = vsel %vm950_vm3, %v7440_v59, %v10251_v11  ;;  %v7761_v31 = vsel %vm950_vm3, %v7441_v41, %v10252_v39 }
0x18f4   :  { %v7802_v5 = vpack.c.bf16 %v7769_v42, %v7768_v21  ;;  %v7764_v57 = vsel %vm950_vm3, %v7444_v17, %v10231_v46  ;;  %v7765_v51 = vsel %vm950_vm3, %v7445_v60, %v10232_v45  ;;  %v7798_v56 = vpack.c.bf16 %v7761_v31, %v7760_v1  ;;  %v16235_v45 = vld [vmem:[#allocation191_spill] sm:$0xff]  ;;  %v16236_v46 = vld [vmem:[#allocation197_spill] sm:$0xff] }
0x18f5   :  { %v7800_v19 = vpack.c.bf16 %v7765_v51, %v7764_v57  ;;  %v7436_v39 = vmul.f32 %v15039_v43, %v14548_v20  ;;  %v7437_v11 = vmul.f32 %v15041_v30, %v14553_v50  ;;  %v7813_v43 = vpop.f32.mrf.mxu0  ;;  %v7832_v50 = vpop.f32.mrf.mxu1 }
0x18f6   :  { %7862 = vmatpush.bf16.msra.mxu1 %v7802_v5  ;;  %v7833_v51 = vadd.f32 %v7832_v50, %v7813_v43 }
0x18f8   :  { %v10265_v33 = vpop.permute.xlu1 %10264 }
0x18f9   :  { %v10267_v29 = vunpack.i.h.bf16 %v10265_v33  ;;  %v10266_v25 = vunpack.i.l.bf16 %v10265_v33  ;;  %v10240_v22 = vpop.permute.xlu0 %10239  ;;  %v10245_v32 = vpop.permute.xlu2 %10244  ;;  %v9738_v33 = vld [vmem:[%s15442_s10 + $0x50] sm:$0xff] }
0x18fa   :  { %v10242_v16 = vunpack.i.h.bf16 %v10240_v22  ;;  %v10241_v58 = vunpack.i.l.bf16 %v10240_v22  ;;  %v10247_v8 = vunpack.i.h.bf16 %v10245_v32  ;;  %v10246_v23 = vunpack.i.l.bf16 %v10245_v32  ;;  %7863 = vmatpush.bf16.msra.mxu1 %v7801_v18 }
0x18fb   :  { %v7740_v4 = vsel %vm950_vm3, %v7420_v13, %v10266_v25  ;;  %v7741_v10 = vsel %vm950_vm3, %v7421_v63, %v10267_v29  ;;  %v7422_v18 = vmul.f32 %v14889_v3, %v14548_v20  ;;  %v16237_v20 = vld [vmem:[#allocation195_spill] sm:$0xff]  ;;  %v9737_v25 = vld [vmem:[%s15442_s10 + $0x48] sm:$0xff] }
0x18fc   :  { %v7744_v7 = vsel %vm950_vm3, %v7424_v12, %v10246_v23  ;;  %v7745_v44 = vsel %vm950_vm3, %v7425_v52, %v10247_v8  ;;  %v7762_v40 = vsel %vm950_vm3, %v7442_v0, %v10241_v58  ;;  %v7763_v14 = vsel %vm950_vm3, %v7443_v55, %v10242_v16  ;;  %v9739_v12 = vld [vmem:[%s15442_s10 + $0x58] sm:$0xff] }
0x18fd   :  { %v7790_v35 = vpack.c.bf16 %v7745_v44, %v7744_v7  ;;  %v7799_v2 = vpack.c.bf16 %v7763_v14, %v7762_v40  ;;  %v7788_v53 = vpack.c.bf16 %v7741_v10, %v7740_v4  ;;  %v7815_v30 = vpop.f32.mrf.mxu0  ;;  %v7834_v21 = vpop.f32.mrf.mxu1 }
0x18fe   :  { %7864 = vmatpush.bf16.msra.mxu1 %v7800_v19  ;;  %v7835_v52 = vadd.f32 %v7834_v21, %v7815_v30 }
0x18ff   :  { %7847 = vmatpush.bf16.msra.mxu0 %v7790_v35 }
0x1901   :  { %v10255_v37 = vpop.permute.xlu0 %10254  ;;  %v10260_v54 = vpop.permute.xlu2 %10259 }
0x1902   :  { %v10257_v36 = vunpack.i.h.bf16 %v10255_v37  ;;  %v10256_v59 = vunpack.i.l.bf16 %v10255_v37  ;;  %v10262_v41 = vunpack.i.h.bf16 %v10260_v54  ;;  %v10261_v9 = vunpack.i.l.bf16 %v10260_v54  ;;  %7865 = vmatpush.bf16.msra.mxu1 %v7799_v2 }
0x1904   :  { %v7742_v6 = vsel %vm950_vm3, %v7422_v18, %v10256_v59  ;;  %v7743_v3 = vsel %vm950_vm3, %v7423_v62, %v10257_v36  ;;  %v7758_v24 = vsel %vm950_vm3, %v7438_v28, %v10261_v9  ;;  %v7759_v61 = vsel %vm950_vm3, %v7439_v15, %v10262_v41  ;;  %v9736_v28 = vld [vmem:[%s15442_s10 + $0x40] sm:$0xff] }
0x1905   :  { %v7789_v47 = vpack.c.bf16 %v7743_v3, %v7742_v6  ;;  %v7797_v34 = vpack.c.bf16 %v7759_v61, %v7758_v24  ;;  %v7818_v42 = vpop.f32.mrf.mxu0  ;;  %v7837_v1 = vpop.f32.mrf.mxu1  ;;  %v15212_v61 = vld [vmem:[%s15445_s13 + $0x10] sm:$0xff] }
0x1906   :  { %7866 = vmatpush.bf16.msra.mxu1 %v7798_v56  ;;  %v7838_v58 = vadd.f32 %v7837_v1, %v7818_v42  ;;  %v16241_v42 = vld [vmem:[#allocation39_spill] sm:$0xff] }
0x1907   :  { %7848 = vmatpush.bf16.msra.mxu0 %v7789_v47  ;;  %v7976_v47 = vperm.slane %v15212_v61, 0 }
0x1909   :  { %v10270_v27 = vpop.permute.xlu0 %10269 }
0x190a   :  { %v10272_v48 = vunpack.i.h.bf16 %v10270_v27  ;;  %v10271_v38 = vunpack.i.l.bf16 %v10270_v27  ;;  %7867 = vmatpush.bf16.msra.mxu1 %v7797_v34  ;;  %v16238_v27 = vld [vmem:[#allocation18_spill] sm:$0xff] }
0x190b   :  { %7849 = vmatpush.bf16.msra.mxu0 %v7788_v53 }
0x190c   :  { %v7756_v49 = vsel %vm950_vm3, %v7436_v39, %v10271_v38  ;;  %v7757_v17 = vsel %vm950_vm3, %v7437_v11, %v10272_v48 }
0x190d   :  { %v7796_v60 = vpack.c.bf16 %v7757_v17, %v7756_v49  ;;  %v7820_v31 = vpop.f32.mrf.mxu0  ;;  %v7839_v5 = vpop.f32.mrf.mxu1  ;;  %v16239_v49 = vld [vmem:[#allocation36_spill] sm:$0xff] }
0x190e   :  { %7850 = vmatmul.bf16.vlgmr.msra.gmra.mxu0 %v16086_v26  ;;  %v7840_v40 = vadd.f32 %v7839_v5, %v7820_v31 }
0x190f   :  { %7868 = vmatpush.bf16.msra.mxu1 %v7796_v60  ;;  %7957 = vmatpush.bf16.msrb.mxu0 %v9739_v12 }
0x1912   :  { %7869 = vmatmul.bf16.vlgmr.msra.gmra.mxu1 %v16235_v45 }
0x1913   :  { %7958 = vmatpush.bf16.msrb.mxu0 %v9738_v33 }
0x1917   :  { %7959 = vmatpush.bf16.msrb.mxu0 %v9737_v25 }
0x191b   :  { %7960 = vmatpush.bf16.msrb.mxu0 %v9736_v28  ;;  %v9741_v28 = vld [vmem:[%s15443_s11 + $0x28] sm:$0xff] }
0x191c   :  { %8146 = vmatpush.bf16.msrb.mxu1 %v9741_v28 }
0x191e   :  { %7855 = vmatmul.bf16.gmra.mxu0 %v16236_v46 }
0x1922   :  { %7874 = vmatmul.bf16.gmra.mxu1 %v16237_v20  ;;  %v16240_v20 = vld [vmem:[#allocation19_spill] sm:$0xff] }
0x198b   :  { %v7851_v57 = vpop.f32.mrf.mxu0 }
0x198c   :  { %v7852_v56 = vadd.f32 %v7851_v57, %v7833_v51  ;;  %v16242_v51 = vld [vmem:[#allocation204_spill] sm:$0xff] }
0x198f   :  { %v7870_v19 = vpop.f32.mrf.mxu1 }
0x1990   :  { %v7871_v26 = vadd.f32 %v7870_v19, %v7852_v56 }
0x1992   :  { %v7880_v13 = vadd.f32 1e-06, %v7871_v26 }
0x1993   :  { %v7853_v63 = vpop.f32.mrf.mxu0 }
0x1994   :  { %10726 = vrcp.f32 %v7880_v13  ;;  %v7854_v0 = vadd.f32 %v7853_v63, %v7835_v52 }
0x1997   :  { %v7872_v55 = vpop.f32.mrf.mxu1 }
0x1998   :  { %v7873_v29 = vadd.f32 %v7872_v55, %v7854_v0 }
0x199a   :  { %v10727_v22 = vpop.eup %10726  ;;  %v7881_v32 = vadd.f32 1e-06, %v7873_v29 }
0x199b   :  { %v7856_v16 = vpop.f32.mrf.mxu0  ;;  %7892 = vrot.lane.b32.xlu2 %v10727_v22, %s10837_s27 }
0x199c   :  { %10728 = vrcp.f32 %v7881_v32  ;;  %v7857_v8 = vadd.f32 %v7856_v16, %v7838_v58 }
0x199f   :  { %v7875_v23 = vpop.f32.mrf.mxu1 }
0x19a0   :  { %v7876_v4 = vadd.f32 %v7875_v23, %v7857_v8 }
0x19a2   :  { %v10729_v10 = vpop.eup %10728  ;;  %v7882_v7 = vadd.f32 1e-06, %v7876_v4 }
0x19a3   :  { %7894 = vrot.lane.b32.xlu1 %v10729_v10, %s10837_s27  ;;  %v7858_v44 = vpop.f32.mrf.mxu0  ;;  %v7981_v10 = vperm.slane %v15212_v61, 1 }
0x19a4   :  { %10730 = vrcp.f32 %v7882_v7  ;;  %v7859_v14 = vadd.f32 %v7858_v44, %v7840_v40 }
0x19a7   :  { %v7877_v35 = vpop.f32.mrf.mxu1 }
0x19a8   :  { %v7878_v2 = vadd.f32 %v7877_v35, %v7859_v14 }
0x19aa   :  { %v10731_v53 = vpop.eup %10730  ;;  %v7883_v18 = vadd.f32 1e-06, %v7878_v2 }
0x19ab   :  { %7896 = vrot.lane.b32.xlu0 %v10731_v53, %s10837_s27 }
0x19ac   :  { %10732 = vrcp.f32 %v7883_v18 }
0x19b2   :  { %v10733_v62 = vpop.eup %10732 }
0x19b3   :  { %7898 = vrot.lane.b32.xlu2 %v10733_v62, %s10837_s27 }
0x19f5   :  { %v7893_v15 = vpop.permute.xlu2 %7892 }
0x19f6   :  { %v7904_v36 = vmul.f32 %v7893_v15, %v7871_v26 }
0x1a0d   :  { %v7899_v9 = vpop.permute.xlu2 %7898 }
0x1a0e   :  { %v7907_v3 = vmul.f32 %v7899_v9, %v7878_v2  ;;  %v9740_v9 = vld [vmem:[%s15443_s11 + $0x20] sm:$0xff] }
0x1a0f   :  { %8147 = vmatpush.bf16.msrb.mxu1 %v9740_v9  ;;  %v9743_v9 = vld [vmem:[%s15444_s12 + $0x48] sm:$0xff] }
0x1a15   :  { %v7895_v37 = vpop.permute.xlu1 %7894 }
0x1a16   :  { %v7905_v54 = vmul.f32 %v7895_v37, %v7873_v29 }
0x1a18   :  { %v7921_v59 = vpack.c.bf16 %v7905_v54, %v7904_v36 }
0x1a1a   :  { %9565 = vmatmul.msk.bf16.vlgmr.msrb.gmra.mxu0 %vm950_vm3, %v7921_v59 }
0x1a1d   :  { %v7897_v41 = vpop.permute.xlu0 %7896 }
0x1a1e   :  { %v7906_v6 = vmul.f32 %v7897_v41, %v7876_v4 }
0x1a20   :  { %v7922_v24 = vpack.c.bf16 %v7907_v3, %v7906_v6 }
0x1a2a   :  { %9566 = vmatmul.msk.bf16.gmra.mxu0 %vm950_vm3, %v7922_v24 }
0x1a97   :  { %v7962_v34 = vpop.f32.mrf.mxu0 }
0x1a98   :  { %v7972_v39 = vadd.f32 %v7962_v34, %v16238_v27 }
0x1a9a   :  { %v7977_v11 = vadd.f32 %v7976_v47, %v7972_v39 }
0x1a9c   :  { %v8014_v48 = vsel %vm445_vm2, %v7977_v11, 0.0 }
0x1a9d   :  { %8015 = vadd.xlane.f32.xlu1 %v8014_v48 }
0x1a9f   :  { %v7964_v38 = vpop.f32.mrf.mxu0 }
0x1aa0   :  { %v7973_v17 = vadd.f32 %v7964_v38, %v16239_v49 }
0x1aa2   :  { %v7978_v60 = vadd.f32 %v7976_v47, %v7973_v17 }
0x1aa4   :  { %v8017_v45 = vsel %vm445_vm2, %v7978_v60, 0.0 }
0x1aa5   :  { %8018 = vadd.xlane.f32.xlu0 %v8017_v45 }
0x1aa7   :  { %v7967_v46 = vpop.f32.mrf.mxu0 }
0x1aa8   :  { %v7974_v43 = vadd.f32 %v7967_v46, %v16240_v20 }
0x1aaa   :  { %v7979_v50 = vadd.f32 %v7976_v47, %v7974_v43  ;;  %v8102_v43 = vperm.slane %v15212_v61, 2 }
0x1aac   :  { %v8020_v30 = vsel %vm445_vm2, %v7979_v50, 0.0 }
0x1aad   :  { %8021 = vadd.xlane.f32.xlu2 %v8020_v30 }
0x1aaf   :  { %v15221_v21 = vpop.f32.mrf.mxu0 }
0x1ab0   :  { %v7975_v1 = vadd.f32 %v15221_v21, %v16241_v42 }
0x1ab2   :  { %v7980_v31 = vadd.f32 %v7976_v47, %v7975_v1 }
0x1ab4   :  { %v8023_v5 = vsel %vm445_vm2, %v7980_v31, 0.0 }
0x1ab5   :  { %8024 = vadd.xlane.f32.xlu1 %v8023_v5  ;;  %v8107_v5 = vperm.slane %v15212_v61, 3 }
0x1b10   :  { %v8016_v57 = vpop.xlane.xlu1 %8015 }
0x1b11   :  { %v8026_v56 = vmul.f32 %v8016_v57, %v16242_v51 }
0x1b13   :  { %v15227_v19 = vsub.f32 %v7977_v11, %v8026_v56 }
0x1b15   :  { %v8034_v26 = vmul.f32 %v15227_v19, %v15227_v19 }
0x1b17   :  { %v8038_v13 = vsel %vm445_vm2, %v8034_v26, 0.0 }
0x1b18   :  { %8039 = vadd.xlane.f32.xlu0 %v8038_v13  ;;  %v8019_v63 = vpop.xlane.xlu0 %8018 }
0x1b19   :  { %v8027_v12 = vmul.f32 %v8019_v63, %v16242_v51 }
0x1b1b   :  { %v15233_v52 = vsub.f32 %v7978_v60, %v8027_v12 }
0x1b1d   :  { %v8035_v33 = vmul.f32 %v15233_v52, %v15233_v52 }
0x1b1f   :  { %v8041_v0 = vsel %vm445_vm2, %v8035_v33, 0.0 }
0x1b20   :  { %8042 = vadd.xlane.f32.xlu2 %v8041_v0  ;;  %v8022_v55 = vpop.xlane.xlu2 %8021 }
0x1b21   :  { %v8028_v29 = vmul.f32 %v8022_v55, %v16242_v51 }
0x1b23   :  { %v15239_v25 = vsub.f32 %v7979_v50, %v8028_v29 }
0x1b25   :  { %v8036_v22 = vmul.f32 %v15239_v25, %v15239_v25 }
0x1b27   :  { %v8044_v32 = vsel %vm445_vm2, %v8036_v22, 0.0 }
0x1b28   :  { %8045 = vadd.xlane.f32.xlu1 %v8044_v32  ;;  %v8025_v16 = vpop.xlane.xlu1 %8024 }
0x1b29   :  { %v8029_v58 = vmul.f32 %v8025_v16, %v16242_v51 }
0x1b2b   :  { %v15245_v8 = vsub.f32 %v7980_v31, %v8029_v58 }
0x1b2d   :  { %v8037_v23 = vmul.f32 %v15245_v8, %v15245_v8 }
0x1b2f   :  { %v8047_v4 = vsel %vm445_vm2, %v8037_v23, 0.0 }
0x1b30   :  { %8048 = vadd.xlane.f32.xlu0 %v8047_v4 }
0x1b38   :  { %7983 = vrot.lane.b32.xlu2 %v7981_v10, %s10835_s6 }
0x1b8b   :  { %v8040_v7 = vpop.xlane.xlu0 %8039 }
0x1b8c   :  { %v8050_v44 = vmul.f32 %v8040_v7, %v16242_v51 }
0x1b8e   :  { %v8054_v40 = vadd.f32 1e-05, %v8050_v44 }
0x1b90   :  { %10734 = vrsqrt.f32 %v8054_v40  ;;  %vm8064_vm6 = vweird.f32 %v8054_v40 }
0x1b93   :  { %v8043_v14 = vpop.xlane.xlu2 %8042 }
0x1b94   :  { %v8051_v35 = vmul.f32 %v8043_v14, %v16242_v51 }
0x1b96   :  { %v10735_v2 = vpop.eup %10734  ;;  %v8055_v53 = vadd.f32 1e-05, %v8051_v35 }
0x1b97   :  { %v8059_v18 = vmul.f32 %v10735_v2, %v8054_v40  ;;  %vm8065_vm5 = vweird.f32 %v10735_v2 }
0x1b98   :  { %10736 = vrsqrt.f32 %v8055_v53  ;;  %vm8066_vm7 = vmor %vm8064_vm6, %vm8065_vm5  ;;  %vm8074_vm9 = vweird.f32 %v8055_v53 }
0x1b99   :  { %v8060_v62 = vmul.f32 %v10735_v2, %v8059_v18  ;;  %v9745_v18 = vld [vmem:[%s15444_s12 + $0x58] sm:$0xff] }
0x1b9a   :  { %8209 = vmatpush.bf16.msra.mxu0 %v9745_v18 }
0x1b9b   :  { %v8061_v15 = vmul.f32 0.5, %v8060_v62  ;;  %v7984_v37 = vpop.permute.xlu2 %7983  ;;  %v8046_v54 = vpop.xlane.xlu1 %8045  ;;  %v9744_v62 = vld [vmem:[%s15444_s12 + $0x50] sm:$0xff] }
0x1b9c   :  { %v7986_v36 = vadd.f32 %v7984_v37, %v7962_v34  ;;  %v7987_v59 = vadd.f32 %v7984_v37, %v7964_v38  ;;  %v7988_v41 = vadd.f32 %v7984_v37, %v7967_v46  ;;  %v8052_v3 = vmul.f32 %v8046_v54, %v16242_v51 }
0x1b9d   :  { %v8062_v6 = vsub.f32 1.5, %v8061_v15  ;;  %v7989_v38 = vadd.f32 %v7984_v37, %v15221_v21  ;;  %v16243_v37 = vld [vmem:[#allocation16_spill] sm:$0xff] }
0x1b9e   :  { %v10737_v24 = vpop.eup %10736  ;;  %10738 = vtanh.f32 %v7986_v36  ;;  %v8056_v39 = vadd.f32 1e-05, %v8052_v3  ;;  %8210 = vmatpush.bf16.msra.mxu0 %v9744_v62  ;;  %v16244_v36 = vld [vmem:[#allocation30_spill] sm:$0xff] }
0x1b9f   :  { %v8063_v47 = vmul.f32 %v10735_v2, %v8062_v6  ;;  %v8069_v27 = vmul.f32 %v10737_v24, %v8055_v53  ;;  %10740 = vtanh.f32 %v7987_v59  ;;  %vm8075_vm8 = vweird.f32 %v10737_v24  ;;  %v9742_v6 = vld [vmem:[%s15444_s12 + $0x40] sm:$0xff] }
0x1ba0   :  { %10742 = vtanh.f32 %v7988_v41  ;;  %vm8076_vm10 = vmor %vm8074_vm9, %vm8075_vm8  ;;  %vm8084_vm12 = vweird.f32 %v8056_v39 }
0x1ba1   :  { %v8070_v34 = vmul.f32 %v10737_v24, %v8069_v27  ;;  %10744 = vrsqrt.f32 %v8056_v39  ;;  %v8067_v11 = vsel %vm8066_vm7, %v10735_v2, %v8063_v47  ;;  %v16245_v47 = vld [vmem:[#allocation33_spill] sm:$0xff] }
0x1ba2   :  { %v8098_v50 = vmul.f32 %v8067_v11, %v15227_v19  ;;  %10746 = vtanh.f32 %v7989_v38  ;;  %8211 = vmatpush.bf16.msra.mxu0 %v9743_v9  ;;  %v10275_v38 = vld [vmem:[%s15446_s14 + $0x2] ss:$0 sm:$0xff] }
0x1ba3   :  { %v8071_v48 = vmul.f32 0.5, %v8070_v34  ;;  %v8049_v49 = vpop.xlane.xlu0 %8048 }
0x1ba4   :  { %v10739_v17 = vpop.eup %10738  ;;  %v8053_v60 = vmul.f32 %v8049_v49, %v16242_v51  ;;  %v8103_v57 = vmul.f32 %v8102_v43, %v8098_v50 }
0x1ba5   :  { %v10741_v45 = vpop.eup %10740  ;;  %v8072_v46 = vsub.f32 1.5, %v8071_v48  ;;  %7998 = vrot.lane.b32.xlu1 %v10739_v17, %s10839_s9 }
0x1ba6   :  { %v10743_v20 = vpop.eup %10742  ;;  %v8057_v30 = vadd.f32 1e-05, %v8053_v60  ;;  %8000 = vrot.lane.b32.xlu0 %v10741_v45, %s10839_s9  ;;  %v15270_v33 = vadd.f32 %v8107_v5, %v8103_v57  ;;  %8212 = vmatpush.bf16.msra.mxu0 %v9742_v6  ;;  %v8174_v6 = vperm.slane %v15212_v61, 4 }
0x1ba7   :  { %v8073_v42 = vmul.f32 %v10737_v24, %v8072_v46  ;;  %8002 = vrot.lane.b32.xlu2 %v10743_v20, %s10839_s9  ;;  %v10745_v21 = vpop.eup %10744 }
0x1ba8   :  { %10748 = vrsqrt.f32 %v8057_v30  ;;  %v8079_v31 = vmul.f32 %v10745_v21, %v8056_v39  ;;  %v10747_v13 = vpop.eup %10746  ;;  %vm8085_vm11 = vweird.f32 %v10745_v21  ;;  %vm8094_vm15 = vweird.f32 %v8057_v30  ;;  %v16246_v39 = vld [vmem:[#allocation17_spill] sm:$0xff] }
0x1ba9   :  { %v8077_v1 = vsel %vm8076_vm10, %v10737_v24, %v8073_v42  ;;  %vm8086_vm13 = vmor %vm8084_vm12, %vm8085_vm11 }
0x1baa   :  { %v8099_v56 = vmul.f32 %v8077_v1, %v15233_v52  ;;  %v8080_v26 = vmul.f32 %v10745_v21, %v8079_v31 }
0x1bac   :  { %v8104_v19 = vmul.f32 %v8102_v43, %v8099_v56  ;;  %v8081_v63 = vmul.f32 0.5, %v8080_v26  ;;  %v15319_v56 = vld [vmem:[%s15453_s21] sm:$0xff] }
0x1bad   :  { %v8332_v26 = vperm.slane %v15319_v56, 2 }
0x1bae   :  { %v10749_v12 = vpop.eup %10748  ;;  %v15272_v0 = vadd.f32 %v8107_v5, %v8104_v19  ;;  %8004 = vrot.lane.b32.xlu0 %v10747_v13, %s10839_s9  ;;  %v8082_v55 = vsub.f32 1.5, %v8081_v63 }
0x1baf   :  { %v8089_v29 = vmul.f32 %v10749_v12, %v8057_v30  ;;  %vm8095_vm14 = vweird.f32 %v10749_v12 }
0x1bb0   :  { %v8112_v22 = vpack.c.bf16 %v15272_v0, %v15270_v33  ;;  %v8083_v32 = vmul.f32 %v10745_v21, %v8082_v55  ;;  %vm8096_vm4 = vmor %vm8094_vm15, %vm8095_vm14 }
0x1bb1   :  { %v8090_v52 = vmul.f32 %v10749_v12, %v8089_v29 }
0x1bb2   :  { %9579 = vmatmul.msk.bf16.vlgmr.msrb.gmra.mxu1 %vm445_vm2, %v8112_v22  ;;  %v8087_v16 = vsel %vm8086_vm13, %v10745_v21, %v8083_v32 }
0x1bb3   :  { %v8091_v58 = vmul.f32 0.5, %v8090_v52  ;;  %v8100_v4 = vmul.f32 %v8087_v16, %v15239_v25  ;;  %v9747_v25 = vld [vmem:[%s15447_s15 + $0x8] sm:$0xff] }
0x1bb4   :  { %8357 = vmatpush.bf16.msra.mxu1 %v9747_v25 }
0x1bb5   :  { %v8092_v23 = vsub.f32 1.5, %v8091_v58  ;;  %v8105_v40 = vmul.f32 %v8102_v43, %v8100_v4 }
0x1bb7   :  { %v8093_v10 = vmul.f32 %v10749_v12, %v8092_v23  ;;  %v15280_v35 = vadd.f32 %v8107_v5, %v8105_v40 }
0x1bb9   :  { %v8097_v7 = vsel %vm8096_vm4, %v10749_v12, %v8093_v10 }
0x1bba   :  { %v8101_v44 = vmul.f32 %v8097_v7, %v15245_v8  ;;  %v9746_v8 = vld [vmem:[%s15447_s15] sm:$0xff] }
0x1bbb   :  { %8358 = vmatpush.bf16.msra.mxu1 %v9746_v8 }
0x1bbc   :  { %v8106_v14 = vmul.f32 %v8102_v43, %v8101_v44 }
0x1bbe   :  { %v15282_v2 = vadd.f32 %v8107_v5, %v8106_v14  ;;  %v10840_v5 = vmov 16.0  }
0x1bbf   :  { %10750 = vrcp.f32 %v10840_v5 }
0x1bc0   :  { %v8113_v53 = vpack.c.bf16 %v15282_v2, %v15280_v35 }
0x1bc2   :  { %9580 = vmatmul.msk.bf16.gmra.mxu1 %vm445_vm2, %v8113_v53 }
0x1bc5   :  { %v10751_v19 = vpop.eup %10750 }
0x1bc6   :  { %v8389_v63 = vmul.f32 16.0, %v10751_v19 }
0x1bc8   :  { %v8390_v32 = vsub.f32 1.0, %v8389_v63 }
0x1bca   :  { %v8391_v58 = vmul.f32 %v10751_v19, %v8390_v32 }
0x1bcc   :  { %v8392_v7 = vadd.f32 %v10751_v19, %v8391_v58 }
0x1c01   :  { %v8003_v24 = vpop.permute.xlu2 %8002 }
0x1c02   :  { %v8012_v34 = vadd.f32 %v8003_v24, %v16246_v39 }
0x1c17   :  { %v7999_v28 = vpop.permute.xlu1 %7998 }
0x1c18   :  { %v8001_v15 = vpop.permute.xlu0 %8000  ;;  %v8010_v54 = vadd.f32 %v7999_v28, %v16243_v37 }
0x1c19   :  { %v8011_v59 = vadd.f32 %v8001_v15, %v16244_v36 }
0x1c1b   :  { %v8326_v41 = vpack.c.bf16 %v8011_v59, %v8010_v54 }
0x1c1d   :  { %9615 = vmatmul.msk.bf16.vlgmr.msra.gmra.mxu1 %vm445_vm2, %v8326_v41 }
0x1c20   :  { %v8005_v3 = vpop.permute.xlu0 %8004 }
0x1c21   :  { %v8013_v27 = vadd.f32 %v8005_v3, %v16245_v47 }
0x1c23   :  { %v8327_v11 = vpack.c.bf16 %v8013_v27, %v8012_v34 }
0x1c2d   :  { %9616 = vmatmul.msk.bf16.gmra.mxu1 %vm445_vm2, %v8327_v11 }
0x1c2f   :  { %v8149_v48 = vpop.f32.mrf.mxu1 }
0x1c30   :  { %v8150_v49 = vadd.f32 %v10275_v38, %v8149_v48 }
0x1c32   :  { %v8159_v45 = vmax.f32 %v8150_v49, 0.0 }
0x1c37   :  { %v8151_v17 = vpop.f32.mrf.mxu1 }
0x1c38   :  { %v8152_v60 = vadd.f32 %v10275_v38, %v8151_v17 }
0x1c3a   :  { %v8160_v46 = vmax.f32 %v8152_v60, 0.0 }
0x1c3c   :  { %v8163_v20 = vpack.c.bf16 %v8160_v46, %v8159_v45 }
0x1c3e   :  { %9605 = vmatmul.msk.bf16.vlgmr.msra.gmra.mxu0 %vm950_vm3, %v8163_v20 }
0x1c3f   :  { %v8154_v43 = vpop.f32.mrf.mxu1 }
0x1c40   :  { %v8155_v50 = vadd.f32 %v10275_v38, %v8154_v43 }
0x1c42   :  { %v8161_v21 = vmax.f32 %v8155_v50, 0.0 }
0x1c47   :  { %v8156_v30 = vpop.f32.mrf.mxu1 }
0x1c48   :  { %v8157_v42 = vadd.f32 %v10275_v38, %v8156_v30 }
0x1c4a   :  { %v8162_v1 = vmax.f32 %v8157_v42, 0.0 }
0x1c4c   :  { %v8164_v31 = vpack.c.bf16 %v8162_v1, %v8161_v21 }
0x1c4e   :  { %9606 = vmatmul.msk.bf16.gmra.mxu0 %vm950_vm3, %v8164_v31  ;;  %vm8393_vm3 = vweird.f32 %v10751_v19 }
0x1c4f   :  { %v15324_v14 = vsel %vm8393_vm3, %v10751_v19, %v8392_v7 }
0x1c9a   :  { %v8360_v57 = vpop.f32.mrf.mxu1 }
0x1c9b   :  { %v8361_v13 = vadd.f32 %v8360_v57, %v8332_v26 }
0x1c9d   :  { %v8370_v29 = vsel %vm231_vm1, %v8361_v13, 0.0 }
0x1ca2   :  { %v8362_v12 = vpop.f32.mrf.mxu1 }
0x1ca3   :  { %v8363_v55 = vadd.f32 %v8362_v12, %v8332_v26 }
0x1ca5   :  { %v8371_v22 = vsel %vm231_vm1, %v8363_v55, 0.0 }
0x1ca6   :  { %v8372_v52 = vadd.f32 %v8371_v22, %v8370_v29 }
0x1ca8   :  { %v8373_v16 = vrot.slane %v8372_v52, 4 }
0x1caa   :  { %v8374_v23 = vadd.f32 %v8373_v16, %v8372_v52  ;;  %v8365_v4 = vpop.f32.mrf.mxu1  ;;  %v8457_v16 = vld [vmem:[%s15449_s17] sm:$0xf] }
0x1cab   :  { %v8366_v53 = vadd.f32 %v8365_v4, %v8332_v26 }
0x1cac   :  { %v8375_v10 = vrot.slane %v8374_v23, 2 }
0x1cad   :  { %v8379_v28 = vsel %vm231_vm1, %v8366_v53, 0.0 }
0x1cae   :  { %v8376_v44 = vadd.f32 %v8375_v10, %v8374_v23  ;;  %v8465_v23 = vsel %vm238_vm0, %v8457_v16, 0 }
0x1caf   :  { %8474 = vmatpush.bf16.msrb.mxu0 %v8465_v23  ;;  %v9749_v23 = vld [vmem:[%s15448_s16 + $0x8] sm:$0xff] }
0x1cb0   :  { %v8377_v40 = vrot.slane %v8376_v44, 1  ;;  %8510 = vmatpush.bf16.msrb.mxu1 %v9749_v23 }
0x1cb2   :  { %v8378_v25 = vadd.f32 %v8377_v40, %v8376_v44  ;;  %v8367_v8 = vpop.f32.mrf.mxu1 }
0x1cb3   :  { %v8368_v18 = vadd.f32 %v8367_v8, %v8332_v26 }
0x1cb4   :  { %v8395_v62 = vmul.f32 %v15324_v14, %v8378_v25 }
0x1cb5   :  { %v8380_v15 = vsel %vm231_vm1, %v8368_v18, 0.0 }
0x1cb6   :  { %v15329_v37 = vsub.f32 %v8361_v13, %v8395_v62  ;;  %v15331_v54 = vsub.f32 %v8363_v55, %v8395_v62  ;;  %v8381_v36 = vadd.f32 %v8380_v15, %v8379_v28 }
0x1cb8   :  { %v8401_v59 = vmul.f32 %v15329_v37, %v15329_v37  ;;  %v8402_v41 = vmul.f32 %v15331_v54, %v15331_v54  ;;  %v8382_v9 = vrot.slane %v8381_v36, 4 }
0x1cba   :  { %v8405_v3 = vsel %vm231_vm1, %v8401_v59, 0.0  ;;  %v8406_v24 = vsel %vm231_vm1, %v8402_v41, 0.0  ;;  %v8383_v47 = vadd.f32 %v8382_v9, %v8381_v36 }
0x1cbb   :  { %v8407_v27 = vadd.f32 %v8406_v24, %v8405_v3  ;;  %v8214_v39 = vpop.f32.mrf.mxu0 }
0x1cbc   :  { %v8384_v34 = vrot.slane %v8383_v47, 2  ;;  %v8215_v11 = vadd.f32 %v8214_v39, %v8174_v6 }
0x1cbd   :  { %v8408_v48 = vrot.slane %v8407_v27, 4 }
0x1cbe   :  { %v8385_v38 = vadd.f32 %v8384_v34, %v8383_v47  ;;  %v15341_v49 = vadd.f32 %v8215_v11, %v15270_v33 }
0x1cbf   :  { %v8409_v17 = vadd.f32 %v8408_v48, %v8407_v27 }
0x1cc0   :  { %v8386_v60 = vrot.slane %v8385_v38, 1  ;;  %v8228_v45 = vsel %vm445_vm2, %v15341_v49, 0.0 }
0x1cc1   :  { %v8410_v46 = vrot.slane %v8409_v17, 2  ;;  %8229 = vadd.xlane.f32.xlu1 %v8228_v45 }
0x1cc2   :  { %v8387_v20 = vadd.f32 %v8386_v60, %v8385_v38 }
0x1cc3   :  { %v8411_v43 = vadd.f32 %v8410_v46, %v8409_v17  ;;  %v8216_v50 = vpop.f32.mrf.mxu0 }
0x1cc4   :  { %v8396_v30 = vmul.f32 %v15324_v14, %v8387_v20  ;;  %v8217_v42 = vadd.f32 %v8216_v50, %v8174_v6 }
0x1cc5   :  { %v8412_v21 = vrot.slane %v8411_v43, 1 }
0x1cc6   :  { %v8399_v1 = vsub.f32 %v8366_v53, %v8396_v30  ;;  %v8400_v31 = vsub.f32 %v8368_v18, %v8396_v30  ;;  %v15347_v5 = vadd.f32 %v8217_v42, %v15272_v0 }
0x1cc7   :  { %v8413_v33 = vadd.f32 %v8412_v21, %v8411_v43 }
0x1cc8   :  { %v8403_v57 = vmul.f32 %v8399_v1, %v8399_v1  ;;  %v8404_v26 = vmul.f32 %v8400_v31, %v8400_v31  ;;  %v8231_v19 = vsel %vm445_vm2, %v15347_v5, 0.0 }
0x1cc9   :  { %v8423_v13 = vadd.f32 1e-06, %v8413_v33  ;;  %8232 = vadd.xlane.f32.xlu2 %v8231_v19 }
0x1cca   :  { %v8414_v63 = vsel %vm231_vm1, %v8403_v57, 0.0  ;;  %v8415_v12 = vsel %vm231_vm1, %v8404_v26, 0.0 }
0x1ccb   :  { %10752 = vrsqrt.f32 %v8423_v13  ;;  %v8416_v55 = vadd.f32 %v8415_v12, %v8414_v63  ;;  %v8219_v29 = vpop.f32.mrf.mxu0  ;;  %vm8431_vm6 = vweird.f32 %v8423_v13  ;;  %v9751_v63 = vld [vmem:[%s15450_s18 + $0x8] sm:$0xff] }
0x1ccc   :  { %v8220_v22 = vadd.f32 %v8219_v29, %v8174_v6  ;;  %8583 = vmatpush.bf16.msrb.mxu3 %v9751_v63 }
0x1ccd   :  { %v8417_v32 = vrot.slane %v8416_v55, 4 }
0x1cce   :  { %v8226_v0 = vadd.f32 %v8220_v22, %v15280_v35 }
0x1ccf   :  { %v8418_v52 = vadd.f32 %v8417_v32, %v8416_v55 }
0x1cd0   :  { %v8234_v58 = vsel %vm445_vm2, %v8226_v0, 0.0 }
0x1cd1   :  { %v10753_v4 = vpop.eup %10752  ;;  %v8419_v10 = vrot.slane %v8418_v52, 2  ;;  %8235 = vadd.xlane.f32.xlu0 %v8234_v58 }
0x1cd2   :  { %v8426_v7 = vmul.f32 %v10753_v4, %v8423_v13  ;;  %vm8432_vm5 = vweird.f32 %v10753_v4 }
0x1cd3   :  { %v8420_v44 = vadd.f32 %v8419_v10, %v8418_v52  ;;  %v8221_v40 = vpop.f32.mrf.mxu0  ;;  %vm8433_vm7 = vmor %vm8431_vm6, %vm8432_vm5 }
0x1cd4   :  { %v8427_v53 = vmul.f32 %v10753_v4, %v8426_v7  ;;  %v8222_v25 = vadd.f32 %v8221_v40, %v8174_v6 }
0x1cd5   :  { %v8421_v8 = vrot.slane %v8420_v44, 1 }
0x1cd6   :  { %v8428_v35 = vmul.f32 0.5, %v8427_v53  ;;  %v8227_v18 = vadd.f32 %v8222_v25, %v15282_v2 }
0x1cd7   :  { %v8422_v62 = vadd.f32 %v8421_v8, %v8420_v44  ;;  %v9748_v44 = vld [vmem:[%s15448_s16] sm:$0xff] }
0x1cd8   :  { %v8429_v28 = vsub.f32 1.5, %v8428_v35  ;;  %v8237_v15 = vsel %vm445_vm2, %v8227_v18, 0.0  ;;  %8511 = vmatpush.bf16.msrb.mxu1 %v9748_v44 }
0x1cd9   :  { %v8424_v36 = vadd.f32 1e-06, %v8422_v62  ;;  %8238 = vadd.xlane.f32.xlu1 %v8237_v15 }
0x1cda   :  { %v8430_v59 = vmul.f32 %v10753_v4, %v8429_v28 }
0x1cdb   :  { %10754 = vrsqrt.f32 %v8424_v36  ;;  %vm8441_vm9 = vweird.f32 %v8424_v36 }
0x1cdc   :  { %v8434_v41 = vsel %vm8433_vm7, %v10753_v4, %v8430_v59 }
0x1cdd   :  { %v8445_v9 = vmul.f32 %v8434_v41, %v15329_v37  ;;  %v8446_v6 = vmul.f32 %v8434_v41, %v15331_v54 }
0x1cdf   :  { %v8455_v3 = vpack.c.bf16 %v8446_v6, %v8445_v9  ;;  %v8316_v9 = vperm.slane %v15212_v61, 5 }
0x1ce1   :  { %v10755_v24 = vpop.eup %10754  ;;  %9617 = vmatmul.msk.bf16.vlgmr.msrb.gmra.mxu0 %vm231_vm1, %v8455_v3 }
0x1ce2   :  { %v8436_v2 = vmul.f32 %v10755_v24, %v8424_v36  ;;  %vm8442_vm8 = vweird.f32 %v10755_v24 }
0x1ce3   :  { %vm8443_vm10 = vmor %vm8441_vm9, %vm8442_vm8 }
0x1ce4   :  { %v8437_v47 = vmul.f32 %v10755_v24, %v8436_v2 }
0x1ce6   :  { %v8438_v27 = vmul.f32 0.5, %v8437_v47 }
0x1ce8   :  { %v8439_v39 = vsub.f32 1.5, %v8438_v27 }
0x1cea   :  { %v8440_v34 = vmul.f32 %v10755_v24, %v8439_v39  ;;  %v8321_v39 = vperm.slane %v15212_v61, 6 }
0x1cec   :  { %v8444_v11 = vsel %vm8443_vm10, %v10755_v24, %v8440_v34  ;;  %vm8559_vm10 = vcmask 1041409  }
0x1ced   :  { %v8447_v48 = vmul.f32 %v8444_v11, %v8399_v1  ;;  %v8448_v38 = vmul.f32 %v8444_v11, %v8400_v31 }
0x1cef   :  { %v8456_v17 = vpack.c.bf16 %v8448_v38, %v8447_v48 }
0x1cf1   :  { %9618 = vmatmul.msk.bf16.gmra.mxu0 %vm231_vm1, %v8456_v17 }
0x1d34   :  { %v8230_v37 = vpop.xlane.xlu1 %8229 }
0x1d35   :  { %v8240_v54 = vmul.f32 %v8230_v37, %v16242_v51 }
0x1d37   :  { %v8244_v60 = vsub.f32 %v15341_v49, %v8240_v54 }
0x1d39   :  { %v8248_v45 = vmul.f32 %v8244_v60, %v8244_v60 }
0x1d3b   :  { %v8252_v46 = vsel %vm445_vm2, %v8248_v45, 0.0 }
0x1d3c   :  { %v8233_v20 = vpop.xlane.xlu2 %8232  ;;  %8253 = vadd.xlane.f32.xlu2 %v8252_v46 }
0x1d3d   :  { %v8241_v43 = vmul.f32 %v8233_v20, %v16242_v51 }
0x1d3f   :  { %v15370_v50 = vsub.f32 %v15347_v5, %v8241_v43 }
0x1d41   :  { %v8249_v30 = vmul.f32 %v15370_v50, %v15370_v50 }
0x1d43   :  { %v8255_v42 = vsel %vm445_vm2, %v8249_v30, 0.0 }
0x1d44   :  { %8256 = vadd.xlane.f32.xlu0 %v8255_v42  ;;  %v8236_v21 = vpop.xlane.xlu0 %8235 }
0x1d45   :  { %v8242_v1 = vmul.f32 %v8236_v21, %v16242_v51 }
0x1d47   :  { %v15376_v49 = vsub.f32 %v8226_v0, %v8242_v1 }
0x1d49   :  { %v8250_v31 = vmul.f32 %v15376_v49, %v15376_v49 }
0x1d4b   :  { %v8258_v33 = vsel %vm445_vm2, %v8250_v31, 0.0 }
0x1d4c   :  { %8259 = vadd.xlane.f32.xlu1 %v8258_v33  ;;  %v8239_v57 = vpop.xlane.xlu1 %8238 }
0x1d4d   :  { %v8243_v5 = vmul.f32 %v8239_v57, %v16242_v51 }
0x1d4f   :  { %v15382_v26 = vsub.f32 %v8227_v18, %v8243_v5 }
0x1d51   :  { %v8251_v19 = vmul.f32 %v15382_v26, %v15382_v26 }
0x1d53   :  { %v8261_v13 = vsel %vm445_vm2, %v8251_v19, 0.0 }
0x1d54   :  { %8262 = vadd.xlane.f32.xlu2 %v8261_v13 }
0x1d5e   :  { %v8476_v13 = vpop.f32.mrf.mxu0 }
0x1daf   :  { %v8254_v12 = vpop.xlane.xlu2 %8253 }
0x1db0   :  { %v8264_v55 = vmul.f32 %v8254_v12, %v16242_v51  ;;  %v8478_v12 = vpop.f32.mrf.mxu0 }
0x1db2   :  { %v8268_v29 = vadd.f32 1e-05, %v8264_v55 }
0x1db4   :  { %10756 = vrsqrt.f32 %v8268_v29  ;;  %vm8278_vm12 = vweird.f32 %v8268_v29 }
0x1db7   :  { %v8257_v22 = vpop.xlane.xlu0 %8256 }
0x1db8   :  { %v8265_v32 = vmul.f32 %v8257_v22, %v16242_v51 }
0x1dba   :  { %v10757_v0 = vpop.eup %10756  ;;  %v8269_v52 = vadd.f32 1e-05, %v8265_v32 }
0x1dbb   :  { %v8273_v16 = vmul.f32 %v10757_v0, %v8268_v29  ;;  %vm8279_vm11 = vweird.f32 %v10757_v0  ;;  %v8523_v29 = vperm.slane %v15319_v56, 1 }
0x1dbc   :  { %10758 = vrsqrt.f32 %v8269_v52  ;;  %vm8280_vm13 = vmor %vm8278_vm12, %vm8279_vm11  ;;  %vm8288_vm15 = vweird.f32 %v8269_v52  ;;  %vm8601_vm11 = vcmask 130048  }
0x1dbd   :  { %v8274_v58 = vmul.f32 %v10757_v0, %v8273_v16  ;;  %v8481_v16 = vpop.f32.mrf.mxu0 }
0x1dbf   :  { %v8275_v4 = vmul.f32 0.5, %v8274_v58  ;;  %v8260_v10 = vpop.xlane.xlu1 %8259 }
0x1dc0   :  { %v8266_v7 = vmul.f32 %v8260_v10, %v16242_v51  ;;  %v9750_v10 = vld [vmem:[%s15450_s18] sm:$0xff] }
0x1dc1   :  { %v8276_v40 = vsub.f32 1.5, %v8275_v4  ;;  %8584 = vmatpush.bf16.msrb.mxu3 %v9750_v10 }
0x1dc2   :  { %v10759_v53 = vpop.eup %10758  ;;  %v8270_v25 = vadd.f32 1e-05, %v8266_v7 }
0x1dc3   :  { %v8277_v8 = vmul.f32 %v10757_v0, %v8276_v40  ;;  %v8283_v35 = vmul.f32 %v10759_v53, %v8269_v52  ;;  %vm8289_vm14 = vweird.f32 %v10759_v53 }
0x1dc4   :  { %10760 = vrsqrt.f32 %v8270_v25  ;;  %vm8290_vm4 = vmor %vm8288_vm15, %vm8289_vm14  ;;  %vm8298_vm5 = vweird.f32 %v8270_v25 }
0x1dc5   :  { %v8284_v18 = vmul.f32 %v10759_v53, %v8283_v35  ;;  %v8281_v62 = vsel %vm8280_vm13, %v10757_v0, %v8277_v8  ;;  %v8483_v40 = vpop.f32.mrf.mxu0 }
0x1dc6   :  { %v8312_v6 = vmul.f32 %v8281_v62, %v8244_v60 }
0x1dc7   :  { %v8285_v28 = vmul.f32 0.5, %v8284_v18  ;;  %v8263_v15 = vpop.xlane.xlu2 %8262 }
0x1dc8   :  { %v8267_v36 = vmul.f32 %v8263_v15, %v16242_v51  ;;  %v8317_v34 = vmul.f32 %v8316_v9, %v8312_v6 }
0x1dc9   :  { %v8286_v59 = vsub.f32 1.5, %v8285_v28 }
0x1dca   :  { %v10761_v41 = vpop.eup %10760  ;;  %v8271_v3 = vadd.f32 1e-05, %v8267_v36  ;;  %v8322_v37 = vadd.f32 %v8321_v39, %v8317_v34 }
0x1dcb   :  { %v8287_v24 = vmul.f32 %v10759_v53, %v8286_v59  ;;  %v8293_v2 = vmul.f32 %v10761_v41, %v8270_v25  ;;  %vm8299_vm3 = vweird.f32 %v10761_v41 }
0x1dcc   :  { %10762 = vrsqrt.f32 %v8271_v3  ;;  %vm8300_vm6 = vmor %vm8298_vm5, %vm8299_vm3  ;;  %vm8308_vm8 = vweird.f32 %v8271_v3 }
0x1dcd   :  { %v8291_v47 = vsel %vm8290_vm4, %v10759_v53, %v8287_v24  ;;  %v8294_v27 = vmul.f32 %v10761_v41, %v8293_v2 }
0x1dce   :  { %v8313_v11 = vmul.f32 %v8291_v47, %v15370_v50 }
0x1dcf   :  { %v8295_v51 = vmul.f32 0.5, %v8294_v27 }
0x1dd0   :  { %v8318_v48 = vmul.f32 %v8316_v9, %v8313_v11 }
0x1dd1   :  { %v8296_v38 = vsub.f32 1.5, %v8295_v51 }
0x1dd2   :  { %v10763_v17 = vpop.eup %10762  ;;  %v8323_v54 = vadd.f32 %v8321_v39, %v8318_v48 }
0x1dd3   :  { %v8297_v60 = vmul.f32 %v10761_v41, %v8296_v38  ;;  %v8303_v45 = vmul.f32 %v10763_v17, %v8271_v3  ;;  %vm8309_vm7 = vweird.f32 %v10763_v17 }
0x1dd4   :  { %v8449_v46 = vpack.c.bf16 %v8323_v54, %v8322_v37  ;;  %vm8310_vm9 = vmor %vm8308_vm8, %vm8309_vm7  ;;  %v9752_v37 = vld [vmem:[%s15451_s19] sm:$0xff]  ;;  %v8554_v54 = vperm.slane %v15319_v56, 3  ;;  %s10841_s19 = smov [#allocation2]  }
0x1dd5   :  { %v8304_v20 = vmul.f32 %v10763_v17, %v8303_v45  ;;  %v8301_v43 = vsel %vm8300_vm6, %v10761_v41, %v8297_v60  ;;  %8612 = vmatpush.bf16.msra.mxu3 %v9752_v37  ;;  %s8648_s4 = sshll.u32 %s10841_s19, 4  ;;  %s8649_s4 = int_to_ptr.vmem [resolvable:$true] %s8648_s4 }
0x1dd6   :  { %9627 = vmatmul.msk.bf16.vlgmr.msrb.gmra.mxu1 %vm445_vm2, %v8449_v46  ;;  %v8314_v50 = vmul.f32 %v8301_v43, %v15376_v49  ;;  %v8620_v43 = vld [vmem:[%s15452_s20] sm:$0xf]  ;;  %s8650_s20 = sshll.u32 %s15454_s22, 4  ;;  %s8651_s20 = int_to_ptr.hbm [resolvable:$true] %s8650_s20 }
0x1dd7   :  { %v8305_v61 = vmul.f32 0.5, %v8304_v20 }
0x1dd8   :  { %v8319_v31 = vmul.f32 %v8316_v9, %v8314_v50 }
0x1dd9   :  { %v8306_v30 = vsub.f32 1.5, %v8305_v61  ;;  %v8626_v61 = vsel %vm238_vm0, %v8620_v43, 0  ;;  %vm8641_vm0 = vcmask 25600  }
0x1dda   :  { %v8324_v57 = vadd.f32 %v8321_v39, %v8319_v31  ;;  %8635 = vmatpush.bf16.msra.mxu0 %v8626_v61 }
0x1ddb   :  { %v8307_v42 = vmul.f32 %v10763_v17, %v8306_v30  ;;  %v8594_v30 = vperm.slane %v15319_v56, 4 }
0x1ddd   :  { %v8311_v21 = vsel %vm8310_vm9, %v10763_v17, %v8307_v42 }
0x1dde   :  { %v8315_v1 = vmul.f32 %v8311_v21, %v15382_v26 }
0x1de0   :  { %v8320_v33 = vmul.f32 %v8316_v9, %v8315_v1 }
0x1de2   :  { %v8325_v5 = vadd.f32 %v8321_v39, %v8320_v33  ;;  %v8621_v33 = vperm.slane %v15319_v56, 5 }
0x1de4   :  { %v8450_v19 = vpack.c.bf16 %v8325_v5, %v8324_v57 }
0x1de6   :  { %9628 = vmatmul.msk.bf16.gmra.mxu1 %vm445_vm2, %v8450_v19 }
0x1e53   :  { %v8513_v63 = vpop.f32.mrf.mxu1 }
0x1e54   :  { %v8514_v55 = vadd.f32 %v8513_v63, %v8476_v13 }
0x1e56   :  { %v8524_v22 = vadd.f32 %v8523_v29, %v8514_v55 }
0x1e58   :  { %v8528_v52 = vsel %vm445_vm2, %v8524_v22, 0.0 }
0x1e5b   :  { %v8515_v49 = vpop.f32.mrf.mxu1 }
0x1e5c   :  { %v8516_v32 = vadd.f32 %v8515_v49, %v8478_v12 }
0x1e5e   :  { %v8525_v0 = vadd.f32 %v8523_v29, %v8516_v32 }
0x1e60   :  { %v8529_v26 = vsel %vm445_vm2, %v8525_v0, 0.0 }
0x1e61   :  { %v8530_v58 = vadd.f32 %v8529_v26, %v8528_v52 }
0x1e63   :  { %v8531_v23 = vrot.slane %v8530_v58, 4  ;;  %v8518_v4 = vpop.f32.mrf.mxu1 }
0x1e64   :  { %v8519_v44 = vadd.f32 %v8518_v4, %v8481_v16 }
0x1e65   :  { %v8532_v7 = vadd.f32 %v8531_v23, %v8530_v58 }
0x1e66   :  { %v8526_v8 = vadd.f32 %v8523_v29, %v8519_v44 }
0x1e67   :  { %v8533_v53 = vrot.slane %v8532_v7, 2 }
0x1e68   :  { %v8537_v28 = vsel %vm445_vm2, %v8526_v8, 0.0 }
0x1e69   :  { %v8534_v62 = vadd.f32 %v8533_v53, %v8532_v7 }
0x1e6b   :  { %v8520_v25 = vpop.f32.mrf.mxu1  ;;  %v8535_v59 = vrot.slane %v8534_v62, 1 }
0x1e6c   :  { %v8521_v35 = vadd.f32 %v8520_v25, %v8483_v40 }
0x1e6d   :  { %v8536_v6 = vadd.f32 %v8535_v59, %v8534_v62 }
0x1e6e   :  { %v8527_v18 = vadd.f32 %v8523_v29, %v8521_v35 }
0x1e6f   :  { %v8546_v2 = vmul.f32 %v8536_v6, %v15324_v14 }
0x1e70   :  { %v8538_v15 = vsel %vm445_vm2, %v8527_v18, 0.0 }
0x1e71   :  { %v8539_v36 = vadd.f32 %v8538_v15, %v8537_v28  ;;  %v8548_v39 = vpack.c.bf16 %v8546_v2, %v8546_v2 }
0x1e73   :  { %v8540_v41 = vrot.slane %v8539_v36, 4  ;;  %v8557_v51 = vunpack.c.l.b16 %v8548_v39 }
0x1e75   :  { %v8541_v9 = vadd.f32 %v8540_v41, %v8539_v36 }
0x1e77   :  { %v8542_v3 = vrot.slane %v8541_v9, 2 }
0x1e79   :  { %v8543_v24 = vadd.f32 %v8542_v3, %v8541_v9 }
0x1e7b   :  { %v8544_v47 = vrot.slane %v8543_v24, 1 }
0x1e7d   :  { %v8545_v27 = vadd.f32 %v8544_v47, %v8543_v24 }
0x1e7f   :  { %v8547_v34 = vmul.f32 %v8545_v27, %v15324_v14 }
0x1e81   :  { %v8549_v11 = vpack.c.bf16 %v8547_v34, %v8547_v34 }
0x1e83   :  { %v8558_v48 = vunpack.c.l.b16 %v8549_v11 }
0x1e85   :  { %v8560_v38 = vsel %vm8559_vm10, %v8558_v48, %v8557_v51 }
0x1e86   :  { %v8561_v17 = vpack.c.b16 %v8560_v38, %v8560_v38 }
0x1e88   :  { %9637 = vmatmul.msk.bf16.vlgmr.msrb.gmra.mxu3 %vm445_vm2, %v8561_v17 }
0x1f0b   :  { %v8586_v60 = vpop.f32.mrf.mxu3 }
0x1f0c   :  { %v8587_v45 = vadd.f32 %v8586_v60, %v8554_v54 }
0x1f0e   :  { %v8590_v46 = vmax.f32 %v8587_v45, 0.0 }
0x1f10   :  { %v8591_v14 = vpack.c.bf16 %v8590_v46, %v8590_v46 }
0x1f12   :  { %9642 = vmatmul.msk.bf16.vlgmr.msra.gmra.mxu3 %vm8601_vm11, %v8591_v14 }
0x1f13   :  { %v8588_v20 = vpop.f32.mrf.mxu3 }
0x1f95   :  { %v8614_v50 = vpop.f32.mrf.mxu3 }
0x1f96   :  { %v8615_v42 = vadd.f32 %v8614_v50, %v8594_v30 }
0x1f98   :  { %v8618_v21 = vmax.f32 %v8615_v42, 0.0 }
0x1f9a   :  { %v8619_v1 = vpack.c.bf16 %v8618_v21, %v8618_v21 }
0x1f9c   :  { %9643 = vmatmul.msk.bf16.vlgmr.msra.gmra.mxu0 %vm231_vm1, %v8619_v1 }
0x1f9d   :  { %v8616_v31 = vpop.f32.mrf.mxu3 }
0x2019   :  { %v8637_v57 = vpop.f32.mrf.mxu0 }
0x201a   :  { %v8638_v5 = vadd.f32 %v8637_v57, %v8621_v33 }
0x201c   :  { %8642 = vst.msk [vmem:[#allocation2] sm:$0x3] %vm8641_vm0, %v8638_v5 }
0x201d   :  { %8653 = dma.vmem_to_hbm [thread:$0]  %s8649_s4, 32, %s8651_s20, [#allocation3]  }
0x2021   :  { %v8639_v19 = vpop.f32.mrf.mxu0 }
0x2022   :  { %10833 = dma.done.wait [#allocation3], 32  }
0x2023   :  { %10834 = vsyncadd [#allocation3], 4294967264 }
0x2024   :  { %8658 = vsyncpa [#allocation3], 1 }

</bundles_post_ra>
